<compile_context>
chip_gen: v7x
topology: tpu7x:2x2x1
jax: 0.10.0
libtpu: 0.0.40
codegen_flags: <defaults>
</compile_context>

<pallas_src>
import math
from functools import partial

import jax
import jax.numpy as jnp
import numpy as np
from jax.experimental import pallas as pl
from jax.experimental.pallas import tpu as pltpu

_LANE = 128
_MAX_PIXELS_PER_STEP = 16384          # keep in-kernel relayouts/temporaries sane


def _round_up(x, m):
    return (x + m - 1) // m * m


def _pad2(a, rows, cols):
    return jnp.pad(a, ((0, rows - a.shape[0]), (0, cols - a.shape[1])))


_VMEM_CAP_CACHE = None


def _vmem_capacity_bytes():
    """Physical per-core VMEM (bytes); conservative 64 MiB fallback (v7x)."""
    global _VMEM_CAP_CACHE
    if _VMEM_CAP_CACHE is None:
        cap = 64 * 1024 * 1024
        try:
            info = pltpu.get_tpu_info()
            cap = int(getattr(info, "vmem_capacity_bytes", cap)) or cap
        except Exception:
            pass
        _VMEM_CAP_CACHE = cap
    return _VMEM_CAP_CACHE


def _per_step_vmem_bytes(tb, H, W, cin_p, cmid_p, cexp_p, mm_bytes, first):
    """Rough per-grid-step VMEM footprint used to pick the batch tile."""
    mt = tb * H * W
    f32 = 4
    act_io = 2 * mt * (cin_p + cexp_p) * f32            # double-buffered x / out tiles
    k_w3 = cmid_p + (cin_p if first else 0)
    w_bytes = (cin_p * cmid_p + 9 * cmid_p * cmid_p + k_w3 * cexp_p) * mm_bytes \
        + 2 * cmid_p * f32
    weights = 2 * w_bytes                                # assume double-buffered blocks
    scratch = (tb * (H + 2) * (W + 2) * cmid_p + mt * 9 * cmid_p) * mm_bytes
    temps = mt * (4 * cmid_p + cexp_p) * f32             # y/d/z/h/out f32 temporaries
    return act_io + weights + scratch + temps


# ---------------------------------------------------------------------------
# Fused Pallas kernel: conv1(1x1) + LayerNorm + conv2(3x3 via im2col) + GELU
# + conv3(1x1) fused with the residual (projection or identity).
# ---------------------------------------------------------------------------

def _make_bottleneck_kernel(*, tb, H, W, c_mid_real, eps, first, mm_dtype,
                            gelu_approx):
    inv_c = 1.0 / float(c_mid_real)
    inv_sqrt2 = 1.0 / math.sqrt(2.0)
    mt = tb * H * W

    def kernel(x_ref, w1_ref, g_ref, b_ref, w2_ref, w3_ref, o_ref,
               ypad_ref, col_ref):
        c = ypad_ref.shape[-1]                 # cmid_p (lane-padded)

        x = x_ref[...]                         # (mt, cin_p) f32
        x_mm = x.astype(mm_dtype)

        # ---- conv1 (1x1) + channels_first LayerNorm over the REAL Cmid ----
        y = jnp.dot(x_mm, w1_ref[...], preferred_element_type=jnp.float32)
        # padded lanes of y are exactly zero (zero-padded weight columns).
        lane = jax.lax.broadcasted_iota(jnp.int32, (1, c), 1)
        real = lane < c_mid_real
        mu = jnp.sum(y, axis=-1, keepdims=True) * inv_c
        d = jnp.where(real, y - mu, 0.0)               # exact two-pass variance
        var = jnp.sum(d * d, axis=-1, keepdims=True) * inv_c
        yln = d * jax.lax.rsqrt(var + eps) * g_ref[...] + b_ref[...]

        # ---- stage spatially padded activation in VMEM for the 3x3 conv.
        # Only the thin halo border is (re)zeroed; the interior is fully
        # overwritten every step, so no full-scratch memset is needed.
        zrow = jnp.zeros((tb, 1, W + 2, c), ypad_ref.dtype)
        zcol = jnp.zeros((tb, H + 2, 1, c), ypad_ref.dtype)
        ypad_ref[:, 0:1, :, :] = zrow
        ypad_ref[:, H + 1:H + 2, :, :] = zrow
        ypad_ref[:, :, 0:1, :] = zcol
        ypad_ref[:, :, W + 1:W + 2, :] = zcol
        ypad_ref[:, 1:H + 1, 1:W + 1, :] = (
            yln.reshape(tb, H, W, c).astype(ypad_ref.dtype))

        # ---- conv2 (3x3, pad=1): in-VMEM im2col -> ONE matmul with K=9*c ----
        for kh in range(3):
            for kw in range(3):
                tap = kh * 3 + kw
                col_ref[:, tap * c:(tap + 1) * c] = (
                    ypad_ref[:, kh:kh + H, kw:kw + W, :].reshape(mt, c))
        z = jnp.dot(col_ref[...], w2_ref[...], preferred_element_type=jnp.float32)

        # ---- GELU ----
        if gelu_approx:
            h = 0.5 * z * (1.0 + jnp.tanh(
                0.7978845608028654 * (z + 0.044715 * z * z * z)))
        else:
            h = 0.5 * z * (1.0 + jax.lax.erf(z * inv_sqrt2))

        # ---- conv3 (1x1 expansion) + residual ----
        if first:
            # projection skip fused into the same matmul: K = cmid_p + cin_p
            hx = jnp.concatenate([h.astype(mm_dtype), x_mm], axis=-1)
            out = jnp.dot(hx, w3_ref[...], preferred_element_type=jnp.float32)
        else:
            out = jnp.dot(h.astype(mm_dtype), w3_ref[...],
                          preferred_element_type=jnp.float32) + x
        o_ref[...] = out

    return kernel


# ---------------------------------------------------------------------------
# Wrapper: layout plumbing (NCHW<->NHWC, channel padding, weight reshapes)
# ---------------------------------------------------------------------------

def bottleneck_forward(x_nchw, params, *, first, eps=1e-6, tile_batch=None,
                       matmul_dtype=jnp.float32, gelu_approx=False):
    """x_nchw: (N, Cin, H, W) f32 -> (N, 4*Cout, H, W) f32."""
    N, Cin, H, W = x_nchw.shape
    w1 = params["conv1"]          # (Cmid, Cin, 1, 1)
    gamma = params["ln_gamma"]    # (Cmid,)
    beta = params["ln_beta"]      # (Cmid,)
    w2 = params["conv2"]          # (Cmid, Cmid, 3, 3)
    w3 = params["conv3"]          # (Cexp, Cmid, 1, 1)
    Cmid = w1.shape[0]
    Cexp = w3.shape[0]

    if not first:
        assert Cin == Cexp, "identity residual requires in_channels == 4*out_channels"

    cin_p = _round_up(Cin, _LANE)
    cmid_p = _round_up(Cmid, _LANE)
    cexp_p = _round_up(Cexp, _LANE)
    mm_dtype = jnp.dtype(matmul_dtype)
    mm_bytes = mm_dtype.itemsize

    vmem_cap = _vmem_capacity_bytes()
    # Leave headroom for Mosaic internal scratch (48 MiB on v7x, ~96 MiB on
    # 128 MiB parts).
    vmem_limit = max(min(vmem_cap * 3 // 4, vmem_cap - 8 * 1024 * 1024),
                     32 * 1024 * 1024)

    # Batch tile: largest divisor of N whose per-step footprint fits the VMEM
    # budget (generation-aware instead of a fixed pixel heuristic).
    # TODO(synk): on v7x prefer an even number of grid steps so both
    # TensorCores stay busy.
    if tile_batch is None:
        budget = int(vmem_cap * 0.6)
        tile_batch = 1
        for d in range(1, N + 1):
            if N % d or d * H * W > _MAX_PIXELS_PER_STEP:
                continue
            if _per_step_vmem_bytes(d, H, W, cin_p, cmid_p, cexp_p,
                                    mm_bytes, first) <= budget:
                tile_batch = d
    assert N % tile_batch == 0, "tile_batch must divide N"
    tb = tile_batch
    grid = (N // tb,)
    mt = tb * H * W
    M = N * H * W

    # ---- weights -> lane-dense matmul layouts (zero-padded channels) ----
    w1_mat = _pad2(w1.reshape(Cmid, Cin).T, cin_p, cmid_p).astype(mm_dtype)
    # conv2 taps stacked along K in (kh, kw, ci) order to match the im2col.
    w2_taps = jnp.transpose(w2, (2, 3, 1, 0)).reshape(9, Cmid, Cmid)
    w2_mat = jnp.pad(w2_taps, ((0, 0), (0, cmid_p - Cmid), (0, cmid_p - Cmid)))
    w2_mat = w2_mat.reshape(9 * cmid_p, cmid_p).astype(mm_dtype)
    w3_mat = _pad2(w3.reshape(Cexp, Cmid).T, cmid_p, cexp_p)
    if first:
        wskip = params["conv_skip"]  # (Cexp, Cin, 1, 1)
        wskip_mat = _pad2(wskip.reshape(Cexp, Cin).T, cin_p, cexp_p)
        w3_mat = jnp.concatenate([w3_mat, wskip_mat], axis=0)  # (cmid_p+cin_p, cexp_p)
    w3_mat = w3_mat.astype(mm_dtype)
    gamma_p = jnp.pad(gamma.reshape(1, Cmid), ((0, 0), (0, cmid_p - Cmid)))
    beta_p = jnp.pad(beta.reshape(1, Cmid), ((0, 0), (0, cmid_p - Cmid)))

    # ---- activations: NCHW -> NHWC -> (M, Cin) -> lane-padded (only if needed)
    # TODO(synk): in a full network keep activations NHWC / channel-padded end
    # to end so these XLA-side transposes/pads (extra HBM round trips) vanish.
    x_flat = jnp.transpose(x_nchw, (0, 2, 3, 1)).reshape(M, Cin)
    x_p = x_flat if cin_p == Cin else jnp.pad(x_flat, ((0, 0), (0, cin_p - Cin)))

    k_w3 = cmid_p + cin_p if first else cmid_p
    in_specs = [
        pl.BlockSpec((mt, cin_p), lambda i: (i, 0)),
        pl.BlockSpec((cin_p, cmid_p), lambda i: (0, 0)),
        pl.BlockSpec((1, cmid_p), lambda i: (0, 0)),
        pl.BlockSpec((1, cmid_p), lambda i: (0, 0)),
        pl.BlockSpec((9 * cmid_p, cmid_p), lambda i: (0, 0)),
        pl.BlockSpec((k_w3, cexp_p), lambda i: (0, 0)),
    ]

    kernel = _make_bottleneck_kernel(tb=tb, H=H, W=W, c_mid_real=Cmid, eps=eps,
                                     first=first, mm_dtype=mm_dtype,
                                     gelu_approx=gelu_approx)

    out2d = pl.pallas_call(
        kernel,
        out_shape=jax.ShapeDtypeStruct((M, cexp_p), jnp.float32),
        grid_spec=pltpu.PrefetchScalarGridSpec(
            num_scalar_prefetch=0,
            grid=grid,
            in_specs=in_specs,
            out_specs=pl.BlockSpec((mt, cexp_p), lambda i: (i, 0)),
            scratch_shapes=[
                pltpu.VMEM((tb, H + 2, W + 2, cmid_p), mm_dtype),   # halo buffer
                pltpu.VMEM((mt, 9 * cmid_p), mm_dtype),             # im2col slab
            ],
        ),
        compiler_params=pltpu.CompilerParams(
            dimension_semantics=("parallel",),
            vmem_limit_bytes=int(vmem_limit),
        ),
    )(x_p, w1_mat, gamma_p, beta_p, w2_mat, w3_mat)

    out_trim = out2d if cexp_p == Cexp else out2d[:, :Cexp]
    out_nhwc = out_trim.reshape(N, H, W, Cexp)
    return jnp.transpose(out_nhwc, (0, 3, 1, 2))  # back to NCHW
    # TODO(synk): DropPath with drop_path > 0 (stochastic depth) is not
    # implemented; the module instantiates nn.Identity() for drop_path=0.


# ---------------------------------------------------------------------------
# Pure-JAX reference (lax convs) for correctness check
# ---------------------------------------------------------------------------

def bottleneck_reference(x, params, *, first, eps=1e-6):
    dn = ("NCHW", "OIHW", "NCHW")
    conv = lambda a, w, pad: jax.lax.conv_general_dilated(
        a, w, (1, 1), pad, dimension_numbers=dn)
    identity = conv(x, params["conv_skip"], "VALID") if first else x
    y = conv(x, params["conv1"], "VALID")
    u = y.mean(1, keepdims=True)
    s = ((y - u) ** 2).mean(1, keepdims=True)
    y = (y - u) / jnp.sqrt(s + eps)
    y = params["ln_gamma"][None, :, None, None] * y + params["ln_beta"][None, :, None, None]
    y = conv(y, params["conv2"], ((1, 1), (1, 1)))
    y = jax.nn.gelu(y, approximate=False)
    y = conv(y, params["conv3"], "VALID")
    return y + identity


# ---------------------------------------------------------------------------
# Main
# ---------------------------------------------------------------------------

if __name__ == "__main__":
    key = jax.random.PRNGKey(0)

    def make_params(k, Cin, Cout, first):
        Cexp = 4 * Cout
        ks = jax.random.split(k, 4)
        p = {
            "conv1": 0.1 * jax.random.normal(ks[0], (Cout, Cin, 1, 1), jnp.float32),
            "ln_gamma": jnp.ones((Cout,), jnp.float32),
            "ln_beta": jnp.zeros((Cout,), jnp.float32),
            "conv2": 0.1 * jax.random.normal(ks[1], (Cout, Cout, 3, 3), jnp.float32),
            "conv3": 0.1 * jax.random.normal(ks[2], (Cexp, Cout, 1, 1), jnp.float32),
        }
        if first:
            p["conv_skip"] = 0.1 * jax.random.normal(ks[3], (Cexp, Cin, 1, 1), jnp.float32)
        return p

    k1, k2, k3, k4 = jax.random.split(key, 4)

    # Case 1: first=True (projection skip fused into conv3); grid of 2 batch tiles.
    N, Cin, H, W, Cout = 4, 16, 16, 16, 8
    x = jax.random.normal(k1, (N, Cin, H, W), jnp.float32)
    params = make_params(k2, Cin, Cout, True)
    fwd = jax.jit(partial(bottleneck_forward, first=True, tile_batch=2))
    out = jax.block_until_ready(fwd(x, params))
    ref = jax.block_until_ready(bottleneck_reference(x, params, first=True))
    assert out.shape == (N, 4 * Cout, H, W), out.shape
    np.testing.assert_allclose(np.asarray(out), np.asarray(ref), rtol=1e-4, atol=1e-4)

    # Case 2: first=False (identity skip, Cin == 4*Cout); auto VMEM-aware tiling.
    N2, Cin2, H2, W2, Cout2 = 2, 32, 8, 8, 8
    x2 = jax.random.normal(k3, (N2, Cin2, H2, W2), jnp.float32)
    params2 = make_params(k4, Cin2, Cout2, False)
    fwd2 = jax.jit(partial(bottleneck_forward, first=False, tile_batch=None))
    out2 = jax.block_until_ready(fwd2(x2, params2))
    ref2 = jax.block_until_ready(bottleneck_reference(x2, params2, first=False))
    assert out2.shape == (N2, 4 * Cout2, H2, W2), out2.shape
    np.testing.assert_allclose(np.asarray(out2), np.asarray(ref2), rtol=1e-4, atol=1e-4)

    # Case 3: bf16 MXU operands (v6e/v7x fast path, bf16 scratch), f32 accumulation.
    fwd_bf16 = jax.jit(partial(bottleneck_forward, first=True, tile_batch=2,
                               matmul_dtype=jnp.bfloat16))
    out_bf = jax.block_until_ready(fwd_bf16(x, params))
    np.testing.assert_allclose(np.asarray(out_bf), np.asarray(ref), rtol=1e-1, atol=1e-1)

    print("KERNEL_OK")
</pallas_src>

<mosaic_0001>
module attributes {stable_mosaic.version = 11 : i64} {
  func.func @kernel(%arg0: i32, %arg1: memref<512x128xf32, #tpu.memory_space<vmem>>, %arg2: memref<128x128xf32, #tpu.memory_space<vmem>>, %arg3: memref<1x128xf32, #tpu.memory_space<vmem>>, %arg4: memref<1x128xf32, #tpu.memory_space<vmem>>, %arg5: memref<1152x128xf32, #tpu.memory_space<vmem>>, %arg6: memref<256x128xf32, #tpu.memory_space<vmem>>, %arg7: memref<512x128xf32, #tpu.memory_space<vmem>>, %arg8: memref<2x18x18x128xf32, #tpu.memory_space<vmem>>, %arg9: memref<512x1152xf32, #tpu.memory_space<vmem>>) attributes {dimension_semantics = [#tpu.dimension_semantics<parallel>], iteration_bounds = array<i64: 2>, scalar_prefetch = 0 : i64, scratch_operands = 2 : i64, tpu.core_type = #tpu.core_type<tc>, window_params = [{transform_indices = @transform_0, window_bounds = array<i64: 512, 128>}, {pipeline_mode = #tpu.pipeline_mode<synchronous>, transform_indices = @transform_1, window_bounds = array<i64: 128, 128>}, {pipeline_mode = #tpu.pipeline_mode<synchronous>, transform_indices = @transform_2, window_bounds = array<i64: 1, 128>}, {pipeline_mode = #tpu.pipeline_mode<synchronous>, transform_indices = @transform_3, window_bounds = array<i64: 1, 128>}, {pipeline_mode = #tpu.pipeline_mode<synchronous>, transform_indices = @transform_4, window_bounds = array<i64: 1152, 128>}, {pipeline_mode = #tpu.pipeline_mode<synchronous>, transform_indices = @transform_5, window_bounds = array<i64: 256, 128>}, {transform_indices = @transform_6, window_bounds = array<i64: 512, 128>}]} {
    %c0 = arith.constant 0 : index
    %c0_0 = arith.constant 0 : index
    %0 = vector.load %arg1[%c0, %c0_0] : memref<512x128xf32, #tpu.memory_space<vmem>>, vector<512x128xf32>
    %c0_1 = arith.constant 0 : index
    %c0_2 = arith.constant 0 : index
    %1 = vector.load %arg2[%c0_1, %c0_2] : memref<128x128xf32, #tpu.memory_space<vmem>>, vector<128x128xf32>
    %cst = arith.constant dense<0.000000e+00> : vector<512x128xf32>
    %2 = tpu.matmul %0, %1, %cst {dimension_numbers = #tpu.dot_dimension_numbers<[1], [0], [0], [1], [0, 0, 1, 1], [], []>} : vector<512x128xf32>, vector<128x128xf32>, vector<512x128xf32> -> vector<512x128xf32>
    %3 = tpu.iota {dimensions = array<i32: 1>} : vector<1x128xi32>
    %c8_i32 = arith.constant 8 : i32
    %4 = vector.broadcast %c8_i32 : i32 to vector<1x128xi32>
    %5 = arith.cmpi slt, %3, %4 : vector<1x128xi32>
    %cst_3 = arith.constant dense<0.000000e+00> : vector<512xf32>
    %6 = vector.multi_reduction <add>, %2, %cst_3 [1] : vector<512x128xf32> to vector<512xf32>
    %7 = vector.shape_cast %6 : vector<512xf32> to vector<512x1xf32>
    %cst_4 = arith.constant 1.250000e-01 : f32
    %8 = vector.broadcast %cst_4 : f32 to vector<512x1xf32>
    %9 = arith.mulf %7, %8 : vector<512x1xf32>
    %10 = vector.broadcast %9 : vector<512x1xf32> to vector<512x128xf32>
    %11 = arith.subf %2, %10 : vector<512x128xf32>
    %cst_5 = arith.constant 0.000000e+00 : f32
    %12 = vector.shape_cast %5 : vector<1x128xi1> to vector<1x128xi1>
    %13 = vector.broadcast %12 : vector<1x128xi1> to vector<512x128xi1>
    %14 = vector.broadcast %cst_5 : f32 to vector<512x128xf32>
    %15 = arith.select %13, %11, %14 : vector<512x128xi1>, vector<512x128xf32>
    %16 = arith.mulf %15, %15 : vector<512x128xf32>
    %cst_6 = arith.constant dense<0.000000e+00> : vector<512xf32>
    %17 = vector.multi_reduction <add>, %16, %cst_6 [1] : vector<512x128xf32> to vector<512xf32>
    %18 = vector.shape_cast %17 : vector<512xf32> to vector<512x1xf32>
    %cst_7 = arith.constant 1.250000e-01 : f32
    %19 = vector.broadcast %cst_7 : f32 to vector<512x1xf32>
    %20 = arith.mulf %18, %19 : vector<512x1xf32>
    %cst_8 = arith.constant 9.99999997E-7 : f32
    %21 = vector.broadcast %cst_8 : f32 to vector<512x1xf32>
    %22 = arith.addf %20, %21 : vector<512x1xf32>
    %23 = math.rsqrt %22 : vector<512x1xf32>
    %24 = vector.broadcast %23 : vector<512x1xf32> to vector<512x128xf32>
    %25 = arith.mulf %15, %24 : vector<512x128xf32>
    %c0_9 = arith.constant 0 : index
    %c0_10 = arith.constant 0 : index
    %26 = vector.load %arg3[%c0_9, %c0_10] : memref<1x128xf32, #tpu.memory_space<vmem>>, vector<1x128xf32>
    %27 = vector.broadcast %26 : vector<1x128xf32> to vector<512x128xf32>
    %28 = arith.mulf %25, %27 : vector<512x128xf32>
    %c0_11 = arith.constant 0 : index
    %c0_12 = arith.constant 0 : index
    %29 = vector.load %arg4[%c0_11, %c0_12] : memref<1x128xf32, #tpu.memory_space<vmem>>, vector<1x128xf32>
    %30 = vector.broadcast %29 : vector<1x128xf32> to vector<512x128xf32>
    %31 = arith.addf %28, %30 : vector<512x128xf32>
    %cst_13 = arith.constant 0.000000e+00 : f32
    %32 = vector.broadcast %cst_13 : f32 to vector<2x1x18x128xf32>
    %cst_14 = arith.constant 0.000000e+00 : f32
    %33 = vector.broadcast %cst_14 : f32 to vector<2x18x1x128xf32>
    %c0_15 = arith.constant 0 : index
    %c0_16 = arith.constant 0 : index
    %c0_17 = arith.constant 0 : index
    %c0_18 = arith.constant 0 : index
    %34 = vector.load %arg8[%c0_15, %c0_16, %c0_17, %c0_18] : memref<2x18x18x128xf32, #tpu.memory_space<vmem>>, vector<2x1x18x128xf32>
    tpu.vector_store %arg8[%c0_15, %c0_16, %c0_17, %c0_18], %32 {strides = array<i32>} : memref<2x18x18x128xf32, #tpu.memory_space<vmem>>, vector<2x1x18x128xf32>,
    %c0_19 = arith.constant 0 : index
    %c17 = arith.constant 17 : index
    %c0_20 = arith.constant 0 : index
    %c0_21 = arith.constant 0 : index
    %35 = vector.load %arg8[%c0_19, %c17, %c0_20, %c0_21] : memref<2x18x18x128xf32, #tpu.memory_space<vmem>>, vector<2x1x18x128xf32>
    tpu.vector_store %arg8[%c0_19, %c17, %c0_20, %c0_21], %32 {strides = array<i32>} : memref<2x18x18x128xf32, #tpu.memory_space<vmem>>, vector<2x1x18x128xf32>,
    %c0_22 = arith.constant 0 : index
    %c0_23 = arith.constant 0 : index
    %c0_24 = arith.constant 0 : index
    %c0_25 = arith.constant 0 : index
    %36 = vector.load %arg8[%c0_22, %c0_23, %c0_24, %c0_25] : memref<2x18x18x128xf32, #tpu.memory_space<vmem>>, vector<2x18x1x128xf32>
    tpu.vector_store %arg8[%c0_22, %c0_23, %c0_24, %c0_25], %33 {strides = array<i32>} : memref<2x18x18x128xf32, #tpu.memory_space<vmem>>, vector<2x18x1x128xf32>,
    %c0_26 = arith.constant 0 : index
    %c0_27 = arith.constant 0 : index
    %c17_28 = arith.constant 17 : index
    %c0_29 = arith.constant 0 : index
    %37 = vector.load %arg8[%c0_26, %c0_27, %c17_28, %c0_29] : memref<2x18x18x128xf32, #tpu.memory_space<vmem>>, vector<2x18x1x128xf32>
    tpu.vector_store %arg8[%c0_26, %c0_27, %c17_28, %c0_29], %33 {strides = array<i32>} : memref<2x18x18x128xf32, #tpu.memory_space<vmem>>, vector<2x18x1x128xf32>,
    %38 = vector.shape_cast %31 : vector<512x128xf32> to vector<2x16x16x128xf32>
    %c0_30 = arith.constant 0 : index
    %c1 = arith.constant 1 : index
    %c1_31 = arith.constant 1 : index
    %c0_32 = arith.constant 0 : index
    %39 = vector.load %arg8[%c0_30, %c1, %c1_31, %c0_32] : memref<2x18x18x128xf32, #tpu.memory_space<vmem>>, vector<2x16x16x128xf32>
    tpu.vector_store %arg8[%c0_30, %c1, %c1_31, %c0_32], %38 {strides = array<i32>} : memref<2x18x18x128xf32, #tpu.memory_space<vmem>>, vector<2x16x16x128xf32>,
    %c0_33 = arith.constant 0 : index
    %c0_34 = arith.constant 0 : index
    %c0_35 = arith.constant 0 : index
    %c0_36 = arith.constant 0 : index
    %40 = vector.load %arg8[%c0_33, %c0_34, %c0_35, %c0_36] : memref<2x18x18x128xf32, #tpu.memory_space<vmem>>, vector<2x16x16x128xf32>
    %41 = vector.shape_cast %40 : vector<2x16x16x128xf32> to vector<512x128xf32>
    %c0_37 = arith.constant 0 : index
    %c0_38 = arith.constant 0 : index
    %42 = vector.load %arg9[%c0_37, %c0_38] : memref<512x1152xf32, #tpu.memory_space<vmem>>, vector<512x128xf32>
    tpu.vector_store %arg9[%c0_37, %c0_38], %41 {strides = array<i32>} : memref<512x1152xf32, #tpu.memory_space<vmem>>, vector<512x128xf32>,
    %c0_39 = arith.constant 0 : index
    %c0_40 = arith.constant 0 : index
    %c1_41 = arith.constant 1 : index
    %c0_42 = arith.constant 0 : index
    %43 = vector.load %arg8[%c0_39, %c0_40, %c1_41, %c0_42] : memref<2x18x18x128xf32, #tpu.memory_space<vmem>>, vector<2x16x16x128xf32>
    %44 = vector.shape_cast %43 : vector<2x16x16x128xf32> to vector<512x128xf32>
    %c0_43 = arith.constant 0 : index
    %c128 = arith.constant 128 : index
    %45 = vector.load %arg9[%c0_43, %c128] : memref<512x1152xf32, #tpu.memory_space<vmem>>, vector<512x128xf32>
    tpu.vector_store %arg9[%c0_43, %c128], %44 {strides = array<i32>} : memref<512x1152xf32, #tpu.memory_space<vmem>>, vector<512x128xf32>,
    %c0_44 = arith.constant 0 : index
    %c0_45 = arith.constant 0 : index
    %c2 = arith.constant 2 : index
    %c0_46 = arith.constant 0 : index
    %46 = vector.load %arg8[%c0_44, %c0_45, %c2, %c0_46] : memref<2x18x18x128xf32, #tpu.memory_space<vmem>>, vector<2x16x16x128xf32>
    %47 = vector.shape_cast %46 : vector<2x16x16x128xf32> to vector<512x128xf32>
    %c0_47 = arith.constant 0 : index
    %c256 = arith.constant 256 : index
    %48 = vector.load %arg9[%c0_47, %c256] : memref<512x1152xf32, #tpu.memory_space<vmem>>, vector<512x128xf32>
    tpu.vector_store %arg9[%c0_47, %c256], %47 {strides = array<i32>} : memref<512x1152xf32, #tpu.memory_space<vmem>>, vector<512x128xf32>,
    %c0_48 = arith.constant 0 : index
    %c1_49 = arith.constant 1 : index
    %c0_50 = arith.constant 0 : index
    %c0_51 = arith.constant 0 : index
    %49 = vector.load %arg8[%c0_48, %c1_49, %c0_50, %c0_51] : memref<2x18x18x128xf32, #tpu.memory_space<vmem>>, vector<2x16x16x128xf32>
    %50 = vector.shape_cast %49 : vector<2x16x16x128xf32> to vector<512x128xf32>
    %c0_52 = arith.constant 0 : index
    %c384 = arith.constant 384 : index
    %51 = vector.load %arg9[%c0_52, %c384] : memref<512x1152xf32, #tpu.memory_space<vmem>>, vector<512x128xf32>
    tpu.vector_store %arg9[%c0_52, %c384], %50 {strides = array<i32>} : memref<512x1152xf32, #tpu.memory_space<vmem>>, vector<512x128xf32>,
    %c0_53 = arith.constant 0 : index
    %c1_54 = arith.constant 1 : index
    %c1_55 = arith.constant 1 : index
    %c0_56 = arith.constant 0 : index
    %52 = vector.load %arg8[%c0_53, %c1_54, %c1_55, %c0_56] : memref<2x18x18x128xf32, #tpu.memory_space<vmem>>, vector<2x16x16x128xf32>
    %53 = vector.shape_cast %52 : vector<2x16x16x128xf32> to vector<512x128xf32>
    %c0_57 = arith.constant 0 : index
    %c512 = arith.constant 512 : index
    %54 = vector.load %arg9[%c0_57, %c512] : memref<512x1152xf32, #tpu.memory_space<vmem>>, vector<512x128xf32>
    tpu.vector_store %arg9[%c0_57, %c512], %53 {strides = array<i32>} : memref<512x1152xf32, #tpu.memory_space<vmem>>, vector<512x128xf32>,
    %c0_58 = arith.constant 0 : index
    %c1_59 = arith.constant 1 : index
    %c2_60 = arith.constant 2 : index
    %c0_61 = arith.constant 0 : index
    %55 = vector.load %arg8[%c0_58, %c1_59, %c2_60, %c0_61] : memref<2x18x18x128xf32, #tpu.memory_space<vmem>>, vector<2x16x16x128xf32>
    %56 = vector.shape_cast %55 : vector<2x16x16x128xf32> to vector<512x128xf32>
    %c0_62 = arith.constant 0 : index
    %c640 = arith.constant 640 : index
    %57 = vector.load %arg9[%c0_62, %c640] : memref<512x1152xf32, #tpu.memory_space<vmem>>, vector<512x128xf32>
    tpu.vector_store %arg9[%c0_62, %c640], %56 {strides = array<i32>} : memref<512x1152xf32, #tpu.memory_space<vmem>>, vector<512x128xf32>,
    %c0_63 = arith.constant 0 : index
    %c2_64 = arith.constant 2 : index
    %c0_65 = arith.constant 0 : index
    %c0_66 = arith.constant 0 : index
    %58 = vector.load %arg8[%c0_63, %c2_64, %c0_65, %c0_66] : memref<2x18x18x128xf32, #tpu.memory_space<vmem>>, vector<2x16x16x128xf32>
    %59 = vector.shape_cast %58 : vector<2x16x16x128xf32> to vector<512x128xf32>
    %c0_67 = arith.constant 0 : index
    %c768 = arith.constant 768 : index
    %60 = vector.load %arg9[%c0_67, %c768] : memref<512x1152xf32, #tpu.memory_space<vmem>>, vector<512x128xf32>
    tpu.vector_store %arg9[%c0_67, %c768], %59 {strides = array<i32>} : memref<512x1152xf32, #tpu.memory_space<vmem>>, vector<512x128xf32>,
    %c0_68 = arith.constant 0 : index
    %c2_69 = arith.constant 2 : index
    %c1_70 = arith.constant 1 : index
    %c0_71 = arith.constant 0 : index
    %61 = vector.load %arg8[%c0_68, %c2_69, %c1_70, %c0_71] : memref<2x18x18x128xf32, #tpu.memory_space<vmem>>, vector<2x16x16x128xf32>
    %62 = vector.shape_cast %61 : vector<2x16x16x128xf32> to vector<512x128xf32>
    %c0_72 = arith.constant 0 : index
    %c896 = arith.constant 896 : index
    %63 = vector.load %arg9[%c0_72, %c896] : memref<512x1152xf32, #tpu.memory_space<vmem>>, vector<512x128xf32>
    tpu.vector_store %arg9[%c0_72, %c896], %62 {strides = array<i32>} : memref<512x1152xf32, #tpu.memory_space<vmem>>, vector<512x128xf32>,
    %c0_73 = arith.constant 0 : index
    %c2_74 = arith.constant 2 : index
    %c2_75 = arith.constant 2 : index
    %c0_76 = arith.constant 0 : index
    %64 = vector.load %arg8[%c0_73, %c2_74, %c2_75, %c0_76] : memref<2x18x18x128xf32, #tpu.memory_space<vmem>>, vector<2x16x16x128xf32>
    %65 = vector.shape_cast %64 : vector<2x16x16x128xf32> to vector<512x128xf32>
    %c0_77 = arith.constant 0 : index
    %c1024 = arith.constant 1024 : index
    %66 = vector.load %arg9[%c0_77, %c1024] : memref<512x1152xf32, #tpu.memory_space<vmem>>, vector<512x128xf32>
    tpu.vector_store %arg9[%c0_77, %c1024], %65 {strides = array<i32>} : memref<512x1152xf32, #tpu.memory_space<vmem>>, vector<512x128xf32>,
    %c0_78 = arith.constant 0 : index
    %c0_79 = arith.constant 0 : index
    %67 = vector.load %arg9[%c0_78, %c0_79] : memref<512x1152xf32, #tpu.memory_space<vmem>>, vector<512x1152xf32>
    %c0_80 = arith.constant 0 : index
    %c0_81 = arith.constant 0 : index
    %68 = vector.load %arg5[%c0_80, %c0_81] : memref<1152x128xf32, #tpu.memory_space<vmem>>, vector<1152x128xf32>
    %cst_82 = arith.constant dense<0.000000e+00> : vector<512x128xf32>
    %69 = tpu.matmul %67, %68, %cst_82 {dimension_numbers = #tpu.dot_dimension_numbers<[1], [0], [0], [1], [0, 0, 1, 1], [], []>} : vector<512x1152xf32>, vector<1152x128xf32>, vector<512x128xf32> -> vector<512x128xf32>
    %cst_83 = arith.constant 5.000000e-01 : f32
    %70 = vector.broadcast %cst_83 : f32 to vector<512x128xf32>
    %71 = arith.mulf %70, %69 : vector<512x128xf32>
    %cst_84 = arith.constant 0.707106769 : f32
    %72 = vector.broadcast %cst_84 : f32 to vector<512x128xf32>
    %73 = arith.mulf %69, %72 : vector<512x128xf32>
    %74 = math.erf %73 : vector<512x128xf32>
    %cst_85 = arith.constant 1.000000e+00 : f32
    %75 = vector.broadcast %cst_85 : f32 to vector<512x128xf32>
    %76 = arith.addf %75, %74 : vector<512x128xf32>
    %77 = arith.mulf %71, %76 : vector<512x128xf32>
    %78 = tpu.concatenate %77, %0 in 1 : vector<512x128xf32>, vector<512x128xf32> -> vector<512x256xf32>
    %c0_86 = arith.constant 0 : index
    %c0_87 = arith.constant 0 : index
    %79 = vector.load %arg6[%c0_86, %c0_87] : memref<256x128xf32, #tpu.memory_space<vmem>>, vector<256x128xf32>
    %cst_88 = arith.constant dense<0.000000e+00> : vector<512x128xf32>
    %80 = tpu.matmul %78, %79, %cst_88 {dimension_numbers = #tpu.dot_dimension_numbers<[1], [0], [0], [1], [0, 0, 1, 1], [], []>} : vector<512x256xf32>, vector<256x128xf32>, vector<512x128xf32> -> vector<512x128xf32>
    %c0_89 = arith.constant 0 : index
    %c0_90 = arith.constant 0 : index
    %81 = vector.load %arg7[%c0_89, %c0_90] : memref<512x128xf32, #tpu.memory_space<vmem>>, vector<512x128xf32>
    tpu.vector_store %arg7[%c0_89, %c0_90], %80 {strides = array<i32>} : memref<512x128xf32, #tpu.memory_space<vmem>>, vector<512x128xf32>,
    return
  }
  func.func @transform_0(%arg0: i32) -> (i32, i32) {
    %c0_i32 = arith.constant 0 : i32
    %c0_i32_0 = arith.constant 0 : i32
    return %arg0, %c0_i32 : i32, i32
  }
  func.func @transform_1(%arg0: i32) -> (i32, i32) {
    %c0_i32 = arith.constant 0 : i32
    %c0_i32_0 = arith.constant 0 : i32
    %c0_i32_1 = arith.constant 0 : i32
    return %c0_i32, %c0_i32_0 : i32, i32
  }
  func.func @transform_2(%arg0: i32) -> (i32, i32) {
    %c0_i32 = arith.constant 0 : i32
    %c0_i32_0 = arith.constant 0 : i32
    %c0_i32_1 = arith.constant 0 : i32
    return %c0_i32, %c0_i32_0 : i32, i32
  }
  func.func @transform_3(%arg0: i32) -> (i32, i32) {
    %c0_i32 = arith.constant 0 : i32
    %c0_i32_0 = arith.constant 0 : i32
    %c0_i32_1 = arith.constant 0 : i32
    return %c0_i32, %c0_i32_0 : i32, i32
  }
  func.func @transform_4(%arg0: i32) -> (i32, i32) {
    %c0_i32 = arith.constant 0 : i32
    %c0_i32_0 = arith.constant 0 : i32
    %c0_i32_1 = arith.constant 0 : i32
    return %c0_i32, %c0_i32_0 : i32, i32
  }
  func.func @transform_5(%arg0: i32) -> (i32, i32) {
    %c0_i32 = arith.constant 0 : i32
    %c0_i32_0 = arith.constant 0 : i32
    %c0_i32_1 = arith.constant 0 : i32
    return %c0_i32, %c0_i32_0 : i32, i32
  }
  func.func @transform_6(%arg0: i32) -> (i32, i32) {
    %c0_i32 = arith.constant 0 : i32
    %c0_i32_0 = arith.constant 0 : i32
    return %arg0, %c0_i32 : i32, i32
  }
}

</mosaic_0001>

<bundles_post_ra>
// kernel: bottleneck_forward.1
= control target key start
LH: loop header
LB: loop body
LE: loop exit
PB: predicated region body
PF: predicated region fallthrough
CT: control target
= control target key end

     0   :  { %11 = vsyncpa [#allocation5], 0  ;;  %s10851_s0 = inlined_call_operand.vmem [shape: f32[1024,128], index: 0, kind: input, shape index: {}]   ;;  %s10852_s1 = inlined_call_operand.vmem [shape: f32[128,128], index: 1, kind: input, shape index: {}]   ;;  %s10853_s2 = inlined_call_operand.vmem [shape: f32[1,128], index: 2, kind: input, shape index: {}]   ;;  %s10854_s3 = inlined_call_operand.vmem [shape: f32[1,128], index: 3, kind: input, shape index: {}]   ;;  %s10855_s4 = inlined_call_operand.vmem [shape: f32[1152,128], index: 4, kind: input, shape index: {}]   ;;  %s10856_s5 = inlined_call_operand.vmem [shape: f32[256,128], index: 5, kind: input, shape index: {}]   ;;  %s10857_s6 = inlined_call_operand.hbm [shape: f32[1024,128], index: 6, kind: output, shape index: {}]  }
   0x1   :  { %13 = vsyncpa [#allocation5 + $0x1], 0  ;;  %s7986_s21 = smov 0   ;;  %s7988_s22 = smov 0  }
   0x2   :  { %s7990_s23 = smov 0   ;;  %s7992_s24 = smov 0  }
   0x3 LB: > { %s8007_s25 = sadd.s32 4294967295, %s7944_s24   ;;  %s6458_s26 = sadd.s32 4294967294, %s7944_s24   ;;  %s7944_s24 = sphi %s7992_s24, %s11220_s24   ;;  %s7940_s23 = sphi %s7990_s23, %s11219_s23   ;;  %s7936_s22 = sphi %s7988_s22, %s11218_s22   ;;  %s7932_s21 = sphi %s7986_s21, %s11217_s21  }
   0x4   : > { %s8011_s27 = sadd.s32 1, %s7944_s24   ;;  %s157_s28 = sadd.s32 1, %s7940_s23 }
   0x5   : > { %s154_s29 = ssub.s32 %s7944_s24, %s8011_s27  ;;  %p167_p0 = scmp.ne.s32.totalorder %s7940_s23, %s7936_s22 }
   0x6   : > { %p155_p1 = scmp.eq.s32.totalorder %s154_s29, 0  ;;  %p168_p2 = scmp.eq.s32.totalorder %s8007_s25, 1 }
   0x7   : > { %p173_p3 = scmp.ne.s32.totalorder %s7936_s22, %s7932_s21  ;;  %p174_p4 = scmp.eq.s32.totalorder %s6458_s26, 1 }
   0x8   : > { %s8022_s30 = scalar_select %p155_p1, %s7940_s23, %s157_s28  }
   0x9   : > { %p8024_p5 = por %p168_p2, %p167_p0  ;;  %p8028_p6 = por %p174_p4, %p173_p3 }
   0xa   : > { %p6461_p7 = scmp.ge.s32.totalorder %s7944_s24, 1  ;;  %p216_p8 = scmp.lt.s32.totalorder %s7944_s24, 3 }
   0xc   : > { %p217_p9 = pnand %p6461_p7, %p216_p8 }
   0xe   : > { %220 = sbr.rel (%p217_p9) target bundleno = 1838 (0x72e), region = 44 }
  0x15   : > { %v317_v0 = vld [vmem:[%s10852_s1] sm:$0xff]  ;;  %v318_v1 = vld [vmem:[%s10852_s1 + $0x8] sm:$0xff]  ;;  %v319_v2 = vld [vmem:[%s10852_s1 + $0x10] sm:$0xff]  ;;  %s6463_s15 = sshll.u32 %s8007_s25, 6  ;;  %s243_s17 = sand.u32 1, %s7936_s22  }
  0x16   : > { %v6889_v3 = vpack.c.bf16 %v318_v1, %v317_v0  ;;  %v320_v4 = vld [vmem:[%s10852_s1 + $0x18] sm:$0xff]  ;;  %p247_p10 = scmp.lt.s32.totalorder %s6463_s15, 127  ;;  %v321_v6 = vld [vmem:[%s10852_s1 + $0x20] sm:$0xff]  ;;  %v322_v7 = vld [vmem:[%s10852_s1 + $0x28] sm:$0xff]  ;;  %s6462_s18 = sshll.u32 %s243_s17, 9 }
  0x17   : > { %v6893_v5 = vpack.c.bf16 %v320_v4, %v319_v2  ;;  %v6897_v8 = vpack.c.bf16 %v322_v7, %v321_v6  ;;  %v323_v9 = vld [vmem:[%s10852_s1 + $0x30] sm:$0xff]  ;;  %v324_v10 = vld [vmem:[%s10852_s1 + $0x38] sm:$0xff]  ;;  %v325_v13 = vld [vmem:[%s10852_s1 + $0x40] sm:$0xff]  ;;  %s10712_s19 = scalar_lea.vmem [#allocation4], %s6462_s18  ;;  %s10810_s9 = scalar_lea.sflag [#allocation5], %s243_s17 }
  0x18   : > { %6890 = vmatprep.subr.bf16.mxu0 %v6889_v3  ;;  %s11222_s15 = smov (!%p247_p10, %s6463_s15), 127  ;;  %v6901_v12 = vpack.c.bf16 %v324_v10, %v323_v9  ;;  %v326_v14 = vld [vmem:[%s10852_s1 + $0x48] sm:$0xff]  ;;  %v327_v16 = vld [vmem:[%s10852_s1 + $0x50] sm:$0xff]  ;;  %v328_v17 = vld [vmem:[%s10852_s1 + $0x58] sm:$0xff]  ;;  %s6396_s20 = sshll.u32 %s10712_s19, 4  ;;  %s10805_s20 = int_to_ptr.vmem [resolvable:$true] %s6396_s20 }
  0x19   : > { %6892 = vmatpush3.bf16.msra.mxu0 %v6889_v3  ;;  %s6464_s28 = sshll.u32 %s11222_s15, 3  ;;  %v6905_v15 = vpack.c.bf16 %v326_v14, %v325_v13  ;;  %v6909_v18 = vpack.c.bf16 %v328_v17, %v327_v16  ;;  %v329_v19 = vld [vmem:[%s10852_s1 + $0x60] sm:$0xff]  ;;  %v330_v20 = vld [vmem:[%s10852_s1 + $0x68] sm:$0xff]  ;;  %v331_v22 = vld [vmem:[%s10852_s1 + $0x70] sm:$0xff]  ;;  %s7948_s10 = smov [#allocation4]  }
  0x1a   : > { %6894 = vmatprep.subr.bf16.mxu0 %v6893_v5  ;;  %s8062_s14 = scalar_lea.vmem %s10851_s0, %s6464_s28  ;;  %v6913_v21 = vpack.c.bf16 %v330_v20, %v329_v19  ;;  %v332_v23 = vld [vmem:[%s10852_s1 + $0x78] sm:$0xff]  ;;  %s7886_s11 = sshll.u32 %s7948_s10, 4  ;;  %s7887_s11 = int_to_ptr.vmem [resolvable:$false] %s7886_s11 }
  0x1b   : > { %v253_v11 = vld [vmem:[%s8062_s14] sm:$0xff]  ;;  %v6917_v24 = vpack.c.bf16 %v332_v23, %v331_v22  ;;  %v254_v25 = vld [vmem:[%s8062_s14 + $0x8] sm:$0xff]  ;;  %v255_v26 = vld [vmem:[%s8062_s14 + $0x10] sm:$0xff]  ;;  %s7888_s12 = scalar_lea.vmem %s7887_s11, 16384  ;;  %p7889_p0 = scmp.lt.s32.totalorder %s10805_s20, %s7887_s11 }
  0x1c   : > { %6665 = vmatprep.mubr.f32.mxu0 %v253_v11  ;;  %v256_v27 = vld [vmem:[%s8062_s14 + $0x18] sm:$0xff]  ;;  %v257_v28 = vld [vmem:[%s8062_s14 + $0x20] sm:$0xff]  ;;  %v258_v29 = vld [vmem:[%s8062_s14 + $0x28] sm:$0xff] }
  0x1d   : > { %6896 = vmatpush3.bf16.msra.mxu0 %v6893_v5  ;;  %v259_v30 = vld [vmem:[%s8062_s14 + $0x30] sm:$0xff]  ;;  %v260_v31 = vld [vmem:[%s8062_s14 + $0x38] sm:$0xff]  ;;  %v261_v32 = vld [vmem:[%s8062_s14 + $0x40] sm:$0xff] }
  0x1e   : > { %6898 = vmatprep.subr.bf16.mxu0 %v6897_v8  ;;  %v262_v33 = vld [vmem:[%s8062_s14 + $0x48] sm:$0xff]  ;;  %v263_v34 = vld [vmem:[%s8062_s14 + $0x50] sm:$0xff]  ;;  %v264_v35 = vld [vmem:[%s8062_s14 + $0x58] sm:$0xff] }
  0x1f   : > { %v265_v36 = vld [vmem:[%s8062_s14 + $0x60] sm:$0xff]  ;;  %v266_v37 = vld [vmem:[%s8062_s14 + $0x68] sm:$0xff]  ;;  %v267_v38 = vld [vmem:[%s8062_s14 + $0x70] sm:$0xff] }
  0x20   : > { %v268_v39 = vld [vmem:[%s8062_s14 + $0x78] sm:$0xff]  ;;  %v269_v40 = vld [vmem:[%s8062_s14 + $0x80] sm:$0xff]  ;;  %v270_v41 = vld [vmem:[%s8062_s14 + $0x88] sm:$0xff] }
  0x21   : > { %6900 = vmatpush3.bf16.msra.mxu0 %v6897_v8  ;;  %v271_v42 = vld [vmem:[%s8062_s14 + $0x90] sm:$0xff]  ;;  %v272_v43 = vld [vmem:[%s8062_s14 + $0x98] sm:$0xff]  ;;  %v273_v44 = vld [vmem:[%s8062_s14 + $0xa0] sm:$0xff] }
  0x22   : > { %6902 = vmatprep.subr.bf16.mxu0 %v6901_v12  ;;  %v274_v45 = vld [vmem:[%s8062_s14 + $0xa8] sm:$0xff]  ;;  %v275_v46 = vld [vmem:[%s8062_s14 + $0xb0] sm:$0xff]  ;;  %v276_v47 = vld [vmem:[%s8062_s14 + $0xb8] sm:$0xff] }
  0x23   : > { %v277_v48 = vld [vmem:[%s8062_s14 + $0xc0] sm:$0xff]  ;;  %v278_v49 = vld [vmem:[%s8062_s14 + $0xc8] sm:$0xff]  ;;  %v279_v50 = vld [vmem:[%s8062_s14 + $0xd0] sm:$0xff] }
  0x24   : > { %v280_v51 = vld [vmem:[%s8062_s14 + $0xd8] sm:$0xff]  ;;  %v281_v52 = vld [vmem:[%s8062_s14 + $0xe0] sm:$0xff]  ;;  %v282_v53 = vld [vmem:[%s8062_s14 + $0xe8] sm:$0xff] }
  0x25   : > { %6904 = vmatpush3.bf16.msra.mxu0 %v6901_v12  ;;  %v283_v54 = vld [vmem:[%s8062_s14 + $0xf0] sm:$0xff]  ;;  %v284_v55 = vld [vmem:[%s8062_s14 + $0xf8] sm:$0xff]  ;;  %v285_v56 = vld [vmem:[%s8062_s14 + $0x100] sm:$0xff] }
  0x26   : > { %6906 = vmatprep.subr.bf16.mxu0 %v6905_v15  ;;  %v286_v57 = vld [vmem:[%s8062_s14 + $0x108] sm:$0xff]  ;;  %v287_v58 = vld [vmem:[%s8062_s14 + $0x110] sm:$0xff]  ;;  %v288_v59 = vld [vmem:[%s8062_s14 + $0x118] sm:$0xff] }
  0x27   : > { %v289_v60 = vld [vmem:[%s8062_s14 + $0x120] sm:$0xff]  ;;  %v290_v61 = vld [vmem:[%s8062_s14 + $0x128] sm:$0xff]  ;;  %v291_v62 = vld [vmem:[%s8062_s14 + $0x130] sm:$0xff] }
  0x28   : > { %v292_v63 = vld [vmem:[%s8062_s14 + $0x138] sm:$0xff]  ;;  %v293_v0 = vld [vmem:[%s8062_s14 + $0x140] sm:$0xff]  ;;  %v294_v1 = vld [vmem:[%s8062_s14 + $0x148] sm:$0xff] }
  0x29   : > { %6908 = vmatpush3.bf16.msra.mxu0 %v6905_v15  ;;  %v295_v2 = vld [vmem:[%s8062_s14 + $0x150] sm:$0xff]  ;;  %v296_v3 = vld [vmem:[%s8062_s14 + $0x158] sm:$0xff]  ;;  %v297_v4 = vld [vmem:[%s8062_s14 + $0x160] sm:$0xff] }
  0x2a   : > { %6910 = vmatprep.subr.bf16.mxu0 %v6909_v18  ;;  %v298_v5 = vld [vmem:[%s8062_s14 + $0x168] sm:$0xff]  ;;  %v299_v6 = vld [vmem:[%s8062_s14 + $0x170] sm:$0xff]  ;;  %v300_v7 = vld [vmem:[%s8062_s14 + $0x178] sm:$0xff] }
  0x2b   : > { %v301_v8 = vld [vmem:[%s8062_s14 + $0x180] sm:$0xff]  ;;  %v302_v9 = vld [vmem:[%s8062_s14 + $0x188] sm:$0xff]  ;;  %v303_v10 = vld [vmem:[%s8062_s14 + $0x190] sm:$0xff] }
  0x2c   : > { %v304_v11 = vld [vmem:[%s8062_s14 + $0x198] sm:$0xff]  ;;  %v305_v12 = vld [vmem:[%s8062_s14 + $0x1a0] sm:$0xff]  ;;  %v306_v13 = vld [vmem:[%s8062_s14 + $0x1a8] sm:$0xff] }
  0x2d   : > { %6912 = vmatpush3.bf16.msra.mxu0 %v6909_v18  ;;  %v307_v14 = vld [vmem:[%s8062_s14 + $0x1b0] sm:$0xff]  ;;  %v308_v15 = vld [vmem:[%s8062_s14 + $0x1b8] sm:$0xff]  ;;  %v309_v16 = vld [vmem:[%s8062_s14 + $0x1c0] sm:$0xff] }
  0x2e   : > { %6914 = vmatprep.subr.bf16.mxu0 %v6913_v21  ;;  %v310_v17 = vld [vmem:[%s8062_s14 + $0x1c8] sm:$0xff]  ;;  %v311_v18 = vld [vmem:[%s8062_s14 + $0x1d0] sm:$0xff]  ;;  %v312_v19 = vld [vmem:[%s8062_s14 + $0x1d8] sm:$0xff] }
  0x2f   : > { %v313_v20 = vld [vmem:[%s8062_s14 + $0x1e0] sm:$0xff]  ;;  %v315_v22 = vld [vmem:[%s8062_s14 + $0x1f0] sm:$0xff]  ;;  %v316_v23 = vld [vmem:[%s8062_s14 + $0x1f8] sm:$0xff] }
  0x31   : > { %6916 = vmatpush3.bf16.msra.mxu0 %v6913_v21  ;;  %v314_v21 = vld [vmem:[%s8062_s14 + $0x1e8] sm:$0xff] }
  0x32   : > { %6918 = vmatprep.subr.bf16.mxu0 %v6917_v24 }
  0x35   : > { %6920 = vmatpush3.bf16.msra.mxu0 %v6917_v24 }
  0x38   : > { %6666 = vmatmul.mubr.f32.vlgmr.msra.gmra.mrb[0].mxu0 %v254_v25 }
  0x39   : > { %6668 = vmatprep.mubr.f32.mxu0 %v255_v26 }
  0x3c   : > { %6669 = vmatmul.mubr.f32.gmra.mrb[2].mxu0 %v256_v27 }
  0x3d   : > { %6671 = vmatprep.mubr.f32.mxu0 %v257_v28 }
  0x40   : > { %6672 = vmatmul.mubr.f32.gmra.mrb[4].mxu0 %v258_v29 }
  0x41   : > { %6674 = vmatprep.mubr.f32.mxu0 %v259_v30 }
  0x44   : > { %6675 = vmatmul.mubr.f32.gmra.mrb[6].mxu0 %v260_v31 }
  0x45   : > { %6677 = vmatprep.mubr.f32.mxu0 %v261_v32 }
  0x48   : > { %6678 = vmatmul.mubr.f32.gmra.mrb[8].mxu0 %v262_v33 }
  0x49   : > { %6680 = vmatprep.mubr.f32.mxu0 %v263_v34 }
  0x4c   : > { %6681 = vmatmul.mubr.f32.gmra.mrb[10].mxu0 %v264_v35 }
  0x4d   : > { %6683 = vmatprep.mubr.f32.mxu0 %v265_v36 }
  0x50   : > { %6684 = vmatmul.mubr.f32.gmra.mrb[12].mxu0 %v266_v37 }
  0x51   : > { %6686 = vmatprep.mubr.f32.mxu0 %v267_v38 }
  0x54   : > { %6687 = vmatmul.mubr.f32.gmra.mrb[14].mxu0 %v268_v39 }
  0x55   : > { %6689 = vmatprep.mubr.f32.mxu0 %v269_v40 }
  0x58   : > { %6690 = vmatmul.mubr.f32.gmra.mrb[16].mxu0 %v270_v41 }
  0x59   : > { %6692 = vmatprep.mubr.f32.mxu0 %v271_v42 }
  0x5c   : > { %6693 = vmatmul.mubr.f32.gmra.mrb[18].mxu0 %v272_v43 }
  0x5d   : > { %6695 = vmatprep.mubr.f32.mxu0 %v273_v44 }
  0x60   : > { %6696 = vmatmul.mubr.f32.gmra.mrb[20].mxu0 %v274_v45 }
  0x61   : > { %6698 = vmatprep.mubr.f32.mxu0 %v275_v46 }
  0x64   : > { %6699 = vmatmul.mubr.f32.gmra.mrb[22].mxu0 %v276_v47 }
  0x65   : > { %6701 = vmatprep.mubr.f32.mxu0 %v277_v48 }
  0x68   : > { %6702 = vmatmul.mubr.f32.gmra.mrb[24].mxu0 %v278_v49 }
  0x69   : > { %6704 = vmatprep.mubr.f32.mxu0 %v279_v50 }
  0x6c   : > { %6705 = vmatmul.mubr.f32.gmra.mrb[26].mxu0 %v280_v51 }
  0x6d   : > { %6707 = vmatprep.mubr.f32.mxu0 %v281_v52 }
  0x70   : > { %6708 = vmatmul.mubr.f32.gmra.mrb[28].mxu0 %v282_v53 }
  0x71   : > { %6710 = vmatprep.mubr.f32.mxu0 %v283_v54 }
  0x74   : > { %6711 = vmatmul.mubr.f32.gmra.mrb[30].mxu0 %v284_v55 }
  0x75   : > { %6713 = vmatprep.mubr.f32.mxu0 %v285_v56 }
  0x78   : > { %6714 = vmatmul.mubr.f32.gmra.mrb[32].mxu0 %v286_v57 }
  0x79   : > { %6716 = vmatprep.mubr.f32.mxu0 %v287_v58 }
  0x7c   : > { %6717 = vmatmul.mubr.f32.gmra.mrb[34].mxu0 %v288_v59 }
  0x7d   : > { %6719 = vmatprep.mubr.f32.mxu0 %v289_v60 }
  0x80   : > { %6720 = vmatmul.mubr.f32.gmra.mrb[36].mxu0 %v290_v61 }
  0x81   : > { %6722 = vmatprep.mubr.f32.mxu0 %v291_v62 }
  0x84   : > { %6723 = vmatmul.mubr.f32.gmra.mrb[38].mxu0 %v292_v63 }
  0x85   : > { %6725 = vmatprep.mubr.f32.mxu0 %v293_v0 }
  0x88   : > { %6726 = vmatmul.mubr.f32.gmra.mrb[40].mxu0 %v294_v1 }
  0x89   : > { %6728 = vmatprep.mubr.f32.mxu0 %v295_v2 }
  0x8c   : > { %6729 = vmatmul.mubr.f32.gmra.mrb[42].mxu0 %v296_v3 }
  0x8d   : > { %6731 = vmatprep.mubr.f32.mxu0 %v297_v4 }
  0x90   : > { %6732 = vmatmul.mubr.f32.gmra.mrb[44].mxu0 %v298_v5 }
  0x91   : > { %6734 = vmatprep.mubr.f32.mxu0 %v299_v6 }
  0x94   : > { %6735 = vmatmul.mubr.f32.gmra.mrb[46].mxu0 %v300_v7 }
  0x95   : > { %6737 = vmatprep.mubr.f32.mxu0 %v301_v8 }
  0x98   : > { %6738 = vmatmul.mubr.f32.gmra.mrb[48].mxu0 %v302_v9 }
  0x99   : > { %6740 = vmatprep.mubr.f32.mxu0 %v303_v10 }
  0x9c   : > { %6741 = vmatmul.mubr.f32.gmra.mrb[50].mxu0 %v304_v11 }
  0x9d   : > { %6743 = vmatprep.mubr.f32.mxu0 %v305_v12 }
  0xa0   : > { %6744 = vmatmul.mubr.f32.gmra.mrb[52].mxu0 %v306_v13 }
  0xa1   : > { %6746 = vmatprep.mubr.f32.mxu0 %v307_v14 }
  0xa4   : > { %6747 = vmatmul.mubr.f32.gmra.mrb[54].mxu0 %v308_v15 }
  0xa5   : > { %6749 = vmatprep.mubr.f32.mxu0 %v309_v16 }
  0xa8   : > { %6750 = vmatmul.mubr.f32.gmra.mrb[56].mxu0 %v310_v17 }
  0xa9   : > { %6752 = vmatprep.mubr.f32.mxu0 %v311_v18  ;;  %v3512_v18 = vld [vmem:[%s10855_s4] sm:$0xff] }
  0xac   : > { %6753 = vmatmul.mubr.f32.gmra.mrb[58].mxu0 %v312_v19  ;;  %v3513_v19 = vld [vmem:[%s10855_s4 + $0x8] sm:$0xff] }
  0xad   : > { %6755 = vmatprep.mubr.f32.mxu0 %v313_v20 }
  0xb0   : > { %6756 = vmatmul.mubr.f32.gmra.mrb[60].mxu0 %v314_v21  ;;  %v6922_v21 = vpack.c.bf16 %v3513_v19, %v3512_v18  ;;  %v3515_v18 = vld [vmem:[%s10855_s4 + $0x18] sm:$0xff] }
  0xb1   : > { %6758 = vmatprep.mubr.f32.mxu0 %v315_v22 }
  0xb4   : > { %6759 = vmatmul.mubr.f32.gmra.mrb[62].mxu0 %v316_v23  ;;  %v10873_v23 = vmov 0.0|0.0  }
  0xb5   : > { %6921 = vmatprep.subr.bf16.mxu0 %v10873_v23  ;;  %6969 = vmatprep.subr.bf16.mxu1 %v10873_v23 }
  0xb6   : > { %6923 = vmatpush1.bf16.msra.mxu0 %v6922_v21  ;;  %v3516_v21 = vld [vmem:[%s10855_s4 + $0x20] sm:$0xff] }
  0xb7   : > { %6924 = vmatprep.subr.bf16.mxu0 %v10873_v23 }
 0x10b   : > { %v8152_v24 = vpop.f32.mrb[0].mxu0 }
 0x10c   : > { %v8154_v25 = vpop.f32.mrb[1].mxu0 }
 0x10d   : > { %721 = vadd.xlane.f32.xlu0 %v8154_v25 }
 0x10f   : > { %v8157_v26 = vpop.f32.mrb[2].mxu0 }
 0x110   : > { %v8159_v27 = vpop.f32.mrb[3].mxu0 }
 0x111   : > { %723 = vadd.xlane.f32.xlu0 %v8152_v24  ;;  %725 = vadd.xlane.f32.xlu1 %v8159_v27 }
 0x113   : > { %v8163_v28 = vpop.f32.mrb[4].mxu0 }
 0x114   : > { %v8165_v29 = vpop.f32.mrb[5].mxu0 }
 0x115   : > { %727 = vadd.xlane.f32.xlu1 %v8157_v26  ;;  %729 = vadd.xlane.f32.xlu0 %v8165_v29 }
 0x117   : > { %v8169_v30 = vpop.f32.mrb[6].mxu0 }
 0x118   : > { %v8171_v31 = vpop.f32.mrb[7].mxu0 }
 0x119   : > { %731 = vadd.xlane.f32.xlu1 %v8163_v28  ;;  %733 = vadd.xlane.f32.xlu0 %v8171_v31 }
 0x11b   : > { %v8175_v32 = vpop.f32.mrb[8].mxu0 }
 0x11c   : > { %v8177_v33 = vpop.f32.mrb[9].mxu0 }
 0x11d   : > { %735 = vadd.xlane.f32.xlu1 %v8169_v30  ;;  %737 = vadd.xlane.f32.xlu0 %v8177_v33 }
 0x11f   : > { %v8181_v34 = vpop.f32.mrb[10].mxu0 }
 0x120   : > { %v8183_v35 = vpop.f32.mrb[11].mxu0 }
 0x121   : > { %739 = vadd.xlane.f32.xlu1 %v8175_v32  ;;  %741 = vadd.xlane.f32.xlu0 %v8183_v35 }
 0x123   : > { %v8187_v36 = vpop.f32.mrb[12].mxu0 }
 0x124   : > { %v8189_v37 = vpop.f32.mrb[13].mxu0 }
 0x125   : > { %743 = vadd.xlane.f32.xlu1 %v8181_v34  ;;  %745 = vadd.xlane.f32.xlu0 %v8189_v37 }
 0x127   : > { %v8193_v38 = vpop.f32.mrb[14].mxu0 }
 0x128   : > { %v8195_v39 = vpop.f32.mrb[15].mxu0 }
 0x129   : > { %747 = vadd.xlane.f32.xlu1 %v8187_v36  ;;  %749 = vadd.xlane.f32.xlu0 %v8195_v39 }
 0x12b   : > { %v8199_v40 = vpop.f32.mrb[16].mxu0 }
 0x12c   : > { %v8201_v41 = vpop.f32.mrb[17].mxu0 }
 0x12d   : > { %751 = vadd.xlane.f32.xlu1 %v8193_v38  ;;  %753 = vadd.xlane.f32.xlu0 %v8201_v41 }
 0x12f   : > { %v8205_v42 = vpop.f32.mrb[18].mxu0 }
 0x130   : > { %v8207_v43 = vpop.f32.mrb[19].mxu0 }
 0x131   : > { %755 = vadd.xlane.f32.xlu1 %v8199_v40  ;;  %757 = vadd.xlane.f32.xlu0 %v8207_v43 }
 0x133   : > { %v8211_v44 = vpop.f32.mrb[20].mxu0 }
 0x134   : > { %v8213_v45 = vpop.f32.mrb[21].mxu0 }
 0x135   : > { %759 = vadd.xlane.f32.xlu1 %v8205_v42 }
 0x137   : > { %v8216_v46 = vpop.f32.mrb[22].mxu0 }
 0x138   : > { %v8218_v47 = vpop.f32.mrb[23].mxu0 }
 0x139   : > { %761 = vadd.xlane.f32.xlu1 %v8213_v45 }
 0x13b   : > { %v8221_v48 = vpop.f32.mrb[24].mxu0 }
 0x13c   : > { %v8223_v49 = vpop.f32.mrb[25].mxu0 }
 0x13d   : > { %763 = vadd.xlane.f32.xlu1 %v8211_v44 }
 0x13f   : > { %v8226_v50 = vpop.f32.mrb[26].mxu0 }
 0x140   : > { %v8228_v51 = vpop.f32.mrb[27].mxu0 }
 0x141   : > { %765 = vadd.xlane.f32.xlu1 %v8218_v47 }
 0x143   : > { %v8231_v52 = vpop.f32.mrb[28].mxu0 }
 0x144   : > { %v8233_v53 = vpop.f32.mrb[29].mxu0 }
 0x145   : > { %767 = vadd.xlane.f32.xlu1 %v8216_v46 }
 0x147   : > { %v8236_v54 = vpop.f32.mrb[30].mxu0 }
 0x148   : > { %10909 = vst [vmem:[#allocation7_spill] sm:$0xff] %v8236_v54  ;;  %v8238_v55 = vpop.f32.mrb[31].mxu0 }
 0x149   : > { %769 = vadd.xlane.f32.xlu1 %v8223_v49 }
 0x14b   : > { %v8241_v56 = vpop.f32.mrb[32].mxu0 }
 0x14c   : > { %10910 = vst [vmem:[#allocation8_spill] sm:$0xff] %v8241_v56  ;;  %v8243_v57 = vpop.f32.mrb[33].mxu0 }
 0x14d   : > { %10911 = vst [vmem:[#allocation9_spill] sm:$0xff] %v8243_v57  ;;  %771 = vadd.xlane.f32.xlu1 %v8221_v48 }
 0x14f   : > { %v8246_v58 = vpop.f32.mrb[34].mxu0 }
 0x150   : > { %10912 = vst [vmem:[#allocation10_spill] sm:$0xff] %v8246_v58  ;;  %v8248_v59 = vpop.f32.mrb[35].mxu0 }
 0x151   : > { %10913 = vst [vmem:[#allocation11_spill] sm:$0xff] %v8248_v59  ;;  %773 = vadd.xlane.f32.xlu1 %v8228_v51 }
 0x153   : > { %v8251_v60 = vpop.f32.mrb[36].mxu0 }
 0x154   : > { %10914 = vst [vmem:[#allocation12_spill] sm:$0xff] %v8251_v60  ;;  %v8253_v61 = vpop.f32.mrb[37].mxu0 }
 0x155   : > { %10915 = vst [vmem:[#allocation13_spill] sm:$0xff] %v8253_v61  ;;  %775 = vadd.xlane.f32.xlu1 %v8226_v50 }
 0x157   : > { %v8256_v62 = vpop.f32.mrb[38].mxu0 }
 0x158   : > { %10916 = vst [vmem:[#allocation14_spill] sm:$0xff] %v8256_v62  ;;  %v8258_v63 = vpop.f32.mrb[39].mxu0 }
 0x159   : > { %10917 = vst [vmem:[#allocation15_spill] sm:$0xff] %v8258_v63  ;;  %777 = vadd.xlane.f32.xlu1 %v8233_v53 }
 0x15b   : > { %v8261_v0 = vpop.f32.mrb[40].mxu0 }
 0x15c   : > { %10918 = vst [vmem:[#allocation16_spill] sm:$0xff] %v8261_v0  ;;  %v8263_v1 = vpop.f32.mrb[41].mxu0 }
 0x15d   : > { %10919 = vst [vmem:[#allocation17_spill] sm:$0xff] %v8263_v1  ;;  %779 = vadd.xlane.f32.xlu1 %v8231_v52 }
 0x15f   : > { %v8266_v2 = vpop.f32.mrb[42].mxu0 }
 0x160   : > { %10920 = vst [vmem:[#allocation18_spill] sm:$0xff] %v8266_v2  ;;  %v8268_v3 = vpop.f32.mrb[43].mxu0 }
 0x161   : > { %10921 = vst [vmem:[#allocation19_spill] sm:$0xff] %v8268_v3  ;;  %781 = vadd.xlane.f32.xlu1 %v8238_v55 }
 0x163   : > { %v8271_v4 = vpop.f32.mrb[44].mxu0 }
 0x164   : > { %v8273_v5 = vpop.f32.mrb[45].mxu0 }
 0x165   : > { %10922 = vst [vmem:[#allocation20_spill] sm:$0xff] %v8273_v5  ;;  %783 = vadd.xlane.f32.xlu1 %v8236_v54 }
 0x167   : > { %v8276_v6 = vpop.f32.mrb[46].mxu0 }
 0x168   : > { %v8278_v7 = vpop.f32.mrb[47].mxu0 }
 0x169   : > { %10923 = vst [vmem:[#allocation21_spill] sm:$0xff] %v8278_v7  ;;  %785 = vadd.xlane.f32.xlu1 %v8243_v57 }
 0x16b   : > { %v8281_v8 = vpop.f32.mrb[48].mxu0 }
 0x16c   : > { %v8283_v9 = vpop.f32.mrb[49].mxu0 }
 0x16d   : > { %787 = vadd.xlane.f32.xlu1 %v8241_v56 }
 0x16f   : > { %v8286_v10 = vpop.f32.mrb[50].mxu0 }
 0x170   : > { %v8288_v11 = vpop.f32.mrb[51].mxu0 }
 0x171   : > { %10924 = vst [vmem:[#allocation22_spill] sm:$0xff] %v8288_v11  ;;  %789 = vadd.xlane.f32.xlu1 %v8248_v59 }
 0x173   : > { %v8291_v12 = vpop.f32.mrb[52].mxu0 }
 0x174   : > { %v8293_v13 = vpop.f32.mrb[53].mxu0 }
 0x175   : > { %791 = vadd.xlane.f32.xlu1 %v8246_v58 }
 0x177   : > { %v8296_v14 = vpop.f32.mrb[54].mxu0 }
 0x178   : > { %v8298_v15 = vpop.f32.mrb[55].mxu0 }
 0x179   : > { %793 = vadd.xlane.f32.xlu1 %v8253_v61 }
 0x17b   : > { %v8301_v16 = vpop.f32.mrb[56].mxu0 }
 0x17c   : > { %v8303_v17 = vpop.f32.mrb[57].mxu0 }
 0x17d   : > { %795 = vadd.xlane.f32.xlu1 %v8251_v60  ;;  %v3514_v60 = vld [vmem:[%s10855_s4 + $0x10] sm:$0xff] }
 0x17e   : > { %v6925_v61 = vpack.c.bf16 %v3515_v18, %v3514_v60  ;;  %v3518_v60 = vld [vmem:[%s10855_s4 + $0x30] sm:$0xff] }
 0x17f   : > { %v8312_v20 = vpop.f32.mrb[58].mxu0 }
 0x180   : > { %v8314_v22 = vpop.f32.mrb[59].mxu0  ;;  %6926 = vmatpush1.bf16.msra.mxu0 %v6925_v61  ;;  %v3519_v61 = vld [vmem:[%s10855_s4 + $0x38] sm:$0xff] }
 0x181   : > { %797 = vadd.xlane.f32.xlu1 %v8258_v63  ;;  %6927 = vmatprep.subr.bf16.mxu0 %v10873_v23  ;;  %v3517_v63 = vld [vmem:[%s10855_s4 + $0x28] sm:$0xff]  ;;  %v6931_v18 = vpack.c.bf16 %v3519_v61, %v3518_v60 }
 0x182   : > { %v6928_v56 = vpack.c.bf16 %v3517_v63, %v3516_v21  ;;  %v3544_v63 = vld [vmem:[%s10855_s4 + $0x100] sm:$0xff]  ;;  %v3545_v21 = vld [vmem:[%s10855_s4 + $0x108] sm:$0xff] }
 0x183   : > { %v8326_v19 = vpop.f32.mrb[60].mxu0  ;;  %v3521_v60 = vld [vmem:[%s10855_s4 + $0x48] sm:$0xff] }
 0x184   : > { %v8328_v58 = vpop.f32.mrb[61].mxu0  ;;  %6929 = vmatpush1.bf16.msra.mxu0 %v6928_v56  ;;  %v6970_v56 = vpack.c.bf16 %v3545_v21, %v3544_v63  ;;  %v3523_v21 = vld [vmem:[%s10855_s4 + $0x58] sm:$0xff] }
 0x185   : > { %799 = vadd.xlane.f32.xlu1 %v8256_v62  ;;  %6930 = vmatprep.subr.bf16.mxu0 %v10873_v23 }
 0x186   : > { %6971 = vmatpush1.bf16.msra.mxu1 %v6970_v56 }
 0x187   : > { %v8338_v59 = vpop.f32.mrb[62].mxu0  ;;  %6972 = vmatprep.subr.bf16.mxu1 %v10873_v23 }
 0x188   : > { %v8340_v57 = vpop.f32.mrb[63].mxu0  ;;  %6932 = vmatpush1.bf16.msra.mxu0 %v6931_v18  ;;  %v3547_v18 = vld [vmem:[%s10855_s4 + $0x118] sm:$0xff] }
 0x189   : > { %801 = vadd.xlane.f32.xlu1 %v8263_v1  ;;  %6933 = vmatprep.subr.bf16.mxu0 %v10873_v23  ;;  %v3520_v1 = vld [vmem:[%s10855_s4 + $0x40] sm:$0xff] }
 0x18a   : > { %v6934_v61 = vpack.c.bf16 %v3521_v60, %v3520_v1  ;;  %v3522_v1 = vld [vmem:[%s10855_s4 + $0x50] sm:$0xff]  ;;  %v718_v60 = vlaneseq }
 0x18b   : > { %v6937_v56 = vpack.c.bf16 %v3523_v21, %v3522_v1  ;;  %v3525_v1 = vld [vmem:[%s10855_s4 + $0x68] sm:$0xff] }
 0x18c   : > { %6935 = vmatpush1.bf16.msra.mxu0 %v6934_v61  ;;  %v3549_v61 = vld [vmem:[%s10855_s4 + $0x128] sm:$0xff] }
 0x18d   : > { %803 = vadd.xlane.f32.xlu1 %v8261_v0  ;;  %v3546_v0 = vld [vmem:[%s10855_s4 + $0x110] sm:$0xff]  ;;  %6936 = vmatprep.subr.bf16.mxu0 %v10873_v23 }
 0x18e   : > { %v6973_v63 = vpack.c.bf16 %v3547_v18, %v3546_v0  ;;  %v3548_v0 = vld [vmem:[%s10855_s4 + $0x120] sm:$0xff] }
 0x18f   : > { %v6976_v18 = vpack.c.bf16 %v3549_v61, %v3548_v0  ;;  %v3551_v0 = vld [vmem:[%s10855_s4 + $0x138] sm:$0xff] }
 0x190   : > { %6974 = vmatpush1.bf16.msra.mxu1 %v6973_v63  ;;  %6938 = vmatpush1.bf16.msra.mxu0 %v6937_v56  ;;  %v3524_v63 = vld [vmem:[%s10855_s4 + $0x60] sm:$0xff]  ;;  %v3550_v56 = vld [vmem:[%s10855_s4 + $0x130] sm:$0xff] }
 0x191   : > { %805 = vadd.xlane.f32.xlu1 %v8268_v3  ;;  %6975 = vmatprep.subr.bf16.mxu1 %v10873_v23  ;;  %v6940_v21 = vpack.c.bf16 %v3525_v1, %v3524_v63  ;;  %v8394_v3 = vand.u32 127, %v718_v60  ;;  %v6979_v61 = vpack.c.bf16 %v3551_v0, %v3550_v56  ;;  %v3526_v60 = vld [vmem:[%s10855_s4 + $0x70] sm:$0xff]  ;;  %v3553_v56 = vld [vmem:[%s10855_s4 + $0x148] sm:$0xff] }
 0x192   : > { %6939 = vmatprep.subr.bf16.mxu0 %v10873_v23 }
 0x193   : > { %vm720_vm0 = vcmp.lt.s32.totalorder %v8394_v3, 8 }
 0x194   : > { %6977 = vmatpush1.bf16.msra.mxu1 %v6976_v18  ;;  %6941 = vmatpush1.bf16.msra.mxu0 %v6940_v21  ;;  %v3527_v18 = vld [vmem:[%s10855_s4 + $0x78] sm:$0xff]  ;;  %v3552_v21 = vld [vmem:[%s10855_s4 + $0x140] sm:$0xff] }
 0x195   : > { %807 = vadd.xlane.f32.xlu1 %v8266_v2  ;;  %6978 = vmatprep.subr.bf16.mxu1 %v10873_v23  ;;  %v6943_v1 = vpack.c.bf16 %v3527_v18, %v3526_v60  ;;  %v3528_v60 = vld [vmem:[%s10855_s4 + $0x80] sm:$0xff]  ;;  %v3529_v18 = vld [vmem:[%s10855_s4 + $0x88] sm:$0xff] }
 0x196   : > { %6942 = vmatprep.subr.bf16.mxu0 %v10873_v23 }
 0x198   : > { %6980 = vmatpush1.bf16.msra.mxu1 %v6979_v61  ;;  %6944 = vmatpush1.bf16.msra.mxu0 %v6943_v1 }
 0x199   : > { %809 = vadd.xlane.f32.xlu1 %v8273_v5  ;;  %6981 = vmatprep.subr.bf16.mxu1 %v10873_v23  ;;  %v6982_v5 = vpack.c.bf16 %v3553_v56, %v3552_v21  ;;  %v3554_v21 = vld [vmem:[%s10855_s4 + $0x150] sm:$0xff]  ;;  %v3555_v56 = vld [vmem:[%s10855_s4 + $0x158] sm:$0xff] }
 0x19a   : > { %v722_v2 = vpop.xlane.xlu0 %721  ;;  %6945 = vmatprep.subr.bf16.mxu0 %v10873_v23 }
 0x19b   : > { %v849_v63 = vmul.f32 0.125, %v722_v2 }
 0x19c   : > { %6983 = vmatpush1.bf16.msra.mxu1 %v6982_v5  ;;  %v6985_v5 = vpack.c.bf16 %v3555_v56, %v3554_v21 }
 0x19d   : > { %v913_v0 = vsub.f32 %v8154_v25, %v849_v63  ;;  %811 = vadd.xlane.f32.xlu1 %v8271_v4  ;;  %v6946_v63 = vpack.c.bf16 %v3529_v18, %v3528_v60  ;;  %6984 = vmatprep.subr.bf16.mxu1 %v10873_v23  ;;  %v3530_v18 = vld [vmem:[%s10855_s4 + $0x90] sm:$0xff] }
 0x19e   : > { %v724_v2 = vpop.xlane.xlu0 %723  ;;  %v726_v61 = vpop.xlane.xlu1 %725 }
 0x19f   : > { %v850_v62 = vmul.f32 0.125, %v724_v2  ;;  %v851_v54 = vmul.f32 0.125, %v726_v61  ;;  %v8430_v25 = vsel %vm720_vm0, %v913_v0, 0.0  ;;  %6947 = vmatpush1.bf16.msra.mxu0 %v6946_v63  ;;  %v3557_v63 = vld [vmem:[%s10855_s4 + $0x168] sm:$0xff] }
 0x1a0   : > { %10925 = vst [vmem:[#allocation23_spill] sm:$0xff] %v8430_v25  ;;  %v1043_v1 = vmul.f32 %v8430_v25, %v8430_v25  ;;  %6948 = vmatprep.subr.bf16.mxu0 %v10873_v23  ;;  %v3531_v25 = vld [vmem:[%s10855_s4 + $0x98] sm:$0xff]  ;;  %6986 = vmatpush1.bf16.msra.mxu1 %v6985_v5 }
 0x1a1   : > { %v914_v2 = vsub.f32 %v8152_v24, %v850_v62  ;;  %v915_v0 = vsub.f32 %v8159_v27, %v851_v54  ;;  %813 = vadd.xlane.f32.xlu1 %v8278_v7  ;;  %6987 = vmatprep.subr.bf16.mxu1 %v10873_v23  ;;  %v3556_v62 = vld [vmem:[%s10855_s4 + $0x160] sm:$0xff] }
 0x1a2   : > { %v728_v61 = vpop.xlane.xlu1 %727  ;;  %v730_v60 = vpop.xlane.xlu0 %729  ;;  %1107 = vadd.xlane.f32.xlu0 %v1043_v1  ;;  %v6949_v1 = vpack.c.bf16 %v3531_v25, %v3530_v18  ;;  %v6988_v5 = vpack.c.bf16 %v3557_v63, %v3556_v62  ;;  %v3532_v23 = vld [vmem:[%s10855_s4 + $0xa0] sm:$0xff]  ;;  %v3533_v25 = vld [vmem:[%s10855_s4 + $0xa8] sm:$0xff]  ;;  %v3559_v18 = vld [vmem:[%s10855_s4 + $0x178] sm:$0xff] }
 0x1a3   : > { %v852_v24 = vmul.f32 0.125, %v728_v61  ;;  %v8453_v27 = vsel %vm720_vm0, %v914_v2, 0.0  ;;  %v853_v56 = vmul.f32 0.125, %v730_v60  ;;  %v8468_v2 = vsel %vm720_vm0, %v915_v0, 0.0  ;;  %v3558_v0 = vld [vmem:[%s10855_s4 + $0x170] sm:$0xff] }
 0x1a4   : > { %v1044_v54 = vmul.f32 %v8453_v27, %v8453_v27  ;;  %10926 = vst [vmem:[#allocation24_spill] sm:$0xff] %v8468_v2  ;;  %6950 = vmatpush1.bf16.msra.mxu0 %v6949_v1  ;;  %6989 = vmatpush1.bf16.msra.mxu1 %v6988_v5  ;;  %v1045_v60 = vmul.f32 %v8468_v2, %v8468_v2  ;;  %v3534_v2 = vld [vmem:[%s10855_s4 + $0xb0] sm:$0xff] }
 0x1a5   : > { %v916_v21 = vsub.f32 %v8157_v26, %v852_v24  ;;  %815 = vadd.xlane.f32.xlu1 %v8276_v6  ;;  %v10927_v26 = vmov 0.0|0.0   ;;  %v6952_v24 = vpack.c.bf16 %v3533_v25, %v3532_v23  ;;  %v6991_v1 = vpack.c.bf16 %v3559_v18, %v3558_v0 }
 0x1a6   : > { %v732_v61 = vpop.xlane.xlu1 %731  ;;  %1109 = vadd.xlane.f32.xlu0 %v1044_v54  ;;  %6951 = vmatprep.subr.bf16.mxu0 %v10927_v26  ;;  %v917_v54 = vsub.f32 %v8165_v29, %v853_v56  ;;  %v734_v5 = vpop.xlane.xlu0 %733  ;;  %v3535_v29 = vld [vmem:[%s10855_s4 + $0xb8] sm:$0xff]  ;;  %v3561_v56 = vld [vmem:[%s10855_s4 + $0x188] sm:$0xff] }
 0x1a7   : > { %6990 = vmatprep.subr.bf16.mxu1 %v10927_v26  ;;  %v854_v62 = vmul.f32 0.125, %v732_v61  ;;  %v8490_v63 = vsel %vm720_vm0, %v916_v21, 0.0  ;;  %v3560_v21 = vld [vmem:[%s10855_s4 + $0x180] sm:$0xff]  ;;  %v6955_v61 = vpack.c.bf16 %v3535_v29, %v3534_v2 }
 0x1a8   : > { %6953 = vmatpush1.bf16.msra.mxu0 %v6952_v24  ;;  %6992 = vmatpush1.bf16.msra.mxu1 %v6991_v1  ;;  %v1046_v23 = vmul.f32 %v8490_v63, %v8490_v63  ;;  %v8512_v0 = vsel %vm720_vm0, %v917_v54, 0.0  ;;  %v6994_v18 = vpack.c.bf16 %v3561_v56, %v3560_v21  ;;  %v3536_v1 = vld [vmem:[%s10855_s4 + $0xc0] sm:$0xff]  ;;  %v3562_v54 = vld [vmem:[%s10855_s4 + $0x190] sm:$0xff] }
 0x1a9   : > { %817 = vadd.xlane.f32.xlu1 %v8283_v9  ;;  %6954 = vmatprep.subr.bf16.mxu0 %v10927_v26  ;;  %v918_v25 = vsub.f32 %v8163_v28, %v854_v62  ;;  %v3537_v28 = vld [vmem:[%s10855_s4 + $0xc8] sm:$0xff]  ;;  %v1047_v2 = vmul.f32 %v8512_v0, %v8512_v0  ;;  %v3563_v62 = vld [vmem:[%s10855_s4 + $0x198] sm:$0xff] }
 0x1aa   : > { %v736_v7 = vpop.xlane.xlu1 %735  ;;  %1111 = vadd.xlane.f32.xlu0 %v1045_v60  ;;  %6993 = vmatprep.subr.bf16.mxu1 %v10927_v26  ;;  %v855_v60 = vmul.f32 0.125, %v734_v5  ;;  %v6958_v5 = vpack.c.bf16 %v3537_v28, %v3536_v1  ;;  %v6997_v56 = vpack.c.bf16 %v3563_v62, %v3562_v54  ;;  %v3538_v1 = vld [vmem:[%s10855_s4 + $0xd0] sm:$0xff] }
 0x1ab   : > { %v8538_v21 = vsel %vm720_vm0, %v918_v25, 0.0  ;;  %v3564_v25 = vld [vmem:[%s10855_s4 + $0x1a0] sm:$0xff] }
 0x1ac   : > { %6956 = vmatpush1.bf16.msra.mxu0 %v6955_v61  ;;  %6995 = vmatpush1.bf16.msra.mxu1 %v6994_v18  ;;  %v919_v29 = vsub.f32 %v8171_v31, %v855_v60  ;;  %v738_v61 = vpop.xlane.xlu0 %737  ;;  %v3539_v31 = vld [vmem:[%s10855_s4 + $0xd8] sm:$0xff]  ;;  %v3565_v60 = vld [vmem:[%s10855_s4 + $0x1a8] sm:$0xff] }
 0x1ad   : > { %819 = vadd.xlane.f32.xlu1 %v8281_v8  ;;  %6957 = vmatprep.subr.bf16.mxu0 %v10927_v26  ;;  %v6961_v28 = vpack.c.bf16 %v3539_v31, %v3538_v1  ;;  %v8560_v54 = vmul.f32 0.125, %v738_v61  ;;  %v8572_v1 = vld [vmem:[%s10855_s4 + $0xe0] sm:$0xff]  ;;  %v8577_v61 = vld [vmem:[%s10855_s4 + $0xe8] sm:$0xff] }
 0x1ae   : > { %v8514_v24 = vpop.xlane.xlu1 %739  ;;  %1113 = vadd.xlane.f32.xlu0 %v1046_v23  ;;  %6996 = vmatprep.subr.bf16.mxu1 %v10927_v26  ;;  %v8533_v23 = vmul.f32 0.125, %v736_v7  ;;  %v1048_v7 = vmul.f32 %v8538_v21, %v8538_v21  ;;  %v8565_v62 = vsel %vm720_vm0, %v919_v29, 0.0  ;;  %v10879_v29 = vmov 0.0  }
 0x1af   : > { %10928 = vst [vmem:[#allocation25_spill] sm:$0xff] %v8565_v62  ;;  %1633 = vst [vmem:[#allocation2] sm:$0xff] %v10879_v29  ;;  %v1049_v31 = vmul.f32 %v8565_v62, %v8565_v62 }
 0x1b0   : > { %6959 = vmatpush1.bf16.msra.mxu0 %v6958_v5  ;;  %6998 = vmatpush1.bf16.msra.mxu1 %v6997_v56  ;;  %v7000_v5 = vpack.c.bf16 %v3565_v60, %v3564_v25  ;;  %1634 = vst [vmem:[#allocation2 + $0x8] sm:$0xff] %v10879_v29  ;;  %1635 = vst [vmem:[#allocation2 + $0x10] sm:$0x3] %v10879_v29  ;;  %v3567_v25 = vld [vmem:[%s10855_s4 + $0x1b8] sm:$0xff]  ;;  %v6964_v60 = vpack.c.bf16 %v8577_v61, %v8572_v1  ;;  %v742_v62 = vpop.xlane.xlu0 %741 }
 0x1b1   : > { %821 = vadd.xlane.f32.xlu1 %v8288_v11  ;;  %6960 = vmatprep.subr.bf16.mxu0 %v10927_v26  ;;  %1636 = vst [vmem:[#allocation2 + $0x1b0] sm:$0xff] %v10879_v29  ;;  %1637 = vst [vmem:[#allocation2 + $0x1b8] sm:$0xff] %v10879_v29 }
 0x1b2   : > { %v8540_v18 = vpop.xlane.xlu1 %743  ;;  %1115 = vadd.xlane.f32.xlu0 %v1047_v2  ;;  %6999 = vmatprep.subr.bf16.mxu1 %v10927_v26  ;;  %v920_v2 = vsub.f32 %v8169_v30, %v8533_v23  ;;  %1638 = vst [vmem:[#allocation2 + $0x1c0] sm:$0x3] %v10879_v29  ;;  %1640 = vst [vmem:[#allocation2 + $0x198] sm:$0xff] %v10879_v29  ;;  %v3568_v23 = vld [vmem:[%s10855_s4 + $0x1c0] sm:$0xff] }
 0x1b3   : > { %1641 = vst [vmem:[#allocation2 + $0x1a0] sm:$0xff] %v10879_v29  ;;  %1642 = vst [vmem:[#allocation2 + $0x1a8] sm:$0x3] %v10879_v29 }
 0x1b4   : > { %6962 = vmatpush1.bf16.msra.mxu0 %v6961_v28  ;;  %7001 = vmatpush1.bf16.msra.mxu1 %v7000_v5  ;;  %1643 = vst [vmem:[#allocation2 + $0x348] sm:$0xff] %v10879_v29  ;;  %1644 = vst [vmem:[#allocation2 + $0x350] sm:$0xff] %v10879_v29  ;;  %v921_v28 = vsub.f32 %v8177_v33, %v8560_v54  ;;  %v858_v5 = vmul.f32 0.125, %v8514_v24  ;;  %v8684_v1 = vsel %vm720_vm0, %v920_v2, 0.0  ;;  %v3542_v33 = vld [vmem:[%s10855_s4 + $0xf0] sm:$0xff]  ;;  %v3543_v24 = vld [vmem:[%s10855_s4 + $0xf8] sm:$0xff] }
 0x1b5   : > { %823 = vadd.xlane.f32.xlu1 %v8286_v10  ;;  %6963 = vmatprep.subr.bf16.mxu0 %v10927_v26  ;;  %1645 = vst [vmem:[#allocation2 + $0x358] sm:$0x3] %v10879_v29  ;;  %1647 = vst [vmem:[#allocation2 + $0x18] sm:$0x1] %v10879_v29  ;;  %v1050_v30 = vmul.f32 %v8684_v1, %v8684_v1  ;;  %v3569_v2 = vld [vmem:[%s10855_s4 + $0x1c8] sm:$0xff]  ;;  %v6967_v54 = vpack.c.bf16 %v3543_v24, %v3542_v33 }
 0x1b6   : > { %v8567_v56 = vpop.xlane.xlu1 %747  ;;  %1117 = vadd.xlane.f32.xlu0 %v1048_v7  ;;  %1648 = vst [vmem:[#allocation2 + $0x30] sm:$0x1] %v10879_v29  ;;  %1649 = vst [vmem:[#allocation2 + $0x48] sm:$0x1] %v10879_v29  ;;  %7002 = vmatprep.subr.bf16.mxu1 %v10927_v26  ;;  %v3566_v7 = vld [vmem:[%s10855_s4 + $0x1b0] sm:$0xff] }
 0x1b7   : > { %1650 = vst [vmem:[#allocation2 + $0x60] sm:$0x1] %v10879_v29  ;;  %1651 = vst [vmem:[#allocation2 + $0x78] sm:$0x1] %v10879_v29  ;;  %v7003_v61 = vpack.c.bf16 %v3567_v25, %v3566_v7  ;;  %v859_v7 = vmul.f32 0.125, %v742_v62  ;;  %v8708_v25 = vsel %vm720_vm0, %v921_v28, 0.0 }
 0x1b8   : > { %1652 = vst [vmem:[#allocation2 + $0x90] sm:$0x1] %v10879_v29  ;;  %1653 = vst [vmem:[#allocation2 + $0xa8] sm:$0x1] %v10879_v29  ;;  %6965 = vmatpush1.bf16.msra.mxu0 %v6964_v60  ;;  %v7006_v60 = vpack.c.bf16 %v3569_v2, %v3568_v23  ;;  %v1051_v33 = vmul.f32 %v8708_v25, %v8708_v25  ;;  %v3571_v62 = vld [vmem:[%s10855_s4 + $0x1d8] sm:$0xff]  ;;  %v1912_v2 = vld [vmem:[#allocation2 + $0x9] sm:$0xff] }
 0x1b9   : > { %1654 = vst [vmem:[#allocation2 + $0xc0] sm:$0x1] %v10879_v29  ;;  %1655 = vst [vmem:[#allocation2 + $0xd8] sm:$0x1] %v10879_v29  ;;  %825 = vadd.xlane.f32.xlu1 %v8293_v13  ;;  %7004 = vmatpush1.bf16.msra.mxu1 %v7003_v61  ;;  %v923_v28 = vsub.f32 %v8183_v35, %v859_v7 }
 0x1ba   : > { %1656 = vst [vmem:[#allocation2 + $0xf0] sm:$0x1] %v10879_v29  ;;  %1657 = vst [vmem:[#allocation2 + $0x108] sm:$0x1] %v10879_v29  ;;  %v8686_v11 = vpop.xlane.xlu1 %751  ;;  %1119 = vadd.xlane.f32.xlu0 %v1049_v31  ;;  %6966 = vmatprep.subr.bf16.mxu0 %v10927_v26  ;;  %v922_v31 = vsub.f32 %v8175_v32, %v858_v5  ;;  %v3570_v32 = vld [vmem:[%s10855_s4 + $0x1d0] sm:$0xff]  ;;  %v860_v5 = vmul.f32 0.125, %v8540_v18 }
 0x1bb   : > { %1658 = vst [vmem:[#allocation2 + $0x120] sm:$0x1] %v10879_v29  ;;  %1659 = vst [vmem:[#allocation2 + $0x138] sm:$0x1] %v10879_v29  ;;  %7005 = vmatprep.subr.bf16.mxu1 %v10927_v26  ;;  %v7009_v24 = vpack.c.bf16 %v3571_v62, %v3570_v32  ;;  %v3572_v18 = vld [vmem:[%s10855_s4 + $0x1e0] sm:$0xff]  ;;  %v8743_v7 = vsel %vm720_vm0, %v923_v28, 0.0 }
 0x1bc   : > { %1660 = vst [vmem:[#allocation2 + $0x150] sm:$0x1] %v10879_v29  ;;  %1661 = vst [vmem:[#allocation2 + $0x168] sm:$0x1] %v10879_v29  ;;  %6968 = vmatpush1.bf16.msra.mxu0 %v6967_v54  ;;  %v924_v54 = vsub.f32 %v8181_v34, %v860_v5  ;;  %v1053_v62 = vmul.f32 %v8743_v7, %v8743_v7  ;;  %v3574_v34 = vld [vmem:[%s10855_s4 + $0x1f0] sm:$0xff]  ;;  %v3575_v28 = vld [vmem:[%s10855_s4 + $0x1f8] sm:$0xff] }
 0x1bd   : > { %1662 = vst [vmem:[#allocation2 + $0x180] sm:$0x1] %v10879_v29  ;;  %1665 = vst [vmem:[#allocation2 + $0x1c8] sm:$0x1] %v10879_v29  ;;  %827 = vadd.xlane.f32.xlu1 %v8291_v12  ;;  %7007 = vmatpush1.bf16.msra.mxu1 %v7006_v60 }
 0x1be   : > { %1666 = vst [vmem:[#allocation2 + $0x1e0] sm:$0x1] %v10879_v29  ;;  %1667 = vst [vmem:[#allocation2 + $0x1f8] sm:$0x1] %v10879_v29  ;;  %v8710_v61 = vpop.xlane.xlu1 %755  ;;  %1121 = vadd.xlane.f32.xlu0 %v1050_v30  ;;  %7008 = vmatprep.subr.bf16.mxu1 %v10927_v26  ;;  %v746_v30 = vpop.xlane.xlu0 %745 }
 0x1bf   : > { %1668 = vst [vmem:[#allocation2 + $0x210] sm:$0x1] %v10879_v29  ;;  %1669 = vst [vmem:[#allocation2 + $0x228] sm:$0x1] %v10879_v29 }
 0x1c0   : > { %1670 = vst [vmem:[#allocation2 + $0x240] sm:$0x1] %v10879_v29  ;;  %1671 = vst [vmem:[#allocation2 + $0x258] sm:$0x1] %v10879_v29 }
 0x1c1   : > { %1672 = vst [vmem:[#allocation2 + $0x270] sm:$0x1] %v10879_v29  ;;  %1673 = vst [vmem:[#allocation2 + $0x288] sm:$0x1] %v10879_v29  ;;  %829 = vadd.xlane.f32.xlu1 %v8298_v15  ;;  %7010 = vmatpush1.bf16.msra.mxu1 %v7009_v24  ;;  %v862_v24 = vmul.f32 0.125, %v8567_v56 }
 0x1c2   : > { %1674 = vst [vmem:[#allocation2 + $0x2a0] sm:$0x1] %v10879_v29  ;;  %1675 = vst [vmem:[#allocation2 + $0x2b8] sm:$0x1] %v10879_v29  ;;  %v8728_v23 = vpop.xlane.xlu1 %759  ;;  %1123 = vadd.xlane.f32.xlu0 %v1051_v33  ;;  %7011 = vmatprep.subr.bf16.mxu1 %v10927_v26  ;;  %v10930_v33 = vmov 0.0  }
 0x1c3   : > { %1676 = vst [vmem:[#allocation2 + $0x2d0] sm:$0x1] %v10879_v29  ;;  %1677 = vst [vmem:[#allocation2 + $0x2e8] sm:$0x1] %v10879_v29 }
 0x1c4   : > { %1678 = vst [vmem:[#allocation2 + $0x300] sm:$0x1] %v10879_v29  ;;  %1679 = vst [vmem:[#allocation2 + $0x318] sm:$0x1] %v10879_v29 }
 0x1c5   : > { %1680 = vst [vmem:[#allocation2 + $0x330] sm:$0x1] %v10879_v29  ;;  %1683 = vst [vmem:[#allocation2 + $0x29] sm:$0x1] %v10879_v29  ;;  %831 = vadd.xlane.f32.xlu1 %v8296_v14 }
 0x1c6   : > { %1684 = vst [vmem:[#allocation2 + $0x41] sm:$0x1] %v10879_v29  ;;  %1685 = vst [vmem:[#allocation2 + $0x59] sm:$0x1] %v10879_v29  ;;  %v762_v32 = vpop.xlane.xlu1 %761 }
 0x1c7   : > { %1686 = vst [vmem:[#allocation2 + $0x71] sm:$0x1] %v10879_v29  ;;  %1687 = vst [vmem:[#allocation2 + $0x89] sm:$0x1] %v10879_v29 }
 0x1c8   : > { %1688 = vst [vmem:[#allocation2 + $0xa1] sm:$0x1] %v10879_v29  ;;  %1689 = vst [vmem:[#allocation2 + $0xb9] sm:$0x1] %v10879_v29 }
 0x1c9   : > { %1690 = vst [vmem:[#allocation2 + $0xd1] sm:$0x1] %v10879_v29  ;;  %1691 = vst [vmem:[#allocation2 + $0xe9] sm:$0x1] %v10879_v29  ;;  %833 = vadd.xlane.f32.xlu1 %v8303_v17 }
 0x1ca   : > { %1692 = vst [vmem:[#allocation2 + $0x101] sm:$0x1] %v10879_v29  ;;  %1693 = vst [vmem:[#allocation2 + $0x119] sm:$0x1] %v10879_v29 }
 0x1cb   : > { %1694 = vst [vmem:[#allocation2 + $0x131] sm:$0x1] %v10879_v29  ;;  %1695 = vst [vmem:[#allocation2 + $0x149] sm:$0x1] %v10879_v29 }
 0x1cc   : > { %1696 = vst [vmem:[#allocation2 + $0x161] sm:$0x1] %v10879_v29  ;;  %1697 = vst [vmem:[#allocation2 + $0x179] sm:$0x1] %v10879_v29 }
 0x1cd   : > { %1698 = vst [vmem:[#allocation2 + $0x191] sm:$0x1] %v10879_v29  ;;  %1701 = vst [vmem:[#allocation2 + $0x1d9] sm:$0x1] %v10879_v29  ;;  %835 = vadd.xlane.f32.xlu1 %v8301_v16 }
 0x1ce   : > { %1702 = vst [vmem:[#allocation2 + $0x1f1] sm:$0x1] %v10879_v29  ;;  %1703 = vst [vmem:[#allocation2 + $0x209] sm:$0x1] %v10879_v29 }
 0x1cf   : > { %1704 = vst [vmem:[#allocation2 + $0x221] sm:$0x1] %v10879_v29  ;;  %1705 = vst [vmem:[#allocation2 + $0x239] sm:$0x1] %v10879_v29 }
 0x1d0   : > { %1706 = vst [vmem:[#allocation2 + $0x251] sm:$0x1] %v10879_v29  ;;  %1707 = vst [vmem:[#allocation2 + $0x269] sm:$0x1] %v10879_v29 }
 0x1d1   : > { %1708 = vst [vmem:[#allocation2 + $0x281] sm:$0x1] %v10879_v29  ;;  %1709 = vst [vmem:[#allocation2 + $0x299] sm:$0x1] %v10879_v29  ;;  %837 = vadd.xlane.f32.xlu1 %v8314_v22 }
 0x1d2   : > { %1710 = vst [vmem:[#allocation2 + $0x2b1] sm:$0x1] %v10879_v29  ;;  %1711 = vst [vmem:[#allocation2 + $0x2c9] sm:$0x1] %v10879_v29 }
 0x1d3   : > { %1712 = vst [vmem:[#allocation2 + $0x2e1] sm:$0x1] %v10879_v29  ;;  %1713 = vst [vmem:[#allocation2 + $0x2f9] sm:$0x1] %v10879_v29 }
 0x1d4   : > { %1714 = vst [vmem:[#allocation2 + $0x311] sm:$0x1] %v10879_v29  ;;  %1715 = vst [vmem:[#allocation2 + $0x329] sm:$0x1] %v10879_v29 }
 0x1d5   : > { %1716 = vst [vmem:[#allocation2 + $0x341] sm:$0x1] %v10879_v29  ;;  %1646 = vst [vmem:[#allocation2] sm:$0x1] %v10879_v29  ;;  %839 = vadd.xlane.f32.xlu1 %v8312_v20 }
 0x1d6   : > { %1663 = vst [vmem:[#allocation2 + $0x198] sm:$0x1] %v10879_v29  ;;  %1664 = vst [vmem:[#allocation2 + $0x1b0] sm:$0x1] %v10879_v29 }
 0x1d7   : > { %1681 = vst [vmem:[#allocation2 + $0x348] sm:$0x1] %v10879_v29  ;;  %1682 = vst [vmem:[#allocation2 + $0x11] sm:$0x1] %v10879_v29 }
 0x1d8   : > { %1699 = vst [vmem:[#allocation2 + $0x1a9] sm:$0x1] %v10879_v29  ;;  %1700 = vst [vmem:[#allocation2 + $0x1c1] sm:$0x1] %v10879_v29 }
 0x1d9   : > { %1717 = vst [vmem:[#allocation2 + $0x359] sm:$0x1] %v10879_v29  ;;  %10929 = vst [vmem:[#allocation26_spill] sm:$0xff] %v8684_v1  ;;  %v1911_v29 = vld [vmem:[#allocation2 + $0x1] sm:$0xff]  ;;  %841 = vadd.xlane.f32.xlu1 %v8328_v58 }
 0x1da   : > { %3720 = vmatprep.mubr.f32.mxu0 %v1911_v29  ;;  %v8726_v29 = vsel %vm720_vm0, %v922_v31, 0.0  ;;  %v861_v31 = vmul.f32 0.125, %v746_v30  ;;  %v8760_v30 = vsel %vm720_vm0, %v924_v54, 0.0 }
 0x1db   : > { %v1052_v35 = vmul.f32 %v8726_v29, %v8726_v29 }
 0x1dc   : > { %v1783_v1 = vld [vmem:[#allocation2] sm:$0xff]  ;;  %v925_v5 = vsub.f32 %v8189_v37, %v861_v31  ;;  %v926_v37 = vsub.f32 %v8187_v36, %v862_v24 }
 0x1dd   : > { %3721 = vmatmul.mubr.f32.vlgmr.msra.gmra.mrb[64].mxu0 %v1783_v1  ;;  %v3573_v1 = vld [vmem:[%s10855_s4 + $0x1e8] sm:$0xff]  ;;  %1125 = vadd.xlane.f32.xlu0 %v1052_v35  ;;  %v750_v35 = vpop.xlane.xlu0 %749 }
 0x1de   : > { %3725 = vmatprep.mubr.f32.mxu0 %v1912_v2  ;;  %v7012_v60 = vpack.c.bf16 %v3573_v1, %v3572_v18  ;;  %v7015_v2 = vpack.c.bf16 %v3575_v28, %v3574_v34  ;;  %v764_v18 = vpop.xlane.xlu1 %763  ;;  %v1054_v1 = vmul.f32 %v8760_v30, %v8760_v30  ;;  %v863_v31 = vmul.f32 0.125, %v750_v35  ;;  %843 = vadd.xlane.f32.xlu1 %v8326_v19 }
 0x1df   : > { %v8769_v56 = vsel %vm720_vm0, %v925_v5, 0.0  ;;  %v8778_v36 = vsel %vm720_vm0, %v926_v37, 0.0  ;;  %v866_v37 = vmul.f32 0.125, %v8710_v61 }
 0x1e0   : > { %7013 = vmatpush1.bf16.msra.mxu1 %v7012_v60  ;;  %v1055_v60 = vmul.f32 %v8769_v56, %v8769_v56  ;;  %v1056_v5 = vmul.f32 %v8778_v36, %v8778_v36 }
 0x1e1   : > { %3726 = vmatmul.mubr.f32.gmra.mrb[66].mxu0 %v10930_v33  ;;  %7014 = vmatprep.subr.bf16.mxu1 %v10927_v26  ;;  %v927_v33 = vsub.f32 %v8195_v39, %v863_v31  ;;  %v754_v34 = vpop.xlane.xlu0 %753 }
 0x1e2   : > { %1127 = vadd.xlane.f32.xlu0 %v1053_v62  ;;  %v766_v54 = vpop.xlane.xlu1 %765  ;;  %v864_v62 = vmul.f32 0.125, %v8686_v11  ;;  %845 = vadd.xlane.f32.xlu1 %v8340_v57 }
 0x1e3   : > { %v8786_v39 = vsel %vm720_vm0, %v927_v33, 0.0 }
 0x1e4   : > { %7016 = vmatpush1.bf16.msra.mxu1 %v7015_v2  ;;  %v928_v24 = vsub.f32 %v8193_v38, %v864_v62  ;;  %v865_v2 = vmul.f32 0.125, %v754_v34  ;;  %v1057_v35 = vmul.f32 %v8786_v39, %v8786_v39  ;;  %v930_v62 = vsub.f32 %v8199_v40, %v866_v37 }
 0x1e5   : > { %7017 = vmatprep.subr.bf16.mxu1 %v10927_v26  ;;  %v758_v31 = vpop.xlane.xlu0 %757 }
 0x1e6   : > { %1129 = vadd.xlane.f32.xlu0 %v1054_v1  ;;  %v768_v28 = vpop.xlane.xlu1 %767  ;;  %v929_v1 = vsub.f32 %v8201_v41, %v865_v2  ;;  %v8795_v38 = vsel %vm720_vm0, %v928_v24, 0.0  ;;  %v867_v34 = vmul.f32 0.125, %v758_v31  ;;  %v868_v2 = vmul.f32 0.125, %v8728_v23  ;;  %847 = vadd.xlane.f32.xlu1 %v8338_v59 }
 0x1e7   : > { %v1058_v33 = vmul.f32 %v8795_v38, %v8795_v38  ;;  %v8812_v40 = vsel %vm720_vm0, %v930_v62, 0.0  ;;  %v869_v31 = vmul.f32 0.125, %v762_v32 }
 0x1e8   : > { %v8803_v41 = vsel %vm720_vm0, %v929_v1, 0.0  ;;  %v931_v24 = vsub.f32 %v8207_v43, %v867_v34  ;;  %v1060_v1 = vmul.f32 %v8812_v40, %v8812_v40  ;;  %v932_v37 = vsub.f32 %v8205_v42, %v868_v2 }
 0x1e9   : > { %v933_v62 = vsub.f32 %v8213_v45, %v869_v31  ;;  %v870_v34 = vmul.f32 0.125, %v764_v18  ;;  %v871_v2 = vmul.f32 0.125, %v766_v54 }
 0x1ea   : > { %1131 = vadd.xlane.f32.xlu0 %v1055_v60  ;;  %v770_v11 = vpop.xlane.xlu1 %769  ;;  %v8820_v43 = vsel %vm720_vm0, %v931_v24, 0.0 }
 0x1eb   : > { %10931 = vst [vmem:[#allocation27_spill] sm:$0xff] %v8820_v43  ;;  %v934_v24 = vsub.f32 %v8211_v44, %v870_v34  ;;  %v935_v18 = vsub.f32 %v8218_v47, %v871_v2 }
 0x1ed   : > { %v8841_v31 = vsel %vm720_vm0, %v934_v24, 0.0  ;;  %v8848_v34 = vsel %vm720_vm0, %v935_v18, 0.0 }
 0x1ee   : > { %1133 = vadd.xlane.f32.xlu0 %v1056_v5  ;;  %v772_v60 = vpop.xlane.xlu1 %771  ;;  %v1059_v5 = vmul.f32 %v8803_v41, %v8803_v41  ;;  %v1064_v44 = vmul.f32 %v8841_v31, %v8841_v31  ;;  %v1065_v47 = vmul.f32 %v8848_v34, %v8848_v34 }
 0x1ef   : > { %v874_v24 = vmul.f32 0.125, %v772_v60 }
 0x1f2   : > { %1135 = vadd.xlane.f32.xlu0 %v1057_v35  ;;  %v774_v61 = vpop.xlane.xlu1 %773 }
 0x1f3   : > { %v875_v18 = vmul.f32 0.125, %v774_v61 }
 0x1f5   : > { %v939_v60 = vsub.f32 %v8228_v51, %v875_v18 }
 0x1f6   : > { %1137 = vadd.xlane.f32.xlu0 %v1058_v33  ;;  %v776_v35 = vpop.xlane.xlu1 %775  ;;  %v1061_v33 = vmul.f32 %v8820_v43, %v8820_v43 }
 0x1fa   : > { %1139 = vadd.xlane.f32.xlu0 %v1059_v5  ;;  %v778_v23 = vpop.xlane.xlu1 %777  ;;  %v8827_v5 = vsel %vm720_vm0, %v932_v37, 0.0  ;;  %v872_v37 = vmul.f32 0.125, %v768_v28 }
 0x1fb   : > { %v1062_v32 = vmul.f32 %v8827_v5, %v8827_v5 }
 0x1fc   : > { %v936_v54 = vsub.f32 %v8216_v46, %v872_v37 }
 0x1fe   : > { %1141 = vadd.xlane.f32.xlu0 %v1060_v1  ;;  %v780_v42 = vpop.xlane.xlu1 %779  ;;  %v8834_v1 = vsel %vm720_vm0, %v933_v62, 0.0  ;;  %v873_v62 = vmul.f32 0.125, %v770_v11  ;;  %v8855_v2 = vsel %vm720_vm0, %v936_v54, 0.0  ;;  %v938_v11 = vsub.f32 %v8221_v48, %v874_v24 }
 0x1ff   : > { %v1063_v45 = vmul.f32 %v8834_v1, %v8834_v1  ;;  %v1066_v46 = vmul.f32 %v8855_v2, %v8855_v2  ;;  %v876_v54 = vmul.f32 0.125, %v776_v35  ;;  %v8876_v24 = vsel %vm720_vm0, %v939_v60, 0.0 }
 0x200   : > { %v937_v28 = vsub.f32 %v8223_v49, %v873_v62  ;;  %v8869_v62 = vsel %vm720_vm0, %v938_v11, 0.0  ;;  %10932 = vst [vmem:[#allocation28_spill] sm:$0xff] %v8876_v24  ;;  %v1069_v51 = vmul.f32 %v8876_v24, %v8876_v24  ;;  %v878_v11 = vmul.f32 0.125, %v780_v42 }
 0x201   : > { %v1068_v48 = vmul.f32 %v8869_v62, %v8869_v62  ;;  %v940_v61 = vsub.f32 %v8226_v50, %v876_v54 }
 0x202   : > { %1143 = vadd.xlane.f32.xlu0 %v1061_v33  ;;  %v782_v43 = vpop.xlane.xlu1 %781  ;;  %v8862_v37 = vsel %vm720_vm0, %v937_v28, 0.0  ;;  %v877_v28 = vmul.f32 0.125, %v778_v23  ;;  %v942_v23 = vsub.f32 %v8231_v52, %v878_v11 }
 0x203   : > { %v1067_v49 = vmul.f32 %v8862_v37, %v8862_v37  ;;  %v8883_v18 = vsel %vm720_vm0, %v940_v61, 0.0  ;;  %v879_v60 = vmul.f32 0.125, %v782_v43  ;;  %v10936_v43 = vld [vmem:[#allocation7_spill] sm:$0xff] }
 0x204   : > { %v941_v35 = vsub.f32 %v8233_v53, %v877_v28  ;;  %10933 = vst [vmem:[#allocation29_spill] sm:$0xff] %v8883_v18  ;;  %v1070_v50 = vmul.f32 %v8883_v18, %v8883_v18  ;;  %v8897_v28 = vsel %vm720_vm0, %v942_v23, 0.0 }
 0x205   : > { %v943_v42 = vsub.f32 %v8238_v55, %v879_v60  ;;  %10935 = vst [vmem:[#allocation31_spill] sm:$0xff] %v8897_v28  ;;  %v1072_v52 = vmul.f32 %v8897_v28, %v8897_v28 }
 0x206   : > { %1145 = vadd.xlane.f32.xlu0 %v1062_v32  ;;  %v784_v33 = vpop.xlane.xlu1 %783  ;;  %v8890_v54 = vsel %vm720_vm0, %v941_v35, 0.0 }
 0x207   : > { %10934 = vst [vmem:[#allocation30_spill] sm:$0xff] %v8890_v54  ;;  %v1071_v53 = vmul.f32 %v8890_v54, %v8890_v54  ;;  %v880_v61 = vmul.f32 0.125, %v784_v33  ;;  %v10938_v33 = vld [vmem:[#allocation9_spill] sm:$0xff] }
 0x209   : > { %v944_v35 = vsub.f32 %v10936_v43, %v880_v61 }
 0x20a   : > { %1147 = vadd.xlane.f32.xlu0 %v1063_v45  ;;  %v786_v32 = vpop.xlane.xlu1 %785 }
 0x20b   : > { %v881_v11 = vmul.f32 0.125, %v786_v32 }
 0x20d   : > { %v945_v23 = vsub.f32 %v10938_v33, %v881_v11 }
 0x20e   : > { %1149 = vadd.xlane.f32.xlu0 %v1064_v44  ;;  %v788_v45 = vpop.xlane.xlu1 %787 }
 0x20f   : > { %v882_v60 = vmul.f32 0.125, %v788_v45  ;;  %v8920_v43 = vsel %vm720_vm0, %v945_v23, 0.0  ;;  %v10944_v23 = vld [vmem:[#allocation10_spill] sm:$0xff] }
 0x210   : > { %v1075_v45 = vmul.f32 %v8920_v43, %v8920_v43 }
 0x212   : > { %1151 = vadd.xlane.f32.xlu0 %v1065_v47  ;;  %v790_v44 = vpop.xlane.xlu1 %789 }
 0x216   : > { %1153 = vadd.xlane.f32.xlu0 %v1066_v46  ;;  %v792_v47 = vpop.xlane.xlu1 %791 }
 0x217   : > { %v884_v33 = vmul.f32 0.125, %v792_v47 }
 0x21a   : > { %1155 = vadd.xlane.f32.xlu0 %v1067_v49  ;;  %v794_v46 = vpop.xlane.xlu1 %793 }
 0x21e   : > { %1157 = vadd.xlane.f32.xlu0 %v1068_v48  ;;  %v796_v49 = vpop.xlane.xlu1 %795 }
 0x222   : > { %1159 = vadd.xlane.f32.xlu0 %v1069_v51  ;;  %v798_v48 = vpop.xlane.xlu1 %797 }
 0x226   : > { %1161 = vadd.xlane.f32.xlu0 %v1070_v50  ;;  %v800_v51 = vpop.xlane.xlu1 %799  ;;  %v8904_v50 = vsel %vm720_vm0, %v943_v42, 0.0  ;;  %v10940_v42 = vld [vmem:[#allocation8_spill] sm:$0xff] }
 0x227   : > { %10937 = vst [vmem:[#allocation7_spill] sm:$0xff] %v8904_v50  ;;  %v1073_v55 = vmul.f32 %v8904_v50, %v8904_v50  ;;  %v946_v61 = vsub.f32 %v10940_v42, %v882_v60  ;;  %10941 = vst [vmem:[#allocation8_spill] sm:$0xff] %v8920_v43  ;;  %v885_v42 = vmul.f32 0.125, %v794_v46 }
 0x229   : > { %v8929_v50 = vsel %vm720_vm0, %v946_v61, 0.0  ;;  %v10946_v61 = vld [vmem:[#allocation13_spill] sm:$0xff] }
 0x22a   : > { %1163 = vadd.xlane.f32.xlu0 %v1071_v53  ;;  %v802_v54 = vpop.xlane.xlu1 %801  ;;  %v8911_v53 = vsel %vm720_vm0, %v944_v35, 0.0  ;;  %v10942_v35 = vld [vmem:[#allocation11_spill] sm:$0xff] }
 0x22b   : > { %10939 = vst [vmem:[#allocation9_spill] sm:$0xff] %v8911_v53  ;;  %v1074_v32 = vmul.f32 %v8911_v53, %v8911_v53  ;;  %10943 = vst [vmem:[#allocation11_spill] sm:$0xff] %v8929_v50  ;;  %v889_v24 = vmul.f32 0.125, %v802_v54 }
 0x22e   : > { %1165 = vadd.xlane.f32.xlu0 %v1072_v52  ;;  %v8913_v28 = vpop.xlane.xlu1 %803  ;;  %v883_v52 = vmul.f32 0.125, %v790_v44  ;;  %v1076_v44 = vmul.f32 %v8929_v50, %v8929_v50  ;;  %v887_v50 = vmul.f32 0.125, %v798_v48 }
 0x232   : > { %1167 = vadd.xlane.f32.xlu0 %v1073_v55  ;;  %v8922_v11 = vpop.xlane.xlu1 %805  ;;  %v947_v55 = vsub.f32 %v10942_v35, %v883_v52  ;;  %v886_v35 = vmul.f32 0.125, %v796_v49 }
 0x234   : > { %v8938_v53 = vsel %vm720_vm0, %v947_v55, 0.0 }
 0x235   : > { %10945 = vst [vmem:[#allocation10_spill] sm:$0xff] %v8938_v53  ;;  %v1077_v47 = vmul.f32 %v8938_v53, %v8938_v53 }
 0x236   : > { %1169 = vadd.xlane.f32.xlu0 %v1074_v32  ;;  %v8931_v60 = vpop.xlane.xlu1 %807  ;;  %v948_v32 = vsub.f32 %v10944_v23, %v884_v33  ;;  %v10948_v23 = vld [vmem:[#allocation12_spill] sm:$0xff] }
 0x238   : > { %v8947_v43 = vsel %vm720_vm0, %v948_v32, 0.0 }
 0x239   : > { %10947 = vst [vmem:[#allocation13_spill] sm:$0xff] %v8947_v43  ;;  %v1078_v55 = vmul.f32 %v8947_v43, %v8947_v43  ;;  %v10952_v43 = vld [vmem:[#allocation14_spill] sm:$0xff] }
 0x23a   : > { %1171 = vadd.xlane.f32.xlu0 %v1075_v45  ;;  %v8940_v52 = vpop.xlane.xlu1 %809  ;;  %v949_v45 = vsub.f32 %v10946_v61, %v885_v42  ;;  %v1108_v42 = vpop.xlane.xlu0 %1107 }
 0x23c   : > { %v8955_v53 = vsel %vm720_vm0, %v949_v45, 0.0 }
 0x23d   : > { %10949 = vst [vmem:[#allocation12_spill] sm:$0xff] %v8955_v53  ;;  %v1079_v61 = vmul.f32 %v8955_v53, %v8955_v53 }
 0x23e   : > { %1173 = vadd.xlane.f32.xlu0 %v1076_v44  ;;  %v812_v33 = vpop.xlane.xlu1 %811  ;;  %v950_v44 = vsub.f32 %v10948_v23, %v886_v35  ;;  %v1110_v23 = vpop.xlane.xlu0 %1109 }
 0x23f   : > { %v894_v46 = vmul.f32 0.125, %v812_v33  ;;  %v888_v33 = vmul.f32 0.125, %v800_v51 }
 0x240   : > { %v8970_v45 = vsel %vm720_vm0, %v950_v44, 0.0 }
 0x241   : > { %v958_v18 = vsub.f32 %v8271_v4, %v894_v46  ;;  %v10951_v4 = vld [vmem:[#allocation15_spill] sm:$0xff]  ;;  %v1080_v53 = vmul.f32 %v8970_v45, %v8970_v45 }
 0x242   : > { %1175 = vadd.xlane.f32.xlu0 %v1077_v47  ;;  %v8957_v49 = vpop.xlane.xlu1 %813  ;;  %v1235_v47 = vmul.f32 0.125, %v1108_v42  ;;  %v951_v35 = vsub.f32 %v10951_v4, %v887_v50  ;;  %v1236_v42 = vmul.f32 0.125, %v1110_v23 }
 0x243   : > { %v8961_v32 = vsel %vm720_vm0, %v958_v18, 0.0 }
 0x244   : > { %10950 = vst [vmem:[#allocation32_spill] sm:$0xff] %v8961_v32  ;;  %v1088_v48 = vmul.f32 %v8961_v32, %v8961_v32  ;;  %v1299_v46 = vadd.f32 1e-06, %v1235_v47  ;;  %v952_v32 = vsub.f32 %v10952_v43, %v888_v33  ;;  %v8978_v50 = vsel %vm720_vm0, %v951_v35, 0.0 }
 0x245   : > { %10953 = vst [vmem:[#allocation15_spill] sm:$0xff] %v8978_v50  ;;  %v1300_v44 = vadd.f32 1e-06, %v1236_v42  ;;  %v1081_v54 = vmul.f32 %v8978_v50, %v8978_v50  ;;  %v890_v33 = vmul.f32 0.125, %v8913_v28 }
 0x246   : > { %1177 = vadd.xlane.f32.xlu0 %v1078_v55  ;;  %v816_v55 = vpop.xlane.xlu1 %815  ;;  %1197 = vadd.xlane.f32.xlu1 %v1088_v48  ;;  %7556 = vrsqrt.f32 %v1299_v46  ;;  %v1112_v48 = vpop.xlane.xlu0 %1111  ;;  %v8992_v43 = vsel %vm720_vm0, %v952_v32, 0.0  ;;  %v10958_v32 = vld [vmem:[#allocation16_spill] sm:$0xff] }
 0x247   : > { %v896_v18 = vmul.f32 0.125, %v816_v55  ;;  %7558 = vrsqrt.f32 %v1300_v44  ;;  %v1237_v4 = vmul.f32 0.125, %v1112_v48  ;;  %10955 = vst [vmem:[#allocation33_spill] sm:$0xff] %v8992_v43  ;;  %v954_v48 = vsub.f32 %v10958_v32, %v890_v33 }
 0x249   : > { %v960_v51 = vsub.f32 %v8276_v6, %v896_v18  ;;  %v1301_v46 = vadd.f32 1e-06, %v1237_v4 }
 0x24a   : > { %1179 = vadd.xlane.f32.xlu0 %v1079_v61  ;;  %v8980_v47 = vpop.xlane.xlu1 %817  ;;  %v1114_v23 = vpop.xlane.xlu0 %1113 }
 0x24b   : > { %v8984_v61 = vsel %vm720_vm0, %v960_v51, 0.0  ;;  %7560 = vrsqrt.f32 %v1301_v46  ;;  %v1238_v42 = vmul.f32 0.125, %v1114_v23  ;;  %v1082_v51 = vmul.f32 %v8992_v43, %v8992_v43  ;;  %v10959_v46 = vld [vmem:[#allocation23_spill] sm:$0xff] }
 0x24c   : > { %10954 = vst [vmem:[#allocation14_spill] sm:$0xff] %v8984_v61  ;;  %v1090_v6 = vmul.f32 %v8984_v61, %v8984_v61 }
 0x24e   : > { %1181 = vadd.xlane.f32.xlu0 %v1080_v53  ;;  %v10956_v53 = vld [vmem:[#allocation17_spill] sm:$0xff]  ;;  %v820_v55 = vpop.xlane.xlu1 %819  ;;  %1201 = vadd.xlane.f32.xlu1 %v1090_v6  ;;  %v1302_v6 = vadd.f32 1e-06, %v1238_v42  ;;  %v1116_v33 = vpop.xlane.xlu0 %1115  ;;  %v9028_v42 = vsel %vm720_vm0, %v954_v48, 0.0 }
 0x24f   : > { %v953_v35 = vsub.f32 %v10956_v53, %v889_v24  ;;  %v898_v18 = vmul.f32 0.125, %v820_v55  ;;  %v891_v24 = vmul.f32 0.125, %v8922_v11  ;;  %v1239_v11 = vmul.f32 0.125, %v1116_v33  ;;  %10961 = vst [vmem:[#allocation23_spill] sm:$0xff] %v9028_v42 }
 0x250   : > { %v7557_v4 = vpop.eup %7556  ;;  %7562 = vrsqrt.f32 %v1302_v6  ;;  %v893_v6 = vmul.f32 0.125, %v8940_v52  ;;  %v10964_v52 = vld [vmem:[#allocation18_spill] sm:$0xff] }
 0x251   : > { %v9000_v44 = vsel %vm720_vm0, %v953_v35, 0.0  ;;  %v962_v28 = vsub.f32 %v8281_v8, %v898_v18  ;;  %v1427_v55 = vmul.f32 %v7557_v4, %v10959_v46  ;;  %v9020_v8 = vld [vmem:[%s10854_s3] ss:$0 sm:$0xff]  ;;  %v7559_v46 = vpop.eup %7558  ;;  %v1303_v33 = vadd.f32 1e-06, %v1239_v11 }
 0x252   : > { %1183 = vadd.xlane.f32.xlu0 %v1081_v54  ;;  %10957 = vst [vmem:[#allocation17_spill] sm:$0xff] %v9000_v44  ;;  %v9008_v54 = vld [vmem:[%s10853_s2] ss:$0 sm:$0xff]  ;;  %v9010_v53 = vpop.xlane.xlu1 %821  ;;  %v1083_v18 = vmul.f32 %v9000_v44, %v9000_v44  ;;  %v1118_v48 = vpop.xlane.xlu0 %1117 }
 0x253   : > { %v9015_v35 = vsel %vm720_vm0, %v962_v28, 0.0  ;;  %v892_v28 = vmul.f32 0.125, %v8931_v60  ;;  %v1498_v4 = vmul.f32 %v9008_v54, %v1427_v55  ;;  %7564 = vrsqrt.f32 %v1303_v33  ;;  %v10966_v33 = vld [vmem:[#allocation24_spill] sm:$0xff] }
 0x254   : > { %10960 = vst [vmem:[#allocation16_spill] sm:$0xff] %v9015_v35  ;;  %v1092_v23 = vmul.f32 %v9015_v35, %v9015_v35  ;;  %v1428_v35 = vmul.f32 %v7559_v46, %v8453_v27  ;;  %v1240_v50 = vmul.f32 0.125, %v1118_v48  ;;  %v1084_v60 = vmul.f32 %v9028_v42, %v9028_v42  ;;  %v2039_v42 = vld [vmem:[#allocation2 + $0x2] sm:$0xff] }
 0x255   : > { %v1569_v44 = vadd.f32 %v9020_v8, %v1498_v4  ;;  %v956_v55 = vsub.f32 %v10964_v52, %v892_v28  ;;  %v7561_v27 = vpop.eup %7560  ;;  %v895_v46 = vmul.f32 0.125, %v8957_v49 }
 0x256   : > { %1185 = vadd.xlane.f32.xlu0 %v1082_v51  ;;  %v10962_v51 = vld [vmem:[#allocation19_spill] sm:$0xff]  ;;  %v824_v43 = vpop.xlane.xlu1 %823  ;;  %1205 = vadd.xlane.f32.xlu1 %v1092_v23  ;;  %v1499_v11 = vmul.f32 %v9008_v54, %v1428_v35  ;;  %v1429_v48 = vmul.f32 %v7561_v27, %v10966_v33  ;;  %v1120_v35 = vpop.xlane.xlu0 %1119 }
 0x257   : > { %v955_v32 = vsub.f32 %v10962_v51, %v891_v24  ;;  %v900_v61 = vmul.f32 0.125, %v824_v43  ;;  %1719 = vst [vmem:[#allocation2 + $0x19] sm:$0xff] %v1569_v44  ;;  %3730 = vmatprep.mubr.f32.mxu0 %v1569_v44  ;;  %v10965_v43 = vld [vmem:[#allocation20_spill] sm:$0xff]  ;;  %v1304_v51 = vadd.f32 1e-06, %v1240_v50 }
 0x258   : > { %v957_v23 = vsub.f32 %v10965_v43, %v893_v6  ;;  %v3577_v50 = vld [vmem:[%s10855_s4 + $0x208] sm:$0xff]  ;;  %v9067_v6 = vsel %vm720_vm0, %v956_v55, 0.0 }
 0x259   : > { %v9040_v24 = vsel %vm720_vm0, %v955_v32, 0.0  ;;  %v1570_v32 = vadd.f32 %v9020_v8, %v1499_v11  ;;  %7566 = vrsqrt.f32 %v1304_v51  ;;  %v10968_v51 = vld [vmem:[#allocation21_spill] sm:$0xff] }
 0x25a   : > { %1187 = vadd.xlane.f32.xlu0 %v1083_v18  ;;  %10963 = vst [vmem:[#allocation19_spill] sm:$0xff] %v9040_v24  ;;  %v964_v18 = vsub.f32 %v8286_v10, %v900_v61  ;;  %v9046_v4 = vpop.xlane.xlu1 %825  ;;  %v3576_v10 = vld [vmem:[%s10855_s4 + $0x200] sm:$0xff]  ;;  %v1241_v61 = vmul.f32 0.125, %v1120_v35  ;;  %v1085_v49 = vmul.f32 %v9040_v24, %v9040_v24  ;;  %v7563_v52 = vpop.eup %7562  ;;  %v9072_v11 = vsel %vm720_vm0, %v957_v23, 0.0  ;;  %v3579_v23 = vld [vmem:[%s10855_s4 + $0x218] sm:$0xff] }
 0x25b   : > { %1720 = vst [vmem:[#allocation2 + $0x21] sm:$0xff] %v1570_v32  ;;  %v7018_v43 = vpack.c.bf16 %v3577_v50, %v3576_v10  ;;  %v959_v33 = vsub.f32 %v10968_v51, %v895_v46  ;;  %v1430_v55 = vmul.f32 %v7563_v52, %v8490_v63  ;;  %v1122_v24 = vpop.xlane.xlu0 %1121  ;;  %v1086_v50 = vmul.f32 %v9067_v6, %v9067_v6  ;;  %v2040_v51 = vld [vmem:[#allocation2 + $0xa] sm:$0xff] }
 0x25c   : > { %v9053_v28 = vsel %vm720_vm0, %v964_v18, 0.0  ;;  %v1305_v18 = vadd.f32 1e-06, %v1241_v61  ;;  %v897_v61 = vmul.f32 0.125, %v8980_v47  ;;  %v1242_v10 = vmul.f32 0.125, %v1122_v24 }
 0x25d   : > { %10967 = vst [vmem:[#allocation18_spill] sm:$0xff] %v9053_v28  ;;  %v1094_v44 = vmul.f32 %v9053_v28, %v9053_v28  ;;  %v1501_v63 = vmul.f32 %v9008_v54, %v1430_v55  ;;  %v1087_v47 = vmul.f32 %v9072_v11, %v9072_v11  ;;  %v3580_v55 = vld [vmem:[%s10855_s4 + $0x220] sm:$0xff] }
 0x25e   : > { %1189 = vadd.xlane.f32.xlu0 %v1084_v60  ;;  %v1500_v60 = vmul.f32 %v9008_v54, %v1429_v48  ;;  %v828_v27 = vpop.xlane.xlu1 %827  ;;  %v3578_v48 = vld [vmem:[%s10855_s4 + $0x210] sm:$0xff]  ;;  %7568 = vrsqrt.f32 %v1305_v18  ;;  %v2167_v46 = vld [vmem:[#allocation2 + $0x18] sm:$0xff]  ;;  %v9094_v18 = vsel %vm720_vm0, %v959_v33, 0.0  ;;  %v3581_v33 = vld [vmem:[%s10855_s4 + $0x228] sm:$0xff] }
 0x25f   : > { %1209 = vadd.xlane.f32.xlu1 %v1094_v44  ;;  %v902_v28 = vmul.f32 0.125, %v828_v27  ;;  %4105 = vmatprep.mubr.f32.mxu1 %v2167_v46  ;;  %v7565_v44 = vpop.eup %7564  ;;  %v7021_v24 = vpack.c.bf16 %v3579_v23, %v3578_v48  ;;  %v1572_v27 = vadd.f32 %v9020_v8, %v1501_v63  ;;  %v961_v48 = vsub.f32 %v8283_v9, %v897_v61 }
 0x260   : > { %v1571_v35 = vadd.f32 %v9020_v8, %v1500_v60  ;;  %3731 = vmatmul.mubr.f32.gmra.mrb[68].mxu0 %v2167_v46  ;;  %v1306_v60 = vadd.f32 1e-06, %v1242_v10  ;;  %4106 = vmatmul.mubr.f32.vlgmr.msra.gmra.mrb[0].mxu1 %v2039_v42  ;;  %v1124_v42 = vpop.xlane.xlu0 %1123  ;;  %v7024_v61 = vpack.c.bf16 %v3581_v33, %v3580_v55  ;;  %v10969_v55 = vld [vmem:[#allocation22_spill] sm:$0xff] }
 0x261   : > { %7019 = vmatpush1.bf16.msra.mxu1 %v7018_v43  ;;  %3735 = vmatprep.mubr.f32.mxu0 %v1570_v32  ;;  %1722 = vst [vmem:[#allocation2 + $0x39] sm:$0xff] %v1572_v27  ;;  %v899_v32 = vmul.f32 0.125, %v9010_v53  ;;  %v1089_v53 = vmul.f32 %v9094_v18, %v9094_v18 }
 0x262   : > { %1191 = vadd.xlane.f32.xlu0 %v1085_v49  ;;  %1721 = vst [vmem:[#allocation2 + $0x31] sm:$0xff] %v1571_v35  ;;  %v966_v49 = vsub.f32 %v8291_v12, %v902_v28  ;;  %v9088_v52 = vpop.xlane.xlu1 %829  ;;  %v1431_v12 = vmul.f32 %v7565_v44, %v8512_v0  ;;  %7570 = vrsqrt.f32 %v1306_v60  ;;  %v1243_v0 = vmul.f32 0.125, %v1124_v42  ;;  %v2168_v23 = vld [vmem:[#allocation2 + $0x20] sm:$0xff]  ;;  %7020 = vmatprep.subr.bf16.mxu1 %v10927_v26 }
 0x263   : > { %4110 = vmatprep.mubr.f32.mxu1 %v2168_v23  ;;  %v7567_v46 = vpop.eup %7566  ;;  %v901_v42 = vmul.f32 0.125, %v9046_v4  ;;  %v963_v33 = vsub.f32 %v10969_v55, %v899_v32 }
 0x264   : > { %v9100_v28 = vsel %vm720_vm0, %v966_v49, 0.0  ;;  %v1502_v43 = vmul.f32 %v9008_v54, %v1431_v12  ;;  %3736 = vmatmul.mubr.f32.gmra.mrb[70].mxu0 %v2168_v23  ;;  %4111 = vmatmul.mubr.f32.gmra.mrb[2].mxu1 %v2040_v51  ;;  %v1432_v49 = vmul.f32 %v7567_v46, %v8538_v21  ;;  %v9120_v12 = vsel %vm720_vm0, %v961_v48, 0.0 }
 0x265   : > { %v1096_v10 = vmul.f32 %v9100_v28, %v9100_v28  ;;  %3740 = vmatprep.mubr.f32.mxu0 %v1571_v35  ;;  %7022 = vmatpush1.bf16.msra.mxu1 %v7021_v24 }
 0x266   : > { %1193 = vadd.xlane.f32.xlu0 %v1086_v50  ;;  %v1307_v50 = vadd.f32 1e-06, %v1243_v0  ;;  %v832_v9 = vpop.xlane.xlu1 %831  ;;  %v1573_v63 = vadd.f32 %v9020_v8, %v1502_v43  ;;  %v1503_v21 = vmul.f32 %v9008_v54, %v1432_v49  ;;  %v2041_v0 = vld [vmem:[#allocation2 + $0x1a] sm:$0xff]  ;;  %v10970_v43 = vld [vmem:[#allocation25_spill] sm:$0xff]  ;;  %7023 = vmatprep.subr.bf16.mxu1 %v10927_v26 }
 0x267   : > { %v904_v44 = vmul.f32 0.125, %v832_v9  ;;  %1213 = vadd.xlane.f32.xlu1 %v1096_v10 }
 0x268   : > { %7572 = vrsqrt.f32 %v1307_v50  ;;  %1723 = vst [vmem:[#allocation2 + $0x49] sm:$0xff] %v1573_v63  ;;  %v7569_v23 = vpop.eup %7568  ;;  %v1574_v4 = vadd.f32 %v9020_v8, %v1503_v21  ;;  %v965_v50 = vsub.f32 %v8293_v13, %v901_v42  ;;  %v903_v42 = vmul.f32 0.125, %v9088_v52 }
 0x269   : > { %v2169_v51 = vld [vmem:[#allocation2 + $0x30] sm:$0xff]  ;;  %v968_v35 = vsub.f32 %v8296_v14, %v904_v44  ;;  %v1433_v46 = vmul.f32 %v7569_v23, %v10970_v43  ;;  %v1091_v14 = vmul.f32 %v9120_v12, %v9120_v12  ;;  %v2170_v49 = vld [vmem:[#allocation2 + $0x38] sm:$0xff]  ;;  %7025 = vmatpush1.bf16.msra.mxu1 %v7024_v61  ;;  %v2042_v61 = vld [vmem:[#allocation2 + $0x22] sm:$0xff] }
 0x26a   : > { %1195 = vadd.xlane.f32.xlu0 %v1087_v47  ;;  %v1126_v60 = vpop.xlane.xlu0 %1125  ;;  %4115 = vmatprep.mubr.f32.mxu1 %v2169_v51  ;;  %v834_v48 = vpop.xlane.xlu1 %833  ;;  %1724 = vst [vmem:[#allocation2 + $0x51] sm:$0xff] %v1574_v4  ;;  %v9154_v52 = vsel %vm720_vm0, %v965_v50, 0.0 }
 0x26b   : > { %v1244_v47 = vmul.f32 0.125, %v1126_v60  ;;  %3741 = vmatmul.mubr.f32.gmra.mrb[72].mxu0 %v2169_v51  ;;  %4116 = vmatmul.mubr.f32.gmra.mrb[4].mxu1 %v2041_v0  ;;  %v9130_v24 = vsel %vm720_vm0, %v968_v35, 0.0  ;;  %v3582_v60 = vld [vmem:[%s10855_s4 + $0x230] sm:$0xff]  ;;  %v1504_v13 = vmul.f32 %v9008_v54, %v1433_v46  ;;  %v10971_v35 = vld [vmem:[#allocation26_spill] sm:$0xff] }
 0x26c   : > { %3745 = vmatprep.mubr.f32.mxu0 %v1572_v27  ;;  %v1098_v44 = vmul.f32 %v9130_v24, %v9130_v24  ;;  %v3583_v27 = vld [vmem:[%s10855_s4 + $0x238] sm:$0xff]  ;;  %4120 = vmatprep.mubr.f32.mxu1 %v2170_v49 }
 0x26d   : > { %v1308_v10 = vadd.f32 1e-06, %v1244_v47  ;;  %v7571_v47 = vpop.eup %7570  ;;  %v1575_v21 = vadd.f32 %v9020_v8, %v1504_v13  ;;  %7026 = vmatprep.subr.bf16.mxu1 %v10927_v26 }
 0x26e   : > { %1199 = vadd.xlane.f32.xlu0 %v1089_v53  ;;  %v9146_v53 = vsel %vm720_vm0, %v963_v33, 0.0  ;;  %v836_v55 = vpop.xlane.xlu1 %835  ;;  %v1434_v0 = vmul.f32 %v7571_v47, %v10971_v35  ;;  %1217 = vadd.xlane.f32.xlu1 %v1098_v44  ;;  %v1095_v35 = vmul.f32 %v9154_v52, %v9154_v52 }
 0x26f   : > { %v1128_v32 = vpop.xlane.xlu0 %1127  ;;  %7574 = vrsqrt.f32 %v1308_v10  ;;  %3746 = vmatmul.mubr.f32.gmra.mrb[74].mxu0 %v2170_v49  ;;  %4121 = vmatmul.mubr.f32.gmra.mrb[6].mxu1 %v2042_v61  ;;  %v906_v23 = vmul.f32 0.125, %v836_v55  ;;  %v7027_v10 = vpack.c.bf16 %v3583_v27, %v3582_v60  ;;  %v2171_v46 = vld [vmem:[#allocation2 + $0x48] sm:$0xff]  ;;  %1725 = vst [vmem:[#allocation2 + $0x61] sm:$0xff] %v1575_v21  ;;  %v905_v49 = vmul.f32 0.125, %v834_v48  ;;  %v2043_v60 = vld [vmem:[#allocation2 + $0x32] sm:$0xff] }
 0x270   : > { %v1245_v9 = vmul.f32 0.125, %v1128_v32  ;;  %3750 = vmatprep.mubr.f32.mxu0 %v1573_v63  ;;  %v1093_v32 = vmul.f32 %v9146_v53, %v9146_v53  ;;  %v3585_v63 = vld [vmem:[%s10855_s4 + $0x248] sm:$0xff]  ;;  %v1505_v50 = vmul.f32 %v9008_v54, %v1434_v0  ;;  %4125 = vmatprep.mubr.f32.mxu1 %v2171_v46 }
 0x271   : > { %v970_v44 = vsub.f32 %v8301_v16, %v906_v23  ;;  %7028 = vmatpush1.bf16.msra.mxu1 %v7027_v10  ;;  %v969_v23 = vsub.f32 %v8303_v17, %v905_v49  ;;  %v2044_v10 = vld [vmem:[#allocation2 + $0x3a] sm:$0xff] }
 0x272   : > { %v1309_v51 = vadd.f32 1e-06, %v1245_v9  ;;  %1203 = vadd.xlane.f32.xlu0 %v1091_v14  ;;  %v3584_v14 = vld [vmem:[%s10855_s4 + $0x240] sm:$0xff]  ;;  %v967_v9 = vsub.f32 %v8298_v15, %v903_v42  ;;  %v7573_v27 = vpop.eup %7572  ;;  %v838_v61 = vpop.xlane.xlu1 %837  ;;  %v1576_v47 = vadd.f32 %v9020_v8, %v1505_v50  ;;  %v2172_v42 = vld [vmem:[#allocation2 + $0x50] sm:$0xff]  ;;  %7029 = vmatprep.subr.bf16.mxu1 %v10927_v26 }
 0x273   : > { %v1130_v33 = vpop.xlane.xlu0 %1129  ;;  %3751 = vmatmul.mubr.f32.gmra.mrb[76].mxu0 %v2171_v46  ;;  %4126 = vmatmul.mubr.f32.gmra.mrb[8].mxu1 %v2043_v60  ;;  %v9172_v55 = vsel %vm720_vm0, %v970_v44, 0.0  ;;  %v7030_v16 = vpack.c.bf16 %v3585_v63, %v3584_v14  ;;  %v3587_v46 = vld [vmem:[%s10855_s4 + $0x258] sm:$0xff] }
 0x274   : > { %7576 = vrsqrt.f32 %v1309_v51  ;;  %v1246_v43 = vmul.f32 0.125, %v1130_v33  ;;  %v1435_v51 = vmul.f32 %v7573_v27, %v8708_v25  ;;  %3755 = vmatprep.mubr.f32.mxu0 %v1574_v4  ;;  %v1100_v0 = vmul.f32 %v9172_v55, %v9172_v55  ;;  %1726 = vst [vmem:[#allocation2 + $0x69] sm:$0xff] %v1576_v47  ;;  %4130 = vmatprep.mubr.f32.mxu1 %v2172_v42 }
 0x275   : > { %v9181_v25 = vsel %vm720_vm0, %v967_v9, 0.0  ;;  %v907_v33 = vmul.f32 0.125, %v838_v61  ;;  %7031 = vmatpush1.bf16.msra.mxu1 %v7030_v16 }
 0x276   : > { %v1310_v13 = vadd.f32 1e-06, %v1246_v43  ;;  %1207 = vadd.xlane.f32.xlu0 %v1093_v32  ;;  %v1506_v4 = vmul.f32 %v9008_v54, %v1435_v51  ;;  %v3586_v43 = vld [vmem:[%s10855_s4 + $0x250] sm:$0xff]  ;;  %v840_v63 = vpop.xlane.xlu1 %839  ;;  %1221 = vadd.xlane.f32.xlu1 %v1100_v0  ;;  %v2173_v60 = vld [vmem:[#allocation2 + $0x60] sm:$0xff]  ;;  %v1097_v27 = vmul.f32 %v9181_v25, %v9181_v25  ;;  %v9198_v51 = vsel %vm720_vm0, %v969_v23, 0.0 }
 0x277   : > { %v1132_v15 = vpop.xlane.xlu0 %1131  ;;  %3756 = vmatmul.mubr.f32.gmra.mrb[78].mxu0 %v2172_v42  ;;  %4131 = vmatmul.mubr.f32.gmra.mrb[10].mxu1 %v2044_v10  ;;  %v908_v9 = vmul.f32 0.125, %v840_v63  ;;  %v1099_v10 = vmul.f32 %v9198_v51, %v9198_v51  ;;  %v2046_v63 = vld [vmem:[#allocation2 + $0x52] sm:$0xff] }
 0x278   : > { %7578 = vrsqrt.f32 %v1310_v13  ;;  %v1247_v48 = vmul.f32 0.125, %v1132_v15  ;;  %v1577_v50 = vadd.f32 %v9020_v8, %v1506_v4  ;;  %3760 = vmatprep.mubr.f32.mxu0 %v1575_v21  ;;  %v7033_v13 = vpack.c.bf16 %v3587_v46, %v3586_v43  ;;  %4135 = vmatprep.mubr.f32.mxu1 %v2173_v60  ;;  %v2045_v21 = vld [vmem:[#allocation2 + $0x4a] sm:$0xff] }
 0x279   : > { %v7575_v32 = vpop.eup %7574  ;;  %v972_v15 = vsub.f32 %v8312_v20, %v908_v9  ;;  %7032 = vmatprep.subr.bf16.mxu1 %v10927_v26 }
 0x27a   : > { %v1311_v14 = vadd.f32 1e-06, %v1247_v48  ;;  %1211 = vadd.xlane.f32.xlu0 %v1095_v35  ;;  %v1436_v17 = vmul.f32 %v7575_v32, %v8726_v29  ;;  %1727 = vst [vmem:[#allocation2 + $0x79] sm:$0xff] %v1577_v50  ;;  %v971_v29 = vsub.f32 %v8314_v22, %v907_v33  ;;  %v842_v16 = vpop.xlane.xlu1 %841  ;;  %7034 = vmatpush1.bf16.msra.mxu1 %v7033_v13 }
 0x27b   : > { %v1134_v49 = vpop.xlane.xlu0 %1133  ;;  %3761 = vmatmul.mubr.f32.gmra.mrb[80].mxu0 %v2173_v60  ;;  %4136 = vmatmul.mubr.f32.gmra.mrb[12].mxu1 %v2045_v21  ;;  %v9206_v4 = vsel %vm720_vm0, %v972_v15, 0.0  ;;  %v909_v23 = vmul.f32 0.125, %v842_v16  ;;  %v2174_v33 = vld [vmem:[#allocation2 + $0x68] sm:$0xff] }
 0x27c   : > { %7580 = vrsqrt.f32 %v1311_v14  ;;  %v1248_v44 = vmul.f32 0.125, %v1134_v49  ;;  %v1507_v61 = vmul.f32 %v9008_v54, %v1436_v17  ;;  %3765 = vmatprep.mubr.f32.mxu0 %v1576_v47  ;;  %v1102_v43 = vmul.f32 %v9206_v4, %v9206_v4  ;;  %v3589_v47 = vld [vmem:[%s10855_s4 + $0x268] sm:$0xff]  ;;  %4140 = vmatprep.mubr.f32.mxu1 %v2174_v33 }
 0x27d   : > { %v9222_v32 = vsel %vm720_vm0, %v971_v29, 0.0  ;;  %v973_v14 = vsub.f32 %v8328_v58, %v909_v23  ;;  %v3590_v58 = vld [vmem:[%s10855_s4 + $0x270] sm:$0xff]  ;;  %v3591_v29 = vld [vmem:[%s10855_s4 + $0x278] sm:$0xff]  ;;  %7035 = vmatprep.subr.bf16.mxu1 %v10927_v26  ;;  %v2047_v16 = vld [vmem:[#allocation2 + $0x62] sm:$0xff] }
 0x27e   : > { %v7577_v48 = vpop.eup %7576  ;;  %v1312_v42 = vadd.f32 1e-06, %v1248_v44  ;;  %1215 = vadd.xlane.f32.xlu0 %v1097_v27  ;;  %v1578_v35 = vadd.f32 %v9020_v8, %v1507_v61  ;;  %v844_v49 = vpop.xlane.xlu1 %843  ;;  %1225 = vadd.xlane.f32.xlu1 %v1102_v43 }
 0x27f   : > { %v1437_v0 = vmul.f32 %v7577_v48, %v8743_v7  ;;  %v1136_v22 = vpop.xlane.xlu0 %1135  ;;  %v3588_v7 = vld [vmem:[%s10855_s4 + $0x260] sm:$0xff]  ;;  %3766 = vmatmul.mubr.f32.gmra.mrb[82].mxu0 %v2174_v33  ;;  %4141 = vmatmul.mubr.f32.gmra.mrb[14].mxu1 %v2046_v63  ;;  %v910_v27 = vmul.f32 0.125, %v844_v49  ;;  %v1101_v48 = vmul.f32 %v9222_v32, %v9222_v32  ;;  %v3593_v49 = vld [vmem:[%s10855_s4 + $0x288] sm:$0xff] }
 0x280   : > { %7582 = vrsqrt.f32 %v1312_v42  ;;  %v1249_v20 = vmul.f32 0.125, %v1136_v22  ;;  %1728 = vst [vmem:[#allocation2 + $0x81] sm:$0xff] %v1578_v35  ;;  %3770 = vmatprep.mubr.f32.mxu0 %v1577_v50  ;;  %v7036_v61 = vpack.c.bf16 %v3589_v47, %v3588_v7  ;;  %v9239_v50 = vsel %vm720_vm0, %v973_v14, 0.0 }
 0x281   : > { %v1508_v46 = vmul.f32 %v9008_v54, %v1437_v0  ;;  %v2175_v21 = vld [vmem:[#allocation2 + $0x78] sm:$0xff]  ;;  %v974_v42 = vsub.f32 %v8326_v19, %v910_v27  ;;  %v1103_v14 = vmul.f32 %v9239_v50, %v9239_v50 }
 0x282   : > { %v7579_v17 = vpop.eup %7578  ;;  %v1313_v9 = vadd.f32 1e-06, %v1249_v20  ;;  %1219 = vadd.xlane.f32.xlu0 %v1099_v10  ;;  %4145 = vmatprep.mubr.f32.mxu1 %v2175_v21  ;;  %v846_v22 = vpop.xlane.xlu1 %845  ;;  %v7039_v20 = vpack.c.bf16 %v3591_v29, %v3590_v58 }
 0x283   : > { %v1579_v44 = vadd.f32 %v9020_v8, %v1508_v46  ;;  %v1438_v60 = vmul.f32 %v7579_v17, %v8760_v30  ;;  %v1138_v13 = vpop.xlane.xlu0 %1137  ;;  %3771 = vmatmul.mubr.f32.gmra.mrb[84].mxu0 %v2175_v21  ;;  %4146 = vmatmul.mubr.f32.gmra.mrb[16].mxu1 %v2047_v16  ;;  %v9246_v43 = vsel %vm720_vm0, %v974_v42, 0.0  ;;  %v911_v7 = vmul.f32 0.125, %v846_v22 }
 0x284   : > { %7584 = vrsqrt.f32 %v1313_v9  ;;  %v1250_v15 = vmul.f32 0.125, %v1138_v13  ;;  %3775 = vmatprep.mubr.f32.mxu0 %v1578_v35  ;;  %7037 = vmatpush1.bf16.msra.mxu1 %v7036_v61  ;;  %v1104_v63 = vmul.f32 %v9246_v43, %v9246_v43  ;;  %v2048_v35 = vld [vmem:[#allocation2 + $0x6a] sm:$0xff]  ;;  %v3592_v9 = vld [vmem:[%s10855_s4 + $0x280] sm:$0xff] }
 0x285   : > { %1729 = vst [vmem:[#allocation2 + $0x91] sm:$0xff] %v1579_v44  ;;  %v1509_v30 = vmul.f32 %v9008_v54, %v1438_v60  ;;  %7038 = vmatprep.subr.bf16.mxu1 %v10927_v26  ;;  %v975_v17 = vsub.f32 %v8340_v57, %v911_v7  ;;  %v7042_v42 = vpack.c.bf16 %v3593_v49, %v3592_v9 }
 0x286   : > { %v7581_v0 = vpop.eup %7580  ;;  %v1314_v23 = vadd.f32 1e-06, %v1250_v15  ;;  %1223 = vadd.xlane.f32.xlu0 %v1101_v48  ;;  %v848_v13 = vpop.xlane.xlu1 %847  ;;  %1229 = vadd.xlane.f32.xlu1 %v1104_v63 }
 0x287   : > { %v1580_v33 = vadd.f32 %v9020_v8, %v1509_v30  ;;  %v1439_v10 = vmul.f32 %v7581_v0, %v8769_v56  ;;  %v1140_v47 = vpop.xlane.xlu0 %1139  ;;  %v2176_v46 = vld [vmem:[#allocation2 + $0x80] sm:$0xff]  ;;  %v9265_v58 = vsel %vm720_vm0, %v975_v17, 0.0  ;;  %v912_v29 = vmul.f32 0.125, %v848_v13 }
 0x288   : > { %7586 = vrsqrt.f32 %v1314_v23  ;;  %v1251_v19 = vmul.f32 0.125, %v1140_v47  ;;  %4150 = vmatprep.mubr.f32.mxu1 %v2176_v46  ;;  %3776 = vmatmul.mubr.f32.gmra.mrb[86].mxu0 %v2176_v46  ;;  %v1105_v30 = vmul.f32 %v9265_v58, %v9265_v58  ;;  %v2049_v0 = vld [vmem:[#allocation2 + $0x7a] sm:$0xff]  ;;  %v2050_v3 = vld [vmem:[#allocation2 + $0x82] sm:$0xff] }
 0x289   : > { %1730 = vst [vmem:[#allocation2 + $0x99] sm:$0xff] %v1580_v33  ;;  %v1510_v56 = vmul.f32 %v9008_v54, %v1439_v10  ;;  %4151 = vmatmul.mubr.f32.gmra.mrb[18].mxu1 %v2048_v35  ;;  %3780 = vmatprep.mubr.f32.mxu0 %v1579_v44  ;;  %v3594_v44 = vld [vmem:[%s10855_s4 + $0x290] sm:$0xff]  ;;  %v3595_v23 = vld [vmem:[%s10855_s4 + $0x298] sm:$0xff] }
 0x28a   : > { %v7583_v60 = vpop.eup %7582  ;;  %v1315_v27 = vadd.f32 1e-06, %v1251_v19  ;;  %1227 = vadd.xlane.f32.xlu0 %v1103_v14  ;;  %7040 = vmatpush1.bf16.msra.mxu1 %v7039_v20  ;;  %v7045_v63 = vpack.c.bf16 %v3595_v23, %v3594_v44 }
 0x28b   : > { %v1581_v61 = vadd.f32 %v9020_v8, %v1510_v56  ;;  %v1440_v57 = vmul.f32 %v7583_v60, %v8778_v36  ;;  %v1142_v15 = vpop.xlane.xlu0 %1141  ;;  %v976_v36 = vsub.f32 %v8338_v59, %v912_v29  ;;  %7041 = vmatprep.subr.bf16.mxu1 %v10927_v26 }
 0x28c   : > { %7588 = vrsqrt.f32 %v1315_v27  ;;  %v1252_v21 = vmul.f32 0.125, %v1142_v15  ;;  %v2177_v48 = vld [vmem:[#allocation2 + $0x90] sm:$0xff] }
 0x28d   : > { %1731 = vst [vmem:[#allocation2 + $0xa9] sm:$0xff] %v1581_v61  ;;  %v1511_v16 = vmul.f32 %v9008_v54, %v1440_v57  ;;  %4155 = vmatprep.mubr.f32.mxu1 %v2177_v48  ;;  %3781 = vmatmul.mubr.f32.gmra.mrb[88].mxu0 %v2177_v48  ;;  %v9281_v59 = vsel %vm720_vm0, %v976_v36, 0.0 }
 0x28e   : > { %v7585_v22 = vpop.eup %7584  ;;  %v1316_v10 = vadd.f32 1e-06, %v1252_v21  ;;  %4156 = vmatmul.mubr.f32.gmra.mrb[20].mxu1 %v2049_v0  ;;  %1231 = vadd.xlane.f32.xlu0 %v1105_v30  ;;  %v1106_v14 = vmul.f32 %v9281_v59, %v9281_v59 }
 0x28f   : > { %v1582_v20 = vadd.f32 %v9020_v8, %v1511_v16  ;;  %v1441_v7 = vmul.f32 %v7585_v22, %v8786_v39  ;;  %v1144_v47 = vpop.xlane.xlu0 %1143  ;;  %3785 = vmatprep.mubr.f32.mxu0 %v1580_v33  ;;  %7043 = vmatpush1.bf16.msra.mxu1 %v7042_v42  ;;  %v3596_v16 = vld [vmem:[%s10855_s4 + $0x2a0] sm:$0xff] }
 0x290   : > { %7590 = vrsqrt.f32 %v1316_v10  ;;  %v1253_v19 = vmul.f32 0.125, %v1144_v47  ;;  %v2178_v46 = vld [vmem:[#allocation2 + $0x98] sm:$0xff]  ;;  %1233 = vadd.xlane.f32.xlu1 %v1106_v14  ;;  %7044 = vmatprep.subr.bf16.mxu1 %v10927_v26 }
 0x291   : > { %1732 = vst [vmem:[#allocation2 + $0xb1] sm:$0xff] %v1582_v20  ;;  %v1512_v56 = vmul.f32 %v9008_v54, %v1441_v7  ;;  %4160 = vmatprep.mubr.f32.mxu1 %v2178_v46  ;;  %3786 = vmatmul.mubr.f32.gmra.mrb[90].mxu0 %v2178_v46  ;;  %v2051_v13 = vld [vmem:[#allocation2 + $0x92] sm:$0xff]  ;;  %v2052_v42 = vld [vmem:[#allocation2 + $0x9a] sm:$0xff] }
 0x292   : > { %v7587_v39 = vpop.eup %7586  ;;  %v1317_v17 = vadd.f32 1e-06, %v1253_v19  ;;  %4161 = vmatmul.mubr.f32.gmra.mrb[22].mxu1 %v2050_v3  ;;  %3790 = vmatprep.mubr.f32.mxu0 %v1581_v61 }
 0x293   : > { %v1583_v33 = vadd.f32 %v9020_v8, %v1512_v56  ;;  %v1442_v35 = vmul.f32 %v7587_v39, %v8795_v38  ;;  %v1146_v9 = vpop.xlane.xlu0 %1145  ;;  %7046 = vmatpush1.bf16.msra.mxu1 %v7045_v63  ;;  %v10972_v56 = vld [vmem:[#allocation27_spill] sm:$0xff] }
 0x294   : > { %7592 = vrsqrt.f32 %v1317_v17  ;;  %v1254_v49 = vmul.f32 0.125, %v1146_v9  ;;  %v2179_v60 = vld [vmem:[#allocation2 + $0xa8] sm:$0xff]  ;;  %7047 = vmatprep.subr.bf16.mxu1 %v10927_v26 }
 0x295   : > { %1733 = vst [vmem:[#allocation2 + $0xc1] sm:$0xff] %v1583_v33  ;;  %v1513_v27 = vmul.f32 %v9008_v54, %v1442_v35  ;;  %4165 = vmatprep.mubr.f32.mxu1 %v2179_v60  ;;  %3791 = vmatmul.mubr.f32.gmra.mrb[92].mxu0 %v2179_v60 }
 0x296   : > { %v7589_v57 = vpop.eup %7588  ;;  %v1318_v29 = vadd.f32 1e-06, %v1254_v49  ;;  %4166 = vmatmul.mubr.f32.gmra.mrb[24].mxu1 %v2051_v13  ;;  %3795 = vmatprep.mubr.f32.mxu0 %v1582_v20 }
 0x297   : > { %v1584_v38 = vadd.f32 %v9020_v8, %v1513_v27  ;;  %v1443_v61 = vmul.f32 %v7589_v57, %v8803_v41  ;;  %v1148_v15 = vpop.xlane.xlu0 %1147  ;;  %v3597_v41 = vld [vmem:[%s10855_s4 + $0x2a8] sm:$0xff] }
 0x298   : > { %7594 = vrsqrt.f32 %v1318_v29  ;;  %v1255_v21 = vmul.f32 0.125, %v1148_v15  ;;  %v2180_v48 = vld [vmem:[#allocation2 + $0xb0] sm:$0xff]  ;;  %v7048_v44 = vpack.c.bf16 %v3597_v41, %v3596_v16 }
 0x299   : > { %1734 = vst [vmem:[#allocation2 + $0xc9] sm:$0xff] %v1584_v38  ;;  %v1514_v30 = vmul.f32 %v9008_v54, %v1443_v61  ;;  %4170 = vmatprep.mubr.f32.mxu1 %v2180_v48  ;;  %3796 = vmatmul.mubr.f32.gmra.mrb[94].mxu0 %v2180_v48  ;;  %v2053_v19 = vld [vmem:[#allocation2 + $0xaa] sm:$0xff]  ;;  %v2054_v35 = vld [vmem:[#allocation2 + $0xb2] sm:$0xff] }
 0x29a   : > { %v7591_v36 = vpop.eup %7590  ;;  %v1319_v0 = vadd.f32 1e-06, %v1255_v21  ;;  %4171 = vmatmul.mubr.f32.gmra.mrb[26].mxu1 %v2052_v42  ;;  %3800 = vmatprep.mubr.f32.mxu0 %v1583_v33 }
 0x29b   : > { %v1585_v23 = vadd.f32 %v9020_v8, %v1514_v30  ;;  %v1444_v22 = vmul.f32 %v7591_v36, %v8812_v40  ;;  %v1150_v10 = vpop.xlane.xlu0 %1149  ;;  %7049 = vmatpush1.bf16.msra.mxu1 %v7048_v44  ;;  %v3599_v44 = vld [vmem:[%s10855_s4 + $0x2b8] sm:$0xff] }
 0x29c   : > { %7596 = vrsqrt.f32 %v1319_v0  ;;  %v1256_v20 = vmul.f32 0.125, %v1150_v10  ;;  %v2181_v7 = vld [vmem:[#allocation2 + $0xc0] sm:$0xff]  ;;  %7050 = vmatprep.subr.bf16.mxu1 %v10927_v26  ;;  %v3598_v0 = vld [vmem:[%s10855_s4 + $0x2b0] sm:$0xff] }
 0x29d   : > { %1735 = vst [vmem:[#allocation2 + $0xd9] sm:$0xff] %v1585_v23  ;;  %v1515_v47 = vmul.f32 %v9008_v54, %v1444_v22  ;;  %4175 = vmatprep.mubr.f32.mxu1 %v2181_v7  ;;  %3801 = vmatmul.mubr.f32.gmra.mrb[96].mxu0 %v2181_v7  ;;  %v7051_v22 = vpack.c.bf16 %v3599_v44, %v3598_v0 }
 0x29e   : > { %v7593_v46 = vpop.eup %7592  ;;  %v1320_v14 = vadd.f32 1e-06, %v1256_v20  ;;  %4176 = vmatmul.mubr.f32.gmra.mrb[28].mxu1 %v2053_v19  ;;  %3805 = vmatprep.mubr.f32.mxu0 %v1584_v38 }
 0x29f   : > { %v1586_v63 = vadd.f32 %v9020_v8, %v1515_v47  ;;  %v1445_v3 = vmul.f32 %v7593_v46, %v10972_v56  ;;  %v1152_v40 = vpop.xlane.xlu0 %1151  ;;  %7052 = vmatpush1.bf16.msra.mxu1 %v7051_v22 }
 0x2a0   : > { %7598 = vrsqrt.f32 %v1320_v14  ;;  %v1257_v39 = vmul.f32 0.125, %v1152_v40  ;;  %v2182_v17 = vld [vmem:[#allocation2 + $0xc8] sm:$0xff]  ;;  %7053 = vmatprep.subr.bf16.mxu1 %v10927_v26 }
 0x2a1   : > { %1736 = vst [vmem:[#allocation2 + $0xe1] sm:$0xff] %v1586_v63  ;;  %v1516_v33 = vmul.f32 %v9008_v54, %v1445_v3  ;;  %4180 = vmatprep.mubr.f32.mxu1 %v2182_v17  ;;  %3806 = vmatmul.mubr.f32.gmra.mrb[98].mxu0 %v2182_v17  ;;  %v2055_v61 = vld [vmem:[#allocation2 + $0xc2] sm:$0xff]  ;;  %v2056_v36 = vld [vmem:[#allocation2 + $0xca] sm:$0xff] }
 0x2a2   : > { %v7595_v9 = vpop.eup %7594  ;;  %v1321_v49 = vadd.f32 1e-06, %v1257_v39  ;;  %4181 = vmatmul.mubr.f32.gmra.mrb[30].mxu1 %v2054_v35  ;;  %3810 = vmatprep.mubr.f32.mxu0 %v1585_v23 }
 0x2a3   : > { %v1587_v60 = vadd.f32 %v9020_v8, %v1516_v33  ;;  %v1446_v27 = vmul.f32 %v7595_v9, %v8827_v5  ;;  %v1154_v13 = vpop.xlane.xlu0 %1153 }
 0x2a4   : > { %7600 = vrsqrt.f32 %v1321_v49  ;;  %v1258_v57 = vmul.f32 0.125, %v1154_v13  ;;  %v2183_v29 = vld [vmem:[#allocation2 + $0xd8] sm:$0xff] }
 0x2a5   : > { %1737 = vst [vmem:[#allocation2 + $0xf1] sm:$0xff] %v1587_v60  ;;  %v1517_v38 = vmul.f32 %v9008_v54, %v1446_v27  ;;  %4185 = vmatprep.mubr.f32.mxu1 %v2183_v29  ;;  %3811 = vmatmul.mubr.f32.gmra.mrb[100].mxu0 %v2183_v29 }
 0x2a6   : > { %v7597_v15 = vpop.eup %7596  ;;  %v1322_v21 = vadd.f32 1e-06, %v1258_v57  ;;  %4186 = vmatmul.mubr.f32.gmra.mrb[32].mxu1 %v2055_v61  ;;  %3815 = vmatprep.mubr.f32.mxu0 %v1586_v63 }
 0x2a7   : > { %v1588_v48 = vadd.f32 %v9020_v8, %v1517_v38  ;;  %v1447_v30 = vmul.f32 %v7597_v15, %v8834_v1  ;;  %v1156_v42 = vpop.xlane.xlu0 %1155 }
 0x2a8   : > { %7602 = vrsqrt.f32 %v1322_v21  ;;  %v1259_v5 = vmul.f32 0.125, %v1156_v42  ;;  %v2184_v16 = vld [vmem:[#allocation2 + $0xe0] sm:$0xff]  ;;  %v3602_v42 = vld [vmem:[%s10855_s4 + $0x2d0] sm:$0xff] }
 0x2a9   : > { %1738 = vst [vmem:[#allocation2 + $0xf9] sm:$0xff] %v1588_v48  ;;  %v1518_v41 = vmul.f32 %v9008_v54, %v1447_v30  ;;  %4190 = vmatprep.mubr.f32.mxu1 %v2184_v16  ;;  %3816 = vmatmul.mubr.f32.gmra.mrb[102].mxu0 %v2184_v16  ;;  %v2057_v14 = vld [vmem:[#allocation2 + $0xda] sm:$0xff]  ;;  %v2058_v35 = vld [vmem:[#allocation2 + $0xe2] sm:$0xff] }
 0x2aa   : > { %v7599_v23 = vpop.eup %7598  ;;  %v1323_v1 = vadd.f32 1e-06, %v1259_v5  ;;  %4191 = vmatmul.mubr.f32.gmra.mrb[34].mxu1 %v2056_v36  ;;  %3820 = vmatprep.mubr.f32.mxu0 %v1587_v60  ;;  %v3603_v5 = vld [vmem:[%s10855_s4 + $0x2d8] sm:$0xff]  ;;  %v9352_v16 = vld [vmem:[%s10854_s3] ss:$0 sm:$0xff] }
 0x2ab   : > { %v1589_v10 = vadd.f32 %v9020_v8, %v1518_v41  ;;  %v1448_v20 = vmul.f32 %v7599_v23, %v8841_v31  ;;  %v1158_v7 = vpop.xlane.xlu0 %1157  ;;  %v7057_v22 = vpack.c.bf16 %v3603_v5, %v3602_v42  ;;  %v3644_v5 = vld [vmem:[%s10855_s4 + $0x420] sm:$0xff] }
 0x2ac   : > { %7604 = vrsqrt.f32 %v1323_v1  ;;  %v1260_v47 = vmul.f32 0.125, %v1158_v7  ;;  %v2185_v19 = vld [vmem:[#allocation2 + $0xf0] sm:$0xff] }
 0x2ad   : > { %1739 = vst [vmem:[#allocation2 + $0x109] sm:$0xff] %v1589_v10  ;;  %v1519_v46 = vmul.f32 %v9008_v54, %v1448_v20  ;;  %4195 = vmatprep.mubr.f32.mxu1 %v2185_v19  ;;  %3821 = vmatmul.mubr.f32.gmra.mrb[104].mxu0 %v2185_v19 }
 0x2ae   : > { %v7601_v63 = vpop.eup %7600  ;;  %v1324_v56 = vadd.f32 1e-06, %v1260_v47  ;;  %4196 = vmatmul.mubr.f32.gmra.mrb[36].mxu1 %v2057_v14  ;;  %3825 = vmatprep.mubr.f32.mxu0 %v1588_v48 }
 0x2af   : > { %v1590_v3 = vadd.f32 %v9020_v8, %v1519_v46  ;;  %v1449_v40 = vmul.f32 %v7601_v63, %v8848_v34  ;;  %v1160_v31 = vpop.xlane.xlu0 %1159  ;;  %v3640_v63 = vld [vmem:[%s10855_s4 + $0x400] sm:$0xff] }
 0x2b0   : > { %7606 = vrsqrt.f32 %v1324_v56  ;;  %v1261_v39 = vmul.f32 0.125, %v1160_v31  ;;  %v2186_v17 = vld [vmem:[#allocation2 + $0xf8] sm:$0xff]  ;;  %v9341_v61 = vpop.f32.mrb[64].mxu0  ;;  %v3641_v56 = vld [vmem:[%s10855_s4 + $0x408] sm:$0xff] }
 0x2b1   : > { %1740 = vst [vmem:[#allocation2 + $0x111] sm:$0xff] %v1590_v3  ;;  %v1520_v33 = vmul.f32 %v9008_v54, %v1449_v40  ;;  %4200 = vmatprep.mubr.f32.mxu1 %v2186_v17  ;;  %3826 = vmatmul.mubr.f32.gmra.mrb[106].mxu0 %v2186_v17  ;;  %v9332_v54 = vld [vmem:[%s10853_s2] ss:$0 sm:$0xff]  ;;  %v2059_v38 = vld [vmem:[#allocation2 + $0xf2] sm:$0xff]  ;;  %v3724_v30 = vpop.f32.mrb[65].mxu0  ;;  %v7113_v31 = vpack.c.bf16 %v3641_v56, %v3640_v63 }
 0x2b2   : > { %v7603_v9 = vpop.eup %7602  ;;  %v1325_v49 = vadd.f32 1e-06, %v1261_v39  ;;  %4201 = vmatmul.mubr.f32.gmra.mrb[38].mxu1 %v2058_v35  ;;  %3830 = vmatprep.mubr.f32.mxu0 %v1589_v10  ;;  %v2060_v7 = vld [vmem:[#allocation2 + $0xfa] sm:$0xff]  ;;  %v3646_v56 = vld [vmem:[%s10855_s4 + $0x430] sm:$0xff] }
 0x2b3   : > { %v1591_v60 = vadd.f32 %v9020_v8, %v1520_v33  ;;  %v1450_v34 = vmul.f32 %v7603_v9, %v8855_v2  ;;  %v1162_v27 = vpop.xlane.xlu0 %1161  ;;  %v3600_v8 = vld [vmem:[%s10855_s4 + $0x2c0] sm:$0xff]  ;;  %v3601_v2 = vld [vmem:[%s10855_s4 + $0x2c8] sm:$0xff]  ;;  %7114 = vmatprep.subr.bf16.mxu0 %v7113_v31 }
 0x2b4   : > { %7608 = vrsqrt.f32 %v1325_v49  ;;  %v1262_v13 = vmul.f32 0.125, %v1162_v27  ;;  %v2187_v57 = vld [vmem:[#allocation2 + $0x108] sm:$0xff]  ;;  %v7054_v48 = vpack.c.bf16 %v3601_v2, %v3600_v8  ;;  %v9356_v44 = vpop.f32.mrb[66].mxu0  ;;  %v3643_v27 = vld [vmem:[%s10855_s4 + $0x418] sm:$0xff]  ;;  %7116 = vmatpush3.bf16.msra.mxu0 %v7113_v31 }
 0x2b5   : > { %1741 = vst [vmem:[#allocation2 + $0x121] sm:$0xff] %v1591_v60  ;;  %v1521_v29 = vmul.f32 %v9332_v54, %v1450_v34  ;;  %4205 = vmatprep.mubr.f32.mxu1 %v2187_v57  ;;  %3831 = vmatmul.mubr.f32.gmra.mrb[108].mxu0 %v2187_v57  ;;  %v3729_v10 = vpop.f32.mrb[67].mxu0  ;;  %v10973_v9 = vld [vmem:[#allocation28_spill] sm:$0xff]  ;;  %v3642_v34 = vld [vmem:[%s10855_s4 + $0x410] sm:$0xff] }
 0x2b6   : > { %v7605_v15 = vpop.eup %7604  ;;  %v1326_v21 = vadd.f32 1e-06, %v1262_v13  ;;  %4206 = vmatmul.mubr.f32.gmra.mrb[40].mxu1 %v2059_v38  ;;  %3835 = vmatprep.mubr.f32.mxu0 %v1590_v3 }
 0x2b7   : > { %v1592_v41 = vadd.f32 %v9352_v16, %v1521_v29  ;;  %v1451_v36 = vmul.f32 %v7605_v15, %v8862_v37  ;;  %v1164_v0 = vpop.xlane.xlu0 %1163  ;;  %7055 = vmatpush1.bf16.msra.mxu1 %v7054_v48  ;;  %v7117_v29 = vpack.c.bf16 %v3643_v27, %v3642_v34  ;;  %v10974_v48 = vld [vmem:[#allocation29_spill] sm:$0xff]  ;;  %v3648_v27 = vld [vmem:[%s10855_s4 + $0x440] sm:$0xff] }
 0x2b8   : > { %7610 = vrsqrt.f32 %v1326_v21  ;;  %v1263_v23 = vmul.f32 0.125, %v1164_v0  ;;  %v2188_v1 = vld [vmem:[#allocation2 + $0x110] sm:$0xff]  ;;  %7056 = vmatprep.subr.bf16.mxu1 %v10927_v26 }
 0x2b9   : > { %1742 = vst [vmem:[#allocation2 + $0x129] sm:$0xff] %v1592_v41  ;;  %v1522_v20 = vmul.f32 %v9332_v54, %v1451_v36  ;;  %4210 = vmatprep.mubr.f32.mxu1 %v2188_v1  ;;  %3836 = vmatmul.mubr.f32.gmra.mrb[110].mxu0 %v2188_v1  ;;  %v2062_v8 = vld [vmem:[#allocation2 + $0x112] sm:$0xff] }
 0x2ba   : > { %v7607_v47 = vpop.eup %7606  ;;  %v1327_v19 = vadd.f32 1e-06, %v1263_v23  ;;  %4211 = vmatmul.mubr.f32.gmra.mrb[42].mxu1 %v2060_v7  ;;  %3840 = vmatprep.mubr.f32.mxu0 %v1591_v60  ;;  %v3604_v7 = vld [vmem:[%s10855_s4 + $0x2e0] sm:$0xff] }
 0x2bb   : > { %v1593_v37 = vadd.f32 %v9352_v16, %v1522_v20  ;;  %v1452_v46 = vmul.f32 %v7607_v47, %v8869_v62  ;;  %v1166_v14 = vpop.xlane.xlu0 %1165  ;;  %7058 = vmatpush1.bf16.msra.mxu1 %v7057_v22  ;;  %v2061_v62 = vld [vmem:[#allocation2 + $0x10a] sm:$0xff]  ;;  %7118 = vmatprep.subr.bf16.mxu0 %v7117_v29 }
 0x2bc   : > { %7612 = vrsqrt.f32 %v1327_v19  ;;  %v1264_v3 = vmul.f32 0.125, %v1166_v14  ;;  %v2189_v40 = vld [vmem:[#allocation2 + $0x120] sm:$0xff]  ;;  %7059 = vmatprep.subr.bf16.mxu1 %v10927_v26  ;;  %7120 = vmatpush3.bf16.msra.mxu0 %v7117_v29  ;;  %v3605_v47 = vld [vmem:[%s10855_s4 + $0x2e8] sm:$0xff] }
 0x2bd   : > { %1743 = vst [vmem:[#allocation2 + $0x139] sm:$0xff] %v1593_v37  ;;  %v1523_v39 = vmul.f32 %v9332_v54, %v1452_v46  ;;  %4215 = vmatprep.mubr.f32.mxu1 %v2189_v40  ;;  %3841 = vmatmul.mubr.f32.gmra.mrb[112].mxu0 %v2189_v40  ;;  %v7060_v63 = vpack.c.bf16 %v3605_v47, %v3604_v7 }
 0x2be   : > { %v7609_v17 = vpop.eup %7608  ;;  %v1328_v33 = vadd.f32 1e-06, %v1264_v3  ;;  %4216 = vmatmul.mubr.f32.gmra.mrb[44].mxu1 %v2061_v62  ;;  %3845 = vmatprep.mubr.f32.mxu0 %v1592_v41  ;;  %v3645_v41 = vld [vmem:[%s10855_s4 + $0x428] sm:$0xff]  ;;  %v3647_v3 = vld [vmem:[%s10855_s4 + $0x438] sm:$0xff] }
 0x2bf   : > { %v1594_v35 = vadd.f32 %v9352_v16, %v1523_v39  ;;  %v1453_v49 = vmul.f32 %v7609_v17, %v10973_v9  ;;  %v1168_v60 = vpop.xlane.xlu0 %1167  ;;  %v7121_v23 = vpack.c.bf16 %v3645_v41, %v3644_v5  ;;  %v7125_v39 = vpack.c.bf16 %v3647_v3, %v3646_v56  ;;  %7061 = vmatpush1.bf16.msra.mxu1 %v7060_v63  ;;  %v3650_v41 = vld [vmem:[%s10855_s4 + $0x450] sm:$0xff]  ;;  %v3653_v63 = vld [vmem:[%s10855_s4 + $0x468] sm:$0xff] }
 0x2c0   : > { %7614 = vrsqrt.f32 %v1328_v33  ;;  %v1265_v13 = vmul.f32 0.125, %v1168_v60  ;;  %v2190_v57 = vld [vmem:[#allocation2 + $0x128] sm:$0xff]  ;;  %7062 = vmatprep.subr.bf16.mxu1 %v10927_v26 }
 0x2c1   : > { %1744 = vst [vmem:[#allocation2 + $0x141] sm:$0xff] %v1594_v35  ;;  %v1524_v38 = vmul.f32 %v9332_v54, %v1453_v49  ;;  %4220 = vmatprep.mubr.f32.mxu1 %v2190_v57  ;;  %3846 = vmatmul.mubr.f32.gmra.mrb[114].mxu0 %v2190_v57  ;;  %v2063_v22 = vld [vmem:[#allocation2 + $0x122] sm:$0xff]  ;;  %v2064_v17 = vld [vmem:[#allocation2 + $0x12a] sm:$0xff] }
 0x2c2   : > { %v7611_v2 = vpop.eup %7610  ;;  %v1329_v15 = vadd.f32 1e-06, %v1265_v13  ;;  %4221 = vmatmul.mubr.f32.gmra.mrb[46].mxu1 %v2062_v8  ;;  %3850 = vmatprep.mubr.f32.mxu0 %v1593_v37  ;;  %v10975_v37 = vld [vmem:[#allocation30_spill] sm:$0xff]  ;;  %v10976_v49 = vld [vmem:[#allocation31_spill] sm:$0xff]  ;;  %v3649_v13 = vld [vmem:[%s10855_s4 + $0x448] sm:$0xff] }
 0x2c3   : > { %v1595_v21 = vadd.f32 %v9352_v16, %v1524_v38  ;;  %v1454_v30 = vmul.f32 %v7611_v2, %v10974_v48  ;;  %v1170_v42 = vpop.xlane.xlu0 %1169  ;;  %7122 = vmatprep.subr.bf16.mxu0 %v7121_v23  ;;  %v7129_v38 = vpack.c.bf16 %v3649_v13, %v3648_v27  ;;  %v1943_v13 = vld [vmem:[#allocation2 + $0x1b1] sm:$0xff] }
 0x2c4   : > { %7616 = vrsqrt.f32 %v1329_v15  ;;  %v1266_v36 = vmul.f32 0.125, %v1170_v42  ;;  %v2191_v0 = vld [vmem:[#allocation2 + $0x138] sm:$0xff]  ;;  %7124 = vmatpush3.bf16.msra.mxu0 %v7121_v23 }
 0x2c5   : > { %1745 = vst [vmem:[#allocation2 + $0x151] sm:$0xff] %v1595_v21  ;;  %v1525_v1 = vmul.f32 %v9332_v54, %v1454_v30  ;;  %4225 = vmatprep.mubr.f32.mxu1 %v2191_v0  ;;  %3851 = vmatmul.mubr.f32.gmra.mrb[116].mxu0 %v2191_v0  ;;  %v10977_v30 = vld [vmem:[#allocation7_spill] sm:$0xff] }
 0x2c6   : > { %v7613_v10 = vpop.eup %7612  ;;  %v1330_v20 = vadd.f32 1e-06, %v1266_v36  ;;  %4226 = vmatmul.mubr.f32.gmra.mrb[48].mxu1 %v2063_v22  ;;  %3855 = vmatprep.mubr.f32.mxu0 %v1594_v35  ;;  %v3651_v36 = vld [vmem:[%s10855_s4 + $0x458] sm:$0xff] }
 0x2c7   : > { %v1596_v19 = vadd.f32 %v9352_v16, %v1525_v1  ;;  %v1455_v46 = vmul.f32 %v7613_v10, %v10975_v37  ;;  %v1172_v14 = vpop.xlane.xlu0 %1171  ;;  %7126 = vmatprep.subr.bf16.mxu0 %v7125_v39  ;;  %v7133_v1 = vpack.c.bf16 %v3651_v36, %v3650_v41  ;;  %v1815_v36 = vld [vmem:[#allocation2 + $0x1b0] sm:$0xff] }
 0x2c8   : > { %7618 = vrsqrt.f32 %v1330_v20  ;;  %v1267_v40 = vmul.f32 0.125, %v1172_v14  ;;  %v2192_v31 = vld [vmem:[#allocation2 + $0x140] sm:$0xff]  ;;  %7128 = vmatpush3.bf16.msra.mxu0 %v7125_v39 }
 0x2c9   : > { %1746 = vst [vmem:[#allocation2 + $0x159] sm:$0xff] %v1596_v19  ;;  %v1526_v62 = vmul.f32 %v9332_v54, %v1455_v46  ;;  %4230 = vmatprep.mubr.f32.mxu1 %v2192_v31  ;;  %3856 = vmatmul.mubr.f32.gmra.mrb[118].mxu0 %v2192_v31  ;;  %v2065_v2 = vld [vmem:[#allocation2 + $0x13a] sm:$0xff]  ;;  %v2066_v10 = vld [vmem:[#allocation2 + $0x142] sm:$0xff] }
 0x2ca   : > { %v7615_v33 = vpop.eup %7614  ;;  %v1331_v35 = vadd.f32 1e-06, %v1267_v40  ;;  %4231 = vmatmul.mubr.f32.gmra.mrb[50].mxu1 %v2064_v17  ;;  %3860 = vmatprep.mubr.f32.mxu0 %v1595_v21  ;;  %v3652_v14 = vld [vmem:[%s10855_s4 + $0x460] sm:$0xff] }
 0x2cb   : > { %v1597_v9 = vadd.f32 %v9352_v16, %v1526_v62  ;;  %v1456_v60 = vmul.f32 %v7615_v33, %v10976_v49  ;;  %v1174_v34 = vpop.xlane.xlu0 %1173  ;;  %7130 = vmatprep.subr.bf16.mxu0 %v7129_v38  ;;  %v7137_v40 = vpack.c.bf16 %v3653_v63, %v3652_v14  ;;  %v3606_v33 = vld [vmem:[%s10855_s4 + $0x2f0] sm:$0xff]  ;;  %v10979_v49 = vld [vmem:[#allocation8_spill] sm:$0xff]  ;;  %v10981_v63 = vld [vmem:[#allocation10_spill] sm:$0xff] }
 0x2cc   : > { %7620 = vrsqrt.f32 %v1331_v35  ;;  %v1268_v57 = vmul.f32 0.125, %v1174_v34  ;;  %v2193_v29 = vld [vmem:[#allocation2 + $0x150] sm:$0xff]  ;;  %7132 = vmatpush3.bf16.msra.mxu0 %v7129_v38  ;;  %v3607_v35 = vld [vmem:[%s10855_s4 + $0x2f8] sm:$0xff] }
 0x2cd   : > { %1747 = vst [vmem:[#allocation2 + $0x169] sm:$0xff] %v1597_v9  ;;  %v1527_v8 = vmul.f32 %v9332_v54, %v1456_v60  ;;  %4235 = vmatprep.mubr.f32.mxu1 %v2193_v29  ;;  %3861 = vmatmul.mubr.f32.gmra.mrb[120].mxu0 %v2193_v29  ;;  %v3654_v29 = vld [vmem:[%s10855_s4 + $0x470] sm:$0xff]  ;;  %v3655_v38 = vld [vmem:[%s10855_s4 + $0x478] sm:$0xff] }
 0x2ce   : > { %v7617_v15 = vpop.eup %7616  ;;  %v1332_v21 = vadd.f32 1e-06, %v1268_v57  ;;  %4236 = vmatmul.mubr.f32.gmra.mrb[52].mxu1 %v2065_v2  ;;  %3865 = vmatprep.mubr.f32.mxu0 %v1596_v19  ;;  %v10978_v19 = vld [vmem:[#allocation9_spill] sm:$0xff]  ;;  %v7063_v57 = vpack.c.bf16 %v3607_v35, %v3606_v33  ;;  %v7814_v33 = vld [vmem:[#allocation2 + $0x8] sm:$0xff] }
 0x2cf   : > { %v1598_v48 = vadd.f32 %v9352_v16, %v1527_v8  ;;  %v1457_v42 = vmul.f32 %v7617_v15, %v10977_v30  ;;  %v1176_v5 = vpop.xlane.xlu0 %1175  ;;  %7134 = vmatprep.subr.bf16.mxu0 %v7133_v1 }
 0x2d0   : > { %7622 = vrsqrt.f32 %v1332_v21  ;;  %v1269_v0 = vmul.f32 0.125, %v1176_v5  ;;  %v2194_v23 = vld [vmem:[#allocation2 + $0x158] sm:$0xff]  ;;  %7136 = vmatpush3.bf16.msra.mxu0 %v7133_v1  ;;  %v7141_v21 = vpack.c.bf16 %v3655_v38, %v3654_v29  ;;  %7064 = vmatpush1.bf16.msra.mxu1 %v7063_v57 }
 0x2d1   : > { %1748 = vst [vmem:[#allocation2 + $0x171] sm:$0xff] %v1598_v48  ;;  %v1528_v22 = vmul.f32 %v9332_v54, %v1457_v42  ;;  %4240 = vmatprep.mubr.f32.mxu1 %v2194_v23  ;;  %3866 = vmatmul.mubr.f32.gmra.mrb[122].mxu0 %v2194_v23  ;;  %v2067_v39 = vld [vmem:[#allocation2 + $0x152] sm:$0xff]  ;;  %v2068_v30 = vld [vmem:[#allocation2 + $0x15a] sm:$0xff] }
 0x2d2   : > { %v7619_v20 = vpop.eup %7618  ;;  %v1333_v7 = vadd.f32 1e-06, %v1269_v0  ;;  %4241 = vmatmul.mubr.f32.gmra.mrb[54].mxu1 %v2066_v10  ;;  %3870 = vmatprep.mubr.f32.mxu0 %v1597_v9  ;;  %v10980_v23 = vld [vmem:[#allocation11_spill] sm:$0xff]  ;;  %v2071_v29 = vld [vmem:[#allocation2 + $0x1b2] sm:$0xff] }
 0x2d3   : > { %v1599_v47 = vadd.f32 %v9352_v16, %v1528_v22  ;;  %v1458_v37 = vmul.f32 %v7619_v20, %v10978_v19  ;;  %v1178_v46 = vpop.xlane.xlu0 %1177  ;;  %v1198_v27 = vpop.xlane.xlu1 %1197  ;;  %7138 = vmatprep.subr.bf16.mxu0 %v7137_v40  ;;  %v1944_v10 = vld [vmem:[#allocation2 + $0x1b9] sm:$0xff]  ;;  %7065 = vmatprep.subr.bf16.mxu1 %v10927_v26 }
 0x2d4   : > { %7624 = vrsqrt.f32 %v1333_v7  ;;  %v1270_v56 = vmul.f32 0.125, %v1178_v46  ;;  %v2195_v3 = vld [vmem:[#allocation2 + $0x168] sm:$0xff]  ;;  %v1280_v2 = vmul.f32 0.125, %v1198_v27  ;;  %7140 = vmatpush3.bf16.msra.mxu0 %v7137_v40  ;;  %v10982_v27 = vld [vmem:[#allocation13_spill] sm:$0xff] }
 0x2d5   : > { %1749 = vst [vmem:[#allocation2 + $0x181] sm:$0xff] %v1599_v47  ;;  %v1529_v31 = vmul.f32 %v9332_v54, %v1458_v37  ;;  %4245 = vmatprep.mubr.f32.mxu1 %v2195_v3  ;;  %3871 = vmatmul.mubr.f32.gmra.mrb[124].mxu0 %v2195_v3 }
 0x2d6   : > { %v7621_v62 = vpop.eup %7620  ;;  %v1334_v17 = vadd.f32 1e-06, %v1270_v56  ;;  %4246 = vmatmul.mubr.f32.gmra.mrb[56].mxu1 %v2067_v39  ;;  %3875 = vmatprep.mubr.f32.mxu0 %v1598_v48  ;;  %v1344_v41 = vadd.f32 1e-06, %v1280_v2 }
 0x2d7   : > { %v1600_v9 = vadd.f32 %v9352_v16, %v1529_v31  ;;  %v1459_v60 = vmul.f32 %v7621_v62, %v10979_v49  ;;  %v1180_v34 = vpop.xlane.xlu0 %1179  ;;  %7142 = vmatprep.subr.bf16.mxu0 %v7141_v21 }
 0x2d8   : > { %7626 = vrsqrt.f32 %v1334_v17  ;;  %v1271_v8 = vmul.f32 0.125, %v1180_v34  ;;  %v2196_v15 = vld [vmem:[#allocation2 + $0x170] sm:$0xff]  ;;  %7144 = vmatpush3.bf16.msra.mxu0 %v7141_v21 }
 0x2d9   : > { %1750 = vst [vmem:[#allocation2 + $0x189] sm:$0xff] %v1600_v9  ;;  %v1530_v48 = vmul.f32 %v9332_v54, %v1459_v60  ;;  %4250 = vmatprep.mubr.f32.mxu1 %v2196_v15  ;;  %3876 = vmatmul.mubr.f32.gmra.mrb[126].mxu0 %v2196_v15  ;;  %v2069_v19 = vld [vmem:[#allocation2 + $0x16a] sm:$0xff]  ;;  %v2070_v35 = vld [vmem:[#allocation2 + $0x172] sm:$0xff] }
 0x2da   : > { %v7623_v42 = vpop.eup %7622  ;;  %v1335_v5 = vadd.f32 1e-06, %v1271_v8  ;;  %4251 = vmatmul.mubr.f32.gmra.mrb[58].mxu1 %v2068_v30  ;;  %3880 = vmatprep.mubr.f32.mxu0 %v1943_v13 }
 0x2db   : > { %v1601_v0 = vadd.f32 %v9352_v16, %v1530_v48  ;;  %v1460_v1 = vmul.f32 %v7623_v42, %v10980_v23  ;;  %v1182_v22 = vpop.xlane.xlu0 %1181  ;;  %v1202_v40 = vpop.xlane.xlu1 %1201  ;;  %7145 = vmatprep.subr.bf16.mxu0 %v10927_v26  ;;  %v10983_v42 = vld [vmem:[#allocation12_spill] sm:$0xff] }
 0x2dc   : > { %7628 = vrsqrt.f32 %v1335_v5  ;;  %v1272_v20 = vmul.f32 0.125, %v1182_v22  ;;  %v2197_v7 = vld [vmem:[#allocation2 + $0x180] sm:$0xff]  ;;  %v1282_v39 = vmul.f32 0.125, %v1202_v40  ;;  %v10984_v23 = vld [vmem:[#allocation32_spill] sm:$0xff] }
 0x2dd   : > { %1751 = vst [vmem:[#allocation2 + $0x1c9] sm:$0xff] %v1601_v0  ;;  %v1531_v47 = vmul.f32 %v9332_v54, %v1460_v1  ;;  %7630 = vrsqrt.f32 %v1344_v41  ;;  %4255 = vmatprep.mubr.f32.mxu1 %v2197_v7  ;;  %3881 = vmatmul.mubr.f32.gmra.mrb[128].mxu0 %v1815_v36 }
 0x2de   : > { %v7625_v37 = vpop.eup %7624  ;;  %v1336_v46 = vadd.f32 1e-06, %v1272_v20  ;;  %4256 = vmatmul.mubr.f32.gmra.mrb[60].mxu1 %v2069_v19  ;;  %3885 = vmatprep.mubr.f32.mxu0 %v1944_v10  ;;  %v1346_v60 = vadd.f32 1e-06, %v1282_v39 }
 0x2df   : > { %v1602_v14 = vadd.f32 %v9352_v16, %v1531_v47  ;;  %v1461_v56 = vmul.f32 %v7625_v37, %v10981_v63  ;;  %v1184_v3 = vpop.xlane.xlu0 %1183 }
 0x2e0   : > { %7632 = vrsqrt.f32 %v1336_v46  ;;  %v1273_v31 = vmul.f32 0.125, %v1184_v3  ;;  %v2198_v62 = vld [vmem:[#allocation2 + $0x188] sm:$0xff] }
 0x2e1   : > { %1752 = vst [vmem:[#allocation2 + $0x1d1] sm:$0xff] %v1602_v14  ;;  %v1532_v17 = vmul.f32 %v9332_v54, %v1461_v56  ;;  %4260 = vmatprep.mubr.f32.mxu1 %v2198_v62  ;;  %3886 = vmatmul.mubr.f32.gmra.mrb[130].mxu0 %v7814_v33 }
 0x2e2   : > { %v7627_v9 = vpop.eup %7626  ;;  %v1337_v49 = vadd.f32 1e-06, %v1273_v31  ;;  %4261 = vmatmul.mubr.f32.gmra.mrb[62].mxu1 %v2070_v35  ;;  %3890 = vmatprep.mubr.f32.mxu0 %v1601_v0  ;;  %v2072_v0 = vld [vmem:[#allocation2 + $0x1ba] sm:$0xff] }
 0x2e3   : > { %v1603_v34 = vadd.f32 %v9352_v16, %v1532_v17  ;;  %v1462_v13 = vmul.f32 %v7627_v9, %v10982_v27  ;;  %v1186_v57 = vpop.xlane.xlu0 %1185  ;;  %v1206_v36 = vpop.xlane.xlu1 %1205  ;;  %v10985_v9 = vld [vmem:[#allocation15_spill] sm:$0xff]  ;;  %v10986_v27 = vld [vmem:[#allocation14_spill] sm:$0xff] }
 0x2e4   : > { %7634 = vrsqrt.f32 %v1337_v49  ;;  %v1274_v38 = vmul.f32 0.125, %v1186_v57  ;;  %v2199_v8 = vld [vmem:[#allocation2 + $0x1c8] sm:$0xff]  ;;  %v1284_v10 = vmul.f32 0.125, %v1206_v36 }
 0x2e5   : > { %1753 = vst [vmem:[#allocation2 + $0x1e1] sm:$0xff] %v1603_v34  ;;  %v1533_v2 = vmul.f32 %v9332_v54, %v1462_v13  ;;  %7636 = vrsqrt.f32 %v1346_v60  ;;  %4265 = vmatprep.mubr.f32.mxu1 %v2199_v8  ;;  %3891 = vmatmul.mubr.f32.gmra.mrb[132].mxu0 %v2199_v8 }
 0x2e6   : > { %v7629_v15 = vpop.eup %7628  ;;  %v1338_v21 = vadd.f32 1e-06, %v1274_v38  ;;  %4266 = vmatmul.mubr.f32.gmra.mrb[64].mxu1 %v2071_v29  ;;  %3895 = vmatprep.mubr.f32.mxu0 %v1602_v14  ;;  %v1348_v46 = vadd.f32 1e-06, %v1284_v10 }
 0x2e7   : > { %v7631_v48 = vpop.eup %7630  ;;  %v1604_v30 = vadd.f32 %v9352_v16, %v1533_v2  ;;  %v1463_v5 = vmul.f32 %v7629_v15, %v10983_v42  ;;  %v1188_v41 = vpop.xlane.xlu0 %1187 }
 0x2e8   : > { %v1472_v1 = vmul.f32 %v7631_v48, %v10984_v23  ;;  %7638 = vrsqrt.f32 %v1338_v21  ;;  %v1275_v22 = vmul.f32 0.125, %v1188_v41  ;;  %v2200_v20 = vld [vmem:[#allocation2 + $0x1d0] sm:$0xff] }
 0x2e9   : > { %1754 = vst [vmem:[#allocation2 + $0x1e9] sm:$0xff] %v1604_v30  ;;  %v1534_v7 = vmul.f32 %v9332_v54, %v1463_v5  ;;  %4270 = vmatprep.mubr.f32.mxu1 %v2200_v20  ;;  %3896 = vmatmul.mubr.f32.gmra.mrb[134].mxu0 %v2200_v20  ;;  %v2073_v62 = vld [vmem:[#allocation2 + $0x1ca] sm:$0xff]  ;;  %v2074_v2 = vld [vmem:[#allocation2 + $0x1d2] sm:$0xff] }
 0x2ea   : > { %v7633_v47 = vpop.eup %7632  ;;  %v1543_v19 = vmul.f32 %v9332_v54, %v1472_v1  ;;  %v1339_v37 = vadd.f32 1e-06, %v1275_v22  ;;  %4271 = vmatmul.mubr.f32.gmra.mrb[66].mxu1 %v2072_v0  ;;  %3900 = vmatprep.mubr.f32.mxu0 %v1603_v34  ;;  %v10987_v5 = vld [vmem:[#allocation33_spill] sm:$0xff] }
 0x2eb   : > { %v1605_v14 = vadd.f32 %v9352_v16, %v1534_v7  ;;  %v1464_v63 = vmul.f32 %v7633_v47, %v8970_v45  ;;  %v1190_v56 = vpop.xlane.xlu0 %1189 }
 0x2ec   : > { %v9465_v3 = vadd.f32 %v9352_v16, %v1543_v19  ;;  %7640 = vrsqrt.f32 %v1339_v37  ;;  %v1276_v40 = vmul.f32 0.125, %v1190_v56  ;;  %v2201_v31 = vld [vmem:[#allocation2 + $0x1e0] sm:$0xff]  ;;  %v1210_v34 = vpop.xlane.xlu1 %1209  ;;  %v10988_v37 = vld [vmem:[#allocation17_spill] sm:$0xff] }
 0x2ed   : > { %1755 = vst [vmem:[#allocation2 + $0x1f9] sm:$0xff] %v1605_v14  ;;  %v1535_v39 = vmul.f32 %v9332_v54, %v1464_v63  ;;  %7642 = vrsqrt.f32 %v1348_v46  ;;  %4275 = vmatprep.mubr.f32.mxu1 %v2201_v31  ;;  %3901 = vmatmul.mubr.f32.gmra.mrb[136].mxu0 %v2201_v31  ;;  %v1286_v29 = vmul.f32 0.125, %v1210_v34  ;;  %v10989_v63 = vld [vmem:[#allocation16_spill] sm:$0xff] }
 0x2ee   : > { %v7635_v17 = vpop.eup %7634  ;;  %1764 = vst [vmem:[#allocation2 + $0x261] sm:$0xff] %v9465_v3  ;;  %v1340_v33 = vadd.f32 1e-06, %v1276_v40  ;;  %4276 = vmatmul.mubr.f32.gmra.mrb[68].mxu1 %v2073_v62  ;;  %3905 = vmatprep.mubr.f32.mxu0 %v1604_v30 }
 0x2ef   : > { %v7637_v45 = vpop.eup %7636  ;;  %v1606_v35 = vadd.f32 %v9352_v16, %v1535_v39  ;;  %v1465_v49 = vmul.f32 %v7635_v17, %v10985_v9  ;;  %v1192_v60 = vpop.xlane.xlu0 %1191  ;;  %v1350_v30 = vadd.f32 1e-06, %v1286_v29 }
 0x2f0   : > { %v1474_v13 = vmul.f32 %v7637_v45, %v10986_v27  ;;  %7644 = vrsqrt.f32 %v1340_v33  ;;  %v1277_v57 = vmul.f32 0.125, %v1192_v60  ;;  %v2202_v38 = vld [vmem:[#allocation2 + $0x1e8] sm:$0xff]  ;;  %v10990_v60 = vld [vmem:[#allocation23_spill] sm:$0xff] }
 0x2f1   : > { %1756 = vst [vmem:[#allocation2 + $0x201] sm:$0xff] %v1606_v35  ;;  %v1536_v8 = vmul.f32 %v9332_v54, %v1465_v49  ;;  %4280 = vmatprep.mubr.f32.mxu1 %v2202_v38  ;;  %3906 = vmatmul.mubr.f32.gmra.mrb[138].mxu0 %v2202_v38  ;;  %v2075_v10 = vld [vmem:[#allocation2 + $0x1e2] sm:$0xff]  ;;  %v2076_v33 = vld [vmem:[#allocation2 + $0x1ea] sm:$0xff] }
 0x2f2   : > { %v7639_v15 = vpop.eup %7638  ;;  %v1545_v21 = vmul.f32 %v9332_v54, %v1474_v13  ;;  %v1341_v48 = vadd.f32 1e-06, %v1277_v57  ;;  %4281 = vmatmul.mubr.f32.gmra.mrb[70].mxu1 %v2074_v2  ;;  %3910 = vmatprep.mubr.f32.mxu0 %v1605_v14 }
 0x2f3   : > { %v1607_v42 = vadd.f32 %v9352_v16, %v1536_v8  ;;  %v1466_v41 = vmul.f32 %v7639_v15, %v10987_v5  ;;  %v1194_v36 = vpop.xlane.xlu0 %1193 }
 0x2f4   : > { %v9477_v0 = vadd.f32 %v9352_v16, %v1545_v21  ;;  %7646 = vrsqrt.f32 %v1341_v48  ;;  %v1278_v23 = vmul.f32 0.125, %v1194_v36  ;;  %v2203_v1 = vld [vmem:[#allocation2 + $0x1f8] sm:$0xff]  ;;  %v1214_v31 = vpop.xlane.xlu1 %1213 }
 0x2f5   : > { %1757 = vst [vmem:[#allocation2 + $0x211] sm:$0xff] %v1607_v42  ;;  %v1537_v22 = vmul.f32 %v9332_v54, %v1466_v41  ;;  %7648 = vrsqrt.f32 %v1350_v30  ;;  %4285 = vmatprep.mubr.f32.mxu1 %v2203_v1  ;;  %3911 = vmatmul.mubr.f32.gmra.mrb[140].mxu0 %v2203_v1  ;;  %v1288_v17 = vmul.f32 0.125, %v1214_v31  ;;  %v10992_v36 = vld [vmem:[#allocation18_spill] sm:$0xff] }
 0x2f6   : > { %v7641_v20 = vpop.eup %7640  ;;  %1766 = vst [vmem:[#allocation2 + $0x279] sm:$0xff] %v9477_v0  ;;  %v1342_v7 = vadd.f32 1e-06, %v1278_v23  ;;  %4286 = vmatmul.mubr.f32.gmra.mrb[72].mxu1 %v2075_v10  ;;  %3915 = vmatprep.mubr.f32.mxu0 %v1606_v35 }
 0x2f7   : > { %v7643_v47 = vpop.eup %7642  ;;  %v1608_v19 = vadd.f32 %v9352_v16, %v1537_v22  ;;  %v1467_v46 = vmul.f32 %v7641_v20, %v10988_v37  ;;  %v1196_v14 = vpop.xlane.xlu0 %1195  ;;  %v1352_v27 = vadd.f32 1e-06, %v1288_v17 }
 0x2f8   : > { %v1476_v56 = vmul.f32 %v7643_v47, %v10989_v63  ;;  %7650 = vrsqrt.f32 %v1342_v7  ;;  %v1279_v40 = vmul.f32 0.125, %v1196_v14  ;;  %v2204_v39 = vld [vmem:[#allocation2 + $0x200] sm:$0xff] }
 0x2f9   : > { %1758 = vst [vmem:[#allocation2 + $0x219] sm:$0xff] %v1608_v19  ;;  %v1538_v62 = vmul.f32 %v9332_v54, %v1467_v46  ;;  %4290 = vmatprep.mubr.f32.mxu1 %v2204_v39  ;;  %3916 = vmatmul.mubr.f32.gmra.mrb[142].mxu0 %v2204_v39  ;;  %v2077_v2 = vld [vmem:[#allocation2 + $0x1fa] sm:$0xff]  ;;  %v2078_v47 = vld [vmem:[#allocation2 + $0x202] sm:$0xff] }
 0x2fa   : > { %v7645_v45 = vpop.eup %7644  ;;  %v1547_v35 = vmul.f32 %v9332_v54, %v1476_v56  ;;  %v1343_v9 = vadd.f32 1e-06, %v1279_v40  ;;  %4291 = vmatmul.mubr.f32.gmra.mrb[74].mxu1 %v2076_v33  ;;  %3920 = vmatprep.mubr.f32.mxu0 %v1607_v42  ;;  %v10991_v42 = vld [vmem:[#allocation19_spill] sm:$0xff] }
 0x2fb   : > { %v1609_v49 = vadd.f32 %v9352_v16, %v1538_v62  ;;  %v1468_v34 = vmul.f32 %v7645_v45, %v10990_v60  ;;  %v1200_v13 = vpop.xlane.xlu0 %1199  ;;  %v1218_v22 = vpop.xlane.xlu1 %1217 }
 0x2fc   : > { %v9489_v57 = vadd.f32 %v9352_v16, %v1547_v35  ;;  %7652 = vrsqrt.f32 %v1343_v9  ;;  %v1281_v29 = vmul.f32 0.125, %v1200_v13  ;;  %v2205_v38 = vld [vmem:[#allocation2 + $0x210] sm:$0xff]  ;;  %v1290_v7 = vmul.f32 0.125, %v1218_v22 }
 0x2fd   : > { %1759 = vst [vmem:[#allocation2 + $0x229] sm:$0xff] %v1609_v49  ;;  %v1539_v8 = vmul.f32 %v9332_v54, %v1468_v34  ;;  %7654 = vrsqrt.f32 %v1352_v27  ;;  %4295 = vmatprep.mubr.f32.mxu1 %v2205_v38  ;;  %3921 = vmatmul.mubr.f32.gmra.mrb[144].mxu0 %v2205_v38 }
 0x2fe   : > { %v7647_v15 = vpop.eup %7646  ;;  %1768 = vst [vmem:[#allocation2 + $0x291] sm:$0xff] %v9489_v57  ;;  %v1345_v21 = vadd.f32 1e-06, %v1281_v29  ;;  %4296 = vmatmul.mubr.f32.gmra.mrb[76].mxu1 %v2077_v2  ;;  %3925 = vmatprep.mubr.f32.mxu0 %v1608_v19  ;;  %v1354_v56 = vadd.f32 1e-06, %v1290_v7 }
 0x2ff   : > { %v7649_v48 = vpop.eup %7648  ;;  %v1610_v30 = vadd.f32 %v9352_v16, %v1539_v8  ;;  %v1469_v5 = vmul.f32 %v7647_v15, %v10991_v42  ;;  %v1204_v41 = vpop.xlane.xlu0 %1203 }
 0x300   : > { %v1478_v23 = vmul.f32 %v7649_v48, %v10992_v36  ;;  %7656 = vrsqrt.f32 %v1345_v21  ;;  %v1283_v1 = vmul.f32 0.125, %v1204_v41  ;;  %v2206_v10 = vld [vmem:[#allocation2 + $0x218] sm:$0xff] }
 0x301   : > { %1760 = vst [vmem:[#allocation2 + $0x231] sm:$0xff] %v1610_v30  ;;  %v1540_v20 = vmul.f32 %v9332_v54, %v1469_v5  ;;  %4300 = vmatprep.mubr.f32.mxu1 %v2206_v10  ;;  %3926 = vmatmul.mubr.f32.gmra.mrb[146].mxu0 %v2206_v10  ;;  %v2079_v33 = vld [vmem:[#allocation2 + $0x212] sm:$0xff]  ;;  %v2080_v2 = vld [vmem:[#allocation2 + $0x21a] sm:$0xff] }
 0x302   : > { %v7651_v19 = vpop.eup %7650  ;;  %v1549_v37 = vmul.f32 %v9332_v54, %v1478_v23  ;;  %v1347_v46 = vadd.f32 1e-06, %v1283_v1  ;;  %4301 = vmatmul.mubr.f32.gmra.mrb[78].mxu1 %v2078_v47  ;;  %3930 = vmatprep.mubr.f32.mxu0 %v1609_v49 }
 0x303   : > { %v1611_v14 = vadd.f32 %v9352_v16, %v1540_v20  ;;  %v1470_v63 = vmul.f32 %v7651_v19, %v9067_v6  ;;  %v1208_v40 = vpop.xlane.xlu0 %1207  ;;  %v1222_v13 = vpop.xlane.xlu1 %1221 }
 0x304   : > { %v9501_v31 = vadd.f32 %v9352_v16, %v1549_v37  ;;  %7658 = vrsqrt.f32 %v1347_v46  ;;  %v1285_v39 = vmul.f32 0.125, %v1208_v40  ;;  %v2207_v62 = vld [vmem:[#allocation2 + $0x228] sm:$0xff]  ;;  %v1292_v8 = vmul.f32 0.125, %v1222_v13 }
 0x305   : > { %1761 = vst [vmem:[#allocation2 + $0x241] sm:$0xff] %v1611_v14  ;;  %v1541_v17 = vmul.f32 %v9332_v54, %v1470_v63  ;;  %7660 = vrsqrt.f32 %v1354_v56  ;;  %4305 = vmatprep.mubr.f32.mxu1 %v2207_v62  ;;  %3931 = vmatmul.mubr.f32.gmra.mrb[148].mxu0 %v2207_v62 }
 0x306   : > { %v7653_v45 = vpop.eup %7652  ;;  %1770 = vst [vmem:[#allocation2 + $0x2a9] sm:$0xff] %v9501_v31  ;;  %v1349_v35 = vadd.f32 1e-06, %v1285_v39  ;;  %4306 = vmatmul.mubr.f32.gmra.mrb[80].mxu1 %v2079_v33  ;;  %3935 = vmatprep.mubr.f32.mxu0 %v1610_v30  ;;  %v1356_v30 = vadd.f32 1e-06, %v1292_v8 }
 0x307   : > { %v7655_v6 = vpop.eup %7654  ;;  %v1612_v9 = vadd.f32 %v9352_v16, %v1541_v17  ;;  %v1471_v49 = vmul.f32 %v7653_v45, %v9072_v11  ;;  %v1212_v60 = vpop.xlane.xlu0 %1211 }
 0x308   : > { %v1480_v34 = vmul.f32 %v7655_v6, %v9100_v28  ;;  %7662 = vrsqrt.f32 %v1349_v35  ;;  %v1287_v27 = vmul.f32 0.125, %v1212_v60  ;;  %v2208_v29 = vld [vmem:[#allocation2 + $0x230] sm:$0xff] }
 0x309   : > { %1762 = vst [vmem:[#allocation2 + $0x249] sm:$0xff] %v1612_v9  ;;  %v1542_v38 = vmul.f32 %v9332_v54, %v1471_v49  ;;  %4310 = vmatprep.mubr.f32.mxu1 %v2208_v29  ;;  %3936 = vmatmul.mubr.f32.gmra.mrb[150].mxu0 %v2208_v29  ;;  %v2081_v1 = vld [vmem:[#allocation2 + $0x22a] sm:$0xff]  ;;  %v9521_v40 = vld [vmem:[#allocation2 + $0x232] sm:$0xff] }
 0x30a   : > { %v7657_v15 = vpop.eup %7656  ;;  %v1551_v21 = vmul.f32 %v9332_v54, %v1480_v34  ;;  %v1351_v48 = vadd.f32 1e-06, %v1287_v27  ;;  %4311 = vmatmul.mubr.f32.gmra.mrb[82].mxu1 %v2080_v2  ;;  %3940 = vmatprep.mubr.f32.mxu0 %v1611_v14 }
 0x30b   : > { %v1613_v11 = vadd.f32 %v9352_v16, %v1542_v38  ;;  %v1473_v28 = vmul.f32 %v7657_v15, %v9094_v18  ;;  %v1216_v42 = vpop.xlane.xlu0 %1215  ;;  %v1226_v46 = vpop.xlane.xlu1 %1225 }
 0x30c   : > { %v9513_v5 = vadd.f32 %v9352_v16, %v1551_v21  ;;  %7664 = vrsqrt.f32 %v1351_v48  ;;  %v1289_v41 = vmul.f32 0.125, %v1216_v42  ;;  %v2209_v36 = vld [vmem:[#allocation2 + $0x240] sm:$0xff]  ;;  %v1294_v56 = vmul.f32 0.125, %v1226_v46 }
 0x30d   : > { %1763 = vst [vmem:[#allocation2 + $0x259] sm:$0xff] %v1613_v11  ;;  %v1544_v23 = vmul.f32 %v9332_v54, %v1473_v28  ;;  %7666 = vrsqrt.f32 %v1356_v30  ;;  %4315 = vmatprep.mubr.f32.mxu1 %v2209_v36  ;;  %3941 = vmatmul.mubr.f32.gmra.mrb[152].mxu0 %v2209_v36 }
 0x30e   : > { %v7659_v22 = vpop.eup %7658  ;;  %1772 = vst [vmem:[#allocation2 + $0x2c1] sm:$0xff] %v9513_v5  ;;  %v1353_v10 = vadd.f32 1e-06, %v1289_v41  ;;  %4316 = vmatmul.mubr.f32.gmra.mrb[84].mxu1 %v2081_v1  ;;  %3945 = vmatprep.mubr.f32.mxu0 %v1612_v9  ;;  %v1358_v33 = vadd.f32 1e-06, %v1294_v56  ;;  %v9581_v56 = vld [vmem:[#allocation2 + $0x262] sm:$0xff] }
 0x30f   : > { %v7661_v18 = vpop.eup %7660  ;;  %v1615_v20 = vadd.f32 %v9352_v16, %v1544_v23  ;;  %v1475_v7 = vmul.f32 %v7659_v22, %v9120_v12  ;;  %v1220_v47 = vpop.xlane.xlu0 %1219 }
 0x310   : > { %v1482_v19 = vmul.f32 %v7661_v18, %v9130_v24  ;;  %7668 = vrsqrt.f32 %v1353_v10  ;;  %v1291_v37 = vmul.f32 0.125, %v1220_v47  ;;  %v2210_v14 = vld [vmem:[#allocation2 + $0x248] sm:$0xff]  ;;  %v9572_v47 = vld [vmem:[%s10854_s3] ss:$0 sm:$0xff] }
 0x311   : > { %1765 = vst [vmem:[#allocation2 + $0x271] sm:$0xff] %v1615_v20  ;;  %v1546_v63 = vmul.f32 %v9332_v54, %v1475_v7  ;;  %4320 = vmatprep.mubr.f32.mxu1 %v2210_v14  ;;  %3946 = vmatmul.mubr.f32.gmra.mrb[154].mxu0 %v2210_v14  ;;  %v9534_v60 = vld [vmem:[#allocation2 + $0x242] sm:$0xff] }
 0x312   : > { %v7663_v39 = vpop.eup %7662  ;;  %v1553_v62 = vmul.f32 %v9332_v54, %v1482_v19  ;;  %v1355_v17 = vadd.f32 1e-06, %v1291_v37  ;;  %4321 = vmatmul.mubr.f32.gmra.mrb[86].mxu1 %v9521_v40  ;;  %3950 = vmatprep.mubr.f32.mxu0 %v1613_v11 }
 0x313   : > { %v9526_v12 = vadd.f32 %v9352_v16, %v1546_v63  ;;  %v1477_v24 = vmul.f32 %v7663_v39, %v9146_v53  ;;  %v1224_v45 = vpop.xlane.xlu0 %1223  ;;  %v1230_v21 = vpop.xlane.xlu1 %1229 }
 0x314   : > { %v9530_v35 = vadd.f32 %v9352_v16, %v1553_v62  ;;  %7670 = vrsqrt.f32 %v1355_v17  ;;  %v1293_v6 = vmul.f32 0.125, %v1224_v45  ;;  %v2211_v9 = vld [vmem:[#allocation2 + $0x258] sm:$0xff]  ;;  %v2212_v27 = vld [vmem:[#allocation2 + $0x260] sm:$0xff]  ;;  %v1296_v11 = vmul.f32 0.125, %v1230_v21 }
 0x315   : > { %1767 = vst [vmem:[#allocation2 + $0x289] sm:$0xff] %v9526_v12  ;;  %v1548_v49 = vmul.f32 %v9332_v54, %v1477_v24  ;;  %7672 = vrsqrt.f32 %v1358_v33  ;;  %4325 = vmatprep.mubr.f32.mxu1 %v2211_v9  ;;  %3951 = vmatmul.mubr.f32.gmra.mrb[156].mxu0 %v2211_v9  ;;  %v9564_v18 = vld [vmem:[#allocation2 + $0x25a] sm:$0xff] }
 0x316   : > { %v7665_v34 = vpop.eup %7664  ;;  %1774 = vst [vmem:[#allocation2 + $0x2d9] sm:$0xff] %v9530_v35  ;;  %v1357_v53 = vadd.f32 1e-06, %v1293_v6  ;;  %4326 = vmatmul.mubr.f32.gmra.mrb[88].mxu1 %v9534_v60  ;;  %3955 = vmatprep.mubr.f32.mxu0 %v9465_v3  ;;  %v9546_v3 = vld [vmem:[#allocation2 + $0x24a] sm:$0xff]  ;;  %v1360_v36 = vadd.f32 1e-06, %v1296_v11 }
 0x317   : > { %v7667_v13 = vpop.eup %7666  ;;  %v9540_v29 = vadd.f32 %v9352_v16, %v1548_v49  ;;  %v1479_v38 = vmul.f32 %v7665_v34, %v9154_v52  ;;  %v1228_v8 = vpop.xlane.xlu0 %1227  ;;  %4330 = vmatprep.mubr.f32.mxu1 %v2212_v27  ;;  %v9551_v52 = vld [vmem:[%s10853_s2] ss:$0 sm:$0xff] }
 0x318   : > { %v1484_v2 = vmul.f32 %v7667_v13, %v9172_v55  ;;  %7674 = vrsqrt.f32 %v1357_v53  ;;  %v1295_v15 = vmul.f32 0.125, %v1228_v8  ;;  %v2213_v42 = vld [vmem:[#allocation2 + $0x270] sm:$0xff]  ;;  %v9607_v13 = vld [vmem:[#allocation2 + $0x27a] sm:$0xff] }
 0x319   : > { %1769 = vst [vmem:[#allocation2 + $0x2a1] sm:$0xff] %v9540_v29  ;;  %v1550_v48 = vmul.f32 %v9332_v54, %v1479_v38  ;;  %3956 = vmatmul.mubr.f32.gmra.mrb[158].mxu0 %v2212_v27  ;;  %v9595_v6 = vld [vmem:[#allocation2 + $0x272] sm:$0xff] }
 0x31a   : > { %v7669_v28 = vpop.eup %7668  ;;  %v1555_v30 = vmul.f32 %v9551_v52, %v1484_v2  ;;  %v1359_v55 = vadd.f32 1e-06, %v1295_v15  ;;  %4331 = vmatmul.mubr.f32.gmra.mrb[90].mxu1 %v9546_v3  ;;  %3960 = vmatprep.mubr.f32.mxu0 %v1615_v20 }
 0x31b   : > { %v9556_v41 = vadd.f32 %v9352_v16, %v1550_v48  ;;  %v1481_v54 = vmul.f32 %v7669_v28, %v9181_v25  ;;  %v1232_v23 = vpop.xlane.xlu0 %1231  ;;  %4335 = vmatprep.mubr.f32.mxu1 %v2213_v42 }
 0x31c   : > { %v9560_v1 = vadd.f32 %v9352_v16, %v1555_v30  ;;  %7676 = vrsqrt.f32 %v1359_v55  ;;  %v1297_v22 = vmul.f32 0.125, %v1232_v23  ;;  %v2214_v16 = vld [vmem:[#allocation2 + $0x278] sm:$0xff]  ;;  %v9621_v21 = vld [vmem:[#allocation2 + $0x28a] sm:$0xff] }
 0x31d   : > { %1771 = vst [vmem:[#allocation2 + $0x2b9] sm:$0xff] %v9556_v41  ;;  %v1552_v10 = vmul.f32 %v9551_v52, %v1481_v54  ;;  %7678 = vrsqrt.f32 %v1360_v36  ;;  %3961 = vmatmul.mubr.f32.gmra.mrb[160].mxu0 %v2213_v42  ;;  %v1234_v46 = vpop.xlane.xlu1 %1233  ;;  %v9629_v30 = vld [vmem:[#allocation2 + $0x292] sm:$0xff]  ;;  %v9640_v36 = vld [vmem:[#allocation2 + $0x2aa] sm:$0xff] }
 0x31e   : > { %v7671_v20 = vpop.eup %7670  ;;  %1776 = vst [vmem:[#allocation2 + $0x2f1] sm:$0xff] %v9560_v1  ;;  %v1361_v25 = vadd.f32 1e-06, %v1297_v22  ;;  %4336 = vmatmul.mubr.f32.gmra.mrb[92].mxu1 %v9564_v18  ;;  %3965 = vmatprep.mubr.f32.mxu0 %v9477_v0  ;;  %v1298_v63 = vmul.f32 0.125, %v1234_v46 }
 0x31f   : > { %v7673_v7 = vpop.eup %7672  ;;  %v9575_v19 = vadd.f32 %v9572_v47, %v1552_v10  ;;  %v1483_v37 = vmul.f32 %v7671_v20, %v9198_v51  ;;  %4340 = vmatprep.mubr.f32.mxu1 %v2214_v16  ;;  %v2215_v51 = vld [vmem:[#allocation2 + $0x288] sm:$0xff] }
 0x320   : > { %v1486_v14 = vmul.f32 %v7673_v7, %v9206_v4  ;;  %7680 = vrsqrt.f32 %v1361_v25  ;;  %v1362_v17 = vadd.f32 1e-06, %v1298_v63  ;;  %v2217_v8 = vld [vmem:[#allocation2 + $0x2a0] sm:$0xff] }
 0x321   : > { %1773 = vst [vmem:[#allocation2 + $0x2d1] sm:$0xff] %v9575_v19  ;;  %v1554_v0 = vmul.f32 %v9551_v52, %v1483_v37  ;;  %3966 = vmatmul.mubr.f32.gmra.mrb[162].mxu0 %v2214_v16  ;;  %v9652_v16 = vld [vmem:[#allocation2 + $0x2c2] sm:$0xff]  ;;  %v9664_v63 = vld [vmem:[#allocation2 + $0x2da] sm:$0xff] }
 0x322   : > { %v7675_v39 = vpop.eup %7674  ;;  %v1557_v62 = vmul.f32 %v9551_v52, %v1486_v14  ;;  %4341 = vmatmul.mubr.f32.gmra.mrb[94].mxu1 %v9581_v56  ;;  %3970 = vmatprep.mubr.f32.mxu0 %v9526_v12  ;;  %7682 = vrsqrt.f32 %v1362_v17 }
 0x323   : > { %v9587_v4 = vadd.f32 %v9572_v47, %v1554_v0  ;;  %v1485_v24 = vmul.f32 %v7675_v39, %v9222_v32  ;;  %4345 = vmatprep.mubr.f32.mxu1 %v2215_v51  ;;  %v2216_v32 = vld [vmem:[#allocation2 + $0x290] sm:$0xff] }
 0x324   : > { %v9591_v33 = vadd.f32 %v9572_v47, %v1557_v62  ;;  %v2219_v55 = vld [vmem:[#allocation2 + $0x2b8] sm:$0xff] }
 0x325   : > { %1775 = vst [vmem:[#allocation2 + $0x2e9] sm:$0xff] %v9587_v4  ;;  %v1556_v45 = vmul.f32 %v9551_v52, %v1485_v24  ;;  %3971 = vmatmul.mubr.f32.gmra.mrb[164].mxu0 %v2215_v51  ;;  %v9646_v10 = vld [vmem:[#allocation2 + $0x2ba] sm:$0xff]  ;;  %v9676_v24 = vld [vmem:[#allocation2 + $0x2f2] sm:$0xff] }
 0x326   : > { %v7677_v9 = vpop.eup %7676  ;;  %1778 = vst [vmem:[#allocation2 + $0x309] sm:$0xff] %v9591_v33  ;;  %4346 = vmatmul.mubr.f32.gmra.mrb[96].mxu1 %v9595_v6  ;;  %3975 = vmatprep.mubr.f32.mxu0 %v9489_v57 }
 0x327   : > { %v7679_v12 = vpop.eup %7678  ;;  %v9601_v49 = vadd.f32 %v9572_v47, %v1556_v45  ;;  %v1487_v34 = vmul.f32 %v7677_v9, %v9239_v50  ;;  %4350 = vmatprep.mubr.f32.mxu1 %v2216_v32 }
 0x328   : > { %v1488_v53 = vmul.f32 %v7679_v12, %v9246_v43  ;;  %v9658_v37 = vld [vmem:[#allocation2 + $0x2d2] sm:$0xff] }
 0x329   : > { %1777 = vst [vmem:[#allocation2 + $0x301] sm:$0xff] %v9601_v49  ;;  %v1558_v27 = vmul.f32 %v9551_v52, %v1487_v34  ;;  %3976 = vmatmul.mubr.f32.gmra.mrb[166].mxu0 %v2216_v32 }
 0x32a   : > { %v7681_v38 = vpop.eup %7680  ;;  %v1559_v57 = vmul.f32 %v9551_v52, %v1488_v53  ;;  %4351 = vmatmul.mubr.f32.gmra.mrb[98].mxu1 %v9607_v13  ;;  %3980 = vmatprep.mubr.f32.mxu0 %v9540_v29  ;;  %v2218_v29 = vld [vmem:[#allocation2 + $0x2a8] sm:$0xff] }
 0x32b   : > { %v9613_v50 = vadd.f32 %v9572_v47, %v1558_v27  ;;  %v1489_v43 = vmul.f32 %v7681_v38, %v9265_v58  ;;  %4355 = vmatprep.mubr.f32.mxu1 %v2217_v8  ;;  %v2808_v27 = vld [vmem:[#allocation2 + $0x32] sm:$0xff] }
 0x32c   : > { %v9617_v2 = vadd.f32 %v9572_v47, %v1559_v57  ;;  %v7683_v48 = vpop.eup %7682  ;;  %v2223_v7 = vld [vmem:[#allocation2 + $0x2e8] sm:$0xff] }
 0x32d   : > { %1779 = vst [vmem:[#allocation2 + $0x319] sm:$0xff] %v9613_v50  ;;  %v1560_v15 = vmul.f32 %v9551_v52, %v1489_v43  ;;  %3981 = vmatmul.mubr.f32.gmra.mrb[168].mxu0 %v2217_v8  ;;  %v1490_v11 = vmul.f32 %v7683_v48, %v9281_v59  ;;  %v2220_v59 = vld [vmem:[#allocation2 + $0x2c0] sm:$0xff]  ;;  %v9670_v17 = vld [vmem:[#allocation2 + $0x2ea] sm:$0xff] }
 0x32e   : > { %1780 = vst [vmem:[#allocation2 + $0x321] sm:$0xff] %v9617_v2  ;;  %4356 = vmatmul.mubr.f32.gmra.mrb[100].mxu1 %v9621_v21  ;;  %3985 = vmatprep.mubr.f32.mxu0 %v9501_v31  ;;  %v9634_v31 = vld [vmem:[#allocation2 + $0x2a2] sm:$0xff]  ;;  %v9688_v53 = vld [vmem:[#allocation2 + $0x30a] sm:$0xff]  ;;  %v2809_v8 = vld [vmem:[#allocation2 + $0x3a] sm:$0xff] }
 0x32f   : > { %v1631_v58 = vadd.f32 %v9572_v47, %v1560_v15  ;;  %4360 = vmatprep.mubr.f32.mxu1 %v2218_v29  ;;  %v1561_v28 = vmul.f32 %v9551_v52, %v1490_v11  ;;  %v3609_v11 = vld [vmem:[%s10855_s4 + $0x308] sm:$0xff] }
 0x330   : > { %v2225_v0 = vld [vmem:[#allocation2 + $0x300] sm:$0xff] }
 0x331   : > { %1781 = vst [vmem:[#allocation2 + $0x331] sm:$0xff] %v1631_v58  ;;  %3986 = vmatmul.mubr.f32.gmra.mrb[170].mxu0 %v2218_v29  ;;  %v1632_v42 = vadd.f32 %v9572_v47, %v1561_v28  ;;  %v9682_v12 = vld [vmem:[#allocation2 + $0x302] sm:$0xff]  ;;  %v9701_v29 = vld [vmem:[#allocation2 + $0x52] sm:$0xff] }
 0x332   : > { %4361 = vmatmul.mubr.f32.gmra.mrb[102].mxu1 %v9629_v30  ;;  %3990 = vmatprep.mubr.f32.mxu0 %v9556_v41  ;;  %v2221_v41 = vld [vmem:[#allocation2 + $0x2d0] sm:$0xff]  ;;  %v3608_v58 = vld [vmem:[%s10855_s4 + $0x300] sm:$0xff] }
 0x333   : > { %4365 = vmatprep.mubr.f32.mxu1 %v2219_v55  ;;  %1782 = vst [vmem:[#allocation2 + $0x339] sm:$0xff] %v1632_v42  ;;  %v9638_v52 = vpop.f32.mrb[68].mxu0  ;;  %v9712_v42 = vld [vmem:[#allocation2 + $0x62] sm:$0xff] }
 0x334   : > { %10993 = vst [vmem:[#allocation20_spill] sm:$0xff] %v9638_v52  ;;  %v3734_v54 = vpop.f32.mrb[69].mxu0  ;;  %v2227_v45 = vld [vmem:[#allocation2 + $0x318] sm:$0xff] }
 0x335   : > { %3991 = vmatmul.mubr.f32.gmra.mrb[172].mxu0 %v2219_v55  ;;  %v9693_v43 = vld [vmem:[#allocation2 + $0x31a] sm:$0xff]  ;;  %v9709_v55 = vld [vmem:[#allocation2 + $0x322] sm:$0xff]  ;;  %v7066_v54 = vpack.c.bf16 %v3609_v11, %v3608_v58  ;;  %v3614_v58 = vld [vmem:[%s10855_s4 + $0x330] sm:$0xff] }
 0x336   : > { %4366 = vmatmul.mubr.f32.gmra.mrb[104].mxu1 %v9634_v31  ;;  %3995 = vmatprep.mubr.f32.mxu0 %v9513_v5  ;;  %v2222_v5 = vld [vmem:[#allocation2 + $0x2d8] sm:$0xff] }
 0x337   : > { %4370 = vmatprep.mubr.f32.mxu1 %v2220_v59  ;;  %v9644_v23 = vpop.f32.mrb[70].mxu0  ;;  %v3615_v11 = vld [vmem:[%s10855_s4 + $0x338] sm:$0xff] }
 0x338   : > { %10994 = vst [vmem:[#allocation24_spill] sm:$0xff] %v9644_v23  ;;  %v3739_v22 = vpop.f32.mrb[71].mxu0  ;;  %v2229_v38 = vld [vmem:[#allocation2 + $0x330] sm:$0xff] }
 0x339   : > { %3996 = vmatmul.mubr.f32.gmra.mrb[174].mxu0 %v2220_v59  ;;  %v2423_v59 = vld [vmem:[#allocation2 + $0x1a] sm:$0xff]  ;;  %v9718_v22 = vld [vmem:[#allocation2 + $0x6a] sm:$0xff] }
 0x33a   : > { %4371 = vmatmul.mubr.f32.gmra.mrb[106].mxu1 %v9640_v36  ;;  %4000 = vmatprep.mubr.f32.mxu0 %v9575_v19  ;;  %v2230_v15 = vld [vmem:[#allocation2 + $0x338] sm:$0xff] }
 0x33b   : > { %4375 = vmatprep.mubr.f32.mxu1 %v2221_v41 }
 0x33d   : > { %4001 = vmatmul.mubr.f32.gmra.mrb[176].mxu0 %v2221_v41 }
 0x33e   : > { %4376 = vmatmul.mubr.f32.gmra.mrb[108].mxu1 %v9646_v10  ;;  %4005 = vmatprep.mubr.f32.mxu0 %v9530_v35  ;;  %v9650_v20 = vpop.f32.mrb[72].mxu0  ;;  %v2224_v35 = vld [vmem:[#allocation2 + $0x2f0] sm:$0xff] }
 0x33f   : > { %4380 = vmatprep.mubr.f32.mxu1 %v2222_v5  ;;  %10995 = vst [vmem:[#allocation21_spill] sm:$0xff] %v9650_v20  ;;  %v3744_v25 = vpop.f32.mrb[73].mxu0 }
 0x340   : > { %v3611_v25 = vld [vmem:[%s10855_s4 + $0x318] sm:$0xff] }
 0x341   : > { %4006 = vmatmul.mubr.f32.gmra.mrb[178].mxu0 %v2222_v5  ;;  %v3610_v5 = vld [vmem:[%s10855_s4 + $0x310] sm:$0xff] }
 0x342   : > { %4381 = vmatmul.mubr.f32.gmra.mrb[110].mxu1 %v9652_v16  ;;  %4010 = vmatprep.mubr.f32.mxu0 %v9587_v4  ;;  %v9656_v47 = vpop.f32.mrb[74].mxu0 }
 0x343   : > { %4385 = vmatprep.mubr.f32.mxu1 %v2223_v7  ;;  %10996 = vst [vmem:[#allocation22_spill] sm:$0xff] %v9656_v47  ;;  %v3749_v19 = vpop.f32.mrb[75].mxu0 }
 0x344   : > { %v2295_v19 = vld [vmem:[#allocation2 + $0x19] sm:$0xff] }
 0x345   : > { %4011 = vmatmul.mubr.f32.gmra.mrb[180].mxu0 %v2223_v7 }
 0x346   : > { %4386 = vmatmul.mubr.f32.gmra.mrb[112].mxu1 %v9658_v37  ;;  %4015 = vmatprep.mubr.f32.mxu0 %v9560_v1  ;;  %v9662_v46 = vpop.f32.mrb[76].mxu0  ;;  %v2226_v1 = vld [vmem:[#allocation2 + $0x308] sm:$0xff] }
 0x347   : > { %4390 = vmatprep.mubr.f32.mxu1 %v2224_v35  ;;  %10997 = vst [vmem:[#allocation25_spill] sm:$0xff] %v9662_v46  ;;  %v3754_v14 = vpop.f32.mrb[77].mxu0  ;;  %v9970_v46 = vld [vmem:[#allocation2 + $0xe1] sm:$0xff] }
 0x348   : > { %v2424_v14 = vld [vmem:[#allocation2 + $0x22] sm:$0xff] }
 0x349   : > { %4016 = vmatmul.mubr.f32.gmra.mrb[182].mxu0 %v2224_v35  ;;  %v9727_v35 = vld [vmem:[#allocation2 + $0x7a] sm:$0xff] }
 0x34a   : > { %4391 = vmatmul.mubr.f32.gmra.mrb[114].mxu1 %v9664_v63  ;;  %4020 = vmatprep.mubr.f32.mxu0 %v9601_v49  ;;  %v9668_v39 = vpop.f32.mrb[78].mxu0 }
 0x34b   : > { %4395 = vmatprep.mubr.f32.mxu1 %v2225_v0  ;;  %10998 = vst [vmem:[#allocation26_spill] sm:$0xff] %v9668_v39  ;;  %v3759_v62 = vpop.f32.mrb[79].mxu0 }
 0x34d   : > { %4021 = vmatmul.mubr.f32.gmra.mrb[184].mxu0 %v2225_v0  ;;  %v7069_v0 = vpack.c.bf16 %v3611_v25, %v3610_v5  ;;  %v9762_v25 = vld [vmem:[#allocation2 + $0xb2] sm:$0xff] }
 0x34e   : > { %4396 = vmatmul.mubr.f32.gmra.mrb[116].mxu1 %v9670_v17  ;;  %4025 = vmatprep.mubr.f32.mxu0 %v9591_v33  ;;  %v9674_v51 = vpop.f32.mrb[80].mxu0  ;;  %v2228_v33 = vld [vmem:[#allocation2 + $0x320] sm:$0xff] }
 0x34f   : > { %4400 = vmatprep.mubr.f32.mxu1 %v2226_v1  ;;  %10999 = vst [vmem:[#allocation27_spill] sm:$0xff] %v9674_v51  ;;  %v3764_v4 = vpop.f32.mrb[81].mxu0  ;;  %v3632_v51 = vld [vmem:[%s10855_s4 + $0x3c0] sm:$0xff] }
 0x350   : > { %v3612_v4 = vld [vmem:[%s10855_s4 + $0x320] sm:$0xff] }
 0x351   : > { %4026 = vmatmul.mubr.f32.gmra.mrb[186].mxu0 %v2226_v1  ;;  %v9732_v1 = vld [vmem:[#allocation2 + $0x82] sm:$0xff] }
 0x352   : > { %4401 = vmatmul.mubr.f32.gmra.mrb[118].mxu1 %v9676_v24  ;;  %4030 = vmatprep.mubr.f32.mxu0 %v9613_v50  ;;  %v9680_v9 = vpop.f32.mrb[82].mxu0 }
 0x353   : > { %4405 = vmatprep.mubr.f32.mxu1 %v2227_v45  ;;  %11000 = vst [vmem:[#allocation28_spill] sm:$0xff] %v9680_v9  ;;  %v3769_v32 = vpop.f32.mrb[83].mxu0  ;;  %v9954_v9 = vld [vmem:[#allocation2 + $0xd9] sm:$0xff] }
 0x355   : > { %4031 = vmatmul.mubr.f32.gmra.mrb[188].mxu0 %v2227_v45  ;;  %v3613_v45 = vld [vmem:[%s10855_s4 + $0x328] sm:$0xff] }
 0x356   : > { %4406 = vmatmul.mubr.f32.gmra.mrb[120].mxu1 %v9682_v12  ;;  %4035 = vmatprep.mubr.f32.mxu0 %v9617_v2  ;;  %v9686_v49 = vpop.f32.mrb[84].mxu0  ;;  %v9695_v2 = vld [vmem:[#allocation2 + $0x4a] sm:$0xff] }
 0x357   : > { %4410 = vmatprep.mubr.f32.mxu1 %v2228_v33  ;;  %11001 = vst [vmem:[#allocation29_spill] sm:$0xff] %v9686_v49  ;;  %v3774_v34 = vpop.f32.mrb[85].mxu0  ;;  %v9920_v49 = vld [vmem:[#allocation2 + $0x1e2] sm:$0xff] }
 0x358   : > { %v9742_v34 = vld [vmem:[#allocation2 + $0x92] sm:$0xff] }
 0x359   : > { %4036 = vmatmul.mubr.f32.gmra.mrb[190].mxu0 %v2228_v33  ;;  %v2296_v33 = vld [vmem:[#allocation2 + $0x21] sm:$0xff] }
 0x35a   : > { %4411 = vmatmul.mubr.f32.gmra.mrb[122].mxu1 %v9688_v53  ;;  %6793 = vmatprep.mubr.f32.mxu0 %v2808_v27 }
 0x35b   : > { %4415 = vmatprep.mubr.f32.mxu1 %v2229_v38  ;;  %v9691_v57 = vpop.f32.mrb[86].mxu0  ;;  %v7072_v38 = vpack.c.bf16 %v3613_v45, %v3612_v4 }
 0x35c   : > { %11002 = vst [vmem:[#allocation30_spill] sm:$0xff] %v9691_v57  ;;  %v3779_v50 = vpop.f32.mrb[87].mxu0  ;;  %v9918_v57 = vld [vmem:[#allocation2 + $0xb1] sm:$0xff] }
 0x35d   : > { %6794 = vmatmul.mubr.f32.vlgmr.msra.gmra.mrb[192].mxu0 %v2809_v8 }
 0x35e   : > { %4416 = vmatmul.mubr.f32.gmra.mrb[124].mxu1 %v9693_v43  ;;  %6796 = vmatprep.mubr.f32.mxu0 %v9695_v2 }
 0x35f   : > { %4420 = vmatprep.mubr.f32.mxu1 %v2230_v15  ;;  %v9747_v15 = vld [vmem:[#allocation2 + $0x9a] sm:$0xff] }
 0x360   : > { %v9699_v48 = vpop.f32.mrb[88].mxu0 }
 0x361   : > { %11003 = vst [vmem:[#allocation31_spill] sm:$0xff] %v9699_v48  ;;  %v3784_v28 = vpop.f32.mrb[89].mxu0  ;;  %6797 = vmatmul.mubr.f32.gmra.mrb[194].mxu0 %v9701_v29 }
 0x362   : > { %4421 = vmatmul.mubr.f32.gmra.mrb[126].mxu1 %v9709_v55  ;;  %6799 = vmatprep.mubr.f32.mxu0 %v9712_v42 }
 0x363   : > { %4490 = vmatprep.mubr.f32.mxu1 %v2423_v59  ;;  %v2297_v59 = vld [vmem:[#allocation2 + $0x31] sm:$0xff] }
 0x364   : > { %v9716_v41 = vpop.f32.mrb[90].mxu0 }
 0x365   : > { %11004 = vst [vmem:[#allocation7_spill] sm:$0xff] %v9716_v41  ;;  %v3789_v7 = vpop.f32.mrb[91].mxu0  ;;  %6800 = vmatmul.mubr.f32.gmra.mrb[196].mxu0 %v9718_v22  ;;  %v3630_v41 = vld [vmem:[%s10855_s4 + $0x3b0] sm:$0xff] }
 0x366   : > { %4491 = vmatmul.mubr.f32.vlgmr.msra.gmra.mrb[0].mxu1 %v2295_v19  ;;  %6802 = vmatprep.mubr.f32.mxu0 %v9727_v35  ;;  %v3616_v7 = vld [vmem:[%s10855_s4 + $0x340] sm:$0xff]  ;;  %v3617_v19 = vld [vmem:[%s10855_s4 + $0x348] sm:$0xff] }
 0x367   : > { %7067 = vmatpush1.bf16.msra.mxu1 %v7066_v54  ;;  %4495 = vmatprep.mubr.f32.mxu1 %v2424_v14  ;;  %v7075_v54 = vpack.c.bf16 %v3615_v11, %v3614_v58  ;;  %v7078_v4 = vpack.c.bf16 %v3617_v19, %v3616_v7  ;;  %v2299_v11 = vld [vmem:[#allocation2 + $0x49] sm:$0xff]  ;;  %v3620_v7 = vld [vmem:[%s10855_s4 + $0x360] sm:$0xff] }
 0x368   : > { %v9730_v62 = vpop.f32.mrb[92].mxu0  ;;  %7068 = vmatprep.subr.bf16.mxu1 %v10927_v26  ;;  %v3621_v19 = vld [vmem:[%s10855_s4 + $0x368] sm:$0xff] }
 0x369   : > { %11005 = vst [vmem:[#allocation9_spill] sm:$0xff] %v9730_v62  ;;  %v3794_v32 = vpop.f32.mrb[93].mxu0  ;;  %6803 = vmatmul.mubr.f32.gmra.mrb[198].mxu0 %v9732_v1  ;;  %v9905_v62 = vld [vmem:[#allocation2 + $0xa9] sm:$0xff] }
 0x36a   : > { %4496 = vmatmul.mubr.f32.gmra.mrb[2].mxu1 %v2296_v33  ;;  %6805 = vmatprep.mubr.f32.mxu0 %v9742_v34  ;;  %v9778_v32 = vld [vmem:[#allocation2 + $0xca] sm:$0xff] }
 0x36b   : > { %4500 = vmatprep.mubr.f32.mxu1 %v2808_v27  ;;  %7070 = vmatpush1.bf16.msra.mxu1 %v7069_v0  ;;  %v9757_v27 = vld [vmem:[#allocation2 + $0xaa] sm:$0xff]  ;;  %v2298_v0 = vld [vmem:[#allocation2 + $0x39] sm:$0xff] }
 0x36c   : > { %v9745_v50 = vpop.f32.mrb[94].mxu0  ;;  %7071 = vmatprep.subr.bf16.mxu1 %v10927_v26  ;;  %v3618_v33 = vld [vmem:[%s10855_s4 + $0x350] sm:$0xff] }
 0x36d   : > { %11006 = vst [vmem:[#allocation8_spill] sm:$0xff] %v9745_v50  ;;  %v3799_v28 = vpop.f32.mrb[95].mxu0  ;;  %6806 = vmatmul.mubr.f32.gmra.mrb[200].mxu0 %v9747_v15  ;;  %v9883_v50 = vld [vmem:[#allocation2 + $0x16a] sm:$0xff] }
 0x36e   : > { %4501 = vmatmul.mubr.f32.gmra.mrb[4].mxu1 %v2297_v59  ;;  %6808 = vmatprep.mubr.f32.mxu0 %v9757_v27 }
 0x36f   : > { %4505 = vmatprep.mubr.f32.mxu1 %v2809_v8  ;;  %7073 = vmatpush1.bf16.msra.mxu1 %v7072_v38  ;;  %v9772_v8 = vld [vmem:[#allocation2 + $0xc2] sm:$0xff]  ;;  %v3619_v38 = vld [vmem:[%s10855_s4 + $0x358] sm:$0xff] }
 0x370   : > { %v9760_v5 = vpop.f32.mrb[96].mxu0  ;;  %7074 = vmatprep.subr.bf16.mxu1 %v10927_v26  ;;  %v7081_v28 = vpack.c.bf16 %v3619_v38, %v3618_v33  ;;  %v9810_v38 = vld [vmem:[#allocation2 + $0xfa] sm:$0xff] }
 0x371   : > { %11007 = vst [vmem:[#allocation11_spill] sm:$0xff] %v9760_v5  ;;  %v3804_v14 = vpop.f32.mrb[97].mxu0  ;;  %6809 = vmatmul.mubr.f32.gmra.mrb[202].mxu0 %v9762_v25  ;;  %v9867_v5 = vld [vmem:[#allocation2 + $0x81] sm:$0xff] }
 0x372   : > { %4506 = vmatmul.mubr.f32.gmra.mrb[6].mxu1 %v2298_v0  ;;  %6811 = vmatprep.mubr.f32.mxu0 %v9772_v8  ;;  %v2300_v0 = vld [vmem:[#allocation2 + $0x51] sm:$0xff] }
 0x373   : > { %4510 = vmatprep.mubr.f32.mxu1 %v9695_v2  ;;  %7076 = vmatpush1.bf16.msra.mxu1 %v7075_v54  ;;  %v9788_v2 = vld [vmem:[#allocation2 + $0xda] sm:$0xff]  ;;  %v9794_v54 = vld [vmem:[#allocation2 + $0xe2] sm:$0xff] }
 0x374   : > { %v9776_v45 = vpop.f32.mrb[98].mxu0  ;;  %7077 = vmatprep.subr.bf16.mxu1 %v10927_v26 }
 0x375   : > { %11008 = vst [vmem:[#allocation10_spill] sm:$0xff] %v9776_v45  ;;  %v3809_v58 = vpop.f32.mrb[99].mxu0  ;;  %6812 = vmatmul.mubr.f32.gmra.mrb[204].mxu0 %v9778_v32  ;;  %v2303_v45 = vld [vmem:[#allocation2 + $0x79] sm:$0xff] }
 0x376   : > { %4511 = vmatmul.mubr.f32.gmra.mrb[8].mxu1 %v2299_v11  ;;  %6814 = vmatprep.mubr.f32.mxu0 %v9788_v2  ;;  %v3622_v58 = vld [vmem:[%s10855_s4 + $0x370] sm:$0xff]  ;;  %v3623_v11 = vld [vmem:[%s10855_s4 + $0x378] sm:$0xff] }
 0x377   : > { %4515 = vmatprep.mubr.f32.mxu1 %v9701_v29  ;;  %7079 = vmatpush1.bf16.msra.mxu1 %v7078_v4  ;;  %v9804_v29 = vld [vmem:[#allocation2 + $0xf2] sm:$0xff]  ;;  %v7084_v4 = vpack.c.bf16 %v3621_v19, %v3620_v7 }
 0x378   : > { %v9792_v59 = vpop.f32.mrb[100].mxu0  ;;  %7080 = vmatprep.subr.bf16.mxu1 %v10927_v26  ;;  %v9826_v19 = vld [vmem:[#allocation2 + $0x112] sm:$0xff] }
 0x379   : > { %11009 = vst [vmem:[#allocation13_spill] sm:$0xff] %v9792_v59  ;;  %v3814_v14 = vpop.f32.mrb[101].mxu0  ;;  %6815 = vmatmul.mubr.f32.gmra.mrb[206].mxu0 %v9794_v54  ;;  %v2302_v59 = vld [vmem:[#allocation2 + $0x69] sm:$0xff] }
 0x37a   : > { %4516 = vmatmul.mubr.f32.gmra.mrb[10].mxu1 %v2300_v0  ;;  %6817 = vmatprep.mubr.f32.mxu0 %v9804_v29  ;;  %v2301_v0 = vld [vmem:[#allocation2 + $0x61] sm:$0xff] }
 0x37b   : > { %4520 = vmatprep.mubr.f32.mxu1 %v9712_v42  ;;  %7082 = vmatpush1.bf16.msra.mxu1 %v7081_v28  ;;  %v9820_v42 = vld [vmem:[#allocation2 + $0x10a] sm:$0xff]  ;;  %v7087_v28 = vpack.c.bf16 %v3623_v11, %v3622_v58 }
 0x37c   : > { %v9808_v33 = vpop.f32.mrb[102].mxu0  ;;  %7083 = vmatprep.subr.bf16.mxu1 %v10927_v26  ;;  %v9842_v11 = vld [vmem:[#allocation2 + $0x12a] sm:$0xff] }
 0x37d   : > { %11010 = vst [vmem:[#allocation12_spill] sm:$0xff] %v9808_v33  ;;  %v3819_v14 = vpop.f32.mrb[103].mxu0  ;;  %6818 = vmatmul.mubr.f32.gmra.mrb[208].mxu0 %v9810_v38 }
 0x37e   : > { %4521 = vmatmul.mubr.f32.gmra.mrb[12].mxu1 %v2301_v0  ;;  %6820 = vmatprep.mubr.f32.mxu0 %v9820_v42  ;;  %v3624_v14 = vld [vmem:[%s10855_s4 + $0x380] sm:$0xff]  ;;  %v3625_v0 = vld [vmem:[%s10855_s4 + $0x388] sm:$0xff] }
 0x37f   : > { %4525 = vmatprep.mubr.f32.mxu1 %v9718_v22  ;;  %7085 = vmatpush1.bf16.msra.mxu1 %v7084_v4  ;;  %v9836_v22 = vld [vmem:[#allocation2 + $0x122] sm:$0xff]  ;;  %v7090_v4 = vpack.c.bf16 %v3625_v0, %v3624_v14 }
 0x380   : > { %v9824_v7 = vpop.f32.mrb[104].mxu0  ;;  %7086 = vmatprep.subr.bf16.mxu1 %v10927_v26  ;;  %v9858_v0 = vld [vmem:[#allocation2 + $0x142] sm:$0xff] }
 0x381   : > { %11011 = vst [vmem:[#allocation32_spill] sm:$0xff] %v9824_v7  ;;  %v3824_v33 = vpop.f32.mrb[105].mxu0  ;;  %6821 = vmatmul.mubr.f32.gmra.mrb[210].mxu0 %v9826_v19 }
 0x382   : > { %4526 = vmatmul.mubr.f32.gmra.mrb[14].mxu1 %v2302_v59  ;;  %6823 = vmatprep.mubr.f32.mxu0 %v9836_v22  ;;  %v3626_v33 = vld [vmem:[%s10855_s4 + $0x390] sm:$0xff]  ;;  %v3627_v59 = vld [vmem:[%s10855_s4 + $0x398] sm:$0xff] }
 0x383   : > { %4530 = vmatprep.mubr.f32.mxu1 %v9727_v35  ;;  %7088 = vmatpush1.bf16.msra.mxu1 %v7087_v28  ;;  %v9852_v35 = vld [vmem:[#allocation2 + $0x13a] sm:$0xff]  ;;  %v7093_v28 = vpack.c.bf16 %v3627_v59, %v3626_v33 }
 0x384   : > { %v9840_v58 = vpop.f32.mrb[106].mxu0  ;;  %7089 = vmatprep.subr.bf16.mxu1 %v10927_v26  ;;  %v9877_v59 = vld [vmem:[#allocation2 + $0x15a] sm:$0xff] }
 0x385   : > { %11012 = vst [vmem:[#allocation15_spill] sm:$0xff] %v9840_v58  ;;  %v3829_v7 = vpop.f32.mrb[107].mxu0  ;;  %6824 = vmatmul.mubr.f32.gmra.mrb[212].mxu0 %v9842_v11 }
 0x386   : > { %4531 = vmatmul.mubr.f32.gmra.mrb[16].mxu1 %v2303_v45  ;;  %6826 = vmatprep.mubr.f32.mxu0 %v9852_v35  ;;  %v3628_v7 = vld [vmem:[%s10855_s4 + $0x3a0] sm:$0xff]  ;;  %v3629_v45 = vld [vmem:[%s10855_s4 + $0x3a8] sm:$0xff] }
 0x387   : > { %4535 = vmatprep.mubr.f32.mxu1 %v9732_v1  ;;  %7091 = vmatpush1.bf16.msra.mxu1 %v7090_v4  ;;  %v9870_v1 = vld [vmem:[#allocation2 + $0x152] sm:$0xff]  ;;  %v7096_v4 = vpack.c.bf16 %v3629_v45, %v3628_v7 }
 0x388   : > { %v9856_v14 = vpop.f32.mrb[108].mxu0  ;;  %7092 = vmatprep.subr.bf16.mxu1 %v10927_v26  ;;  %v9893_v45 = vld [vmem:[#allocation2 + $0x99] sm:$0xff] }
 0x389   : > { %11013 = vst [vmem:[#allocation14_spill] sm:$0xff] %v9856_v14  ;;  %v3834_v58 = vpop.f32.mrb[109].mxu0  ;;  %6827 = vmatmul.mubr.f32.gmra.mrb[214].mxu0 %v9858_v0  ;;  %v9880_v14 = vld [vmem:[#allocation2 + $0x91] sm:$0xff] }
 0x38a   : > { %4536 = vmatmul.mubr.f32.gmra.mrb[18].mxu1 %v9867_v5  ;;  %6829 = vmatprep.mubr.f32.mxu0 %v9870_v1 }
 0x38b   : > { %4540 = vmatprep.mubr.f32.mxu1 %v9742_v34  ;;  %7094 = vmatpush1.bf16.msra.mxu1 %v7093_v28  ;;  %v9890_v28 = vld [vmem:[#allocation2 + $0x172] sm:$0xff] }
 0x38c   : > { %v9875_v33 = vpop.f32.mrb[110].mxu0  ;;  %7095 = vmatprep.subr.bf16.mxu1 %v10927_v26 }
 0x38d   : > { %11014 = vst [vmem:[#allocation33_spill] sm:$0xff] %v9875_v33  ;;  %v3839_v58 = vpop.f32.mrb[111].mxu0  ;;  %6830 = vmatmul.mubr.f32.gmra.mrb[216].mxu0 %v9877_v59 }
 0x38e   : > { %4541 = vmatmul.mubr.f32.gmra.mrb[20].mxu1 %v9880_v14  ;;  %6832 = vmatprep.mubr.f32.mxu0 %v9883_v50  ;;  %v9896_v58 = vld [vmem:[#allocation2 + $0x182] sm:$0xff] }
 0x38f   : > { %4545 = vmatprep.mubr.f32.mxu1 %v9747_v15  ;;  %7097 = vmatpush1.bf16.msra.mxu1 %v7096_v4  ;;  %v2838_v15 = vld [vmem:[#allocation2 + $0x19a] sm:$0xff] }
 0x390   : > { %v9888_v34 = vpop.f32.mrb[112].mxu0  ;;  %7098 = vmatprep.subr.bf16.mxu1 %v10927_v26 }
 0x391   : > { %11015 = vst [vmem:[#allocation17_spill] sm:$0xff] %v9888_v34  ;;  %v3844_v7 = vpop.f32.mrb[113].mxu0  ;;  %6833 = vmatmul.mubr.f32.gmra.mrb[218].mxu0 %v9890_v28  ;;  %v9903_v34 = vld [vmem:[#allocation2 + $0x18a] sm:$0xff] }
 0x392   : > { %4546 = vmatmul.mubr.f32.gmra.mrb[22].mxu1 %v9893_v45  ;;  %6835 = vmatprep.mubr.f32.mxu0 %v9896_v58  ;;  %v2839_v7 = vld [vmem:[#allocation2 + $0x1a2] sm:$0xff] }
 0x393   : > { %4550 = vmatprep.mubr.f32.mxu1 %v9757_v27  ;;  %v3631_v27 = vld [vmem:[%s10855_s4 + $0x3b8] sm:$0xff] }
 0x394   : > { %v9901_v4 = vpop.f32.mrb[114].mxu0 }
 0x395   : > { %11016 = vst [vmem:[#allocation16_spill] sm:$0xff] %v9901_v4  ;;  %v3849_v33 = vpop.f32.mrb[115].mxu0  ;;  %6836 = vmatmul.mubr.f32.gmra.mrb[220].mxu0 %v9903_v34  ;;  %v7099_v4 = vpack.c.bf16 %v3631_v27, %v3630_v41  ;;  %v9928_v41 = vld [vmem:[#allocation2 + $0x1ea] sm:$0xff] }
 0x396   : > { %4551 = vmatmul.mubr.f32.gmra.mrb[24].mxu1 %v9905_v62  ;;  %6838 = vmatprep.mubr.f32.mxu0 %v2838_v15 }
 0x397   : > { %4555 = vmatprep.mubr.f32.mxu1 %v9762_v25  ;;  %7100 = vmatpush1.bf16.msra.mxu1 %v7099_v4  ;;  %v9940_v4 = vld [vmem:[#allocation2 + $0x202] sm:$0xff] }
 0x398   : > { %v9916_v33 = vpop.f32.mrb[116].mxu0  ;;  %7101 = vmatprep.subr.bf16.mxu1 %v10927_v26 }
 0x399   : > { %11017 = vst [vmem:[#allocation23_spill] sm:$0xff] %v9916_v33  ;;  %v3854_v48 = vpop.f32.mrb[117].mxu0  ;;  %6839 = vmatmul.mubr.f32.gmra.mrb[222].mxu0 %v2839_v7  ;;  %v9933_v7 = vld [vmem:[#allocation2 + $0x1fa] sm:$0xff] }
 0x39a   : > { %4556 = vmatmul.mubr.f32.gmra.mrb[26].mxu1 %v9918_v57  ;;  %6841 = vmatprep.mubr.f32.mxu0 %v9920_v49  ;;  %v9930_v48 = vld [vmem:[#allocation2 + $0xc1] sm:$0xff] }
 0x39b   : > { %4560 = vmatprep.mubr.f32.mxu1 %v9772_v8 }
 0x39c   : > { %v9926_v15 = vpop.f32.mrb[118].mxu0 }
 0x39d   : > { %11018 = vst [vmem:[#allocation19_spill] sm:$0xff] %v9926_v15  ;;  %v3859_v25 = vpop.f32.mrb[119].mxu0  ;;  %6842 = vmatmul.mubr.f32.gmra.mrb[224].mxu0 %v9928_v41  ;;  %v9942_v15 = vld [vmem:[#allocation2 + $0xc9] sm:$0xff] }
 0x39e   : > { %4561 = vmatmul.mubr.f32.gmra.mrb[28].mxu1 %v9930_v48  ;;  %6844 = vmatprep.mubr.f32.mxu0 %v9933_v7  ;;  %v9945_v25 = vld [vmem:[#allocation2 + $0x212] sm:$0xff] }
 0x39f   : > { %4565 = vmatprep.mubr.f32.mxu1 %v9778_v32  ;;  %v9952_v32 = vld [vmem:[#allocation2 + $0x21a] sm:$0xff] }
 0x3a0   : > { %v9938_v8 = vpop.f32.mrb[120].mxu0 }
 0x3a1   : > { %11019 = vst [vmem:[#allocation18_spill] sm:$0xff] %v9938_v8  ;;  %v3864_v27 = vpop.f32.mrb[121].mxu0  ;;  %6845 = vmatmul.mubr.f32.gmra.mrb[226].mxu0 %v9940_v4 }
 0x3a2   : > { %4566 = vmatmul.mubr.f32.gmra.mrb[30].mxu1 %v9942_v15  ;;  %6847 = vmatprep.mubr.f32.mxu0 %v9945_v25  ;;  %v9957_v27 = vld [vmem:[#allocation2 + $0x22a] sm:$0xff] }
 0x3a3   : > { %4570 = vmatprep.mubr.f32.mxu1 %v9788_v2  ;;  %v3633_v2 = vld [vmem:[%s10855_s4 + $0x3c8] sm:$0xff] }
 0x3a4   : > { %v9950_v33 = vpop.f32.mrb[122].mxu0 }
 0x3a5   : > { %11020 = vst [vmem:[#allocation34_spill] sm:$0xff] %v9950_v33  ;;  %v3869_v8 = vpop.f32.mrb[123].mxu0  ;;  %6848 = vmatmul.mubr.f32.gmra.mrb[228].mxu0 %v9952_v32 }
 0x3a6   : > { %4571 = vmatmul.mubr.f32.gmra.mrb[32].mxu1 %v9954_v9  ;;  %6850 = vmatprep.mubr.f32.mxu0 %v9957_v27  ;;  %v7102_v8 = vpack.c.bf16 %v3633_v2, %v3632_v51  ;;  %v9979_v51 = vld [vmem:[#allocation2 + $0xf1] sm:$0xff] }
 0x3a7   : > { %4575 = vmatprep.mubr.f32.mxu1 %v9794_v54 }
 0x3a8   : > { %v9968_v33 = vpop.f32.mrb[124].mxu0  ;;  %7103 = vmatpush1.bf16.msra.mxu1 %v7102_v8  ;;  %v10018_v8 = vld [vmem:[#allocation2 + $0x121] sm:$0xff] }
 0x3a9   : > { %11021 = vst [vmem:[#allocation35_spill] sm:$0xff] %v9968_v33  ;;  %v3874_v39 = vpop.f32.mrb[125].mxu0  ;;  %6851 = vmatmul.mubr.f32.gmra.mrb[230].mxu0 %v9521_v40  ;;  %7104 = vmatprep.subr.bf16.mxu1 %v10927_v26  ;;  %v10231_v33 = vld [vmem:[#allocation2 + $0x2d9] sm:$0xff] }
 0x3aa   : > { %4576 = vmatmul.mubr.f32.gmra.mrb[34].mxu1 %v9970_v46  ;;  %6853 = vmatprep.mubr.f32.mxu0 %v9534_v60  ;;  %v9987_v60 = vld [vmem:[#allocation2 + $0xf9] sm:$0xff] }
 0x3ab   : > { %4580 = vmatprep.mubr.f32.mxu1 %v9804_v29  ;;  %v9995_v29 = vld [vmem:[#allocation2 + $0x109] sm:$0xff] }
 0x3ac   : > { %v9977_v47 = vpop.f32.mrb[126].mxu0 }
 0x3ad   : > { %11022 = vst [vmem:[#allocation36_spill] sm:$0xff] %v9977_v47  ;;  %v3879_v54 = vpop.f32.mrb[127].mxu0  ;;  %6854 = vmatmul.mubr.f32.gmra.mrb[232].mxu0 %v9546_v3  ;;  %v2478_v47 = vld [vmem:[#allocation2 + $0x2da] sm:$0xff] }
 0x3ae   : > { %4581 = vmatmul.mubr.f32.gmra.mrb[36].mxu1 %v9979_v51  ;;  %6856 = vmatprep.mubr.f32.mxu0 %v9564_v18  ;;  %v10026_v54 = vld [vmem:[#allocation2 + $0x129] sm:$0xff] }
 0x3af   : > { %4585 = vmatprep.mubr.f32.mxu1 %v9810_v38 }
 0x3b0   : > { %v9985_v40 = vpop.f32.mrb[128].mxu0 }
 0x3b1   : > { %11023 = vst [vmem:[#allocation37_spill] sm:$0xff] %v9985_v40  ;;  %6857 = vmatmul.mubr.f32.gmra.mrb[234].mxu0 %v9581_v56  ;;  %v3884_v39 = vpop.f32.mrb[129].mxu0  ;;  %v3634_v56 = vld [vmem:[%s10855_s4 + $0x3d0] sm:$0xff] }
 0x3b2   : > { %4586 = vmatmul.mubr.f32.gmra.mrb[38].mxu1 %v9987_v60  ;;  %6859 = vmatprep.mubr.f32.mxu0 %v9595_v6  ;;  %v3635_v6 = vld [vmem:[%s10855_s4 + $0x3d8] sm:$0xff] }
 0x3b3   : > { %4590 = vmatprep.mubr.f32.mxu1 %v9820_v42  ;;  %v7105_v38 = vpack.c.bf16 %v3635_v6, %v3634_v56  ;;  %v10034_v39 = vld [vmem:[#allocation2 + $0x139] sm:$0xff]  ;;  %v10077_v6 = vld [vmem:[#allocation2 + $0x169] sm:$0xff] }
 0x3b4   : > { %v9993_v3 = vpop.f32.mrb[130].mxu0  ;;  %v10065_v56 = vld [vmem:[#allocation2 + $0x159] sm:$0xff] }
 0x3b5   : > { %11024 = vst [vmem:[#allocation38_spill] sm:$0xff] %v9993_v3  ;;  %6860 = vmatmul.mubr.f32.gmra.mrb[236].mxu0 %v9607_v13  ;;  %v3889_v18 = vpop.f32.mrb[131].mxu0  ;;  %v10009_v13 = vld [vmem:[#allocation2 + $0x111] sm:$0xff]  ;;  %7106 = vmatpush1.bf16.msra.mxu1 %v7105_v38 }
 0x3b6   : > { %4591 = vmatmul.mubr.f32.gmra.mrb[40].mxu1 %v9995_v29  ;;  %6862 = vmatprep.mubr.f32.mxu0 %v9621_v21  ;;  %v10048_v18 = vld [vmem:[#allocation2 + $0x141] sm:$0xff]  ;;  %v3639_v38 = vld [vmem:[%s10855_s4 + $0x3f8] sm:$0xff] }
 0x3b7   : > { %4595 = vmatprep.mubr.f32.mxu1 %v9826_v19  ;;  %7107 = vmatprep.subr.bf16.mxu1 %v10927_v26  ;;  %v10224_v3 = vld [vmem:[#allocation2 + $0x2d1] sm:$0xff] }
 0x3b8   : > { %v10007_v42 = vpop.f32.mrb[132].mxu0 }
 0x3b9   : > { %11025 = vst [vmem:[#allocation39_spill] sm:$0xff] %v10007_v42  ;;  %v3894_v2 = vpop.f32.mrb[133].mxu0  ;;  %6863 = vmatmul.mubr.f32.gmra.mrb[238].mxu0 %v9629_v30  ;;  %v2477_v42 = vld [vmem:[#allocation2 + $0x2d2] sm:$0xff] }
 0x3ba   : > { %4596 = vmatmul.mubr.f32.gmra.mrb[42].mxu1 %v10009_v13  ;;  %6865 = vmatprep.mubr.f32.mxu0 %v9634_v31 }
 0x3bb   : > { %4600 = vmatprep.mubr.f32.mxu1 %v9836_v22 }
 0x3bc   : > { %v10016_v21 = vpop.f32.mrb[134].mxu0 }
 0x3bd   : > { %11026 = vst [vmem:[#allocation40_spill] sm:$0xff] %v10016_v21  ;;  %v3899_v19 = vpop.f32.mrb[135].mxu0  ;;  %6866 = vmatmul.mubr.f32.gmra.mrb[240].mxu0 %v9640_v36 }
 0x3be   : > { %4601 = vmatmul.mubr.f32.gmra.mrb[44].mxu1 %v10018_v8  ;;  %6868 = vmatprep.mubr.f32.mxu0 %v9646_v10  ;;  %v3636_v10 = vld [vmem:[%s10855_s4 + $0x3e0] sm:$0xff] }
 0x3bf   : > { %4605 = vmatprep.mubr.f32.mxu1 %v9842_v11 }
 0x3c0   : > { %v10024_v30 = vpop.f32.mrb[136].mxu0 }
 0x3c1   : > { %11027 = vst [vmem:[#allocation41_spill] sm:$0xff] %v10024_v30  ;;  %v3904_v31 = vpop.f32.mrb[137].mxu0  ;;  %6869 = vmatmul.mubr.f32.gmra.mrb[242].mxu0 %v9652_v16  ;;  %v3637_v16 = vld [vmem:[%s10855_s4 + $0x3e8] sm:$0xff] }
 0x3c2   : > { %4606 = vmatmul.mubr.f32.gmra.mrb[46].mxu1 %v10026_v54  ;;  %6871 = vmatprep.mubr.f32.mxu0 %v9658_v37  ;;  %v7108_v37 = vpack.c.bf16 %v3637_v16, %v3636_v10  ;;  %v10090_v31 = vld [vmem:[#allocation2 + $0x171] sm:$0xff]  ;;  %v10096_v16 = vld [vmem:[#allocation2 + $0x181] sm:$0xff] }
 0x3c3   : > { %4610 = vmatprep.mubr.f32.mxu1 %v9852_v35  ;;  %v10217_v30 = vld [vmem:[#allocation2 + $0x2c1] sm:$0xff] }
 0x3c4   : > { %v10032_v36 = vpop.f32.mrb[138].mxu0  ;;  %7109 = vmatpush1.bf16.msra.mxu1 %v7108_v37 }
 0x3c5   : > { %11028 = vst [vmem:[#allocation42_spill] sm:$0xff] %v10032_v36  ;;  %v3909_v22 = vpop.f32.mrb[139].mxu0  ;;  %6872 = vmatmul.mubr.f32.gmra.mrb[244].mxu0 %v9664_v63  ;;  %7110 = vmatprep.subr.bf16.mxu1 %v10927_v26  ;;  %v2476_v36 = vld [vmem:[#allocation2 + $0x2c2] sm:$0xff] }
 0x3c6   : > { %4611 = vmatmul.mubr.f32.gmra.mrb[48].mxu1 %v10034_v39  ;;  %6874 = vmatprep.mubr.f32.mxu0 %v9670_v17 }
 0x3c7   : > { %4615 = vmatprep.mubr.f32.mxu1 %v9858_v0  ;;  %v10057_v0 = vld [vmem:[#allocation2 + $0x151] sm:$0xff] }
 0x3c8   : > { %v10046_v11 = vpop.f32.mrb[140].mxu0 }
 0x3c9   : > { %11029 = vst [vmem:[#allocation43_spill] sm:$0xff] %v10046_v11  ;;  %v3914_v35 = vpop.f32.mrb[141].mxu0  ;;  %6875 = vmatmul.mubr.f32.gmra.mrb[246].mxu0 %v9676_v24 }
 0x3ca   : > { %4616 = vmatmul.mubr.f32.gmra.mrb[50].mxu1 %v10048_v18  ;;  %6877 = vmatprep.mubr.f32.mxu0 %v9682_v12  ;;  %v10102_v35 = vld [vmem:[#allocation2 + $0x189] sm:$0xff] }
 0x3cb   : > { %4620 = vmatprep.mubr.f32.mxu1 %v9870_v1  ;;  %v10068_v1 = vld [vmem:[#allocation2 + $0x332] sm:$0xff] }
 0x3cc   : > { %v10055_v63 = vpop.f32.mrb[142].mxu0 }
 0x3cd   : > { %11030 = vst [vmem:[#allocation44_spill] sm:$0xff] %v10055_v63  ;;  %v3919_v17 = vpop.f32.mrb[143].mxu0  ;;  %6878 = vmatmul.mubr.f32.gmra.mrb[248].mxu0 %v9688_v53 }
 0x3ce   : > { %4621 = vmatmul.mubr.f32.gmra.mrb[52].mxu1 %v10057_v0  ;;  %6880 = vmatprep.mubr.f32.mxu0 %v9693_v43  ;;  %v10075_v43 = vld [vmem:[#allocation2 + $0x33a] sm:$0xff]  ;;  %v2455_v17 = vld [vmem:[#allocation2 + $0x1ca] sm:$0xff] }
 0x3cf   : > { %4625 = vmatprep.mubr.f32.mxu1 %v9877_v59 }
 0x3d0   : > { %v10063_v24 = vpop.f32.mrb[144].mxu0 }
 0x3d1   : > { %11031 = vst [vmem:[#allocation45_spill] sm:$0xff] %v10063_v24  ;;  %v3924_v12 = vpop.f32.mrb[145].mxu0  ;;  %6881 = vmatmul.mubr.f32.gmra.mrb[250].mxu0 %v9709_v55  ;;  %v3638_v55 = vld [vmem:[%s10855_s4 + $0x3f0] sm:$0xff] }
 0x3d2   : > { %4626 = vmatmul.mubr.f32.gmra.mrb[54].mxu1 %v10065_v56  ;;  %6883 = vmatprep.mubr.f32.mxu0 %v10068_v1 }
 0x3d3   : > { %4630 = vmatprep.mubr.f32.mxu1 %v9883_v50  ;;  %v7111_v50 = vpack.c.bf16 %v3639_v38, %v3638_v55  ;;  %v2456_v55 = vld [vmem:[#allocation2 + $0x1d2] sm:$0xff] }
 0x3d4   : > { %v10073_v53 = vpop.f32.mrb[146].mxu0 }
 0x3d5   : > { %11032 = vst [vmem:[#allocation46_spill] sm:$0xff] %v10073_v53  ;;  %v3929_v59 = vpop.f32.mrb[147].mxu0  ;;  %6884 = vmatmul.mubr.f32.gmra.mrb[252].mxu0 %v10075_v43  ;;  %7112 = vmatpush1.bf16.msra.mxu1 %v7111_v50 }
 0x3d6   : > { %4631 = vmatmul.mubr.f32.gmra.mrb[56].mxu1 %v10077_v6  ;;  %v2327_v59 = vld [vmem:[#allocation2 + $0x1c9] sm:$0xff] }
 0x3d7   : > { %4635 = vmatprep.mubr.f32.mxu1 %v9890_v28 }
 0x3d8   : > { %v10088_v2 = vpop.f32.mrb[148].mxu0 }
 0x3d9   : > { %11033 = vst [vmem:[#allocation47_spill] sm:$0xff] %v10088_v2  ;;  %v3934_v19 = vpop.f32.mrb[149].mxu0 }
 0x3da   : > { %4636 = vmatmul.mubr.f32.gmra.mrb[58].mxu1 %v10090_v31 }
 0x3db   : > { %4640 = vmatprep.mubr.f32.mxu1 %v9896_v58 }
 0x3dc   : > { %v10094_v22 = vpop.f32.mrb[150].mxu0 }
 0x3dd   : > { %11034 = vst [vmem:[#allocation48_spill] sm:$0xff] %v10094_v22  ;;  %v3939_v10 = vpop.f32.mrb[151].mxu0 }
 0x3de   : > { %4641 = vmatmul.mubr.f32.gmra.mrb[60].mxu1 %v10096_v16 }
 0x3df   : > { %4645 = vmatprep.mubr.f32.mxu1 %v9903_v34  ;;  %v2328_v34 = vld [vmem:[#allocation2 + $0x1d1] sm:$0xff] }
 0x3e0   : > { %v10100_v28 = vpop.f32.mrb[152].mxu0 }
 0x3e1   : > { %11035 = vst [vmem:[#allocation49_spill] sm:$0xff] %v10100_v28  ;;  %v3944_v37 = vpop.f32.mrb[153].mxu0 }
 0x3e2   : > { %4646 = vmatmul.mubr.f32.gmra.mrb[62].mxu1 %v10102_v35  ;;  %v10112_v37 = vld [vmem:[#allocation2 + $0x1e1] sm:$0xff] }
 0x3e3   : > { %4650 = vmatprep.mubr.f32.mxu1 %v2455_v17 }
 0x3e4   : > { %v10105_v12 = vpop.f32.mrb[154].mxu0 }
 0x3e5   : > { %11036 = vst [vmem:[#allocation50_spill] sm:$0xff] %v10105_v12  ;;  %v3949_v58 = vpop.f32.mrb[155].mxu0 }
 0x3e6   : > { %4651 = vmatmul.mubr.f32.gmra.mrb[64].mxu1 %v2327_v59  ;;  %v10118_v59 = vld [vmem:[#allocation2 + $0x1e9] sm:$0xff] }
 0x3e7   : > { %4655 = vmatprep.mubr.f32.mxu1 %v2456_v55 }
 0x3e8   : > { %v10107_v38 = vpop.f32.mrb[156].mxu0 }
 0x3e9   : > { %11037 = vst [vmem:[#allocation51_spill] sm:$0xff] %v10107_v38  ;;  %v3954_v50 = vpop.f32.mrb[157].mxu0 }
 0x3ea   : > { %4656 = vmatmul.mubr.f32.gmra.mrb[66].mxu1 %v2328_v34  ;;  %v10124_v50 = vld [vmem:[#allocation2 + $0x1f9] sm:$0xff] }
 0x3eb   : > { %4660 = vmatprep.mubr.f32.mxu1 %v9920_v49 }
 0x3ec   : > { %v10110_v19 = vpop.f32.mrb[158].mxu0 }
 0x3ed   : > { %11038 = vst [vmem:[#allocation52_spill] sm:$0xff] %v10110_v19  ;;  %v3959_v10 = vpop.f32.mrb[159].mxu0 }
 0x3ee   : > { %4661 = vmatmul.mubr.f32.gmra.mrb[68].mxu1 %v10112_v37  ;;  %v10130_v10 = vld [vmem:[#allocation2 + $0x201] sm:$0xff] }
 0x3ef   : > { %4665 = vmatprep.mubr.f32.mxu1 %v9928_v41 }
 0x3f0   : > { %v10116_v17 = vpop.f32.mrb[160].mxu0 }
 0x3f1   : > { %11039 = vst [vmem:[#allocation53_spill] sm:$0xff] %v10116_v17  ;;  %v3964_v58 = vpop.f32.mrb[161].mxu0 }
 0x3f2   : > { %4666 = vmatmul.mubr.f32.gmra.mrb[70].mxu1 %v10118_v59 }
 0x3f3   : > { %4670 = vmatprep.mubr.f32.mxu1 %v9933_v7 }
 0x3f4   : > { %v10122_v55 = vpop.f32.mrb[162].mxu0 }
 0x3f5   : > { %11040 = vst [vmem:[#allocation54_spill] sm:$0xff] %v10122_v55  ;;  %v3969_v49 = vpop.f32.mrb[163].mxu0  ;;  %v10136_v55 = vld [vmem:[#allocation2 + $0x211] sm:$0xff] }
 0x3f6   : > { %4671 = vmatmul.mubr.f32.gmra.mrb[72].mxu1 %v10124_v50 }
 0x3f7   : > { %4675 = vmatprep.mubr.f32.mxu1 %v9940_v4 }
 0x3f8   : > { %v10128_v34 = vpop.f32.mrb[164].mxu0 }
 0x3f9   : > { %11041 = vst [vmem:[#allocation55_spill] sm:$0xff] %v10128_v34  ;;  %v3974_v41 = vpop.f32.mrb[165].mxu0  ;;  %v10142_v34 = vld [vmem:[#allocation2 + $0x219] sm:$0xff] }
 0x3fa   : > { %4676 = vmatmul.mubr.f32.gmra.mrb[74].mxu1 %v10130_v10 }
 0x3fb   : > { %4680 = vmatprep.mubr.f32.mxu1 %v9945_v25 }
 0x3fc   : > { %v10134_v58 = vpop.f32.mrb[166].mxu0 }
 0x3fd   : > { %11042 = vst [vmem:[#allocation56_spill] sm:$0xff] %v10134_v58  ;;  %v3979_v7 = vpop.f32.mrb[167].mxu0  ;;  %v10148_v58 = vld [vmem:[#allocation2 + $0x229] sm:$0xff] }
 0x3fe   : > { %4681 = vmatmul.mubr.f32.gmra.mrb[76].mxu1 %v10136_v55  ;;  %v2464_v7 = vld [vmem:[#allocation2 + $0x232] sm:$0xff] }
 0x3ff   : > { %4685 = vmatprep.mubr.f32.mxu1 %v9952_v32 }
 0x400   : > { %v10140_v49 = vpop.f32.mrb[168].mxu0 }
 0x401   : > { %11043 = vst [vmem:[#allocation57_spill] sm:$0xff] %v10140_v49  ;;  %v3984_v4 = vpop.f32.mrb[169].mxu0  ;;  %v10153_v49 = vld [vmem:[#allocation2 + $0x231] sm:$0xff] }
 0x402   : > { %4686 = vmatmul.mubr.f32.gmra.mrb[78].mxu1 %v10142_v34  ;;  %v2465_v4 = vld [vmem:[#allocation2 + $0x242] sm:$0xff] }
 0x403   : > { %4690 = vmatprep.mubr.f32.mxu1 %v9957_v27 }
 0x404   : > { %v10146_v41 = vpop.f32.mrb[170].mxu0 }
 0x405   : > { %11044 = vst [vmem:[#allocation58_spill] sm:$0xff] %v10146_v41  ;;  %v3989_v25 = vpop.f32.mrb[171].mxu0  ;;  %v10158_v41 = vld [vmem:[#allocation2 + $0x241] sm:$0xff] }
 0x406   : > { %4691 = vmatmul.mubr.f32.gmra.mrb[80].mxu1 %v10148_v58  ;;  %v2466_v25 = vld [vmem:[#allocation2 + $0x24a] sm:$0xff] }
 0x407   : > { %4695 = vmatprep.mubr.f32.mxu1 %v2464_v7 }
 0x408   : > { %v10151_v17 = vpop.f32.mrb[172].mxu0 }
 0x409   : > { %11045 = vst [vmem:[#allocation59_spill] sm:$0xff] %v10151_v17  ;;  %v3994_v32 = vpop.f32.mrb[173].mxu0  ;;  %v10163_v17 = vld [vmem:[#allocation2 + $0x249] sm:$0xff] }
 0x40a   : > { %4696 = vmatmul.mubr.f32.gmra.mrb[82].mxu1 %v10153_v49  ;;  %v2467_v32 = vld [vmem:[#allocation2 + $0x25a] sm:$0xff] }
 0x40b   : > { %4700 = vmatprep.mubr.f32.mxu1 %v2465_v4 }
 0x40c   : > { %v10156_v19 = vpop.f32.mrb[174].mxu0 }
 0x40d   : > { %11046 = vst [vmem:[#allocation60_spill] sm:$0xff] %v10156_v19  ;;  %v3999_v27 = vpop.f32.mrb[175].mxu0  ;;  %v10168_v19 = vld [vmem:[#allocation2 + $0x259] sm:$0xff] }
 0x40e   : > { %4701 = vmatmul.mubr.f32.gmra.mrb[84].mxu1 %v10158_v41  ;;  %v2468_v27 = vld [vmem:[#allocation2 + $0x262] sm:$0xff] }
 0x40f   : > { %4705 = vmatprep.mubr.f32.mxu1 %v2466_v25 }
 0x410   : > { %v10161_v38 = vpop.f32.mrb[176].mxu0 }
 0x411   : > { %11047 = vst [vmem:[#allocation61_spill] sm:$0xff] %v10161_v38  ;;  %v4004_v7 = vpop.f32.mrb[177].mxu0  ;;  %v10173_v38 = vld [vmem:[#allocation2 + $0x261] sm:$0xff] }
 0x412   : > { %4706 = vmatmul.mubr.f32.gmra.mrb[86].mxu1 %v10163_v17  ;;  %v2469_v7 = vld [vmem:[#allocation2 + $0x272] sm:$0xff] }
 0x413   : > { %4710 = vmatprep.mubr.f32.mxu1 %v2467_v32 }
 0x414   : > { %v10166_v12 = vpop.f32.mrb[178].mxu0 }
 0x415   : > { %11048 = vst [vmem:[#allocation62_spill] sm:$0xff] %v10166_v12  ;;  %v4009_v4 = vpop.f32.mrb[179].mxu0  ;;  %v10178_v12 = vld [vmem:[#allocation2 + $0x271] sm:$0xff] }
 0x416   : > { %4711 = vmatmul.mubr.f32.gmra.mrb[88].mxu1 %v10168_v19  ;;  %v2470_v4 = vld [vmem:[#allocation2 + $0x27a] sm:$0xff] }
 0x417   : > { %4715 = vmatprep.mubr.f32.mxu1 %v2468_v27 }
 0x418   : > { %v10171_v28 = vpop.f32.mrb[180].mxu0 }
 0x419   : > { %11049 = vst [vmem:[#allocation63_spill] sm:$0xff] %v10171_v28  ;;  %v4014_v25 = vpop.f32.mrb[181].mxu0  ;;  %v10183_v28 = vld [vmem:[#allocation2 + $0x279] sm:$0xff] }
 0x41a   : > { %4716 = vmatmul.mubr.f32.gmra.mrb[90].mxu1 %v10173_v38  ;;  %v2471_v25 = vld [vmem:[#allocation2 + $0x28a] sm:$0xff] }
 0x41b   : > { %4720 = vmatprep.mubr.f32.mxu1 %v2469_v7 }
 0x41c   : > { %v10176_v22 = vpop.f32.mrb[182].mxu0 }
 0x41d   : > { %11050 = vst [vmem:[#allocation64_spill] sm:$0xff] %v10176_v22  ;;  %v4019_v32 = vpop.f32.mrb[183].mxu0  ;;  %v10188_v22 = vld [vmem:[#allocation2 + $0x289] sm:$0xff] }
 0x41e   : > { %4721 = vmatmul.mubr.f32.gmra.mrb[92].mxu1 %v10178_v12  ;;  %v2472_v32 = vld [vmem:[#allocation2 + $0x292] sm:$0xff] }
 0x41f   : > { %4725 = vmatprep.mubr.f32.mxu1 %v2470_v4 }
 0x420   : > { %v10181_v2 = vpop.f32.mrb[184].mxu0 }
 0x421   : > { %11051 = vst [vmem:[#allocation65_spill] sm:$0xff] %v10181_v2  ;;  %v4024_v27 = vpop.f32.mrb[185].mxu0  ;;  %v10193_v2 = vld [vmem:[#allocation2 + $0x291] sm:$0xff] }
 0x422   : > { %4726 = vmatmul.mubr.f32.gmra.mrb[94].mxu1 %v10183_v28  ;;  %v2473_v27 = vld [vmem:[#allocation2 + $0x2a2] sm:$0xff] }
 0x423   : > { %4730 = vmatprep.mubr.f32.mxu1 %v2471_v25 }
 0x424   : > { %v10186_v53 = vpop.f32.mrb[186].mxu0 }
 0x425   : > { %11052 = vst [vmem:[#allocation66_spill] sm:$0xff] %v10186_v53  ;;  %v4029_v7 = vpop.f32.mrb[187].mxu0  ;;  %v10198_v53 = vld [vmem:[#allocation2 + $0x2a1] sm:$0xff] }
 0x426   : > { %4731 = vmatmul.mubr.f32.gmra.mrb[96].mxu1 %v10188_v22  ;;  %v2474_v7 = vld [vmem:[#allocation2 + $0x2aa] sm:$0xff] }
 0x427   : > { %4735 = vmatprep.mubr.f32.mxu1 %v2472_v32  ;;  %v10203_v32 = vld [vmem:[#allocation2 + $0x2a9] sm:$0xff] }
 0x428   : > { %v10191_v24 = vpop.f32.mrb[188].mxu0 }
 0x429   : > { %11053 = vst [vmem:[#allocation67_spill] sm:$0xff] %v10191_v24  ;;  %v4034_v4 = vpop.f32.mrb[189].mxu0  ;;  %v2475_v24 = vld [vmem:[#allocation2 + $0x2ba] sm:$0xff] }
 0x42a   : > { %4736 = vmatmul.mubr.f32.gmra.mrb[98].mxu1 %v10193_v2 }
 0x42b   : > { %4740 = vmatprep.mubr.f32.mxu1 %v2473_v27 }
 0x42c   : > { %v10196_v63 = vpop.f32.mrb[190].mxu0 }
 0x42d   : > { %11054 = vst [vmem:[#allocation68_spill] sm:$0xff] %v10196_v63  ;;  %v4039_v25 = vpop.f32.mrb[191].mxu0  ;;  %v10210_v63 = vld [vmem:[#allocation2 + $0x2b9] sm:$0xff] }
 0x42e   : > { %4741 = vmatmul.mubr.f32.gmra.mrb[100].mxu1 %v10198_v53 }
 0x42f   : > { %4745 = vmatprep.mubr.f32.mxu1 %v2474_v7 }
 0x430   : > { %v10201_v11 = vpop.f32.mrb[192].mxu0 }
 0x431   : > { %v10205_v4 = vpop.f32.mrb[193].mxu0 }
 0x432   : > { %4746 = vmatmul.mubr.f32.gmra.mrb[102].mxu1 %v10203_v32 }
 0x433   : > { %4750 = vmatprep.mubr.f32.mxu1 %v2475_v24 }
 0x434   : > { %v10208_v27 = vpop.f32.mrb[194].mxu0 }
 0x435   : > { %11055 = vst [vmem:[#allocation69_spill] sm:$0xff] %v10208_v27  ;;  %v10212_v25 = vpop.f32.mrb[195].mxu0 }
 0x436   : > { %11056 = vst [vmem:[#allocation70_spill] sm:$0xff] %v10212_v25  ;;  %4751 = vmatmul.mubr.f32.gmra.mrb[104].mxu1 %v10210_v63 }
 0x437   : > { %4755 = vmatprep.mubr.f32.mxu1 %v2476_v36 }
 0x438   : > { %v10215_v7 = vpop.f32.mrb[196].mxu0 }
 0x439   : > { %11057 = vst [vmem:[#allocation71_spill] sm:$0xff] %v10215_v7  ;;  %v10219_v21 = vpop.f32.mrb[197].mxu0 }
 0x43a   : > { %11058 = vst [vmem:[#allocation72_spill] sm:$0xff] %v10219_v21  ;;  %4756 = vmatmul.mubr.f32.gmra.mrb[106].mxu1 %v10217_v30  ;;  %v2479_v21 = vld [vmem:[#allocation2 + $0x2ea] sm:$0xff] }
 0x43b   : > { %4760 = vmatprep.mubr.f32.mxu1 %v2477_v42 }
 0x43c   : > { %v10222_v24 = vpop.f32.mrb[198].mxu0 }
 0x43d   : > { %11059 = vst [vmem:[#allocation73_spill] sm:$0xff] %v10222_v24  ;;  %v10226_v40 = vpop.f32.mrb[199].mxu0  ;;  %v10238_v24 = vld [vmem:[#allocation2 + $0x2e9] sm:$0xff] }
 0x43e   : > { %11060 = vst [vmem:[#allocation74_spill] sm:$0xff] %v10226_v40  ;;  %4761 = vmatmul.mubr.f32.gmra.mrb[108].mxu1 %v10224_v3  ;;  %v2480_v40 = vld [vmem:[#allocation2 + $0x2f2] sm:$0xff] }
 0x43f   : > { %4765 = vmatprep.mubr.f32.mxu1 %v2478_v47 }
 0x440   : > { %v10229_v36 = vpop.f32.mrb[200].mxu0 }
 0x441   : > { %11061 = vst [vmem:[#allocation75_spill] sm:$0xff] %v10229_v36  ;;  %v10233_v7 = vpop.f32.mrb[201].mxu0  ;;  %v10245_v36 = vld [vmem:[#allocation2 + $0x2f1] sm:$0xff] }
 0x442   : > { %11062 = vst [vmem:[#allocation76_spill] sm:$0xff] %v10233_v7  ;;  %4766 = vmatmul.mubr.f32.gmra.mrb[110].mxu1 %v10231_v33  ;;  %v2481_v7 = vld [vmem:[#allocation2 + $0x302] sm:$0xff] }
 0x443   : > { %4770 = vmatprep.mubr.f32.mxu1 %v2479_v21 }
 0x444   : > { %v10236_v42 = vpop.f32.mrb[202].mxu0 }
 0x445   : > { %11063 = vst [vmem:[#allocation77_spill] sm:$0xff] %v10236_v42  ;;  %v10240_v20 = vpop.f32.mrb[203].mxu0  ;;  %v10252_v42 = vld [vmem:[#allocation2 + $0x301] sm:$0xff] }
 0x446   : > { %11064 = vst [vmem:[#allocation78_spill] sm:$0xff] %v10240_v20  ;;  %4771 = vmatmul.mubr.f32.gmra.mrb[112].mxu1 %v10238_v24  ;;  %11068 = vst [vmem:[#allocation82_spill] sm:$0xff] %v10252_v42  ;;  %v2482_v20 = vld [vmem:[#allocation2 + $0x30a] sm:$0xff] }
 0x447   : > { %4775 = vmatprep.mubr.f32.mxu1 %v2480_v40  ;;  %v5901_v40 = vld [vmem:[%s10856_s5] sm:$0xff] }
 0x448   : > { %v10243_v47 = vpop.f32.mrb[204].mxu0 }
 0x449   : > { %11065 = vst [vmem:[#allocation79_spill] sm:$0xff] %v10243_v47  ;;  %v10247_v27 = vpop.f32.mrb[205].mxu0  ;;  %v5902_v47 = vld [vmem:[%s10856_s5 + $0x8] sm:$0xff] }
 0x44a   : > { %11066 = vst [vmem:[#allocation80_spill] sm:$0xff] %v10247_v27  ;;  %4776 = vmatmul.mubr.f32.gmra.mrb[114].mxu1 %v10245_v36 }
 0x44b   : > { %4780 = vmatprep.mubr.f32.mxu1 %v2481_v7  ;;  %v7146_v7 = vpack.c.bf16 %v5902_v47, %v5901_v40  ;;  %v2484_v47 = vld [vmem:[#allocation2 + $0x322] sm:$0xff]  ;;  %v5903_v40 = vld [vmem:[%s10856_s5 + $0x10] sm:$0xff] }
 0x44c   : > { %v10250_v21 = vpop.f32.mrb[206].mxu0 }
 0x44d   : > { %11067 = vst [vmem:[#allocation81_spill] sm:$0xff] %v10250_v21  ;;  %v10254_v23 = vpop.f32.mrb[207].mxu0  ;;  %v10265_v21 = vld [vmem:[#allocation2 + $0x309] sm:$0xff]  ;;  %7147 = vmatpush1.bf16.msra.mxu0 %v7146_v7 }
 0x44e   : > { %11069 = vst [vmem:[#allocation83_spill] sm:$0xff] %v10254_v23  ;;  %4781 = vmatmul.mubr.f32.gmra.mrb[116].mxu1 %v10252_v42  ;;  %v2483_v23 = vld [vmem:[#allocation2 + $0x31a] sm:$0xff]  ;;  %7148 = vmatprep.subr.bf16.mxu0 %v10927_v26 }
 0x44f   : > { %4785 = vmatprep.mubr.f32.mxu1 %v2482_v20  ;;  %v10273_v42 = vld [vmem:[#allocation2 + $0x319] sm:$0xff] }
 0x450   : > { %v10263_v27 = vpop.f32.mrb[208].mxu0  ;;  %11073 = vst [vmem:[#allocation87_spill] sm:$0xff] %v10273_v42 }
 0x451   : > { %11070 = vst [vmem:[#allocation84_spill] sm:$0xff] %v10263_v27  ;;  %v10267_v25 = vpop.f32.mrb[209].mxu0 }
 0x452   : > { %11071 = vst [vmem:[#allocation85_spill] sm:$0xff] %v10267_v25  ;;  %4786 = vmatmul.mubr.f32.gmra.mrb[118].mxu1 %v10265_v21 }
 0x453   : > { %4790 = vmatprep.mubr.f32.mxu1 %v2483_v23  ;;  %v5904_v23 = vld [vmem:[%s10856_s5 + $0x18] sm:$0xff] }
 0x454   : > { %v10271_v20 = vpop.f32.mrb[210].mxu0  ;;  %v7149_v27 = vpack.c.bf16 %v5904_v23, %v5903_v40  ;;  %v5905_v40 = vld [vmem:[%s10856_s5 + $0x20] sm:$0xff] }
 0x455   : > { %11072 = vst [vmem:[#allocation86_spill] sm:$0xff] %v10271_v20  ;;  %v10275_v52 = vpop.f32.mrb[211].mxu0  ;;  %v10286_v20 = vld [vmem:[#allocation2 + $0x321] sm:$0xff] }
 0x456   : > { %11074 = vst [vmem:[#allocation88_spill] sm:$0xff] %v10275_v52  ;;  %4791 = vmatmul.mubr.f32.gmra.mrb[120].mxu1 %v10273_v42  ;;  %11076 = vst [vmem:[#allocation90_spill] sm:$0xff] %v10286_v20  ;;  %7150 = vmatpush1.bf16.msra.mxu0 %v7149_v27  ;;  %v10295_v52 = vld [vmem:[#allocation2 + $0x331] sm:$0xff]  ;;  %v5906_v27 = vld [vmem:[%s10856_s5 + $0x28] sm:$0xff] }
 0x457   : > { %4795 = vmatprep.mubr.f32.mxu1 %v2484_v47  ;;  %7151 = vmatprep.subr.bf16.mxu0 %v10927_v26  ;;  %11079 = vst [vmem:[#allocation93_spill] sm:$0xff] %v10295_v52 }
 0x458   : > { %v10284_v7 = vpop.f32.mrb[212].mxu0 }
 0x459   : > { %11075 = vst [vmem:[#allocation89_spill] sm:$0xff] %v10284_v7  ;;  %v10288_v25 = vpop.f32.mrb[213].mxu0 }
 0x45a   : > { %11077 = vst [vmem:[#allocation91_spill] sm:$0xff] %v10288_v25  ;;  %4796 = vmatmul.mubr.f32.gmra.mrb[122].mxu1 %v10286_v20 }
 0x45b   : > { %4800 = vmatprep.mubr.f32.mxu1 %v10068_v1  ;;  %v7152_v1 = vpack.c.bf16 %v5906_v27, %v5905_v40  ;;  %v5907_v40 = vld [vmem:[%s10856_s5 + $0x30] sm:$0xff]  ;;  %v5908_v27 = vld [vmem:[%s10856_s5 + $0x38] sm:$0xff] }
 0x45c   : > { %v10293_v47 = vpop.f32.mrb[214].mxu0 }
 0x45d   : > { %11078 = vst [vmem:[#allocation92_spill] sm:$0xff] %v10293_v47  ;;  %v10297_v42 = vpop.f32.mrb[215].mxu0  ;;  %v10309_v47 = vld [vmem:[#allocation2 + $0x339] sm:$0xff]  ;;  %7153 = vmatpush1.bf16.msra.mxu0 %v7152_v1 }
 0x45e   : > { %11080 = vst [vmem:[#allocation94_spill] sm:$0xff] %v10297_v42  ;;  %4801 = vmatmul.mubr.f32.gmra.mrb[124].mxu1 %v10295_v52  ;;  %11082 = vst [vmem:[#allocation96_spill] sm:$0xff] %v10309_v47  ;;  %v2680_v42 = vld [vmem:[#allocation2 + $0x31] sm:$0xff]  ;;  %7154 = vmatprep.subr.bf16.mxu0 %v10927_v26 }
 0x45f   : > { %4805 = vmatprep.mubr.f32.mxu1 %v10075_v43  ;;  %v2552_v52 = vld [vmem:[#allocation2 + $0x30] sm:$0xff]  ;;  %v2681_v43 = vld [vmem:[#allocation2 + $0x39] sm:$0xff] }
 0x460   : > { %v10307_v23 = vpop.f32.mrb[216].mxu0 }
 0x461   : > { %11081 = vst [vmem:[#allocation95_spill] sm:$0xff] %v10307_v23  ;;  %v10311_v7 = vpop.f32.mrb[217].mxu0  ;;  %v7155_v23 = vpack.c.bf16 %v5908_v27, %v5907_v40  ;;  %v5909_v40 = vld [vmem:[%s10856_s5 + $0x40] sm:$0xff]  ;;  %v5910_v27 = vld [vmem:[%s10856_s5 + $0x48] sm:$0xff] }
 0x462   : > { %11083 = vst [vmem:[#allocation97_spill] sm:$0xff] %v10311_v7  ;;  %4806 = vmatmul.mubr.f32.gmra.mrb[126].mxu1 %v10309_v47  ;;  %v2683_v47 = vld [vmem:[#allocation2 + $0x51] sm:$0xff] }
 0x463   : > { %4875 = vmatprep.mubr.f32.mxu1 %v2680_v42  ;;  %v2553_v42 = vld [vmem:[#allocation2 + $0x38] sm:$0xff]  ;;  %7156 = vmatpush1.bf16.msra.mxu0 %v7155_v23 }
 0x464   : > { %v10315_v25 = vpop.f32.mrb[218].mxu0  ;;  %7157 = vmatprep.subr.bf16.mxu0 %v10927_v26 }
 0x465   : > { %11084 = vst [vmem:[#allocation98_spill] sm:$0xff] %v10315_v25  ;;  %v10317_v20 = vpop.f32.mrb[219].mxu0  ;;  %v2682_v25 = vld [vmem:[#allocation2 + $0x49] sm:$0xff] }
 0x466   : > { %11085 = vst [vmem:[#allocation99_spill] sm:$0xff] %v10317_v20  ;;  %4876 = vmatmul.mubr.f32.vlgmr.msra.gmra.mrb[0].mxu1 %v2552_v52 }
 0x467   : > { %4880 = vmatprep.mubr.f32.mxu1 %v2681_v43  ;;  %v2554_v43 = vld [vmem:[#allocation2 + $0x48] sm:$0xff] }
 0x468   : > { %v10325_v1 = vpop.f32.mrb[220].mxu0 }
 0x469   : > { %11086 = vst [vmem:[#allocation100_spill] sm:$0xff] %v10325_v1  ;;  %v10327_v7 = vpop.f32.mrb[221].mxu0 }
 0x46a   : > { %11087 = vst [vmem:[#allocation101_spill] sm:$0xff] %v10327_v7  ;;  %4881 = vmatmul.mubr.f32.gmra.mrb[2].mxu1 %v2553_v42  ;;  %v2555_v42 = vld [vmem:[#allocation2 + $0x50] sm:$0xff] }
 0x46b   : > { %4885 = vmatprep.mubr.f32.mxu1 %v2682_v25  ;;  %v7158_v25 = vpack.c.bf16 %v5910_v27, %v5909_v40  ;;  %v2685_v7 = vld [vmem:[#allocation2 + $0x69] sm:$0xff]  ;;  %v5912_v27 = vld [vmem:[%s10856_s5 + $0x58] sm:$0xff] }
 0x46c   : > { %v10330_v52 = vpop.f32.mrb[222].mxu0  ;;  %v5911_v40 = vld [vmem:[%s10856_s5 + $0x50] sm:$0xff] }
 0x46d   : > { %11088 = vst [vmem:[#allocation102_spill] sm:$0xff] %v10330_v52  ;;  %v10332_v20 = vpop.f32.mrb[223].mxu0  ;;  %v2684_v52 = vld [vmem:[#allocation2 + $0x61] sm:$0xff]  ;;  %7159 = vmatpush1.bf16.msra.mxu0 %v7158_v25 }
 0x46e   : > { %11089 = vst [vmem:[#allocation103_spill] sm:$0xff] %v10332_v20  ;;  %4886 = vmatmul.mubr.f32.gmra.mrb[4].mxu1 %v2554_v43  ;;  %7160 = vmatprep.subr.bf16.mxu0 %v10927_v26  ;;  %v2556_v43 = vld [vmem:[#allocation2 + $0x60] sm:$0xff] }
 0x46f   : > { %4890 = vmatprep.mubr.f32.mxu1 %v2683_v47 }
 0x470   : > { %v10340_v23 = vpop.f32.mrb[224].mxu0 }
 0x471   : > { %11090 = vst [vmem:[#allocation104_spill] sm:$0xff] %v10340_v23  ;;  %v10342_v1 = vpop.f32.mrb[225].mxu0 }
 0x472   : > { %4891 = vmatmul.mubr.f32.gmra.mrb[6].mxu1 %v2555_v42  ;;  %v2557_v42 = vld [vmem:[#allocation2 + $0x68] sm:$0xff] }
 0x473   : > { %4895 = vmatprep.mubr.f32.mxu1 %v2684_v52  ;;  %v7161_v52 = vpack.c.bf16 %v5912_v27, %v5911_v40  ;;  %v5913_v40 = vld [vmem:[%s10856_s5 + $0x60] sm:$0xff]  ;;  %v5914_v27 = vld [vmem:[%s10856_s5 + $0x68] sm:$0xff] }
 0x474   : > { %v10345_v47 = vpop.f32.mrb[226].mxu0 }
 0x475   : > { %11091 = vst [vmem:[#allocation105_spill] sm:$0xff] %v10345_v47  ;;  %v10347_v20 = vpop.f32.mrb[227].mxu0  ;;  %v2686_v47 = vld [vmem:[#allocation2 + $0x79] sm:$0xff]  ;;  %7162 = vmatpush1.bf16.msra.mxu0 %v7161_v52 }
 0x476   : > { %11092 = vst [vmem:[#allocation106_spill] sm:$0xff] %v10347_v20  ;;  %4896 = vmatmul.mubr.f32.gmra.mrb[8].mxu1 %v2556_v43  ;;  %7163 = vmatprep.subr.bf16.mxu0 %v10927_v26  ;;  %v2558_v43 = vld [vmem:[#allocation2 + $0x78] sm:$0xff] }
 0x477   : > { %4900 = vmatprep.mubr.f32.mxu1 %v2685_v7 }
 0x478   : > { %v10355_v25 = vpop.f32.mrb[228].mxu0 }
 0x479   : > { %11093 = vst [vmem:[#allocation107_spill] sm:$0xff] %v10355_v25  ;;  %v10357_v23 = vpop.f32.mrb[229].mxu0 }
 0x47a   : > { %4901 = vmatmul.mubr.f32.gmra.mrb[10].mxu1 %v2557_v42  ;;  %v2559_v42 = vld [vmem:[#allocation2 + $0x80] sm:$0xff] }
 0x47b   : > { %4905 = vmatprep.mubr.f32.mxu1 %v2686_v47  ;;  %v7164_v47 = vpack.c.bf16 %v5914_v27, %v5913_v40  ;;  %v5915_v40 = vld [vmem:[%s10856_s5 + $0x70] sm:$0xff]  ;;  %v5916_v27 = vld [vmem:[%s10856_s5 + $0x78] sm:$0xff] }
 0x47c   : > { %v10360_v7 = vpop.f32.mrb[230].mxu0 }
 0x47d   : > { %11094 = vst [vmem:[#allocation108_spill] sm:$0xff] %v10360_v7  ;;  %v10362_v20 = vpop.f32.mrb[231].mxu0  ;;  %7165 = vmatpush1.bf16.msra.mxu0 %v7164_v47 }
 0x47e   : > { %4906 = vmatmul.mubr.f32.gmra.mrb[12].mxu1 %v2558_v43  ;;  %7166 = vmatprep.subr.bf16.mxu0 %v10927_v26  ;;  %v2560_v43 = vld [vmem:[#allocation2 + $0x90] sm:$0xff] }
 0x47f   : > { %4910 = vmatprep.mubr.f32.mxu1 %v9867_v5 }
 0x480   : > { %v10371_v52 = vpop.f32.mrb[232].mxu0 }
 0x481   : > { %11095 = vst [vmem:[#allocation109_spill] sm:$0xff] %v10371_v52  ;;  %v10373_v25 = vpop.f32.mrb[233].mxu0 }
 0x482   : > { %4911 = vmatmul.mubr.f32.gmra.mrb[14].mxu1 %v2559_v42  ;;  %v2561_v42 = vld [vmem:[#allocation2 + $0x98] sm:$0xff] }
 0x483   : > { %4915 = vmatprep.mubr.f32.mxu1 %v9880_v14  ;;  %v7167_v14 = vpack.c.bf16 %v5916_v27, %v5915_v40  ;;  %v5917_v40 = vld [vmem:[%s10856_s5 + $0x80] sm:$0xff]  ;;  %v5918_v27 = vld [vmem:[%s10856_s5 + $0x88] sm:$0xff] }
 0x484   : > { %v10377_v5 = vpop.f32.mrb[234].mxu0 }
 0x485   : > { %11096 = vst [vmem:[#allocation110_spill] sm:$0xff] %v10377_v5  ;;  %v10379_v7 = vpop.f32.mrb[235].mxu0  ;;  %7168 = vmatpush1.bf16.msra.mxu0 %v7167_v14 }
 0x486   : > { %4916 = vmatmul.mubr.f32.gmra.mrb[16].mxu1 %v2560_v43  ;;  %7169 = vmatprep.subr.bf16.mxu0 %v10927_v26  ;;  %v2562_v43 = vld [vmem:[#allocation2 + $0xa8] sm:$0xff] }
 0x487   : > { %4920 = vmatprep.mubr.f32.mxu1 %v9893_v45 }
 0x488   : > { %v10388_v47 = vpop.f32.mrb[236].mxu0 }
 0x489   : > { %11097 = vst [vmem:[#allocation111_spill] sm:$0xff] %v10388_v47  ;;  %v10390_v52 = vpop.f32.mrb[237].mxu0 }
 0x48a   : > { %4921 = vmatmul.mubr.f32.gmra.mrb[18].mxu1 %v2561_v42  ;;  %v2563_v42 = vld [vmem:[#allocation2 + $0xb0] sm:$0xff] }
 0x48b   : > { %4925 = vmatprep.mubr.f32.mxu1 %v9905_v62  ;;  %v7170_v62 = vpack.c.bf16 %v5918_v27, %v5917_v40  ;;  %v5919_v40 = vld [vmem:[%s10856_s5 + $0x90] sm:$0xff]  ;;  %v5920_v27 = vld [vmem:[%s10856_s5 + $0x98] sm:$0xff] }
 0x48c   : > { %v10394_v45 = vpop.f32.mrb[238].mxu0 }
 0x48d   : > { %11098 = vst [vmem:[#allocation112_spill] sm:$0xff] %v10394_v45  ;;  %v10396_v5 = vpop.f32.mrb[239].mxu0  ;;  %7171 = vmatpush1.bf16.msra.mxu0 %v7170_v62 }
 0x48e   : > { %4926 = vmatmul.mubr.f32.gmra.mrb[20].mxu1 %v2562_v43  ;;  %7172 = vmatprep.subr.bf16.mxu0 %v10927_v26  ;;  %v2564_v43 = vld [vmem:[#allocation2 + $0xc0] sm:$0xff] }
 0x48f   : > { %4930 = vmatprep.mubr.f32.mxu1 %v9918_v57 }
 0x490   : > { %v10405_v14 = vpop.f32.mrb[240].mxu0 }
 0x491   : > { %11099 = vst [vmem:[#allocation113_spill] sm:$0xff] %v10405_v14  ;;  %v10407_v47 = vpop.f32.mrb[241].mxu0 }
 0x492   : > { %4931 = vmatmul.mubr.f32.gmra.mrb[22].mxu1 %v2563_v42  ;;  %v2565_v42 = vld [vmem:[#allocation2 + $0xc8] sm:$0xff] }
 0x493   : > { %4935 = vmatprep.mubr.f32.mxu1 %v9930_v48  ;;  %v7173_v48 = vpack.c.bf16 %v5920_v27, %v5919_v40  ;;  %v5921_v40 = vld [vmem:[%s10856_s5 + $0xa0] sm:$0xff]  ;;  %v5922_v27 = vld [vmem:[%s10856_s5 + $0xa8] sm:$0xff] }
 0x494   : > { %v10411_v57 = vpop.f32.mrb[242].mxu0 }
 0x495   : > { %11100 = vst [vmem:[#allocation114_spill] sm:$0xff] %v10411_v57  ;;  %v10413_v45 = vpop.f32.mrb[243].mxu0  ;;  %7174 = vmatpush1.bf16.msra.mxu0 %v7173_v48 }
 0x496   : > { %4936 = vmatmul.mubr.f32.gmra.mrb[24].mxu1 %v2564_v43  ;;  %7175 = vmatprep.subr.bf16.mxu0 %v10927_v26  ;;  %v2566_v43 = vld [vmem:[#allocation2 + $0xd8] sm:$0xff] }
 0x497   : > { %4940 = vmatprep.mubr.f32.mxu1 %v9942_v15 }
 0x498   : > { %v10422_v62 = vpop.f32.mrb[244].mxu0 }
 0x499   : > { %11101 = vst [vmem:[#allocation115_spill] sm:$0xff] %v10422_v62  ;;  %v10424_v14 = vpop.f32.mrb[245].mxu0 }
 0x49a   : > { %4941 = vmatmul.mubr.f32.gmra.mrb[26].mxu1 %v2565_v42  ;;  %v2567_v42 = vld [vmem:[#allocation2 + $0xe0] sm:$0xff] }
 0x49b   : > { %4945 = vmatprep.mubr.f32.mxu1 %v9954_v9  ;;  %v7176_v9 = vpack.c.bf16 %v5922_v27, %v5921_v40  ;;  %v5923_v40 = vld [vmem:[%s10856_s5 + $0xb0] sm:$0xff]  ;;  %v5924_v27 = vld [vmem:[%s10856_s5 + $0xb8] sm:$0xff] }
 0x49c   : > { %v10428_v15 = vpop.f32.mrb[246].mxu0 }
 0x49d   : > { %11102 = vst [vmem:[#allocation116_spill] sm:$0xff] %v10428_v15  ;;  %v10430_v57 = vpop.f32.mrb[247].mxu0  ;;  %7177 = vmatpush1.bf16.msra.mxu0 %v7176_v9 }
 0x49e   : > { %4946 = vmatmul.mubr.f32.gmra.mrb[28].mxu1 %v2566_v43  ;;  %7178 = vmatprep.subr.bf16.mxu0 %v10927_v26  ;;  %v2568_v43 = vld [vmem:[#allocation2 + $0xf0] sm:$0xff] }
 0x49f   : > { %4950 = vmatprep.mubr.f32.mxu1 %v9970_v46 }
 0x4a0   : > { %v10439_v48 = vpop.f32.mrb[248].mxu0 }
 0x4a1   : > { %11103 = vst [vmem:[#allocation117_spill] sm:$0xff] %v10439_v48  ;;  %v10441_v62 = vpop.f32.mrb[249].mxu0 }
 0x4a2   : > { %4951 = vmatmul.mubr.f32.gmra.mrb[30].mxu1 %v2567_v42  ;;  %v2569_v42 = vld [vmem:[#allocation2 + $0xf8] sm:$0xff] }
 0x4a3   : > { %4955 = vmatprep.mubr.f32.mxu1 %v9979_v51  ;;  %v7179_v51 = vpack.c.bf16 %v5924_v27, %v5923_v40  ;;  %v5926_v40 = vld [vmem:[%s10856_s5 + $0xc8] sm:$0xff] }
 0x4a4   : > { %v10445_v46 = vpop.f32.mrb[250].mxu0 }
 0x4a5   : > { %v10447_v15 = vpop.f32.mrb[251].mxu0  ;;  %7180 = vmatpush1.bf16.msra.mxu0 %v7179_v51  ;;  %v5928_v51 = vld [vmem:[%s10856_s5 + $0xd8] sm:$0xff] }
 0x4a6   : > { %4956 = vmatmul.mubr.f32.gmra.mrb[32].mxu1 %v2568_v43  ;;  %7181 = vmatprep.subr.bf16.mxu0 %v10927_v26  ;;  %v5925_v43 = vld [vmem:[%s10856_s5 + $0xc0] sm:$0xff] }
 0x4a7   : > { %4960 = vmatprep.mubr.f32.mxu1 %v9987_v60  ;;  %v2570_v60 = vld [vmem:[#allocation2 + $0x108] sm:$0xff]  ;;  %v7182_v27 = vpack.c.bf16 %v5926_v40, %v5925_v43  ;;  %v5929_v43 = vld [vmem:[%s10856_s5 + $0xe0] sm:$0xff]  ;;  %v2577_v40 = vld [vmem:[#allocation2 + $0x158] sm:$0xff] }
 0x4a8   : > { %v10456_v9 = vpop.f32.mrb[252].mxu0 }
 0x4a9   : > { %11104 = vst [vmem:[#allocation118_spill] sm:$0xff] %v10456_v9  ;;  %v10458_v48 = vpop.f32.mrb[253].mxu0  ;;  %v2571_v9 = vld [vmem:[#allocation2 + $0x110] sm:$0xff]  ;;  %7183 = vmatpush1.bf16.msra.mxu0 %v7182_v27 }
 0x4aa   : > { %4961 = vmatmul.mubr.f32.gmra.mrb[34].mxu1 %v2569_v42  ;;  %7184 = vmatprep.subr.bf16.mxu0 %v10927_v26 }
 0x4ab   : > { %4965 = vmatprep.mubr.f32.mxu1 %v9995_v29  ;;  %v2572_v29 = vld [vmem:[#allocation2 + $0x120] sm:$0xff] }
 0x4ae   : > { %4966 = vmatmul.mubr.f32.gmra.mrb[36].mxu1 %v2570_v60  ;;  %v2573_v60 = vld [vmem:[#allocation2 + $0x128] sm:$0xff] }
 0x4af   : > { %4970 = vmatprep.mubr.f32.mxu1 %v10009_v13  ;;  %v5927_v13 = vld [vmem:[%s10856_s5 + $0xd0] sm:$0xff] }
 0x4b0   : > { %v7185_v42 = vpack.c.bf16 %v5928_v51, %v5927_v13  ;;  %v2578_v13 = vld [vmem:[#allocation2 + $0x168] sm:$0xff] }
 0x4b2   : > { %4971 = vmatmul.mubr.f32.gmra.mrb[38].mxu1 %v2571_v9  ;;  %7186 = vmatpush1.bf16.msra.mxu0 %v7185_v42  ;;  %v2576_v9 = vld [vmem:[#allocation2 + $0x150] sm:$0xff]  ;;  %v7817_v42 = vld [vmem:[%s8062_s14] sm:$0xff] }
 0x4b3   : > { %4975 = vmatprep.mubr.f32.mxu1 %v10018_v8  ;;  %7187 = vmatprep.subr.bf16.mxu0 %v10927_v26  ;;  %v2574_v8 = vld [vmem:[#allocation2 + $0x138] sm:$0xff] }
 0x4b6   : > { %4976 = vmatmul.mubr.f32.gmra.mrb[40].mxu1 %v2572_v29  ;;  %v2871_v29 = vld [vmem:[#allocation2 + $0x352] sm:$0xff] }
 0x4b7   : > { %4980 = vmatprep.mubr.f32.mxu1 %v10026_v54  ;;  %v2575_v54 = vld [vmem:[#allocation2 + $0x140] sm:$0xff] }
 0x4ba   : > { %4981 = vmatmul.mubr.f32.gmra.mrb[42].mxu1 %v2573_v60  ;;  %v2710_v60 = vld [vmem:[#allocation2 + $0x199] sm:$0xff] }
 0x4bb   : > { %4985 = vmatprep.mubr.f32.mxu1 %v10034_v39  ;;  %v5930_v39 = vld [vmem:[%s10856_s5 + $0xe8] sm:$0xff] }
 0x4bc   : > { %v7188_v27 = vpack.c.bf16 %v5930_v39, %v5929_v43  ;;  %v10501_v43 = vld [vmem:[#allocation2 + $0x8] sm:$0xff]  ;;  %v2587_v39 = vld [vmem:[#allocation2 + $0x200] sm:$0xff] }
 0x4be   : > { %4986 = vmatmul.mubr.f32.gmra.mrb[44].mxu1 %v2574_v8  ;;  %7189 = vmatpush1.bf16.msra.mxu0 %v7188_v27  ;;  %v2581_v8 = vld [vmem:[#allocation2 + $0x188] sm:$0xff]  ;;  %v2605_v27 = vld [vmem:[#allocation2 + $0x2d8] sm:$0xff] }
 0x4bf   : > { %4990 = vmatprep.mubr.f32.mxu1 %v10048_v18  ;;  %v2870_v18 = vld [vmem:[#allocation2 + $0x34a] sm:$0xff]  ;;  %7190 = vmatprep.subr.bf16.mxu0 %v10927_v26 }
 0x4c0   : > { %6886 = vmatprep.mubr.f32.mxu0 %v2870_v18  ;;  %v2579_v26 = vld [vmem:[#allocation2 + $0x170] sm:$0xff] }
 0x4c1   : > { %6887 = vmatmul.mubr.f32.gmra.mrb[254].mxu0 %v2871_v29 }
 0x4c2   : > { %4991 = vmatmul.mubr.f32.gmra.mrb[46].mxu1 %v2575_v54  ;;  %5997 = vmatprep.mubr.f32.mxu0 %v7817_v42  ;;  %v2582_v54 = vld [vmem:[#allocation2 + $0x198] sm:$0xff]  ;;  %v11105_v42 = vld [vmem:[#allocation20_spill] sm:$0xff] }
 0x4c3   : > { %4995 = vmatprep.mubr.f32.mxu1 %v10057_v0  ;;  %v5931_v0 = vld [vmem:[%s10856_s5 + $0xf0] sm:$0xff] }
 0x4c6   : > { %4996 = vmatmul.mubr.f32.gmra.mrb[48].mxu1 %v2576_v9  ;;  %v2711_v9 = vld [vmem:[#allocation2 + $0x1a1] sm:$0xff] }
 0x4c7   : > { %5000 = vmatprep.mubr.f32.mxu1 %v10065_v56  ;;  %v5932_v56 = vld [vmem:[%s10856_s5 + $0xf8] sm:$0xff] }
 0x4c8   : > { %v7191_v51 = vpack.c.bf16 %v5932_v56, %v5931_v0 }
 0x4ca   : > { %5001 = vmatmul.mubr.f32.gmra.mrb[50].mxu1 %v2577_v40  ;;  %7192 = vmatpush1.bf16.msra.mxu0 %v7191_v51  ;;  %v2588_v40 = vld [vmem:[#allocation2 + $0x210] sm:$0xff] }
 0x4cb   : > { %5005 = vmatprep.mubr.f32.mxu1 %v10077_v6  ;;  %v2580_v6 = vld [vmem:[#allocation2 + $0x180] sm:$0xff] }
 0x4ce   : > { %5006 = vmatmul.mubr.f32.gmra.mrb[52].mxu1 %v2578_v13 }
 0x4cf   : > { %5010 = vmatprep.mubr.f32.mxu1 %v10090_v31  ;;  %v2584_v31 = vld [vmem:[#allocation2 + $0x1e0] sm:$0xff] }
 0x4d2   : > { %5011 = vmatmul.mubr.f32.gmra.mrb[54].mxu1 %v2579_v26 }
 0x4d3   : > { %5015 = vmatprep.mubr.f32.mxu1 %v10096_v16  ;;  %v2585_v16 = vld [vmem:[#allocation2 + $0x1e8] sm:$0xff] }
 0x4d6   : > { %5016 = vmatmul.mubr.f32.gmra.mrb[56].mxu1 %v2580_v6  ;;  %v11107_v6 = vld [vmem:[#allocation70_spill] sm:$0xff] }
 0x4d7   : > { %5020 = vmatprep.mubr.f32.mxu1 %v10102_v35  ;;  %v2586_v35 = vld [vmem:[#allocation2 + $0x1f8] sm:$0xff] }
 0x4da   : > { %5021 = vmatmul.mubr.f32.gmra.mrb[58].mxu1 %v2581_v8  ;;  %v2608_v8 = vld [vmem:[#allocation2 + $0x300] sm:$0xff] }
 0x4db   : > { %5025 = vmatprep.mubr.f32.mxu1 %v2710_v60 }
 0x4de   : > { %5026 = vmatmul.mubr.f32.gmra.mrb[60].mxu1 %v2582_v54 }
 0x4df   : > { %5030 = vmatprep.mubr.f32.mxu1 %v2711_v9  ;;  %v11108_v9 = vld [vmem:[#allocation24_spill] sm:$0xff] }
 0x4e2   : > { %5031 = vmatmul.mubr.f32.gmra.mrb[62].mxu1 %v10501_v43 }
 0x4e3   : > { %5035 = vmatprep.mubr.f32.mxu1 %v10112_v37  ;;  %v2589_v37 = vld [vmem:[#allocation2 + $0x218] sm:$0xff] }
 0x4e6   : > { %5036 = vmatmul.mubr.f32.gmra.mrb[64].mxu1 %v2584_v31 }
 0x4e7   : > { %5040 = vmatprep.mubr.f32.mxu1 %v10118_v59  ;;  %v2590_v59 = vld [vmem:[#allocation2 + $0x228] sm:$0xff] }
 0x4ea   : > { %5041 = vmatmul.mubr.f32.gmra.mrb[66].mxu1 %v2585_v16 }
 0x4eb   : > { %5045 = vmatprep.mubr.f32.mxu1 %v10124_v50  ;;  %v2591_v50 = vld [vmem:[#allocation2 + $0x230] sm:$0xff] }
 0x4ee   : > { %5046 = vmatmul.mubr.f32.gmra.mrb[68].mxu1 %v2586_v35 }
 0x4ef   : > { %5050 = vmatprep.mubr.f32.mxu1 %v10130_v10  ;;  %v2592_v10 = vld [vmem:[#allocation2 + $0x240] sm:$0xff] }
 0x4f2   : > { %5051 = vmatmul.mubr.f32.gmra.mrb[70].mxu1 %v2587_v39  ;;  %v2609_v39 = vld [vmem:[#allocation2 + $0x308] sm:$0xff] }
 0x4f3   : > { %5055 = vmatprep.mubr.f32.mxu1 %v10136_v55  ;;  %v2593_v55 = vld [vmem:[#allocation2 + $0x248] sm:$0xff] }
 0x4f6   : > { %5056 = vmatmul.mubr.f32.gmra.mrb[72].mxu1 %v2588_v40 }
 0x4f7   : > { %5060 = vmatprep.mubr.f32.mxu1 %v10142_v34  ;;  %v2594_v34 = vld [vmem:[#allocation2 + $0x258] sm:$0xff] }
 0x4fa   : > { %5061 = vmatmul.mubr.f32.gmra.mrb[74].mxu1 %v2589_v37 }
 0x4fb   : > { %5065 = vmatprep.mubr.f32.mxu1 %v10148_v58  ;;  %v2595_v58 = vld [vmem:[#allocation2 + $0x260] sm:$0xff] }
 0x4fe   : > { %5066 = vmatmul.mubr.f32.gmra.mrb[76].mxu1 %v2590_v59  ;;  %v11110_v59 = vld [vmem:[#allocation21_spill] sm:$0xff] }
 0x4ff   : > { %5070 = vmatprep.mubr.f32.mxu1 %v10153_v49  ;;  %v2596_v49 = vld [vmem:[#allocation2 + $0x270] sm:$0xff] }
 0x502   : > { %5071 = vmatmul.mubr.f32.gmra.mrb[78].mxu1 %v2591_v50 }
 0x503   : > { %5075 = vmatprep.mubr.f32.mxu1 %v10158_v41  ;;  %v2597_v41 = vld [vmem:[#allocation2 + $0x278] sm:$0xff] }
 0x506   : > { %5076 = vmatmul.mubr.f32.gmra.mrb[80].mxu1 %v2592_v10 }
 0x507   : > { %5080 = vmatprep.mubr.f32.mxu1 %v10163_v17  ;;  %v2598_v17 = vld [vmem:[#allocation2 + $0x288] sm:$0xff] }
 0x50a   : > { %5081 = vmatmul.mubr.f32.gmra.mrb[82].mxu1 %v2593_v55 }
 0x50b   : > { %5085 = vmatprep.mubr.f32.mxu1 %v10168_v19  ;;  %v2599_v19 = vld [vmem:[#allocation2 + $0x290] sm:$0xff] }
 0x50e   : > { %5086 = vmatmul.mubr.f32.gmra.mrb[84].mxu1 %v2594_v34 }
 0x50f   : > { %5090 = vmatprep.mubr.f32.mxu1 %v10173_v38  ;;  %v2600_v38 = vld [vmem:[#allocation2 + $0x2a0] sm:$0xff] }
 0x512   : > { %5091 = vmatmul.mubr.f32.gmra.mrb[86].mxu1 %v2595_v58  ;;  %v11111_v58 = vld [vmem:[#allocation87_spill] sm:$0xff] }
 0x513   : > { %5095 = vmatprep.mubr.f32.mxu1 %v10178_v12  ;;  %v2601_v12 = vld [vmem:[#allocation2 + $0x2a8] sm:$0xff] }
 0x516   : > { %5096 = vmatmul.mubr.f32.gmra.mrb[88].mxu1 %v2596_v49  ;;  %v11112_v49 = vld [vmem:[#allocation72_spill] sm:$0xff] }
 0x517   : > { %5100 = vmatprep.mubr.f32.mxu1 %v10183_v28  ;;  %v2602_v28 = vld [vmem:[#allocation2 + $0x2b8] sm:$0xff] }
 0x51a   : > { %5101 = vmatmul.mubr.f32.gmra.mrb[90].mxu1 %v2597_v41 }
 0x51b   : > { %5105 = vmatprep.mubr.f32.mxu1 %v10188_v22  ;;  %v2603_v22 = vld [vmem:[#allocation2 + $0x2c0] sm:$0xff] }
 0x51e   : > { %5106 = vmatmul.mubr.f32.gmra.mrb[92].mxu1 %v2598_v17 }
 0x51f   : > { %5110 = vmatprep.mubr.f32.mxu1 %v10193_v2  ;;  %v2604_v2 = vld [vmem:[#allocation2 + $0x2d0] sm:$0xff] }
 0x522   : > { %5111 = vmatmul.mubr.f32.gmra.mrb[94].mxu1 %v2599_v19  ;;  %v2610_v19 = vld [vmem:[#allocation2 + $0x318] sm:$0xff] }
 0x523   : > { %5115 = vmatprep.mubr.f32.mxu1 %v10198_v53 }
 0x526   : > { %5116 = vmatmul.mubr.f32.gmra.mrb[96].mxu1 %v2600_v38 }
 0x527   : > { %5120 = vmatprep.mubr.f32.mxu1 %v10203_v32 }
 0x52a   : > { %5121 = vmatmul.mubr.f32.gmra.mrb[98].mxu1 %v2601_v12 }
 0x52b   : > { %5125 = vmatprep.mubr.f32.mxu1 %v10210_v63 }
 0x52e   : > { %5126 = vmatmul.mubr.f32.gmra.mrb[100].mxu1 %v2602_v28  ;;  %v11113_v28 = vld [vmem:[#allocation22_spill] sm:$0xff] }
 0x52f   : > { %5130 = vmatprep.mubr.f32.mxu1 %v10217_v30  ;;  %v2606_v30 = vld [vmem:[#allocation2 + $0x2e8] sm:$0xff] }
 0x532   : > { %5131 = vmatmul.mubr.f32.gmra.mrb[102].mxu1 %v2603_v22 }
 0x533   : > { %5135 = vmatprep.mubr.f32.mxu1 %v10224_v3 }
 0x536   : > { %5136 = vmatmul.mubr.f32.gmra.mrb[104].mxu1 %v2604_v2 }
 0x537   : > { %5140 = vmatprep.mubr.f32.mxu1 %v10231_v33 }
 0x539   : > { %v4877_v53 = vpop.f32.mrb[0].mxu1 }
 0x53a   : > { %v7193_v32 = vadd.f32 %v4877_v53, %v9341_v61  ;;  %v4879_v18 = vpop.f32.mrb[1].mxu1  ;;  %5141 = vmatmul.mubr.f32.gmra.mrb[106].mxu1 %v2605_v27  ;;  %v2607_v61 = vld [vmem:[#allocation2 + $0x2f0] sm:$0xff] }
 0x53b   : > { %5145 = vmatprep.mubr.f32.mxu1 %v10238_v24  ;;  %v11115_v18 = vld [vmem:[#allocation71_spill] sm:$0xff] }
 0x53c   : > { %v5263_v63 = vadd.f32 %v7193_v32, %v10205_v4  ;;  %v11106_v4 = vld [vmem:[#allocation82_spill] sm:$0xff] }
 0x53d   : > { %v4882_v0 = vpop.f32.mrb[2].mxu1  ;;  %v11114_v32 = vld [vmem:[#allocation90_spill] sm:$0xff] }
 0x53e   : > { %v5645_v56 = vmul.f32 0.70710677, %v5263_v63  ;;  %v7194_v29 = vadd.f32 %v4882_v0, %v9356_v44  ;;  %v4884_v3 = vpop.f32.mrb[3].mxu1  ;;  %5146 = vmatmul.mubr.f32.gmra.mrb[108].mxu1 %v2606_v30  ;;  %v5581_v55 = vmul.f32 0.5, %v5263_v63  ;;  %v7819_v0 = vld [vmem:[%s8062_s14 + $0x8] sm:$0xff] }
 0x53f   : > { %5150 = vmatprep.mubr.f32.mxu1 %v10245_v36 }
 0x540   : > { %7684 = verf.f32 %v5645_v56  ;;  %v5268_v33 = vadd.f32 %v7194_v29, %v10201_v11  ;;  %v11109_v11 = vld [vmem:[#allocation69_spill] sm:$0xff]  ;;  %v2611_v29 = vld [vmem:[#allocation2 + $0x320] sm:$0xff] }
 0x541   : > { %v4887_v13 = vpop.f32.mrb[4].mxu1 }
 0x542   : > { %v5646_v51 = vmul.f32 0.70710677, %v5268_v33  ;;  %v7195_v26 = vadd.f32 %v4887_v13, %v11105_v42  ;;  %v4889_v24 = vpop.f32.mrb[5].mxu1  ;;  %5151 = vmatmul.mubr.f32.gmra.mrb[110].mxu1 %v2607_v61  ;;  %v5582_v53 = vmul.f32 0.5, %v5268_v33  ;;  %v11116_v61 = vld [vmem:[#allocation25_spill] sm:$0xff] }
 0x543   : > { %5155 = vmatprep.mubr.f32.mxu1 %v11106_v4  ;;  %v11117_v24 = vld [vmem:[#allocation93_spill] sm:$0xff]  ;;  %v11118_v4 = vld [vmem:[#allocation74_spill] sm:$0xff] }
 0x544   : > { %7686 = verf.f32 %v5646_v51  ;;  %v5273_v60 = vadd.f32 %v7195_v26, %v11107_v6 }
 0x545   : > { %v4892_v44 = vpop.f32.mrb[6].mxu1 }
 0x546   : > { %v5647_v54 = vmul.f32 0.70710677, %v5273_v60  ;;  %v7196_v36 = vadd.f32 %v4892_v44, %v11108_v9  ;;  %v4894_v31 = vpop.f32.mrb[7].mxu1  ;;  %5156 = vmatmul.mubr.f32.gmra.mrb[112].mxu1 %v2608_v8  ;;  %v5583_v33 = vmul.f32 0.5, %v5273_v60  ;;  %v7820_v44 = vld [vmem:[%s8062_s14 + $0x10] sm:$0xff] }
 0x547   : > { %5160 = vmatprep.mubr.f32.mxu1 %v10265_v21  ;;  %v2612_v9 = vld [vmem:[#allocation2 + $0x330] sm:$0xff] }
 0x548   : > { %7688 = verf.f32 %v5647_v54  ;;  %v5278_v16 = vadd.f32 %v7196_v36, %v11109_v11  ;;  %v11119_v11 = vld [vmem:[#allocation26_spill] sm:$0xff] }
 0x549   : > { %v4897_v35 = vpop.f32.mrb[8].mxu1 }
 0x54a   : > { %v7685_v40 = vpop.eup %7684  ;;  %v5648_v37 = vmul.f32 0.70710677, %v5278_v16  ;;  %v7197_v50 = vadd.f32 %v4897_v35, %v11110_v59  ;;  %v4899_v10 = vpop.f32.mrb[9].mxu1  ;;  %5161 = vmatmul.mubr.f32.gmra.mrb[114].mxu1 %v2609_v39  ;;  %v5584_v60 = vmul.f32 0.5, %v5278_v16  ;;  %v11121_v59 = vld [vmem:[#allocation73_spill] sm:$0xff] }
 0x54b   : > { %v5773_v34 = vadd.f32 1.0, %v7685_v40  ;;  %5165 = vmatprep.mubr.f32.mxu1 %v11111_v58  ;;  %v7821_v10 = vld [vmem:[%s8062_s14 + $0x18] sm:$0xff] }
 0x54c   : > { %7690 = verf.f32 %v5648_v37  ;;  %v5283_v41 = vadd.f32 %v7197_v50, %v11112_v49  ;;  %v11120_v37 = vld [vmem:[#allocation96_spill] sm:$0xff]  ;;  %v2613_v49 = vld [vmem:[#allocation2 + $0x338] sm:$0xff] }
 0x54d   : > { %v5837_v21 = vmul.f32 %v5773_v34, %v5581_v55  ;;  %v4902_v17 = vpop.f32.mrb[10].mxu1  ;;  %v2742_v55 = vld [vmem:[#allocation2 + $0x349] sm:$0xff] }
 0x54e   : > { %v7687_v38 = vpop.eup %7686  ;;  %v5649_v12 = vmul.f32 0.70710677, %v5283_v41  ;;  %v7198_v22 = vadd.f32 %v4902_v17, %v11113_v28  ;;  %v4904_v2 = vpop.f32.mrb[11].mxu1  ;;  %5166 = vmatmul.mubr.f32.gmra.mrb[116].mxu1 %v2610_v19  ;;  %v11122_v19 = vld [vmem:[#allocation27_spill] sm:$0xff]  ;;  %v5585_v16 = vmul.f32 0.5, %v5283_v41 }
 0x54f   : > { %v5774_v27 = vadd.f32 1.0, %v7687_v38  ;;  %5170 = vmatprep.mubr.f32.mxu1 %v11114_v32  ;;  %5998 = vmatmul.mubr.f32.vlgmr.msra.gmra.mrb[0].mxu0 %v5837_v21  ;;  %v11123_v2 = vld [vmem:[#allocation76_spill] sm:$0xff]  ;;  %v2743_v32 = vld [vmem:[#allocation2 + $0x351] sm:$0xff] }
 0x550   : > { %7692 = verf.f32 %v5649_v12  ;;  %v5288_v63 = vadd.f32 %v7198_v22, %v11115_v18  ;;  %6002 = vmatprep.mubr.f32.mxu0 %v7819_v0  ;;  %v2614_v22 = vld [vmem:[#allocation2 + $0x348] sm:$0xff] }
 0x551   : > { %v5838_v30 = vmul.f32 %v5774_v27, %v5582_v53  ;;  %v4907_v56 = vpop.f32.mrb[12].mxu1  ;;  %v7822_v27 = vld [vmem:[%s8062_s14 + $0x20] sm:$0xff] }
 0x552   : > { %v7689_v3 = vpop.eup %7688  ;;  %v5650_v13 = vmul.f32 0.70710677, %v5288_v63  ;;  %v7199_v51 = vadd.f32 %v4907_v56, %v11116_v61  ;;  %v4909_v42 = vpop.f32.mrb[13].mxu1  ;;  %5171 = vmatmul.mubr.f32.gmra.mrb[118].mxu1 %v2611_v29  ;;  %v11124_v29 = vld [vmem:[#allocation28_spill] sm:$0xff]  ;;  %v5586_v41 = vmul.f32 0.5, %v5288_v63 }
 0x553   : > { %v5775_v26 = vadd.f32 1.0, %v7689_v3  ;;  %5175 = vmatprep.mubr.f32.mxu1 %v11117_v24  ;;  %6003 = vmatmul.mubr.f32.gmra.mrb[2].mxu0 %v5838_v30 }
 0x554   : > { %7694 = verf.f32 %v5650_v13  ;;  %v5293_v6 = vadd.f32 %v7199_v51, %v11118_v4  ;;  %6007 = vmatprep.mubr.f32.mxu0 %v7820_v44  ;;  %v11125_v51 = vld [vmem:[#allocation75_spill] sm:$0xff] }
 0x555   : > { %v5839_v8 = vmul.f32 %v5775_v26, %v5583_v33  ;;  %v4912_v54 = vpop.f32.mrb[14].mxu1  ;;  %v7823_v33 = vld [vmem:[%s8062_s14 + $0x28] sm:$0xff] }
 0x556   : > { %v7691_v36 = vpop.eup %7690  ;;  %v5651_v31 = vmul.f32 0.70710677, %v5293_v6  ;;  %v7200_v35 = vadd.f32 %v4912_v54, %v11119_v11  ;;  %v4914_v39 = vpop.f32.mrb[15].mxu1  ;;  %5176 = vmatmul.mubr.f32.gmra.mrb[120].mxu1 %v2612_v9 }
 0x557   : > { %v5776_v40 = vadd.f32 1.0, %v7691_v36  ;;  %5180 = vmatprep.mubr.f32.mxu1 %v11120_v37  ;;  %6008 = vmatmul.mubr.f32.gmra.mrb[4].mxu0 %v5839_v8  ;;  %v11126_v8 = vld [vmem:[#allocation29_spill] sm:$0xff]  ;;  %v5587_v36 = vmul.f32 0.5, %v5293_v6 }
 0x558   : > { %7696 = verf.f32 %v5651_v31  ;;  %v5298_v50 = vadd.f32 %v7200_v35, %v11121_v59  ;;  %6012 = vmatprep.mubr.f32.mxu0 %v7821_v10  ;;  %v11127_v31 = vld [vmem:[#allocation78_spill] sm:$0xff]  ;;  %v7824_v35 = vld [vmem:[%s8062_s14 + $0x30] sm:$0xff] }
 0x559   : > { %v5840_v34 = vmul.f32 %v5776_v40, %v5584_v60  ;;  %v4917_v58 = vpop.f32.mrb[16].mxu1  ;;  %v11128_v59 = vld [vmem:[#allocation30_spill] sm:$0xff] }
 0x55a   : > { %v7693_v21 = vpop.eup %7692  ;;  %v5652_v17 = vmul.f32 0.70710677, %v5298_v50  ;;  %v7201_v38 = vadd.f32 %v4917_v58, %v11122_v19  ;;  %v4919_v12 = vpop.f32.mrb[17].mxu1  ;;  %5181 = vmatmul.mubr.f32.gmra.mrb[122].mxu1 %v2613_v49  ;;  %v7825_v49 = vld [vmem:[%s8062_s14 + $0x38] sm:$0xff] }
 0x55b   : > { %v5777_v28 = vadd.f32 1.0, %v7693_v21  ;;  %6013 = vmatmul.mubr.f32.gmra.mrb[6].mxu0 %v5840_v34  ;;  %5185 = vmatprep.mubr.f32.mxu1 %v2742_v55  ;;  %v5588_v34 = vmul.f32 0.5, %v5298_v50  ;;  %v11130_v12 = vld [vmem:[#allocation31_spill] sm:$0xff]  ;;  %v11131_v50 = vld [vmem:[#allocation80_spill] sm:$0xff] }
 0x55c   : > { %7698 = verf.f32 %v5652_v17  ;;  %v5303_v53 = vadd.f32 %v7201_v38, %v11123_v2  ;;  %6017 = vmatprep.mubr.f32.mxu0 %v7822_v27 }
 0x55d   : > { %v5841_v18 = vmul.f32 %v5777_v28, %v5585_v16  ;;  %v4922_v0 = vpop.f32.mrb[18].mxu1 }
 0x55e   : > { %v7695_v30 = vpop.eup %7694  ;;  %v5653_v56 = vmul.f32 0.70710677, %v5303_v53  ;;  %v7202_v3 = vadd.f32 %v4922_v0, %v11124_v29  ;;  %v4924_v13 = vpop.f32.mrb[19].mxu1  ;;  %5186 = vmatmul.mubr.f32.gmra.mrb[124].mxu1 %v2614_v22  ;;  %v5589_v22 = vmul.f32 0.5, %v5303_v53  ;;  %v11132_v29 = vld [vmem:[#allocation7_spill] sm:$0xff] }
 0x55f   : > { %v5778_v61 = vadd.f32 1.0, %v7695_v30  ;;  %6018 = vmatmul.mubr.f32.gmra.mrb[8].mxu0 %v5841_v18  ;;  %5190 = vmatprep.mubr.f32.mxu1 %v2743_v32  ;;  %v7826_v32 = vld [vmem:[%s8062_s14 + $0x40] sm:$0xff] }
 0x560   : > { %7700 = verf.f32 %v5653_v56  ;;  %v5308_v42 = vadd.f32 %v7202_v3, %v11125_v51  ;;  %6022 = vmatprep.mubr.f32.mxu0 %v7823_v33  ;;  %v11133_v53 = vld [vmem:[#allocation79_spill] sm:$0xff]  ;;  %v7827_v33 = vld [vmem:[%s8062_s14 + $0x48] sm:$0xff] }
 0x561   : > { %v5842_v26 = vmul.f32 %v5778_v61, %v5586_v41  ;;  %v4927_v24 = vpop.f32.mrb[20].mxu1 }
 0x562   : > { %v7697_v4 = vpop.eup %7696  ;;  %v5654_v44 = vmul.f32 0.70710677, %v5308_v42  ;;  %v7203_v54 = vadd.f32 %v4927_v24, %v11126_v8  ;;  %v4929_v9 = vpop.f32.mrb[21].mxu1  ;;  %5191 = vmatmul.mubr.f32.gmra.mrb[126].mxu1 %v10501_v43  ;;  %v11129_v43 = vld [vmem:[#allocation77_spill] sm:$0xff]  ;;  %v5590_v41 = vmul.f32 0.5, %v5308_v42  ;;  %v11135_v42 = vld [vmem:[#allocation83_spill] sm:$0xff] }
 0x563   : > { %v5779_v63 = vadd.f32 1.0, %v7697_v4  ;;  %6023 = vmatmul.mubr.f32.gmra.mrb[10].mxu0 %v5842_v26  ;;  %v11134_v8 = vld [vmem:[#allocation9_spill] sm:$0xff] }
 0x564   : > { %7702 = verf.f32 %v5654_v44  ;;  %v5313_v11 = vadd.f32 %v7203_v54, %v11127_v31  ;;  %6027 = vmatprep.mubr.f32.mxu0 %v7824_v35  ;;  %v7828_v35 = vld [vmem:[%s8062_s14 + $0x50] sm:$0xff] }
 0x565   : > { %v5843_v39 = vmul.f32 %v5779_v63, %v5587_v36  ;;  %v4932_v60 = vpop.f32.mrb[22].mxu1 }
 0x566   : > { %v7699_v40 = vpop.eup %7698  ;;  %v5655_v37 = vmul.f32 0.70710677, %v5313_v11  ;;  %v7204_v10 = vadd.f32 %v4932_v60, %v11128_v59  ;;  %v4934_v55 = vpop.f32.mrb[23].mxu1  ;;  %v5591_v36 = vmul.f32 0.5, %v5313_v11  ;;  %v11136_v59 = vld [vmem:[#allocation8_spill] sm:$0xff]  ;;  %v11137_v11 = vld [vmem:[#allocation81_spill] sm:$0xff] }
 0x567   : > { %v5780_v58 = vadd.f32 1.0, %v7699_v40  ;;  %6028 = vmatmul.mubr.f32.gmra.mrb[12].mxu0 %v5843_v39 }
 0x568   : > { %7704 = verf.f32 %v5655_v37  ;;  %v5318_v6 = vadd.f32 %v7204_v10, %v11129_v43  ;;  %6032 = vmatprep.mubr.f32.mxu0 %v7825_v49  ;;  %v7829_v49 = vld [vmem:[%s8062_s14 + $0x58] sm:$0xff] }
 0x569   : > { %v5844_v21 = vmul.f32 %v5780_v58, %v5588_v34  ;;  %v4937_v17 = vpop.f32.mrb[24].mxu1 }
 0x56a   : > { %v7701_v19 = vpop.eup %7700  ;;  %v5656_v38 = vmul.f32 0.70710677, %v5318_v6  ;;  %v7205_v16 = vadd.f32 %v4937_v17, %v11130_v12  ;;  %v4939_v28 = vpop.f32.mrb[25].mxu1  ;;  %v5592_v34 = vmul.f32 0.5, %v5318_v6  ;;  %v11138_v12 = vld [vmem:[#allocation11_spill] sm:$0xff]  ;;  %v11139_v6 = vld [vmem:[#allocation85_spill] sm:$0xff] }
 0x56b   : > { %v5781_v2 = vadd.f32 1.0, %v7701_v19  ;;  %6033 = vmatmul.mubr.f32.gmra.mrb[14].mxu0 %v5844_v21 }
 0x56c   : > { %7706 = verf.f32 %v5656_v38  ;;  %v5323_v27 = vadd.f32 %v7205_v16, %v11131_v50  ;;  %6037 = vmatprep.mubr.f32.mxu0 %v7826_v32  ;;  %v7830_v32 = vld [vmem:[%s8062_s14 + $0x60] sm:$0xff] }
 0x56d   : > { %v5845_v18 = vmul.f32 %v5781_v2, %v5589_v22  ;;  %v4942_v0 = vpop.f32.mrb[26].mxu1 }
 0x56e   : > { %v7703_v30 = vpop.eup %7702  ;;  %v5657_v56 = vmul.f32 0.70710677, %v5323_v27  ;;  %v7206_v3 = vadd.f32 %v4942_v0, %v11132_v29  ;;  %v4944_v13 = vpop.f32.mrb[27].mxu1  ;;  %v5593_v22 = vmul.f32 0.5, %v5323_v27  ;;  %v11140_v29 = vld [vmem:[#allocation10_spill] sm:$0xff]  ;;  %v11141_v27 = vld [vmem:[#allocation84_spill] sm:$0xff] }
 0x56f   : > { %v5782_v61 = vadd.f32 1.0, %v7703_v30  ;;  %6038 = vmatmul.mubr.f32.gmra.mrb[16].mxu0 %v5845_v18 }
 0x570   : > { %7708 = verf.f32 %v5657_v56  ;;  %v5328_v51 = vadd.f32 %v7206_v3, %v11133_v53  ;;  %6042 = vmatprep.mubr.f32.mxu0 %v7827_v33  ;;  %v7831_v33 = vld [vmem:[%s8062_s14 + $0x68] sm:$0xff] }
 0x571   : > { %v5846_v26 = vmul.f32 %v5782_v61, %v5590_v41  ;;  %v4947_v24 = vpop.f32.mrb[28].mxu1 }
 0x572   : > { %v7705_v4 = vpop.eup %7704  ;;  %v5658_v44 = vmul.f32 0.70710677, %v5328_v51  ;;  %v7207_v54 = vadd.f32 %v4947_v24, %v11134_v8  ;;  %v4949_v9 = vpop.f32.mrb[29].mxu1  ;;  %v5594_v41 = vmul.f32 0.5, %v5328_v51  ;;  %v11142_v8 = vld [vmem:[#allocation13_spill] sm:$0xff]  ;;  %v11143_v51 = vld [vmem:[#allocation88_spill] sm:$0xff] }
 0x573   : > { %v5783_v63 = vadd.f32 1.0, %v7705_v4  ;;  %6043 = vmatmul.mubr.f32.gmra.mrb[18].mxu0 %v5846_v26 }
 0x574   : > { %7710 = verf.f32 %v5658_v44  ;;  %v5333_v31 = vadd.f32 %v7207_v54, %v11135_v42  ;;  %6047 = vmatprep.mubr.f32.mxu0 %v7828_v35  ;;  %v7832_v35 = vld [vmem:[%s8062_s14 + $0x70] sm:$0xff] }
 0x575   : > { %v5847_v39 = vmul.f32 %v5783_v63, %v5591_v36  ;;  %v4952_v60 = vpop.f32.mrb[30].mxu1 }
 0x576   : > { %v7707_v40 = vpop.eup %7706  ;;  %v5659_v37 = vmul.f32 0.70710677, %v5333_v31  ;;  %v7208_v10 = vadd.f32 %v4952_v60, %v11136_v59  ;;  %v4954_v55 = vpop.f32.mrb[31].mxu1  ;;  %v5595_v36 = vmul.f32 0.5, %v5333_v31  ;;  %v11144_v59 = vld [vmem:[#allocation12_spill] sm:$0xff]  ;;  %v11145_v31 = vld [vmem:[#allocation86_spill] sm:$0xff] }
 0x577   : > { %v5784_v58 = vadd.f32 1.0, %v7707_v40  ;;  %6048 = vmatmul.mubr.f32.gmra.mrb[20].mxu0 %v5847_v39 }
 0x578   : > { %7712 = verf.f32 %v5659_v37  ;;  %v5338_v43 = vadd.f32 %v7208_v10, %v11137_v11  ;;  %6052 = vmatprep.mubr.f32.mxu0 %v7829_v49  ;;  %v7833_v49 = vld [vmem:[%s8062_s14 + $0x78] sm:$0xff] }
 0x579   : > { %v5848_v21 = vmul.f32 %v5784_v58, %v5592_v34  ;;  %v4957_v17 = vpop.f32.mrb[32].mxu1 }
 0x57a   : > { %v7709_v19 = vpop.eup %7708  ;;  %v5660_v38 = vmul.f32 0.70710677, %v5338_v43  ;;  %v7209_v16 = vadd.f32 %v4957_v17, %v11138_v12  ;;  %v4959_v28 = vpop.f32.mrb[33].mxu1  ;;  %v5596_v34 = vmul.f32 0.5, %v5338_v43  ;;  %v11146_v12 = vld [vmem:[#allocation32_spill] sm:$0xff]  ;;  %v11147_v43 = vld [vmem:[#allocation91_spill] sm:$0xff] }
 0x57b   : > { %v5785_v2 = vadd.f32 1.0, %v7709_v19  ;;  %6053 = vmatmul.mubr.f32.gmra.mrb[22].mxu0 %v5848_v21 }
 0x57c   : > { %7714 = verf.f32 %v5660_v38  ;;  %v5343_v50 = vadd.f32 %v7209_v16, %v11139_v6  ;;  %6057 = vmatprep.mubr.f32.mxu0 %v7830_v32  ;;  %v7834_v32 = vld [vmem:[%s8062_s14 + $0x80] sm:$0xff] }
 0x57d   : > { %v5849_v18 = vmul.f32 %v5785_v2, %v5593_v22  ;;  %v4962_v0 = vpop.f32.mrb[34].mxu1 }
 0x57e   : > { %v7711_v30 = vpop.eup %7710  ;;  %v5661_v56 = vmul.f32 0.70710677, %v5343_v50  ;;  %v7210_v3 = vadd.f32 %v4962_v0, %v11140_v29  ;;  %v4964_v13 = vpop.f32.mrb[35].mxu1  ;;  %v5597_v22 = vmul.f32 0.5, %v5343_v50  ;;  %v11148_v29 = vld [vmem:[#allocation15_spill] sm:$0xff]  ;;  %v11149_v50 = vld [vmem:[#allocation89_spill] sm:$0xff] }
 0x57f   : > { %v5786_v61 = vadd.f32 1.0, %v7711_v30  ;;  %6058 = vmatmul.mubr.f32.gmra.mrb[24].mxu0 %v5849_v18 }
 0x580   : > { %7716 = verf.f32 %v5661_v56  ;;  %v5348_v53 = vadd.f32 %v7210_v3, %v11141_v27  ;;  %6062 = vmatprep.mubr.f32.mxu0 %v7831_v33  ;;  %v7835_v33 = vld [vmem:[%s8062_s14 + $0x88] sm:$0xff] }
 0x581   : > { %v5850_v26 = vmul.f32 %v5786_v61, %v5594_v41  ;;  %v4967_v24 = vpop.f32.mrb[36].mxu1 }
 0x582   : > { %v7713_v4 = vpop.eup %7712  ;;  %v5662_v44 = vmul.f32 0.70710677, %v5348_v53  ;;  %v7211_v54 = vadd.f32 %v4967_v24, %v11142_v8  ;;  %v4969_v9 = vpop.f32.mrb[37].mxu1  ;;  %v5598_v41 = vmul.f32 0.5, %v5348_v53  ;;  %v11150_v8 = vld [vmem:[#allocation14_spill] sm:$0xff] }
 0x583   : > { %v5787_v63 = vadd.f32 1.0, %v7713_v4  ;;  %6063 = vmatmul.mubr.f32.gmra.mrb[26].mxu0 %v5850_v26  ;;  %v11151_v53 = vld [vmem:[#allocation94_spill] sm:$0xff] }
 0x584   : > { %7718 = verf.f32 %v5662_v44  ;;  %v5353_v42 = vadd.f32 %v7211_v54, %v11143_v51  ;;  %6067 = vmatprep.mubr.f32.mxu0 %v7832_v35  ;;  %v7836_v35 = vld [vmem:[%s8062_s14 + $0x90] sm:$0xff] }
 0x585   : > { %v5851_v39 = vmul.f32 %v5787_v63, %v5595_v36  ;;  %v4972_v60 = vpop.f32.mrb[38].mxu1 }
 0x586   : > { %v7715_v40 = vpop.eup %7714  ;;  %v5663_v37 = vmul.f32 0.70710677, %v5353_v42  ;;  %v7212_v10 = vadd.f32 %v4972_v60, %v11144_v59  ;;  %v4974_v55 = vpop.f32.mrb[39].mxu1  ;;  %v5599_v36 = vmul.f32 0.5, %v5353_v42  ;;  %v11152_v59 = vld [vmem:[#allocation33_spill] sm:$0xff]  ;;  %v11153_v42 = vld [vmem:[#allocation92_spill] sm:$0xff] }
 0x587   : > { %v5788_v58 = vadd.f32 1.0, %v7715_v40  ;;  %6068 = vmatmul.mubr.f32.gmra.mrb[28].mxu0 %v5851_v39 }
 0x588   : > { %7720 = verf.f32 %v5663_v37  ;;  %v5358_v11 = vadd.f32 %v7212_v10, %v11145_v31  ;;  %6072 = vmatprep.mubr.f32.mxu0 %v7833_v49  ;;  %v7837_v49 = vld [vmem:[%s8062_s14 + $0x98] sm:$0xff] }
 0x589   : > { %v5852_v21 = vmul.f32 %v5788_v58, %v5596_v34  ;;  %v4977_v17 = vpop.f32.mrb[40].mxu1 }
 0x58a   : > { %v7717_v19 = vpop.eup %7716  ;;  %v5664_v38 = vmul.f32 0.70710677, %v5358_v11  ;;  %v7213_v16 = vadd.f32 %v4977_v17, %v11146_v12  ;;  %v4979_v28 = vpop.f32.mrb[41].mxu1  ;;  %v5600_v34 = vmul.f32 0.5, %v5358_v11  ;;  %v11154_v12 = vld [vmem:[#allocation17_spill] sm:$0xff] }
 0x58b   : > { %v5789_v2 = vadd.f32 1.0, %v7717_v19  ;;  %6073 = vmatmul.mubr.f32.gmra.mrb[30].mxu0 %v5852_v21  ;;  %v11155_v11 = vld [vmem:[#allocation97_spill] sm:$0xff] }
 0x58c   : > { %7722 = verf.f32 %v5664_v38  ;;  %v5363_v6 = vadd.f32 %v7213_v16, %v11147_v43  ;;  %6077 = vmatprep.mubr.f32.mxu0 %v7834_v32  ;;  %v7838_v32 = vld [vmem:[%s8062_s14 + $0xa0] sm:$0xff] }
 0x58d   : > { %v5853_v18 = vmul.f32 %v5789_v2, %v5597_v22  ;;  %v4982_v0 = vpop.f32.mrb[42].mxu1 }
 0x58e   : > { %v7719_v30 = vpop.eup %7718  ;;  %v5665_v56 = vmul.f32 0.70710677, %v5363_v6  ;;  %v7214_v3 = vadd.f32 %v4982_v0, %v11148_v29  ;;  %v4984_v13 = vpop.f32.mrb[43].mxu1  ;;  %v5601_v22 = vmul.f32 0.5, %v5363_v6  ;;  %v11156_v29 = vld [vmem:[#allocation16_spill] sm:$0xff]  ;;  %v11157_v6 = vld [vmem:[#allocation95_spill] sm:$0xff] }
 0x58f   : > { %v5790_v61 = vadd.f32 1.0, %v7719_v30  ;;  %6078 = vmatmul.mubr.f32.gmra.mrb[32].mxu0 %v5853_v18 }
 0x590   : > { %7724 = verf.f32 %v5665_v56  ;;  %v5368_v27 = vadd.f32 %v7214_v3, %v11149_v50  ;;  %6082 = vmatprep.mubr.f32.mxu0 %v7835_v33  ;;  %v7839_v33 = vld [vmem:[%s8062_s14 + $0xa8] sm:$0xff] }
 0x591   : > { %v5854_v26 = vmul.f32 %v5790_v61, %v5598_v41  ;;  %v4987_v24 = vpop.f32.mrb[44].mxu1 }
 0x592   : > { %v7721_v4 = vpop.eup %7720  ;;  %v5666_v44 = vmul.f32 0.70710677, %v5368_v27  ;;  %v7215_v54 = vadd.f32 %v4987_v24, %v11150_v8  ;;  %v4989_v9 = vpop.f32.mrb[45].mxu1  ;;  %v5602_v41 = vmul.f32 0.5, %v5368_v27 }
 0x593   : > { %v5791_v63 = vadd.f32 1.0, %v7721_v4  ;;  %6083 = vmatmul.mubr.f32.gmra.mrb[34].mxu0 %v5854_v26  ;;  %v11158_v9 = vld [vmem:[#allocation23_spill] sm:$0xff] }
 0x594   : > { %7726 = verf.f32 %v5666_v44  ;;  %v5373_v51 = vadd.f32 %v7215_v54, %v11151_v53  ;;  %6087 = vmatprep.mubr.f32.mxu0 %v7836_v35  ;;  %v10608_v26 = vpop.f32.mrb[254].mxu0  ;;  %v11159_v35 = vld [vmem:[#allocation99_spill] sm:$0xff] }
 0x595   : > { %v5855_v39 = vmul.f32 %v5791_v63, %v5599_v36  ;;  %v4992_v60 = vpop.f32.mrb[46].mxu1  ;;  %v10610_v44 = vpop.f32.mrb[255].mxu0 }
 0x596   : > { %v7723_v40 = vpop.eup %7722  ;;  %v5667_v37 = vmul.f32 0.70710677, %v5373_v51  ;;  %v7216_v10 = vadd.f32 %v4992_v60, %v11152_v59  ;;  %v4994_v55 = vpop.f32.mrb[47].mxu1  ;;  %v5603_v27 = vmul.f32 0.5, %v5373_v51  ;;  %v7840_v60 = vld [vmem:[%s8062_s14 + $0xb0] sm:$0xff]  ;;  %v11161_v51 = vld [vmem:[#allocation98_spill] sm:$0xff] }
 0x597   : > { %v5792_v58 = vadd.f32 1.0, %v7723_v40  ;;  %6088 = vmatmul.mubr.f32.gmra.mrb[36].mxu0 %v5855_v39  ;;  %v11160_v55 = vld [vmem:[#allocation19_spill] sm:$0xff] }
 0x598   : > { %7728 = verf.f32 %v5667_v37  ;;  %v5378_v31 = vadd.f32 %v7216_v10, %v11153_v42  ;;  %6092 = vmatprep.mubr.f32.mxu0 %v7837_v49 }
 0x599   : > { %v5856_v21 = vmul.f32 %v5792_v58, %v5600_v34  ;;  %v4997_v17 = vpop.f32.mrb[48].mxu1 }
 0x59a   : > { %v7725_v19 = vpop.eup %7724  ;;  %v5668_v38 = vmul.f32 0.70710677, %v5378_v31  ;;  %v7217_v16 = vadd.f32 %v4997_v17, %v11154_v12  ;;  %v4999_v28 = vpop.f32.mrb[49].mxu1  ;;  %v5604_v42 = vmul.f32 0.5, %v5378_v31  ;;  %v7841_v17 = vld [vmem:[%s8062_s14 + $0xb8] sm:$0xff]  ;;  %v11163_v31 = vld [vmem:[#allocation101_spill] sm:$0xff] }
 0x59b   : > { %v5793_v2 = vadd.f32 1.0, %v7725_v19  ;;  %6093 = vmatmul.mubr.f32.gmra.mrb[38].mxu0 %v5856_v21  ;;  %v11162_v28 = vld [vmem:[#allocation18_spill] sm:$0xff] }
 0x59c   : > { %7730 = verf.f32 %v5668_v38  ;;  %v5383_v43 = vadd.f32 %v7217_v16, %v11155_v11  ;;  %6097 = vmatprep.mubr.f32.mxu0 %v7838_v32 }
 0x59d   : > { %v5857_v18 = vmul.f32 %v5793_v2, %v5601_v22  ;;  %v5002_v0 = vpop.f32.mrb[50].mxu1 }
 0x59e   : > { %v7727_v30 = vpop.eup %7726  ;;  %v5669_v56 = vmul.f32 0.70710677, %v5383_v43  ;;  %v7218_v3 = vadd.f32 %v5002_v0, %v11156_v29  ;;  %v5004_v13 = vpop.f32.mrb[51].mxu1  ;;  %v5605_v11 = vmul.f32 0.5, %v5383_v43  ;;  %v7842_v0 = vld [vmem:[%s8062_s14 + $0xc0] sm:$0xff]  ;;  %v11165_v43 = vld [vmem:[#allocation100_spill] sm:$0xff] }
 0x59f   : > { %v5794_v61 = vadd.f32 1.0, %v7727_v30  ;;  %6098 = vmatmul.mubr.f32.gmra.mrb[40].mxu0 %v5857_v18  ;;  %v11164_v13 = vld [vmem:[#allocation34_spill] sm:$0xff] }
 0x5a0   : > { %7732 = verf.f32 %v5669_v56  ;;  %v5388_v50 = vadd.f32 %v7218_v3, %v11157_v6  ;;  %6102 = vmatprep.mubr.f32.mxu0 %v7839_v33 }
 0x5a1   : > { %v5858_v24 = vmul.f32 %v5794_v61, %v5602_v41  ;;  %v5007_v4 = vpop.f32.mrb[52].mxu1 }
 0x5a2   : > { %v7729_v8 = vpop.eup %7728  ;;  %v5670_v54 = vmul.f32 0.70710677, %v5388_v50  ;;  %v7219_v36 = vadd.f32 %v5007_v4, %v11158_v9  ;;  %v5009_v63 = vpop.f32.mrb[53].mxu1  ;;  %v5606_v6 = vmul.f32 0.5, %v5388_v50  ;;  %v7843_v4 = vld [vmem:[%s8062_s14 + $0xc8] sm:$0xff]  ;;  %v11167_v50 = vld [vmem:[#allocation103_spill] sm:$0xff] }
 0x5a3   : > { %v5795_v53 = vadd.f32 1.0, %v7729_v8  ;;  %6103 = vmatmul.mubr.f32.gmra.mrb[42].mxu0 %v5858_v24  ;;  %v11166_v63 = vld [vmem:[#allocation35_spill] sm:$0xff] }
 0x5a4   : > { %7734 = verf.f32 %v5670_v54  ;;  %v5393_v39 = vadd.f32 %v7219_v36, %v11159_v35  ;;  %6107 = vmatprep.mubr.f32.mxu0 %v7840_v60 }
 0x5a5   : > { %v5859_v40 = vmul.f32 %v5795_v53, %v5603_v27  ;;  %v5012_v37 = vpop.f32.mrb[54].mxu1 }
 0x5a6   : > { %v7731_v59 = vpop.eup %7730  ;;  %v5671_v10 = vmul.f32 0.70710677, %v5393_v39  ;;  %v7220_v34 = vadd.f32 %v5012_v37, %v11160_v55  ;;  %v5014_v58 = vpop.f32.mrb[55].mxu1  ;;  %v5607_v35 = vmul.f32 0.5, %v5393_v39  ;;  %v7844_v37 = vld [vmem:[%s8062_s14 + $0xd0] sm:$0xff]  ;;  %v11169_v39 = vld [vmem:[#allocation102_spill] sm:$0xff] }
 0x5a7   : > { %v5796_v49 = vadd.f32 1.0, %v7731_v59  ;;  %6108 = vmatmul.mubr.f32.gmra.mrb[44].mxu0 %v5859_v40  ;;  %v11168_v58 = vld [vmem:[#allocation36_spill] sm:$0xff] }
 0x5a8   : > { %7736 = verf.f32 %v5671_v10  ;;  %v5398_v21 = vadd.f32 %v7220_v34, %v11161_v51  ;;  %6112 = vmatprep.mubr.f32.mxu0 %v7841_v17 }
 0x5a9   : > { %v5860_v19 = vmul.f32 %v5796_v49, %v5604_v42  ;;  %v5017_v38 = vpop.f32.mrb[56].mxu1 }
 0x5aa   : > { %v7733_v12 = vpop.eup %7732  ;;  %v5672_v16 = vmul.f32 0.70710677, %v5398_v21  ;;  %v7221_v22 = vadd.f32 %v5017_v38, %v11162_v28  ;;  %v5019_v2 = vpop.f32.mrb[57].mxu1  ;;  %v5608_v51 = vmul.f32 0.5, %v5398_v21  ;;  %v7845_v38 = vld [vmem:[%s8062_s14 + $0xd8] sm:$0xff] }
 0x5ab   : > { %v5797_v32 = vadd.f32 1.0, %v7733_v12  ;;  %6113 = vmatmul.mubr.f32.gmra.mrb[46].mxu0 %v5860_v19  ;;  %v11170_v2 = vld [vmem:[#allocation37_spill] sm:$0xff] }
 0x5ac   : > { %7738 = verf.f32 %v5672_v16  ;;  %v5403_v18 = vadd.f32 %v7221_v22, %v11163_v31  ;;  %6117 = vmatprep.mubr.f32.mxu0 %v7842_v0 }
 0x5ad   : > { %v5861_v30 = vmul.f32 %v5797_v32, %v5605_v11  ;;  %v5022_v56 = vpop.f32.mrb[58].mxu1 }
 0x5ae   : > { %v7735_v29 = vpop.eup %7734  ;;  %v5673_v3 = vmul.f32 0.70710677, %v5403_v18  ;;  %v7222_v41 = vadd.f32 %v5022_v56, %v11164_v13  ;;  %v5024_v61 = vpop.f32.mrb[59].mxu1  ;;  %v5609_v31 = vmul.f32 0.5, %v5403_v18  ;;  %v11172_v18 = vld [vmem:[#allocation104_spill] sm:$0xff] }
 0x5af   : > { %v5798_v33 = vadd.f32 1.0, %v7735_v29  ;;  %6118 = vmatmul.mubr.f32.gmra.mrb[48].mxu0 %v5861_v30  ;;  %v7846_v30 = vld [vmem:[%s8062_s14 + $0xe0] sm:$0xff] }
 0x5b0   : > { %7740 = verf.f32 %v5673_v3  ;;  %v5408_v24 = vadd.f32 %v7222_v41, %v11165_v43  ;;  %6122 = vmatprep.mubr.f32.mxu0 %v7843_v4  ;;  %v11171_v41 = vld [vmem:[#allocation38_spill] sm:$0xff] }
 0x5b1   : > { %v5862_v8 = vmul.f32 %v5798_v33, %v5606_v6  ;;  %v5027_v54 = vpop.f32.mrb[60].mxu1 }
 0x5b2   : > { %v7737_v9 = vpop.eup %7736  ;;  %v5674_v36 = vmul.f32 0.70710677, %v5408_v24  ;;  %v7223_v27 = vadd.f32 %v5027_v54, %v11166_v63  ;;  %v5029_v53 = vpop.f32.mrb[61].mxu1  ;;  %v5610_v33 = vmul.f32 0.5, %v5408_v24  ;;  %v11173_v63 = vld [vmem:[#allocation39_spill] sm:$0xff]  ;;  %v11174_v24 = vld [vmem:[#allocation106_spill] sm:$0xff] }
 0x5b3   : > { %v5799_v60 = vadd.f32 1.0, %v7737_v9  ;;  %6123 = vmatmul.mubr.f32.gmra.mrb[50].mxu0 %v5862_v8  ;;  %v7847_v8 = vld [vmem:[%s8062_s14 + $0xe8] sm:$0xff] }
 0x5b4   : > { %7742 = verf.f32 %v5674_v36  ;;  %v5413_v40 = vadd.f32 %v7223_v27, %v11167_v50  ;;  %6127 = vmatprep.mubr.f32.mxu0 %v7844_v37  ;;  %v7848_v37 = vld [vmem:[%s8062_s14 + $0xf0] sm:$0xff] }
 0x5b5   : > { %v5863_v59 = vmul.f32 %v5799_v60, %v5607_v35  ;;  %v5032_v10 = vpop.f32.mrb[62].mxu1 }
 0x5b6   : > { %v7739_v55 = vpop.eup %7738  ;;  %v5675_v34 = vmul.f32 0.70710677, %v5413_v40  ;;  %v7224_v42 = vadd.f32 %v5032_v10, %v11168_v58  ;;  %v5034_v49 = vpop.f32.mrb[63].mxu1  ;;  %v5611_v35 = vmul.f32 0.5, %v5413_v40  ;;  %v11175_v58 = vld [vmem:[#allocation40_spill] sm:$0xff]  ;;  %v11176_v40 = vld [vmem:[#allocation105_spill] sm:$0xff] }
 0x5b7   : > { %v5800_v17 = vadd.f32 1.0, %v7739_v55  ;;  %6128 = vmatmul.mubr.f32.gmra.mrb[52].mxu0 %v5863_v59 }
 0x5b8   : > { %7744 = verf.f32 %v5675_v34  ;;  %v5418_v19 = vadd.f32 %v7224_v42, %v11169_v39  ;;  %6132 = vmatprep.mubr.f32.mxu0 %v7845_v38  ;;  %v7849_v38 = vld [vmem:[%s8062_s14 + $0xf8] sm:$0xff] }
 0x5b9   : > { %v5864_v12 = vmul.f32 %v5800_v17, %v5608_v51  ;;  %v5037_v16 = vpop.f32.mrb[64].mxu1 }
 0x5ba   : > { %v7741_v28 = vpop.eup %7740  ;;  %v5676_v22 = vmul.f32 0.70710677, %v5418_v19  ;;  %v7225_v11 = vadd.f32 %v5037_v16, %v11170_v2  ;;  %v5039_v32 = vpop.f32.mrb[65].mxu1  ;;  %v5612_v51 = vmul.f32 0.5, %v5418_v19  ;;  %v11177_v2 = vld [vmem:[#allocation41_spill] sm:$0xff] }
 0x5bb   : > { %v5801_v0 = vadd.f32 1.0, %v7741_v28  ;;  %6133 = vmatmul.mubr.f32.gmra.mrb[54].mxu0 %v5864_v12 }
 0x5bc   : > { %7746 = verf.f32 %v5676_v22  ;;  %v5423_v21 = vadd.f32 %v7225_v11, %v10342_v1  ;;  %6137 = vmatprep.mubr.f32.mxu0 %v7846_v30  ;;  %v7850_v30 = vld [vmem:[%s8062_s14 + $0x100] sm:$0xff] }
 0x5bd   : > { %v5865_v56 = vmul.f32 %v5801_v0, %v5609_v31  ;;  %v5042_v29 = vpop.f32.mrb[66].mxu1 }
 0x5be   : > { %v7743_v3 = vpop.eup %7742  ;;  %v5677_v13 = vmul.f32 0.70710677, %v5423_v21  ;;  %v7226_v61 = vadd.f32 %v5042_v29, %v11171_v41  ;;  %v5044_v6 = vpop.f32.mrb[67].mxu1  ;;  %v5613_v31 = vmul.f32 0.5, %v5423_v21  ;;  %v11178_v41 = vld [vmem:[#allocation42_spill] sm:$0xff]  ;;  %v11179_v21 = vld [vmem:[#allocation107_spill] sm:$0xff] }
 0x5bf   : > { %v5802_v43 = vadd.f32 1.0, %v7743_v3  ;;  %6138 = vmatmul.mubr.f32.gmra.mrb[56].mxu0 %v5865_v56 }
 0x5c0   : > { %7748 = verf.f32 %v5677_v13  ;;  %v5428_v4 = vadd.f32 %v7226_v61, %v11172_v18  ;;  %6142 = vmatprep.mubr.f32.mxu0 %v7847_v8  ;;  %v7851_v8 = vld [vmem:[%s8062_s14 + $0x108] sm:$0xff] }
 0x5c1   : > { %v5866_v54 = vmul.f32 %v5802_v43, %v5610_v33  ;;  %v5047_v1 = vpop.f32.mrb[68].mxu1 }
 0x5c2   : > { %v7745_v9 = vpop.eup %7744  ;;  %v5678_v36 = vmul.f32 0.70710677, %v5428_v4  ;;  %v7227_v27 = vadd.f32 %v5047_v1, %v11173_v63  ;;  %v5049_v53 = vpop.f32.mrb[69].mxu1  ;;  %v5614_v33 = vmul.f32 0.5, %v5428_v4 }
 0x5c3   : > { %v5803_v60 = vadd.f32 1.0, %v7745_v9  ;;  %6143 = vmatmul.mubr.f32.gmra.mrb[58].mxu0 %v5866_v54 }
 0x5c4   : > { %7750 = verf.f32 %v5678_v36  ;;  %v5433_v50 = vadd.f32 %v7227_v27, %v11174_v24  ;;  %6147 = vmatprep.mubr.f32.mxu0 %v7848_v37  ;;  %v11180_v36 = vld [vmem:[#allocation43_spill] sm:$0xff] }
 0x5c5   : > { %v5867_v59 = vmul.f32 %v5803_v60, %v5611_v35  ;;  %v5052_v10 = vpop.f32.mrb[70].mxu1  ;;  %v7852_v60 = vld [vmem:[%s8062_s14 + $0x110] sm:$0xff] }
 0x5c6   : > { %v7747_v55 = vpop.eup %7746  ;;  %v5679_v34 = vmul.f32 0.70710677, %v5433_v50  ;;  %v7228_v42 = vadd.f32 %v5052_v10, %v11175_v58  ;;  %v5054_v49 = vpop.f32.mrb[71].mxu1  ;;  %v5615_v53 = vmul.f32 0.5, %v5433_v50  ;;  %v11182_v50 = vld [vmem:[#allocation108_spill] sm:$0xff] }
 0x5c7   : > { %v5804_v17 = vadd.f32 1.0, %v7747_v55  ;;  %6148 = vmatmul.mubr.f32.gmra.mrb[60].mxu0 %v5867_v59  ;;  %v11181_v55 = vld [vmem:[#allocation44_spill] sm:$0xff] }
 0x5c8   : > { %7752 = verf.f32 %v5679_v34  ;;  %v5438_v39 = vadd.f32 %v7228_v42, %v11176_v40  ;;  %6152 = vmatprep.mubr.f32.mxu0 %v7849_v38 }
 0x5c9   : > { %v5868_v12 = vmul.f32 %v5804_v17, %v5612_v51  ;;  %v5057_v16 = vpop.f32.mrb[72].mxu1  ;;  %v7853_v17 = vld [vmem:[%s8062_s14 + $0x118] sm:$0xff] }
 0x5ca   : > { %v7749_v28 = vpop.eup %7748  ;;  %v5680_v22 = vmul.f32 0.70710677, %v5438_v39  ;;  %v7229_v11 = vadd.f32 %v5057_v16, %v11177_v2  ;;  %v5059_v32 = vpop.f32.mrb[73].mxu1  ;;  %v5616_v42 = vmul.f32 0.5, %v5438_v39  ;;  %v11183_v16 = vld [vmem:[#allocation45_spill] sm:$0xff] }
 0x5cb   : > { %v5805_v0 = vadd.f32 1.0, %v7749_v28  ;;  %6153 = vmatmul.mubr.f32.gmra.mrb[62].mxu0 %v5868_v12  ;;  %v7854_v32 = vld [vmem:[%s8062_s14 + $0x120] sm:$0xff] }
 0x5cc   : > { %7754 = verf.f32 %v5680_v22  ;;  %v5443_v19 = vadd.f32 %v7229_v11, %v10357_v23  ;;  %6157 = vmatprep.mubr.f32.mxu0 %v7850_v30 }
 0x5cd   : > { %v5869_v56 = vmul.f32 %v5805_v0, %v5613_v31  ;;  %v5062_v29 = vpop.f32.mrb[74].mxu1 }
 0x5ce   : > { %v7751_v3 = vpop.eup %7750  ;;  %v5681_v13 = vmul.f32 0.70710677, %v5443_v19  ;;  %v7230_v61 = vadd.f32 %v5062_v29, %v11178_v41  ;;  %v5064_v6 = vpop.f32.mrb[75].mxu1  ;;  %v5617_v2 = vmul.f32 0.5, %v5443_v19  ;;  %v11184_v29 = vld [vmem:[#allocation46_spill] sm:$0xff]  ;;  %v11185_v19 = vld [vmem:[#allocation109_spill] sm:$0xff] }
 0x5cf   : > { %v5806_v43 = vadd.f32 1.0, %v7751_v3  ;;  %6158 = vmatmul.mubr.f32.gmra.mrb[64].mxu0 %v5869_v56 }
 0x5d0   : > { %7756 = verf.f32 %v5681_v13  ;;  %v5448_v18 = vadd.f32 %v7230_v61, %v11179_v21  ;;  %6162 = vmatprep.mubr.f32.mxu0 %v7851_v8 }
 0x5d1   : > { %v5870_v54 = vmul.f32 %v5806_v43, %v5614_v33  ;;  %v5067_v23 = vpop.f32.mrb[76].mxu1  ;;  %v7855_v33 = vld [vmem:[%s8062_s14 + $0x128] sm:$0xff] }
 0x5d2   : > { %v7753_v1 = vpop.eup %7752  ;;  %v5682_v9 = vmul.f32 0.70710677, %v5448_v18  ;;  %v7231_v63 = vadd.f32 %v5067_v23, %v11180_v36  ;;  %v5069_v27 = vpop.f32.mrb[77].mxu1  ;;  %v5618_v41 = vmul.f32 0.5, %v5448_v18 }
 0x5d3   : > { %v5807_v35 = vadd.f32 1.0, %v7753_v1  ;;  %6163 = vmatmul.mubr.f32.gmra.mrb[66].mxu0 %v5870_v54  ;;  %v11186_v54 = vld [vmem:[#allocation47_spill] sm:$0xff] }
 0x5d4   : > { %7758 = verf.f32 %v5682_v9  ;;  %v5453_v4 = vadd.f32 %v7231_v63, %v10362_v20  ;;  %6167 = vmatprep.mubr.f32.mxu0 %v7852_v60  ;;  %v7856_v63 = vld [vmem:[%s8062_s14 + $0x130] sm:$0xff] }
 0x5d5   : > { %v5871_v24 = vmul.f32 %v5807_v35, %v5615_v53  ;;  %v5072_v37 = vpop.f32.mrb[78].mxu1 }
 0x5d6   : > { %v7755_v59 = vpop.eup %7754  ;;  %v5683_v10 = vmul.f32 0.70710677, %v5453_v4  ;;  %v7232_v34 = vadd.f32 %v5072_v37, %v11181_v55  ;;  %v5074_v58 = vpop.f32.mrb[79].mxu1  ;;  %v5619_v9 = vmul.f32 0.5, %v5453_v4  ;;  %v11188_v4 = vld [vmem:[#allocation110_spill] sm:$0xff] }
 0x5d7   : > { %v5808_v49 = vadd.f32 1.0, %v7755_v59  ;;  %6168 = vmatmul.mubr.f32.gmra.mrb[68].mxu0 %v5871_v24  ;;  %v11187_v24 = vld [vmem:[#allocation48_spill] sm:$0xff]  ;;  %v7857_v58 = vld [vmem:[%s8062_s14 + $0x138] sm:$0xff] }
 0x5d8   : > { %7760 = verf.f32 %v5683_v10  ;;  %v5458_v51 = vadd.f32 %v7232_v34, %v11182_v50  ;;  %6172 = vmatprep.mubr.f32.mxu0 %v7853_v17  ;;  %v11189_v17 = vld [vmem:[#allocation49_spill] sm:$0xff] }
 0x5d9   : > { %v5872_v40 = vmul.f32 %v5808_v49, %v5616_v42  ;;  %v5077_v20 = vpop.f32.mrb[80].mxu1 }
 0x5da   : > { %v7757_v38 = vpop.eup %7756  ;;  %v5684_v12 = vmul.f32 0.70710677, %v5458_v51  ;;  %v7233_v28 = vadd.f32 %v5077_v20, %v11183_v16  ;;  %v5079_v22 = vpop.f32.mrb[81].mxu1  ;;  %v5620_v10 = vmul.f32 0.5, %v5458_v51  ;;  %v7858_v16 = vld [vmem:[%s8062_s14 + $0x140] sm:$0xff] }
 0x5db   : > { %v5809_v11 = vadd.f32 1.0, %v7757_v38  ;;  %6173 = vmatmul.mubr.f32.gmra.mrb[70].mxu0 %v5872_v40 }
 0x5dc   : > { %7762 = verf.f32 %v5684_v12  ;;  %v5463_v39 = vadd.f32 %v7233_v28, %v10373_v25  ;;  %6177 = vmatprep.mubr.f32.mxu0 %v7854_v32  ;;  %v11190_v32 = vld [vmem:[#allocation50_spill] sm:$0xff] }
 0x5dd   : > { %v5873_v31 = vmul.f32 %v5809_v11, %v5617_v2  ;;  %v5082_v0 = vpop.f32.mrb[82].mxu1 }
 0x5de   : > { %v7759_v30 = vpop.eup %7758  ;;  %v5685_v56 = vmul.f32 0.70710677, %v5463_v39  ;;  %v7234_v3 = vadd.f32 %v5082_v0, %v11184_v29  ;;  %v5084_v13 = vpop.f32.mrb[83].mxu1  ;;  %v5621_v38 = vmul.f32 0.5, %v5463_v39  ;;  %v11191_v39 = vld [vmem:[#allocation111_spill] sm:$0xff] }
 0x5df   : > { %v5810_v61 = vadd.f32 1.0, %v7759_v30  ;;  %6178 = vmatmul.mubr.f32.gmra.mrb[72].mxu0 %v5873_v31 }
 0x5e0   : > { %7764 = verf.f32 %v5685_v56  ;;  %v5468_v6 = vadd.f32 %v7234_v3, %v11185_v19  ;;  %6182 = vmatprep.mubr.f32.mxu0 %v7855_v33  ;;  %v7859_v3 = vld [vmem:[%s8062_s14 + $0x148] sm:$0xff]  ;;  %v11192_v19 = vld [vmem:[#allocation51_spill] sm:$0xff] }
 0x5e1   : > { %v5874_v43 = vmul.f32 %v5810_v61, %v5618_v41  ;;  %v5087_v25 = vpop.f32.mrb[84].mxu1 }
 0x5e2   : > { %v7761_v21 = vpop.eup %7760  ;;  %v5686_v8 = vmul.f32 0.70710677, %v5468_v6  ;;  %v7235_v23 = vadd.f32 %v5087_v25, %v11186_v54  ;;  %v5089_v1 = vpop.f32.mrb[85].mxu1  ;;  %v5622_v30 = vmul.f32 0.5, %v5468_v6 }
 0x5e3   : > { %v5811_v36 = vadd.f32 1.0, %v7761_v21  ;;  %6183 = vmatmul.mubr.f32.gmra.mrb[74].mxu0 %v5874_v43 }
 0x5e4   : > { %7766 = verf.f32 %v5686_v8  ;;  %v5473_v18 = vadd.f32 %v7235_v23, %v10379_v7  ;;  %6187 = vmatprep.mubr.f32.mxu0 %v7856_v63  ;;  %v7860_v8 = vld [vmem:[%s8062_s14 + $0x150] sm:$0xff] }
 0x5e5   : > { %v5875_v27 = vmul.f32 %v5811_v36, %v5619_v9  ;;  %v5092_v53 = vpop.f32.mrb[86].mxu1  ;;  %v11193_v36 = vld [vmem:[#allocation52_spill] sm:$0xff] }
 0x5e6   : > { %v7763_v35 = vpop.eup %7762  ;;  %v5687_v60 = vmul.f32 0.70710677, %v5473_v18  ;;  %v7236_v37 = vadd.f32 %v5092_v53, %v11187_v24  ;;  %v5094_v59 = vpop.f32.mrb[87].mxu1  ;;  %v5623_v25 = vmul.f32 0.5, %v5473_v18  ;;  %v11194_v18 = vld [vmem:[#allocation112_spill] sm:$0xff]  ;;  %v7861_v24 = vld [vmem:[%s8062_s14 + $0x158] sm:$0xff] }
 0x5e7   : > { %v5812_v55 = vadd.f32 1.0, %v7763_v35  ;;  %6188 = vmatmul.mubr.f32.gmra.mrb[76].mxu0 %v5875_v27 }
 0x5e8   : > { %7768 = verf.f32 %v5687_v60  ;;  %v5478_v34 = vadd.f32 %v7236_v37, %v11188_v4  ;;  %6192 = vmatprep.mubr.f32.mxu0 %v7857_v58 }
 0x5e9   : > { %v5876_v42 = vmul.f32 %v5812_v55, %v5620_v10  ;;  %v5097_v7 = vpop.f32.mrb[88].mxu1  ;;  %v11195_v55 = vld [vmem:[#allocation53_spill] sm:$0xff] }
 0x5ea   : > { %v7765_v49 = vpop.eup %7764  ;;  %v5688_v50 = vmul.f32 0.70710677, %v5478_v34  ;;  %v7237_v40 = vadd.f32 %v5097_v7, %v11189_v17  ;;  %v5099_v20 = vpop.f32.mrb[89].mxu1  ;;  %v5624_v53 = vmul.f32 0.5, %v5478_v34 }
 0x5eb   : > { %v5813_v12 = vadd.f32 1.0, %v7765_v49  ;;  %6193 = vmatmul.mubr.f32.gmra.mrb[78].mxu0 %v5876_v42  ;;  %v7862_v49 = vld [vmem:[%s8062_s14 + $0x160] sm:$0xff] }
 0x5ec   : > { %7770 = verf.f32 %v5688_v50  ;;  %v5483_v51 = vadd.f32 %v7237_v40, %v10390_v52  ;;  %6197 = vmatprep.mubr.f32.mxu0 %v7858_v16 }
 0x5ed   : > { %v5877_v28 = vmul.f32 %v5813_v12, %v5621_v38  ;;  %v5102_v22 = vpop.f32.mrb[90].mxu1  ;;  %v11196_v38 = vld [vmem:[#allocation54_spill] sm:$0xff] }
 0x5ee   : > { %v7767_v2 = vpop.eup %7766  ;;  %v5689_v11 = vmul.f32 0.70710677, %v5483_v51  ;;  %v7238_v31 = vadd.f32 %v5102_v22, %v11190_v32  ;;  %v5104_v0 = vpop.f32.mrb[91].mxu1  ;;  %v5625_v42 = vmul.f32 0.5, %v5483_v51  ;;  %v11197_v51 = vld [vmem:[#allocation113_spill] sm:$0xff] }
 0x5ef   : > { %v5814_v56 = vadd.f32 1.0, %v7767_v2  ;;  %6198 = vmatmul.mubr.f32.gmra.mrb[80].mxu0 %v5877_v28 }
 0x5f0   : > { %7772 = verf.f32 %v5689_v11  ;;  %v5488_v29 = vadd.f32 %v7238_v31, %v11191_v39  ;;  %6202 = vmatprep.mubr.f32.mxu0 %v7859_v3  ;;  %v7863_v11 = vld [vmem:[%s8062_s14 + $0x168] sm:$0xff] }
 0x5f1   : > { %v5878_v13 = vmul.f32 %v5814_v56, %v5622_v30  ;;  %v5107_v52 = vpop.f32.mrb[92].mxu1  ;;  %v11198_v30 = vld [vmem:[#allocation55_spill] sm:$0xff] }
 0x5f2   : > { %v7769_v41 = vpop.eup %7768  ;;  %v5690_v61 = vmul.f32 0.70710677, %v5488_v29  ;;  %v7239_v33 = vadd.f32 %v5107_v52, %v11192_v19  ;;  %v5109_v43 = vpop.f32.mrb[93].mxu1  ;;  %v5626_v28 = vmul.f32 0.5, %v5488_v29  ;;  %v7864_v52 = vld [vmem:[%s8062_s14 + $0x170] sm:$0xff] }
 0x5f3   : > { %v5815_v21 = vadd.f32 1.0, %v7769_v41  ;;  %6203 = vmatmul.mubr.f32.gmra.mrb[82].mxu0 %v5878_v13  ;;  %v11199_v43 = vld [vmem:[#allocation56_spill] sm:$0xff] }
 0x5f4   : > { %7774 = verf.f32 %v5690_v61  ;;  %v5493_v6 = vadd.f32 %v7239_v33, %v10396_v5  ;;  %6207 = vmatprep.mubr.f32.mxu0 %v7860_v8 }
 0x5f5   : > { %v5879_v54 = vmul.f32 %v5815_v21, %v5623_v25  ;;  %v5112_v23 = vpop.f32.mrb[94].mxu1 }
 0x5f6   : > { %v7771_v1 = vpop.eup %7770  ;;  %v5691_v9 = vmul.f32 0.70710677, %v5493_v6  ;;  %v7240_v63 = vadd.f32 %v5112_v23, %v11193_v36  ;;  %v5114_v27 = vpop.f32.mrb[95].mxu1  ;;  %v5627_v3 = vmul.f32 0.5, %v5493_v6  ;;  %v11200_v6 = vld [vmem:[#allocation114_spill] sm:$0xff] }
 0x5f7   : > { %v5816_v35 = vadd.f32 1.0, %v7771_v1  ;;  %6208 = vmatmul.mubr.f32.gmra.mrb[84].mxu0 %v5879_v54  ;;  %v7865_v1 = vld [vmem:[%s8062_s14 + $0x178] sm:$0xff]  ;;  %v11201_v27 = vld [vmem:[#allocation57_spill] sm:$0xff] }
 0x5f8   : > { %7776 = verf.f32 %v5691_v9  ;;  %v5498_v60 = vadd.f32 %v7240_v63, %v11194_v18  ;;  %6212 = vmatprep.mubr.f32.mxu0 %v7861_v24 }
 0x5f9   : > { %v5880_v37 = vmul.f32 %v5816_v35, %v5624_v53  ;;  %v5117_v5 = vpop.f32.mrb[96].mxu1 }
 0x5fa   : > { %v7773_v59 = vpop.eup %7772  ;;  %v5692_v10 = vmul.f32 0.70710677, %v5498_v60  ;;  %v7241_v4 = vadd.f32 %v5117_v5, %v11195_v55  ;;  %v5119_v58 = vpop.f32.mrb[97].mxu1  ;;  %v5628_v8 = vmul.f32 0.5, %v5498_v60 }
 0x5fb   : > { %v5817_v7 = vadd.f32 1.0, %v7773_v59  ;;  %6213 = vmatmul.mubr.f32.gmra.mrb[86].mxu0 %v5880_v37  ;;  %v7866_v37 = vld [vmem:[%s8062_s14 + $0x180] sm:$0xff] }
 0x5fc   : > { %7778 = verf.f32 %v5692_v10  ;;  %v5503_v34 = vadd.f32 %v7241_v4, %v10407_v47  ;;  %6217 = vmatprep.mubr.f32.mxu0 %v7862_v49  ;;  %v11202_v4 = vld [vmem:[#allocation58_spill] sm:$0xff] }
 0x5fd   : > { %v5881_v50 = vmul.f32 %v5817_v7, %v5625_v42  ;;  %v5122_v17 = vpop.f32.mrb[98].mxu1 }
 0x5fe   : > { %v7775_v40 = vpop.eup %7774  ;;  %v5693_v20 = vmul.f32 0.70710677, %v5503_v34  ;;  %v7242_v12 = vadd.f32 %v5122_v17, %v11196_v38  ;;  %v5124_v16 = vpop.f32.mrb[99].mxu1  ;;  %v5629_v18 = vmul.f32 0.5, %v5503_v34  ;;  %v11203_v34 = vld [vmem:[#allocation115_spill] sm:$0xff]  ;;  %v7867_v17 = vld [vmem:[%s8062_s14 + $0x188] sm:$0xff] }
 0x5ff   : > { %v5818_v22 = vadd.f32 1.0, %v7775_v40  ;;  %6218 = vmatmul.mubr.f32.gmra.mrb[88].mxu0 %v5881_v50 }
 0x600   : > { %7780 = verf.f32 %v5693_v20  ;;  %v5508_v2 = vadd.f32 %v7242_v12, %v11197_v51  ;;  %6222 = vmatprep.mubr.f32.mxu0 %v7863_v11  ;;  %v11204_v12 = vld [vmem:[#allocation59_spill] sm:$0xff]  ;;  %v7868_v11 = vld [vmem:[%s8062_s14 + $0x190] sm:$0xff] }
 0x601   : > { %v5882_v32 = vmul.f32 %v5818_v22, %v5626_v28  ;;  %v5127_v47 = vpop.f32.mrb[100].mxu1 }
 0x602   : > { %v7777_v31 = vpop.eup %7776  ;;  %v5694_v0 = vmul.f32 0.70710677, %v5508_v2  ;;  %v7243_v56 = vadd.f32 %v5127_v47, %v11198_v30  ;;  %v5129_v39 = vpop.f32.mrb[101].mxu1  ;;  %v5630_v7 = vmul.f32 0.5, %v5508_v2  ;;  %v11205_v30 = vld [vmem:[#allocation60_spill] sm:$0xff] }
 0x603   : > { %v5819_v13 = vadd.f32 1.0, %v7777_v31  ;;  %6223 = vmatmul.mubr.f32.gmra.mrb[90].mxu0 %v5882_v32 }
 0x604   : > { %7782 = verf.f32 %v5694_v0  ;;  %v5513_v29 = vadd.f32 %v7243_v56, %v10413_v45  ;;  %6227 = vmatprep.mubr.f32.mxu0 %v7864_v52 }
 0x605   : > { %v5883_v41 = vmul.f32 %v5819_v13, %v5627_v3  ;;  %v5132_v61 = vpop.f32.mrb[102].mxu1 }
 0x606   : > { %v7779_v19 = vpop.eup %7778  ;;  %v5695_v33 = vmul.f32 0.70710677, %v5513_v29  ;;  %v7244_v25 = vadd.f32 %v5132_v61, %v11199_v43  ;;  %v5134_v21 = vpop.f32.mrb[103].mxu1  ;;  %v5631_v22 = vmul.f32 0.5, %v5513_v29  ;;  %v11206_v29 = vld [vmem:[#allocation116_spill] sm:$0xff]  ;;  %v11207_v43 = vld [vmem:[#allocation61_spill] sm:$0xff] }
 0x607   : > { %v5820_v54 = vadd.f32 1.0, %v7779_v19  ;;  %6228 = vmatmul.mubr.f32.gmra.mrb[92].mxu0 %v5883_v41  ;;  %v7869_v41 = vld [vmem:[%s8062_s14 + $0x198] sm:$0xff] }
 0x608   : > { %7784 = verf.f32 %v5695_v33  ;;  %v5518_v23 = vadd.f32 %v7244_v25, %v11200_v6  ;;  %6232 = vmatprep.mubr.f32.mxu0 %v7865_v1 }
 0x609   : > { %v5884_v9 = vmul.f32 %v5820_v54, %v5628_v8  ;;  %v5137_v45 = vpop.f32.mrb[104].mxu1 }
 0x60a   : > { %v7781_v36 = vpop.eup %7780  ;;  %v5696_v63 = vmul.f32 0.70710677, %v5518_v23  ;;  %v7245_v53 = vadd.f32 %v5137_v45, %v11201_v27  ;;  %v5139_v35 = vpop.f32.mrb[105].mxu1  ;;  %v5632_v3 = vmul.f32 0.5, %v5518_v23  ;;  %v7870_v23 = vld [vmem:[%s8062_s14 + $0x1a0] sm:$0xff] }
 0x60b   : > { %v5821_v24 = vadd.f32 1.0, %v7781_v36  ;;  %6233 = vmatmul.mubr.f32.gmra.mrb[94].mxu0 %v5884_v9 }
 0x60c   : > { %7786 = verf.f32 %v5696_v63  ;;  %v5523_v60 = vadd.f32 %v7245_v53, %v10424_v14  ;;  %6237 = vmatprep.mubr.f32.mxu0 %v7866_v37  ;;  %v11208_v63 = vld [vmem:[#allocation62_spill] sm:$0xff]  ;;  %v7871_v37 = vld [vmem:[%s8062_s14 + $0x1a8] sm:$0xff] }
 0x60d   : > { %v5885_v5 = vmul.f32 %v5821_v24, %v5629_v18  ;;  %v5142_v59 = vpop.f32.mrb[106].mxu1  ;;  %v11209_v24 = vld [vmem:[#allocation117_spill] sm:$0xff] }
 0x60e   : > { %v7783_v10 = vpop.eup %7782  ;;  %v5697_v55 = vmul.f32 0.70710677, %v5523_v60  ;;  %v7246_v58 = vadd.f32 %v5142_v59, %v11202_v4  ;;  %v5144_v42 = vpop.f32.mrb[107].mxu1  ;;  %v5633_v8 = vmul.f32 0.5, %v5523_v60 }
 0x60f   : > { %v5822_v49 = vadd.f32 1.0, %v7783_v10  ;;  %6238 = vmatmul.mubr.f32.gmra.mrb[96].mxu0 %v5885_v5 }
 0x610   : > { %7788 = verf.f32 %v5697_v55  ;;  %v5528_v50 = vadd.f32 %v7246_v58, %v11203_v34  ;;  %6242 = vmatprep.mubr.f32.mxu0 %v7867_v17  ;;  %v11210_v55 = vld [vmem:[#allocation63_spill] sm:$0xff]  ;;  %v7872_v17 = vld [vmem:[%s8062_s14 + $0x1b0] sm:$0xff] }
 0x611   : > { %v5886_v40 = vmul.f32 %v5822_v49, %v5630_v7  ;;  %v5147_v14 = vpop.f32.mrb[108].mxu1 }
 0x612   : > { %v7785_v20 = vpop.eup %7784  ;;  %v5698_v38 = vmul.f32 0.70710677, %v5528_v50  ;;  %v7247_v16 = vadd.f32 %v5147_v14, %v11204_v12  ;;  %v5149_v28 = vpop.f32.mrb[109].mxu1  ;;  %v5634_v35 = vmul.f32 0.5, %v5528_v50  ;;  %v11211_v12 = vld [vmem:[#allocation64_spill] sm:$0xff] }
 0x613   : > { %v5823_v51 = vadd.f32 1.0, %v7785_v20  ;;  %6243 = vmatmul.mubr.f32.gmra.mrb[98].mxu0 %v5886_v40 }
 0x614   : > { %7790 = verf.f32 %v5698_v38  ;;  %v5533_v2 = vadd.f32 %v7247_v16, %v10430_v57  ;;  %6247 = vmatprep.mubr.f32.mxu0 %v7868_v11 }
 0x615   : > { %v5887_v32 = vmul.f32 %v5823_v51, %v5631_v22  ;;  %v5152_v47 = vpop.f32.mrb[110].mxu1 }
 0x616   : > { %v7787_v31 = vpop.eup %7786  ;;  %v5699_v0 = vmul.f32 0.70710677, %v5533_v2  ;;  %v7248_v56 = vadd.f32 %v5152_v47, %v11205_v30  ;;  %v5154_v39 = vpop.f32.mrb[111].mxu1  ;;  %v5635_v7 = vmul.f32 0.5, %v5533_v2 }
 0x617   : > { %v5824_v13 = vadd.f32 1.0, %v7787_v31  ;;  %6248 = vmatmul.mubr.f32.gmra.mrb[100].mxu0 %v5887_v32  ;;  %v7873_v32 = vld [vmem:[%s8062_s14 + $0x1b8] sm:$0xff] }
 0x618   : > { %7792 = verf.f32 %v5699_v0  ;;  %v5538_v52 = vadd.f32 %v7248_v56, %v11206_v29  ;;  %6252 = vmatprep.mubr.f32.mxu0 %v7869_v41  ;;  %v11212_v56 = vld [vmem:[#allocation65_spill] sm:$0xff] }
 0x619   : > { %v5888_v57 = vmul.f32 %v5824_v13, %v5632_v3  ;;  %v5157_v61 = vpop.f32.mrb[112].mxu1 }
 0x61a   : > { %v7789_v19 = vpop.eup %7788  ;;  %v5700_v33 = vmul.f32 0.70710677, %v5538_v52  ;;  %v7249_v25 = vadd.f32 %v5157_v61, %v11207_v43  ;;  %v5159_v21 = vpop.f32.mrb[113].mxu1  ;;  %v5636_v51 = vmul.f32 0.5, %v5538_v52 }
 0x61b   : > { %v5825_v54 = vadd.f32 1.0, %v7789_v19  ;;  %6253 = vmatmul.mubr.f32.gmra.mrb[102].mxu0 %v5888_v57  ;;  %v7874_v57 = vld [vmem:[%s8062_s14 + $0x1c0] sm:$0xff] }
 0x61c   : > { %7794 = verf.f32 %v5700_v33  ;;  %v5543_v6 = vadd.f32 %v7249_v25, %v10441_v62  ;;  %6257 = vmatprep.mubr.f32.mxu0 %v7870_v23  ;;  %v11213_v25 = vld [vmem:[#allocation66_spill] sm:$0xff] }
 0x61d   : > { %v5889_v1 = vmul.f32 %v5825_v54, %v5633_v8  ;;  %v5162_v9 = vpop.f32.mrb[114].mxu1 }
 0x61e   : > { %v7791_v45 = vpop.eup %7790  ;;  %v5701_v36 = vmul.f32 0.70710677, %v5543_v6  ;;  %v7250_v27 = vadd.f32 %v5162_v9, %v11208_v63  ;;  %v5164_v53 = vpop.f32.mrb[115].mxu1  ;;  %v5637_v29 = vmul.f32 0.5, %v5543_v6  ;;  %v11214_v9 = vld [vmem:[#allocation118_spill] sm:$0xff] }
 0x61f   : > { %v5826_v18 = vadd.f32 1.0, %v7791_v45  ;;  %6258 = vmatmul.mubr.f32.gmra.mrb[104].mxu0 %v5889_v1  ;;  %v7875_v45 = vld [vmem:[%s8062_s14 + $0x1c8] sm:$0xff] }
 0x620   : > { %7796 = verf.f32 %v5701_v36  ;;  %v5548_v60 = vadd.f32 %v7250_v27, %v11209_v24  ;;  %6262 = vmatprep.mubr.f32.mxu0 %v7871_v37 }
 0x621   : > { %v5890_v62 = vmul.f32 %v5826_v18, %v5634_v35  ;;  %v5167_v5 = vpop.f32.mrb[116].mxu1  ;;  %v11215_v35 = vld [vmem:[#allocation67_spill] sm:$0xff] }
 0x622   : > { %v7793_v59 = vpop.eup %7792  ;;  %v5702_v10 = vmul.f32 0.70710677, %v5548_v60  ;;  %v7251_v4 = vadd.f32 %v5167_v5, %v11210_v55  ;;  %v5169_v58 = vpop.f32.mrb[117].mxu1  ;;  %v5638_v6 = vmul.f32 0.5, %v5548_v60 }
 0x623   : > { %v5999_v42 = vpop.f32.mrb[0].mxu0  ;;  %v5827_v49 = vadd.f32 1.0, %v7793_v59  ;;  %6263 = vmatmul.mubr.f32.gmra.mrb[106].mxu0 %v5890_v62 }
 0x624   : > { %6318 = vst [vmem:[%s10712_s19] sm:$0xff] %v5999_v42  ;;  %v6001_v34 = vpop.f32.mrb[1].mxu0  ;;  %7798 = verf.f32 %v5702_v10  ;;  %v5553_v50 = vadd.f32 %v7251_v4, %v10447_v15  ;;  %6267 = vmatprep.mubr.f32.mxu0 %v7872_v17  ;;  %v7876_v10 = vld [vmem:[%s8062_s14 + $0x1d0] sm:$0xff] }
 0x625   : > { %v5891_v40 = vmul.f32 %v5827_v49, %v5635_v7  ;;  %v5172_v14 = vpop.f32.mrb[118].mxu1  ;;  %v11216_v7 = vld [vmem:[#allocation68_spill] sm:$0xff] }
 0x626   : > { %v7795_v20 = vpop.eup %7794  ;;  %v5703_v38 = vmul.f32 0.70710677, %v5553_v50  ;;  %v7252_v16 = vadd.f32 %v5172_v14, %v11211_v12  ;;  %v5174_v28 = vpop.f32.mrb[119].mxu1  ;;  %v5639_v60 = vmul.f32 0.5, %v5553_v50 }
 0x627   : > { %v6004_v22 = vpop.f32.mrb[2].mxu0  ;;  %v5828_v2 = vadd.f32 1.0, %v7795_v20  ;;  %6268 = vmatmul.mubr.f32.gmra.mrb[108].mxu0 %v5891_v40  ;;  %v7877_v20 = vld [vmem:[%s8062_s14 + $0x1d8] sm:$0xff] }
 0x628   : > { %6319 = vst [vmem:[%s10712_s19 + $0x8] sm:$0xff] %v6004_v22  ;;  %v6006_v11 = vpop.f32.mrb[3].mxu0  ;;  %7800 = verf.f32 %v5703_v38  ;;  %v5558_v15 = vadd.f32 %v7252_v16, %v10445_v46  ;;  %6272 = vmatprep.mubr.f32.mxu0 %v7873_v32 }
 0x629   : > { %v5892_v47 = vmul.f32 %v5828_v2, %v5636_v51  ;;  %v5177_v31 = vpop.f32.mrb[120].mxu1  ;;  %v7878_v11 = vld [vmem:[%s8062_s14 + $0x1e0] sm:$0xff] }
 0x62a   : > { %v7797_v0 = vpop.eup %7796  ;;  %v5704_v30 = vmul.f32 0.70710677, %v5558_v15  ;;  %v7253_v39 = vadd.f32 %v5177_v31, %v11212_v56  ;;  %v5179_v3 = vpop.f32.mrb[121].mxu1  ;;  %v5640_v50 = vmul.f32 0.5, %v5558_v15 }
 0x62b   : > { %v6009_v13 = vpop.f32.mrb[4].mxu0  ;;  %v5829_v52 = vadd.f32 1.0, %v7797_v0  ;;  %6273 = vmatmul.mubr.f32.gmra.mrb[110].mxu0 %v5892_v47 }
 0x62c   : > { %6320 = vst [vmem:[%s10712_s19 + $0x10] sm:$0xff] %v6009_v13  ;;  %v6011_v41 = vpop.f32.mrb[5].mxu0  ;;  %7802 = verf.f32 %v5704_v30  ;;  %v5563_v46 = vadd.f32 %v7253_v39, %v10458_v48  ;;  %6277 = vmatprep.mubr.f32.mxu0 %v7874_v57  ;;  %v7879_v30 = vld [vmem:[%s8062_s14 + $0x1e8] sm:$0xff] }
 0x62d   : > { %v5893_v61 = vmul.f32 %v5829_v52, %v5637_v29  ;;  %v5182_v19 = vpop.f32.mrb[122].mxu1  ;;  %v7880_v41 = vld [vmem:[%s8062_s14 + $0x1f0] sm:$0xff] }
 0x62e   : > { %v7799_v33 = vpop.eup %7798  ;;  %v5705_v43 = vmul.f32 0.70710677, %v5563_v46  ;;  %v7254_v21 = vadd.f32 %v5182_v19, %v11213_v25  ;;  %v5184_v8 = vpop.f32.mrb[123].mxu1  ;;  %v5641_v22 = vmul.f32 0.5, %v5563_v46  ;;  %v7881_v25 = vld [vmem:[%s8062_s14 + $0x1f8] sm:$0xff]  ;;  %s6472_s14 = sshll.u32 %s8007_s25, 13 }
 0x62f   : > { %v6014_v54 = vpop.f32.mrb[6].mxu0  ;;  %v5830_v23 = vadd.f32 1.0, %v7799_v33  ;;  %6278 = vmatmul.mubr.f32.gmra.mrb[112].mxu0 %v5893_v61  ;;  %s10803_s29 = scalar_lea.hbm %s10857_s6, %s6472_s14  ;;  %s7882_s25 = scalar_lea.vmem %s10805_s20, 8192 }
 0x630   : > { %6321 = vst [vmem:[%s10712_s19 + $0x18] sm:$0xff] %v6014_v54  ;;  %v6016_v1 = vpop.f32.mrb[7].mxu0  ;;  %7804 = verf.f32 %v5705_v43  ;;  %v5568_v48 = vadd.f32 %v7254_v21, %v11214_v9  ;;  %6282 = vmatprep.mubr.f32.mxu0 %v7875_v45  ;;  %p7883_p11 = scmp.ne.s32.totalorder %s10805_s20, %s7882_s25  ;;  %p7890_p1 = scmp.lt.s32.totalorder %s7888_s12, %s7882_s25 }
 0x631   : > { %v5894_v36 = vmul.f32 %v5830_v23, %v5638_v6  ;;  %v5187_v63 = vpop.f32.mrb[124].mxu1 }
 0x632   : > { %v7801_v27 = vpop.eup %7800  ;;  %v5706_v53 = vmul.f32 0.70710677, %v5568_v48  ;;  %v7255_v18 = vadd.f32 %v5187_v63, %v11215_v35  ;;  %v5189_v24 = vpop.f32.mrb[125].mxu1  ;;  %v5642_v47 = vmul.f32 0.5, %v5568_v48  ;;  %p7884_p12 = pnand %p7883_p11, %p8024_p5  ;;  %p7891_p2 = por %p7890_p1, %p7889_p0 }
 0x633   : > { %v6019_v37 = vpop.f32.mrb[8].mxu0  ;;  %v5831_v62 = vadd.f32 1.0, %v7801_v27  ;;  %6283 = vmatmul.mubr.f32.gmra.mrb[114].mxu0 %v5894_v36 }
 0x634   : > { %6322 = vst [vmem:[%s10712_s19 + $0x20] sm:$0xff] %v6019_v37  ;;  %v6021_v5 = vpop.f32.mrb[9].mxu0  ;;  %7806 = verf.f32 %v5706_v53  ;;  %v5573_v59 = vadd.f32 %v7255_v18, %v10610_v44  ;;  %6287 = vmatprep.mubr.f32.mxu0 %v7876_v10  ;;  %p7885_p13 = pneg %p7884_p12 }
 0x635   : > { %v5895_v55 = vmul.f32 %v5831_v62, %v5639_v60  ;;  %v5192_v4 = vpop.f32.mrb[126].mxu1 }
 0x636   : > { %v7803_v58 = vpop.eup %7802  ;;  %v5707_v42 = vmul.f32 0.70710677, %v5573_v59  ;;  %v7256_v49 = vadd.f32 %v5192_v4, %v11216_v7  ;;  %v5194_v34 = vpop.f32.mrb[127].mxu1  ;;  %v5643_v13 = vmul.f32 0.5, %v5573_v59  ;;  %p7892_p3 = pnand %p7891_p2, %p7885_p13 }
 0x637   : > { %v6024_v17 = vpop.f32.mrb[10].mxu0  ;;  %v5832_v40 = vadd.f32 1.0, %v7803_v58  ;;  %6288 = vmatmul.mubr.f32.gmra.mrb[116].mxu0 %v5895_v55 }
 0x638   : > { %6323 = vst [vmem:[%s10712_s19 + $0x28] sm:$0xff] %v6024_v17  ;;  %v6026_v14 = vpop.f32.mrb[11].mxu0  ;;  %7808 = verf.f32 %v5707_v42  ;;  %v5578_v44 = vadd.f32 %v7256_v49, %v10608_v26  ;;  %6292 = vmatprep.mubr.f32.mxu0 %v7877_v20 }
 0x639   : > { %v5896_v38 = vmul.f32 %v5832_v40, %v5640_v50 }
 0x63a   : > { %v7805_v12 = vpop.eup %7804  ;;  %v5708_v16 = vmul.f32 0.70710677, %v5578_v44  ;;  %v6029_v28 = vpop.f32.mrb[12].mxu0  ;;  %v5644_v19 = vmul.f32 0.5, %v5578_v44 }
 0x63b   : > { %v5833_v51 = vadd.f32 1.0, %v7805_v12  ;;  %6324 = vst [vmem:[%s10712_s19 + $0x30] sm:$0xff] %v6029_v28  ;;  %v6031_v2 = vpop.f32.mrb[13].mxu0  ;;  %6293 = vmatmul.mubr.f32.gmra.mrb[118].mxu0 %v5896_v38 }
 0x63c   : > { %7810 = verf.f32 %v5708_v16  ;;  %6297 = vmatprep.mubr.f32.mxu0 %v7878_v11 }
 0x63d   : > { %v5897_v15 = vmul.f32 %v5833_v51, %v5641_v22 }
 0x63e   : > { %v7807_v32 = vpop.eup %7806  ;;  %v6034_v26 = vpop.f32.mrb[14].mxu0 }
 0x63f   : > { %v5834_v31 = vadd.f32 1.0, %v7807_v32  ;;  %6325 = vst [vmem:[%s10712_s19 + $0x38] sm:$0xff] %v6034_v26  ;;  %v6036_v0 = vpop.f32.mrb[15].mxu0  ;;  %6298 = vmatmul.mubr.f32.gmra.mrb[120].mxu0 %v5897_v15 }
 0x640   : > { %6302 = vmatprep.mubr.f32.mxu0 %v7879_v30 }
 0x641   : > { %v5898_v56 = vmul.f32 %v5834_v31, %v5642_v47 }
 0x642   : > { %v7809_v39 = vpop.eup %7808  ;;  %v6039_v3 = vpop.f32.mrb[16].mxu0 }
 0x643   : > { %v5835_v29 = vadd.f32 1.0, %v7809_v39  ;;  %6326 = vst [vmem:[%s10712_s19 + $0x40] sm:$0xff] %v6039_v3  ;;  %v6041_v52 = vpop.f32.mrb[17].mxu0  ;;  %6303 = vmatmul.mubr.f32.gmra.mrb[122].mxu0 %v5898_v56 }
 0x644   : > { %6307 = vmatprep.mubr.f32.mxu0 %v7880_v41 }
 0x645   : > { %v5899_v46 = vmul.f32 %v5835_v29, %v5643_v13 }
 0x646   : > { %v7811_v57 = vpop.eup %7810  ;;  %v6044_v61 = vpop.f32.mrb[18].mxu0 }
 0x647   : > { %v5836_v33 = vadd.f32 1.0, %v7811_v57  ;;  %6327 = vst [vmem:[%s10712_s19 + $0x48] sm:$0xff] %v6044_v61  ;;  %v6046_v43 = vpop.f32.mrb[19].mxu0  ;;  %6308 = vmatmul.mubr.f32.gmra.mrb[124].mxu0 %v5899_v46 }
 0x648   : > { %6312 = vmatprep.mubr.f32.mxu0 %v7881_v25 }
 0x649   : > { %v5900_v21 = vmul.f32 %v5836_v33, %v5644_v19 }
 0x64a   : > { %v6049_v8 = vpop.f32.mrb[20].mxu0 }
 0x64b   : > { %6328 = vst [vmem:[%s10712_s19 + $0x50] sm:$0xff] %v6049_v8  ;;  %v6051_v54 = vpop.f32.mrb[21].mxu0  ;;  %6313 = vmatmul.mubr.f32.gmra.mrb[126].mxu0 %v5900_v21 }
 0x64e   : > { %v6054_v6 = vpop.f32.mrb[22].mxu0 }
 0x64f   : > { %6329 = vst [vmem:[%s10712_s19 + $0x58] sm:$0xff] %v6054_v6  ;;  %v6056_v23 = vpop.f32.mrb[23].mxu0 }
 0x652   : > { %v6059_v1 = vpop.f32.mrb[24].mxu0 }
 0x653   : > { %6330 = vst [vmem:[%s10712_s19 + $0x60] sm:$0xff] %v6059_v1  ;;  %v6061_v9 = vpop.f32.mrb[25].mxu0 }
 0x656   : > { %v6064_v48 = vpop.f32.mrb[26].mxu0 }
 0x657   : > { %6331 = vst [vmem:[%s10712_s19 + $0x68] sm:$0xff] %v6064_v48  ;;  %v6066_v45 = vpop.f32.mrb[27].mxu0 }
 0x65a   : > { %v6069_v36 = vpop.f32.mrb[28].mxu0 }
 0x65b   : > { %6332 = vst [vmem:[%s10712_s19 + $0x70] sm:$0xff] %v6069_v36  ;;  %v6071_v63 = vpop.f32.mrb[29].mxu0 }
 0x65e   : > { %v6074_v27 = vpop.f32.mrb[30].mxu0 }
 0x65f   : > { %6333 = vst [vmem:[%s10712_s19 + $0x78] sm:$0xff] %v6074_v27  ;;  %v6076_v53 = vpop.f32.mrb[31].mxu0 }
 0x662   : > { %v6079_v35 = vpop.f32.mrb[32].mxu0 }
 0x663   : > { %6334 = vst [vmem:[%s10712_s19 + $0x80] sm:$0xff] %v6079_v35  ;;  %v6081_v18 = vpop.f32.mrb[33].mxu0 }
 0x666   : > { %v6084_v24 = vpop.f32.mrb[34].mxu0 }
 0x667   : > { %6335 = vst [vmem:[%s10712_s19 + $0x88] sm:$0xff] %v6084_v24  ;;  %v6086_v37 = vpop.f32.mrb[35].mxu0 }
 0x66a   : > { %v6089_v60 = vpop.f32.mrb[36].mxu0 }
 0x66b   : > { %6336 = vst [vmem:[%s10712_s19 + $0x90] sm:$0xff] %v6089_v60  ;;  %v6091_v62 = vpop.f32.mrb[37].mxu0 }
 0x66e   : > { %v6094_v5 = vpop.f32.mrb[38].mxu0 }
 0x66f   : > { %6337 = vst [vmem:[%s10712_s19 + $0x98] sm:$0xff] %v6094_v5  ;;  %v6096_v59 = vpop.f32.mrb[39].mxu0 }
 0x672   : > { %v6099_v10 = vpop.f32.mrb[40].mxu0 }
 0x673   : > { %6338 = vst [vmem:[%s10712_s19 + $0xa0] sm:$0xff] %v6099_v10  ;;  %v6101_v55 = vpop.f32.mrb[41].mxu0 }
 0x676   : > { %v6104_v4 = vpop.f32.mrb[42].mxu0 }
 0x677   : > { %6339 = vst [vmem:[%s10712_s19 + $0xa8] sm:$0xff] %v6104_v4  ;;  %v6106_v58 = vpop.f32.mrb[43].mxu0 }
 0x67a   : > { %v6109_v42 = vpop.f32.mrb[44].mxu0 }
 0x67b   : > { %6340 = vst [vmem:[%s10712_s19 + $0xb0] sm:$0xff] %v6109_v42  ;;  %v6111_v7 = vpop.f32.mrb[45].mxu0 }
 0x67e   : > { %v6114_v49 = vpop.f32.mrb[46].mxu0 }
 0x67f   : > { %6341 = vst [vmem:[%s10712_s19 + $0xb8] sm:$0xff] %v6114_v49  ;;  %v6116_v34 = vpop.f32.mrb[47].mxu0 }
 0x682   : > { %v6119_v17 = vpop.f32.mrb[48].mxu0 }
 0x683   : > { %6342 = vst [vmem:[%s10712_s19 + $0xc0] sm:$0xff] %v6119_v17  ;;  %v6121_v50 = vpop.f32.mrb[49].mxu0 }
 0x686   : > { %v6124_v40 = vpop.f32.mrb[50].mxu0 }
 0x687   : > { %6343 = vst [vmem:[%s10712_s19 + $0xc8] sm:$0xff] %v6124_v40  ;;  %v6126_v14 = vpop.f32.mrb[51].mxu0 }
 0x68a   : > { %v6129_v44 = vpop.f32.mrb[52].mxu0 }
 0x68b   : > { %6344 = vst [vmem:[%s10712_s19 + $0xd0] sm:$0xff] %v6129_v44  ;;  %v6131_v20 = vpop.f32.mrb[53].mxu0 }
 0x68e   : > { %v6134_v38 = vpop.f32.mrb[54].mxu0 }
 0x68f   : > { %6345 = vst [vmem:[%s10712_s19 + $0xd8] sm:$0xff] %v6134_v38  ;;  %v6136_v12 = vpop.f32.mrb[55].mxu0 }
 0x692   : > { %v6139_v16 = vpop.f32.mrb[56].mxu0 }
 0x693   : > { %6346 = vst [vmem:[%s10712_s19 + $0xe0] sm:$0xff] %v6139_v16  ;;  %v6141_v28 = vpop.f32.mrb[57].mxu0 }
 0x696   : > { %v6144_v22 = vpop.f32.mrb[58].mxu0 }
 0x697   : > { %6347 = vst [vmem:[%s10712_s19 + $0xe8] sm:$0xff] %v6144_v22  ;;  %v6146_v51 = vpop.f32.mrb[59].mxu0 }
 0x69a   : > { %v6149_v2 = vpop.f32.mrb[60].mxu0 }
 0x69b   : > { %6348 = vst [vmem:[%s10712_s19 + $0xf0] sm:$0xff] %v6149_v2  ;;  %v6151_v11 = vpop.f32.mrb[61].mxu0 }
 0x69e   : > { %v6154_v15 = vpop.f32.mrb[62].mxu0 }
 0x69f   : > { %6349 = vst [vmem:[%s10712_s19 + $0xf8] sm:$0xff] %v6154_v15  ;;  %v6156_v32 = vpop.f32.mrb[63].mxu0 }
 0x6a2   : > { %v6159_v26 = vpop.f32.mrb[64].mxu0 }
 0x6a3   : > { %6350 = vst [vmem:[%s10712_s19 + $0x100] sm:$0xff] %v6159_v26  ;;  %v6161_v47 = vpop.f32.mrb[65].mxu0 }
 0x6a6   : > { %v6164_v31 = vpop.f32.mrb[66].mxu0 }
 0x6a7   : > { %6351 = vst [vmem:[%s10712_s19 + $0x108] sm:$0xff] %v6164_v31  ;;  %v6166_v0 = vpop.f32.mrb[67].mxu0 }
 0x6aa   : > { %v6169_v30 = vpop.f32.mrb[68].mxu0 }
 0x6ab   : > { %6352 = vst [vmem:[%s10712_s19 + $0x110] sm:$0xff] %v6169_v30  ;;  %v6171_v56 = vpop.f32.mrb[69].mxu0 }
 0x6ae   : > { %v6174_v39 = vpop.f32.mrb[70].mxu0 }
 0x6af   : > { %6353 = vst [vmem:[%s10712_s19 + $0x118] sm:$0xff] %v6174_v39  ;;  %v6176_v3 = vpop.f32.mrb[71].mxu0 }
 0x6b2   : > { %v6179_v13 = vpop.f32.mrb[72].mxu0 }
 0x6b3   : > { %6354 = vst [vmem:[%s10712_s19 + $0x120] sm:$0xff] %v6179_v13  ;;  %v6181_v29 = vpop.f32.mrb[73].mxu0 }
 0x6b6   : > { %v6184_v52 = vpop.f32.mrb[74].mxu0 }
 0x6b7   : > { %6355 = vst [vmem:[%s10712_s19 + $0x128] sm:$0xff] %v6184_v52  ;;  %v6186_v41 = vpop.f32.mrb[75].mxu0 }
 0x6ba   : > { %v6189_v46 = vpop.f32.mrb[76].mxu0 }
 0x6bb   : > { %6356 = vst [vmem:[%s10712_s19 + $0x130] sm:$0xff] %v6189_v46  ;;  %v6191_v57 = vpop.f32.mrb[77].mxu0 }
 0x6be   : > { %v6194_v61 = vpop.f32.mrb[78].mxu0 }
 0x6bf   : > { %6357 = vst [vmem:[%s10712_s19 + $0x138] sm:$0xff] %v6194_v61  ;;  %v6196_v19 = vpop.f32.mrb[79].mxu0 }
 0x6c2   : > { %v6199_v33 = vpop.f32.mrb[80].mxu0 }
 0x6c3   : > { %6358 = vst [vmem:[%s10712_s19 + $0x140] sm:$0xff] %v6199_v33  ;;  %v6201_v43 = vpop.f32.mrb[81].mxu0 }
 0x6c6   : > { %v6204_v25 = vpop.f32.mrb[82].mxu0 }
 0x6c7   : > { %6359 = vst [vmem:[%s10712_s19 + $0x148] sm:$0xff] %v6204_v25  ;;  %v6206_v21 = vpop.f32.mrb[83].mxu0 }
 0x6ca   : > { %v6209_v8 = vpop.f32.mrb[84].mxu0 }
 0x6cb   : > { %6360 = vst [vmem:[%s10712_s19 + $0x150] sm:$0xff] %v6209_v8  ;;  %v6211_v54 = vpop.f32.mrb[85].mxu0 }
 0x6ce   : > { %v6214_v6 = vpop.f32.mrb[86].mxu0 }
 0x6cf   : > { %6361 = vst [vmem:[%s10712_s19 + $0x158] sm:$0xff] %v6214_v6  ;;  %v6216_v23 = vpop.f32.mrb[87].mxu0 }
 0x6d2   : > { %v6219_v1 = vpop.f32.mrb[88].mxu0 }
 0x6d3   : > { %6362 = vst [vmem:[%s10712_s19 + $0x160] sm:$0xff] %v6219_v1  ;;  %v6221_v9 = vpop.f32.mrb[89].mxu0 }
 0x6d6   : > { %v6224_v48 = vpop.f32.mrb[90].mxu0 }
 0x6d7   : > { %6363 = vst [vmem:[%s10712_s19 + $0x168] sm:$0xff] %v6224_v48  ;;  %v6226_v45 = vpop.f32.mrb[91].mxu0 }
 0x6da   : > { %v6229_v36 = vpop.f32.mrb[92].mxu0 }
 0x6db   : > { %6364 = vst [vmem:[%s10712_s19 + $0x170] sm:$0xff] %v6229_v36  ;;  %v6231_v63 = vpop.f32.mrb[93].mxu0 }
 0x6de   : > { %v6234_v27 = vpop.f32.mrb[94].mxu0 }
 0x6df   : > { %6365 = vst [vmem:[%s10712_s19 + $0x178] sm:$0xff] %v6234_v27  ;;  %v6236_v53 = vpop.f32.mrb[95].mxu0 }
 0x6e2   : > { %v6239_v35 = vpop.f32.mrb[96].mxu0 }
 0x6e3   : > { %6366 = vst [vmem:[%s10712_s19 + $0x180] sm:$0xff] %v6239_v35  ;;  %v6241_v18 = vpop.f32.mrb[97].mxu0 }
 0x6e6   : > { %v6244_v24 = vpop.f32.mrb[98].mxu0 }
 0x6e7   : > { %6367 = vst [vmem:[%s10712_s19 + $0x188] sm:$0xff] %v6244_v24  ;;  %v6246_v37 = vpop.f32.mrb[99].mxu0 }
 0x6ea   : > { %v6249_v60 = vpop.f32.mrb[100].mxu0 }
 0x6eb   : > { %6368 = vst [vmem:[%s10712_s19 + $0x190] sm:$0xff] %v6249_v60  ;;  %v6251_v62 = vpop.f32.mrb[101].mxu0 }
 0x6ee   : > { %v6254_v5 = vpop.f32.mrb[102].mxu0 }
 0x6ef   : > { %6369 = vst [vmem:[%s10712_s19 + $0x198] sm:$0xff] %v6254_v5  ;;  %v6256_v59 = vpop.f32.mrb[103].mxu0 }
 0x6f2   : > { %v6259_v10 = vpop.f32.mrb[104].mxu0 }
 0x6f3   : > { %6370 = vst [vmem:[%s10712_s19 + $0x1a0] sm:$0xff] %v6259_v10  ;;  %v6261_v55 = vpop.f32.mrb[105].mxu0 }
 0x6f6   : > { %v6264_v4 = vpop.f32.mrb[106].mxu0 }
 0x6f7   : > { %6371 = vst [vmem:[%s10712_s19 + $0x1a8] sm:$0xff] %v6264_v4  ;;  %v6266_v58 = vpop.f32.mrb[107].mxu0 }
 0x6fa   : > { %v6269_v42 = vpop.f32.mrb[108].mxu0 }
 0x6fb   : > { %6372 = vst [vmem:[%s10712_s19 + $0x1b0] sm:$0xff] %v6269_v42  ;;  %v6271_v7 = vpop.f32.mrb[109].mxu0 }
 0x6fe   : > { %v6274_v49 = vpop.f32.mrb[110].mxu0 }
 0x6ff   : > { %6373 = vst [vmem:[%s10712_s19 + $0x1b8] sm:$0xff] %v6274_v49  ;;  %v6276_v34 = vpop.f32.mrb[111].mxu0 }
 0x702   : > { %v6279_v17 = vpop.f32.mrb[112].mxu0 }
 0x703   : > { %6374 = vst [vmem:[%s10712_s19 + $0x1c0] sm:$0xff] %v6279_v17  ;;  %v6281_v50 = vpop.f32.mrb[113].mxu0 }
 0x706   : > { %v6284_v40 = vpop.f32.mrb[114].mxu0 }
 0x707   : > { %6375 = vst [vmem:[%s10712_s19 + $0x1c8] sm:$0xff] %v6284_v40  ;;  %v6286_v14 = vpop.f32.mrb[115].mxu0 }
 0x70a   : > { %v6289_v44 = vpop.f32.mrb[116].mxu0 }
 0x70b   : > { %6376 = vst [vmem:[%s10712_s19 + $0x1d0] sm:$0xff] %v6289_v44  ;;  %v6291_v20 = vpop.f32.mrb[117].mxu0 }
 0x70e   : > { %v6294_v38 = vpop.f32.mrb[118].mxu0 }
 0x70f   : > { %6377 = vst [vmem:[%s10712_s19 + $0x1d8] sm:$0xff] %v6294_v38  ;;  %v6296_v12 = vpop.f32.mrb[119].mxu0 }
 0x712   : > { %v6299_v16 = vpop.f32.mrb[120].mxu0 }
 0x713   : > { %6378 = vst [vmem:[%s10712_s19 + $0x1e0] sm:$0xff] %v6299_v16  ;;  %v6301_v28 = vpop.f32.mrb[121].mxu0 }
 0x716   : > { %v6304_v22 = vpop.f32.mrb[122].mxu0 }
 0x717   : > { %6379 = vst [vmem:[%s10712_s19 + $0x1e8] sm:$0xff] %v6304_v22  ;;  %v6306_v51 = vpop.f32.mrb[123].mxu0 }
 0x71a   : > { %v6309_v2 = vpop.f32.mrb[124].mxu0 }
 0x71b   : > { %6380 = vst [vmem:[%s10712_s19 + $0x1f0] sm:$0xff] %v6309_v2  ;;  %v6311_v11 = vpop.f32.mrb[125].mxu0 }
 0x71e   : > { %v6314_v15 = vpop.f32.mrb[126].mxu0 }
 0x71f   : > { %6381 = vst [vmem:[%s10712_s19 + $0x1f8] sm:$0xff] %v6314_v15  ;;  %v6316_v32 = vpop.f32.mrb[127].mxu0 }
 0x720   : > { %7895 = shalt.err (!%p7892_p3)
}
 0x721   : > { %s7896_s13 = scalar_lea.hbm %s10803_s29, 8192  ;;  %s7900_s17 = scalar_lea.hbm %s10857_s6, 16384 }
 0x722   : > { %p7897_p4 = scmp.ne.s32.totalorder %s10803_s29, %s7896_s13  ;;  %p7901_p9 = scmp.lt.u32.totalorder %s10803_s29, %s10857_s6 }
 0x723   : > { %p7902_p10 = scmp.lt.u32.totalorder %s7900_s17, %s7896_s13  ;;  %p7904_p12 = scmp.lt.u32.totalorder %s7896_s13, %s10803_s29 }
 0x724   : > { %p7898_p7 = pnand %p7897_p4, %p8024_p5 }
 0x725   : > { %p7903_p11 = por %p7902_p10, %p7901_p9 }
 0x726   : > { %p7899_p8 = pneg %p7898_p7 }
 0x727   : > { %p7905_p13 = por %p7904_p12, %p7903_p11 }
 0x729   : > { %p7906_p0 = pnand %p7905_p13, %p7899_p8 }
 0x72b   : > { %7909 = shalt.err (!%p7906_p0)
}
 0x72c   : > { %s7949_s14 = smov 128   ;;  %s7950_s26 = smov 8  }
 0x72d   : > { %7513 = dma.vmem_to_hbm [thread:$0]  (%p8024_p5), %s10805_s20, 8192, %s10803_s29, %s10810_s9, %s7949_s14, %s7949_s14, %s7950_s26  }
 0x72e PF: > { %p7519_p1 = scmp.ge.s32.totalorder %s7944_s24, 2  ;;  %s6411_s28 = sand.u32 1, %s7932_s21  }
 0x72f   : > { %s6412_s25 = scalar_lea.sflag [#allocation5], %s6411_s28 }
 0x730   : > { %p7516_p2 = pnand %p7519_p1, %p8028_p6 }
 0x732   : > { %7927 = dma.done.wait (!%p7516_p2), %s6412_s25, 8192  }
 0x733   : > { %7929 = vsyncadd (!%p7516_p2), %s6412_s25, 4294959104  ;;  %p16_p3 = scmp.ge.s32.totalorder %s8011_s27, 4   ;;  %s11217_s21 = smov %s7936_s22 }
 0x734   : > { %s11218_s22 = smov %s7940_s23  ;;  %s11219_s23 = smov %s8022_s30 }
 0x735   : > { %s11220_s24 = smov %s8011_s27  ;;  %18 = sbr.rel (!%p16_p3) target bundleno = 3 (0x3), region = 82 }
 0x73c   :  { %6417 = vsyncpa [#allocation5], 1 }
 0x73d   :  { %6419 = vsyncpa [#allocation5 + $0x1], 1 }

</bundles_post_ra>
